<compile_context>
chip_gen: v7x
topology: tpu7x:2x2x1
jax: 0.10.0
libtpu: 0.0.40
codegen_flags: <defaults>
</compile_context>

<pallas_src>
import jax
import jax.numpy as jnp
from jax import lax
from jax.experimental import pallas as pl
from jax.experimental.pallas import tpu as pltpu


def _sigmoid(x):
    # sigmoid(x) == 0.5 * tanh(x/2) + 0.5  (mathematically exact, single EUP op)
    return 0.5 * jnp.tanh(0.5 * x) + 0.5


def lstm_kernel(x_ref, w_ih0_ref, w_hh0_ref, b0_ref,
                w_cat1_ref, b1_ref, w_fc_ref, b_fc_ref,
                out_ref, xproj_ref, h1hist_ref):
    S, B, E = x_ref.shape
    H = w_hh0_ref.shape[0]

    # ---- time-independent layer-0 input projection, all timesteps at once ----
    x_flat = x_ref[...].reshape(S * B, E)                              # (S*B, E)
    xproj = (jnp.dot(x_flat, w_ih0_ref[...],
                     preferred_element_type=jnp.float32)
             + b0_ref[...])                                            # (S*B, 4H)
    xproj_ref[...] = xproj.reshape(S, B, 4 * H)

    # Hoist the layer-1 bias broadcast out of the unrolled loop.
    b1b = jnp.broadcast_to(b1_ref[...], (B, 4 * H))

    def gates_to_state(g, c_prev):
        # PyTorch gate layout along the last axis: [i, f, g, o]
        i = _sigmoid(g[:, 0 * H:1 * H])
        f = _sigmoid(g[:, 1 * H:2 * H])
        gg = jnp.tanh(g[:, 2 * H:3 * H])
        o = _sigmoid(g[:, 3 * H:4 * H])
        c_new = f * c_prev + i * gg
        h_new = o * jnp.tanh(c_new)
        return h_new, c_new

    def step(t, carry):
        h0, c0, h1, c1 = carry
        # Layer 0: input projection precomputed; only the recurrent matmul remains.
        g0 = xproj_ref[t] + jnp.dot(h0, w_hh0_ref[...],
                                    preferred_element_type=jnp.float32)
        h0, c0 = gates_to_state(g0, c0)
        # Layer 1: fused [h0, h1] @ [W_ih1; W_hh1]  (single K=2H contraction).
        cat = jnp.concatenate([h0, h1], axis=-1)                       # (B, 2H)
        g1 = jnp.dot(cat, w_cat1_ref[...],
                     preferred_element_type=jnp.float32) + b1b
        h1, c1 = gates_to_state(g1, c1)
        h1hist_ref[t] = h1
        return h0, c0, h1, c1

    zeros = jnp.zeros((B, H), jnp.float32)
    lax.fori_loop(0, S, step, (zeros, zeros, zeros, zeros), unroll=True)

    # ---- deferred FC + softmax over all timesteps, lane-dense (O padded to 128) ----
    hist = h1hist_ref[...].reshape(S * B, H)
    logits = (jnp.dot(hist, w_fc_ref[...],
                      preferred_element_type=jnp.float32)
              + b_fc_ref[...])                                         # (S*B, O_pad)
    m = jnp.max(logits, axis=-1, keepdims=True)
    e = jnp.exp(logits - m)                     # padded columns: exp(-1e30-m) == 0
    denom = jnp.sum(e, axis=-1, keepdims=True)
    # Exact divide: one-shot epilogue, negligible cost, rows sum to 1 in f32.
    out_ref[...] = (e / denom).astype(out_ref.dtype)


@jax.jit
def lstm_forward(x, params):
    """x: (S, B, E) float32.  Returns (S, B, O) softmax probabilities."""
    S, B, E = x.shape
    H = params["w_hh0"].shape[0]
    O = params["w_fc"].shape[1]
    O_pad = max(128, ((O + 127) // 128) * 128)

    # Stack layer-1 weights so the kernel does one K=2H matmul per step.
    w_cat1 = jnp.concatenate([params["w_ih1"], params["w_hh1"]], axis=0)  # (2H, 4H)

    # Lane-dense FC: zero-pad weights, -1e30-pad bias so padded softmax columns are 0.
    w_fc_pad = jnp.zeros((H, O_pad), jnp.float32).at[:, :O].set(params["w_fc"])
    b_fc_pad = jnp.full((1, O_pad), -1e30, jnp.float32).at[:, :O].set(params["b_fc"])

    vmem = lambda: pl.BlockSpec(memory_space=pltpu.MemorySpace.VMEM)

    out_flat = pl.pallas_call(
        lstm_kernel,
        out_shape=jax.ShapeDtypeStruct((S * B, O_pad), jnp.float32),
        in_specs=[vmem() for _ in range(8)],
        out_specs=vmem(),
        scratch_shapes=[
            pltpu.VMEM((S, B, 4 * H), jnp.float32),   # hoisted input projection
            pltpu.VMEM((S, B, H), jnp.float32),       # h1 history for deferred FC
        ],
    )(x, params["w_ih0"], params["w_hh0"], params["b0"],
      w_cat1, params["b1"], w_fc_pad, b_fc_pad)

    return out_flat[:, :O].reshape(S, B, O)


def lstm_reference(x, params):
    """Pure-JAX reference (lax.scan) reproducing nn.LSTM + Linear + Softmax."""
    H = params["w_hh0"].shape[0]

    def cell(x_t, h, c, w_ih, w_hh, b):
        gates = x_t @ w_ih + h @ w_hh + b
        i = jax.nn.sigmoid(gates[:, 0 * H:1 * H])
        f = jax.nn.sigmoid(gates[:, 1 * H:2 * H])
        g = jnp.tanh(gates[:, 2 * H:3 * H])
        o = jax.nn.sigmoid(gates[:, 3 * H:4 * H])
        c_new = f * c + i * g
        h_new = o * jnp.tanh(c_new)
        return h_new, c_new

    B = x.shape[1]
    init = (jnp.zeros((B, H)), jnp.zeros((B, H)),
            jnp.zeros((B, H)), jnp.zeros((B, H)))

    def step(carry, x_t):
        h0, c0, h1, c1 = carry
        h0, c0 = cell(x_t, h0, c0, params["w_ih0"], params["w_hh0"], params["b0"])
        h1, c1 = cell(h0, h1, c1, params["w_ih1"], params["w_hh1"], params["b1"])
        return (h0, c0, h1, c1), h1

    _, hs = jax.lax.scan(step, init, x)
    logits = hs @ params["w_fc"] + params["b_fc"]
    return jax.nn.softmax(logits, axis=2)


def init_params(key, E, H, O):
    """Deterministic init mimicking PyTorch's U(-1/sqrt(H), 1/sqrt(H))."""
    k = 1.0 / jnp.sqrt(H)
    keys = jax.random.split(key, 10)
    u = lambda kk, shape: jax.random.uniform(kk, shape, jnp.float32, -k, k)
    return {
        # Pre-transposed to (in, 4H) so the kernel does x @ W with no transpose.
        "w_ih0": u(keys[0], (E, 4 * H)),
        "w_hh0": u(keys[1], (H, 4 * H)),
        "b0":    (u(keys[2], (1, 4 * H)) + u(keys[3], (1, 4 * H))),  # b_ih + b_hh
        "w_ih1": u(keys[4], (H, 4 * H)),
        "w_hh1": u(keys[5], (H, 4 * H)),
        "b1":    (u(keys[6], (1, 4 * H)) + u(keys[7], (1, 4 * H))),
        "w_fc":  u(keys[8], (H, O)),
        "b_fc":  u(keys[9], (1, O)),
    }


if __name__ == "__main__":
    # Small shapes consistent with the module (hidden_dim=128, 2 LSTM layers,
    # seq-major input, softmax over output_dim).
    S, B, E, H, O = 8, 8, 128, 128, 16

    key = jax.random.PRNGKey(0)
    kx, kp = jax.random.split(key)
    x = jax.random.normal(kx, (S, B, E), jnp.float32)
    params = init_params(kp, E, H, O)

    out = jax.block_until_ready(lstm_forward(x, params))
    ref = jax.block_until_ready(lstm_reference(x, params))

    assert out.shape == (S, B, O)
    # Loose-ish tolerance absorbs possible Mosaic-vs-XLA f32 matmul rounding differences.
    assert jnp.allclose(out, ref, atol=2e-3, rtol=2e-3)
    # Exact divide in the epilogue -> rows sum to 1 to f32 precision.
    assert jnp.allclose(jnp.sum(out, axis=2), 1.0, atol=1e-4)

    print("KERNEL_OK")
</pallas_src>

<mosaic_0001>
module attributes {stable_mosaic.version = 11 : i64} {
  func.func @lstm_kernel(%arg0: memref<8x8x128xf32, #tpu.memory_space<vmem>>, %arg1: memref<128x512xf32, #tpu.memory_space<vmem>>, %arg2: memref<128x512xf32, #tpu.memory_space<vmem>>, %arg3: memref<1x512xf32, #tpu.memory_space<vmem>>, %arg4: memref<256x512xf32, #tpu.memory_space<vmem>>, %arg5: memref<1x512xf32, #tpu.memory_space<vmem>>, %arg6: memref<128x128xf32, #tpu.memory_space<vmem>>, %arg7: memref<1x128xf32, #tpu.memory_space<vmem>>, %arg8: memref<64x128xf32, #tpu.memory_space<vmem>>, %arg9: memref<8x8x512xf32, #tpu.memory_space<vmem>>, %arg10: memref<8x8x128xf32, #tpu.memory_space<vmem>>) attributes {dimension_semantics = [], scalar_prefetch = 0 : i64, scratch_operands = 2 : i64, tpu.core_type = #tpu.core_type<tc>} {
    %c0 = arith.constant 0 : index
    %c0_0 = arith.constant 0 : index
    %c0_1 = arith.constant 0 : index
    %0 = vector.load %arg0[%c0, %c0_0, %c0_1] : memref<8x8x128xf32, #tpu.memory_space<vmem>>, vector<8x8x128xf32>
    %1 = vector.shape_cast %0 : vector<8x8x128xf32> to vector<64x128xf32>
    %c0_2 = arith.constant 0 : index
    %c0_3 = arith.constant 0 : index
    %2 = vector.load %arg1[%c0_2, %c0_3] : memref<128x512xf32, #tpu.memory_space<vmem>>, vector<128x512xf32>
    %cst = arith.constant dense<0.000000e+00> : vector<64x512xf32>
    %3 = tpu.matmul %1, %2, %cst {dimension_numbers = #tpu.dot_dimension_numbers<[1], [0], [0], [1], [0, 0, 1, 1], [], []>} : vector<64x128xf32>, vector<128x512xf32>, vector<64x512xf32> -> vector<64x512xf32>
    %c0_4 = arith.constant 0 : index
    %c0_5 = arith.constant 0 : index
    %4 = vector.load %arg3[%c0_4, %c0_5] : memref<1x512xf32, #tpu.memory_space<vmem>>, vector<1x512xf32>
    %5 = vector.broadcast %4 : vector<1x512xf32> to vector<64x512xf32>
    %6 = arith.addf %3, %5 : vector<64x512xf32>
    %7 = vector.shape_cast %6 : vector<64x512xf32> to vector<8x8x512xf32>
    %c0_6 = arith.constant 0 : index
    %c0_7 = arith.constant 0 : index
    %c0_8 = arith.constant 0 : index
    %8 = vector.load %arg9[%c0_6, %c0_7, %c0_8] : memref<8x8x512xf32, #tpu.memory_space<vmem>>, vector<8x8x512xf32>
    tpu.vector_store %arg9[%c0_6, %c0_7, %c0_8], %7 {strides = array<i32>} : memref<8x8x512xf32, #tpu.memory_space<vmem>>, vector<8x8x512xf32>,
    %c0_9 = arith.constant 0 : index
    %c0_10 = arith.constant 0 : index
    %9 = vector.load %arg5[%c0_9, %c0_10] : memref<1x512xf32, #tpu.memory_space<vmem>>, vector<1x512xf32>
    %10 = vector.shape_cast %9 : vector<1x512xf32> to vector<1x512xf32>
    %11 = vector.broadcast %10 : vector<1x512xf32> to vector<8x512xf32>
    %cst_11 = arith.constant 0.000000e+00 : f32
    %12 = vector.broadcast %cst_11 : f32 to vector<8x128xf32>
    %c0_i32 = arith.constant 0 : i32
    %13 = arith.index_cast %c0_i32 : i32 to index
    %c0_12 = arith.constant 0 : index
    %c0_13 = arith.constant 0 : index
    %14 = vector.load %arg9[%13, %c0_12, %c0_13] : memref<8x8x512xf32, #tpu.memory_space<vmem>>, vector<1x8x512xf32>
    %15 = vector.shape_cast %14 : vector<1x8x512xf32> to vector<8x512xf32>
    %c0_14 = arith.constant 0 : index
    %c0_15 = arith.constant 0 : index
    %16 = vector.load %arg2[%c0_14, %c0_15] : memref<128x512xf32, #tpu.memory_space<vmem>>, vector<128x512xf32>
    %cst_16 = arith.constant dense<0.000000e+00> : vector<8x512xf32>
    %17 = tpu.matmul %12, %16, %cst_16 {dimension_numbers = #tpu.dot_dimension_numbers<[1], [0], [0], [1], [0, 0, 1, 1], [], []>} : vector<8x128xf32>, vector<128x512xf32>, vector<8x512xf32> -> vector<8x512xf32>
    %18 = arith.addf %15, %17 : vector<8x512xf32>
    %19 = vector.extract_strided_slice %18 {offsets = [0, 0], sizes = [8, 128], strides = [1, 1]} : vector<8x512xf32> to vector<8x128xf32>
    %cst_17 = arith.constant 5.000000e-01 : f32
    %20 = vector.broadcast %cst_17 : f32 to vector<8x128xf32>
    %21 = arith.mulf %20, %19 : vector<8x128xf32>
    %22 = math.tanh %21 : vector<8x128xf32>
    %cst_18 = arith.constant 5.000000e-01 : f32
    %23 = vector.broadcast %cst_18 : f32 to vector<8x128xf32>
    %24 = arith.mulf %23, %22 : vector<8x128xf32>
    %cst_19 = arith.constant 5.000000e-01 : f32
    %25 = vector.broadcast %cst_19 : f32 to vector<8x128xf32>
    %26 = arith.addf %24, %25 : vector<8x128xf32>
    %27 = vector.extract_strided_slice %18 {offsets = [0, 128], sizes = [8, 128], strides = [1, 1]} : vector<8x512xf32> to vector<8x128xf32>
    %cst_20 = arith.constant 5.000000e-01 : f32
    %28 = vector.broadcast %cst_20 : f32 to vector<8x128xf32>
    %29 = arith.mulf %28, %27 : vector<8x128xf32>
    %30 = math.tanh %29 : vector<8x128xf32>
    %cst_21 = arith.constant 5.000000e-01 : f32
    %31 = vector.broadcast %cst_21 : f32 to vector<8x128xf32>
    %32 = arith.mulf %31, %30 : vector<8x128xf32>
    %cst_22 = arith.constant 5.000000e-01 : f32
    %33 = vector.broadcast %cst_22 : f32 to vector<8x128xf32>
    %34 = arith.addf %32, %33 : vector<8x128xf32>
    %35 = vector.extract_strided_slice %18 {offsets = [0, 256], sizes = [8, 128], strides = [1, 1]} : vector<8x512xf32> to vector<8x128xf32>
    %36 = math.tanh %35 : vector<8x128xf32>
    %37 = vector.extract_strided_slice %18 {offsets = [0, 384], sizes = [8, 128], strides = [1, 1]} : vector<8x512xf32> to vector<8x128xf32>
    %cst_23 = arith.constant 5.000000e-01 : f32
    %38 = vector.broadcast %cst_23 : f32 to vector<8x128xf32>
    %39 = arith.mulf %38, %37 : vector<8x128xf32>
    %40 = math.tanh %39 : vector<8x128xf32>
    %cst_24 = arith.constant 5.000000e-01 : f32
    %41 = vector.broadcast %cst_24 : f32 to vector<8x128xf32>
    %42 = arith.mulf %41, %40 : vector<8x128xf32>
    %cst_25 = arith.constant 5.000000e-01 : f32
    %43 = vector.broadcast %cst_25 : f32 to vector<8x128xf32>
    %44 = arith.addf %42, %43 : vector<8x128xf32>
    %45 = arith.mulf %34, %12 : vector<8x128xf32>
    %46 = arith.mulf %26, %36 : vector<8x128xf32>
    %47 = arith.addf %45, %46 : vector<8x128xf32>
    %48 = math.tanh %47 : vector<8x128xf32>
    %49 = arith.mulf %44, %48 : vector<8x128xf32>
    %50 = tpu.concatenate %49, %12 in 1 : vector<8x128xf32>, vector<8x128xf32> -> vector<8x256xf32>
    %c0_26 = arith.constant 0 : index
    %c0_27 = arith.constant 0 : index
    %51 = vector.load %arg4[%c0_26, %c0_27] : memref<256x512xf32, #tpu.memory_space<vmem>>, vector<256x512xf32>
    %cst_28 = arith.constant dense<0.000000e+00> : vector<8x512xf32>
    %52 = tpu.matmul %50, %51, %cst_28 {dimension_numbers = #tpu.dot_dimension_numbers<[1], [0], [0], [1], [0, 0, 1, 1], [], []>} : vector<8x256xf32>, vector<256x512xf32>, vector<8x512xf32> -> vector<8x512xf32>
    %53 = arith.addf %52, %11 : vector<8x512xf32>
    %54 = vector.extract_strided_slice %53 {offsets = [0, 0], sizes = [8, 128], strides = [1, 1]} : vector<8x512xf32> to vector<8x128xf32>
    %cst_29 = arith.constant 5.000000e-01 : f32
    %55 = vector.broadcast %cst_29 : f32 to vector<8x128xf32>
    %56 = arith.mulf %55, %54 : vector<8x128xf32>
    %57 = math.tanh %56 : vector<8x128xf32>
    %cst_30 = arith.constant 5.000000e-01 : f32
    %58 = vector.broadcast %cst_30 : f32 to vector<8x128xf32>
    %59 = arith.mulf %58, %57 : vector<8x128xf32>
    %cst_31 = arith.constant 5.000000e-01 : f32
    %60 = vector.broadcast %cst_31 : f32 to vector<8x128xf32>
    %61 = arith.addf %59, %60 : vector<8x128xf32>
    %62 = vector.extract_strided_slice %53 {offsets = [0, 128], sizes = [8, 128], strides = [1, 1]} : vector<8x512xf32> to vector<8x128xf32>
    %cst_32 = arith.constant 5.000000e-01 : f32
    %63 = vector.broadcast %cst_32 : f32 to vector<8x128xf32>
    %64 = arith.mulf %63, %62 : vector<8x128xf32>
    %65 = math.tanh %64 : vector<8x128xf32>
    %cst_33 = arith.constant 5.000000e-01 : f32
    %66 = vector.broadcast %cst_33 : f32 to vector<8x128xf32>
    %67 = arith.mulf %66, %65 : vector<8x128xf32>
    %cst_34 = arith.constant 5.000000e-01 : f32
    %68 = vector.broadcast %cst_34 : f32 to vector<8x128xf32>
    %69 = arith.addf %67, %68 : vector<8x128xf32>
    %70 = vector.extract_strided_slice %53 {offsets = [0, 256], sizes = [8, 128], strides = [1, 1]} : vector<8x512xf32> to vector<8x128xf32>
    %71 = math.tanh %70 : vector<8x128xf32>
    %72 = vector.extract_strided_slice %53 {offsets = [0, 384], sizes = [8, 128], strides = [1, 1]} : vector<8x512xf32> to vector<8x128xf32>
    %cst_35 = arith.constant 5.000000e-01 : f32
    %73 = vector.broadcast %cst_35 : f32 to vector<8x128xf32>
    %74 = arith.mulf %73, %72 : vector<8x128xf32>
    %75 = math.tanh %74 : vector<8x128xf32>
    %cst_36 = arith.constant 5.000000e-01 : f32
    %76 = vector.broadcast %cst_36 : f32 to vector<8x128xf32>
    %77 = arith.mulf %76, %75 : vector<8x128xf32>
    %cst_37 = arith.constant 5.000000e-01 : f32
    %78 = vector.broadcast %cst_37 : f32 to vector<8x128xf32>
    %79 = arith.addf %77, %78 : vector<8x128xf32>
    %80 = arith.mulf %69, %12 : vector<8x128xf32>
    %81 = arith.mulf %61, %71 : vector<8x128xf32>
    %82 = arith.addf %80, %81 : vector<8x128xf32>
    %83 = math.tanh %82 : vector<8x128xf32>
    %84 = arith.mulf %79, %83 : vector<8x128xf32>
    %85 = arith.index_cast %c0_i32 : i32 to index
    %c0_38 = arith.constant 0 : index
    %c0_39 = arith.constant 0 : index
    %86 = vector.load %arg10[%85, %c0_38, %c0_39] : memref<8x8x128xf32, #tpu.memory_space<vmem>>, vector<1x8x128xf32>
    %87 = vector.shape_cast %86 : vector<1x8x128xf32> to vector<8x128xf32>
    %88 = vector.shape_cast %84 : vector<8x128xf32> to vector<1x8x128xf32>
    tpu.vector_store %arg10[%85, %c0_38, %c0_39], %88 {strides = array<i32>} : memref<8x8x128xf32, #tpu.memory_space<vmem>>, vector<1x8x128xf32>,
    %c1_i32 = arith.constant 1 : i32
    %89 = arith.index_cast %c1_i32 : i32 to index
    %c0_40 = arith.constant 0 : index
    %c0_41 = arith.constant 0 : index
    %90 = vector.load %arg9[%89, %c0_40, %c0_41] : memref<8x8x512xf32, #tpu.memory_space<vmem>>, vector<1x8x512xf32>
    %91 = vector.shape_cast %90 : vector<1x8x512xf32> to vector<8x512xf32>
    %c0_42 = arith.constant 0 : index
    %c0_43 = arith.constant 0 : index
    %92 = vector.load %arg2[%c0_42, %c0_43] : memref<128x512xf32, #tpu.memory_space<vmem>>, vector<128x512xf32>
    %cst_44 = arith.constant dense<0.000000e+00> : vector<8x512xf32>
    %93 = tpu.matmul %49, %92, %cst_44 {dimension_numbers = #tpu.dot_dimension_numbers<[1], [0], [0], [1], [0, 0, 1, 1], [], []>} : vector<8x128xf32>, vector<128x512xf32>, vector<8x512xf32> -> vector<8x512xf32>
    %94 = arith.addf %91, %93 : vector<8x512xf32>
    %95 = vector.extract_strided_slice %94 {offsets = [0, 0], sizes = [8, 128], strides = [1, 1]} : vector<8x512xf32> to vector<8x128xf32>
    %cst_45 = arith.constant 5.000000e-01 : f32
    %96 = vector.broadcast %cst_45 : f32 to vector<8x128xf32>
    %97 = arith.mulf %96, %95 : vector<8x128xf32>
    %98 = math.tanh %97 : vector<8x128xf32>
    %cst_46 = arith.constant 5.000000e-01 : f32
    %99 = vector.broadcast %cst_46 : f32 to vector<8x128xf32>
    %100 = arith.mulf %99, %98 : vector<8x128xf32>
    %cst_47 = arith.constant 5.000000e-01 : f32
    %101 = vector.broadcast %cst_47 : f32 to vector<8x128xf32>
    %102 = arith.addf %100, %101 : vector<8x128xf32>
    %103 = vector.extract_strided_slice %94 {offsets = [0, 128], sizes = [8, 128], strides = [1, 1]} : vector<8x512xf32> to vector<8x128xf32>
    %cst_48 = arith.constant 5.000000e-01 : f32
    %104 = vector.broadcast %cst_48 : f32 to vector<8x128xf32>
    %105 = arith.mulf %104, %103 : vector<8x128xf32>
    %106 = math.tanh %105 : vector<8x128xf32>
    %cst_49 = arith.constant 5.000000e-01 : f32
    %107 = vector.broadcast %cst_49 : f32 to vector<8x128xf32>
    %108 = arith.mulf %107, %106 : vector<8x128xf32>
    %cst_50 = arith.constant 5.000000e-01 : f32
    %109 = vector.broadcast %cst_50 : f32 to vector<8x128xf32>
    %110 = arith.addf %108, %109 : vector<8x128xf32>
    %111 = vector.extract_strided_slice %94 {offsets = [0, 256], sizes = [8, 128], strides = [1, 1]} : vector<8x512xf32> to vector<8x128xf32>
    %112 = math.tanh %111 : vector<8x128xf32>
    %113 = vector.extract_strided_slice %94 {offsets = [0, 384], sizes = [8, 128], strides = [1, 1]} : vector<8x512xf32> to vector<8x128xf32>
    %cst_51 = arith.constant 5.000000e-01 : f32
    %114 = vector.broadcast %cst_51 : f32 to vector<8x128xf32>
    %115 = arith.mulf %114, %113 : vector<8x128xf32>
    %116 = math.tanh %115 : vector<8x128xf32>
    %cst_52 = arith.constant 5.000000e-01 : f32
    %117 = vector.broadcast %cst_52 : f32 to vector<8x128xf32>
    %118 = arith.mulf %117, %116 : vector<8x128xf32>
    %cst_53 = arith.constant 5.000000e-01 : f32
    %119 = vector.broadcast %cst_53 : f32 to vector<8x128xf32>
    %120 = arith.addf %118, %119 : vector<8x128xf32>
    %121 = arith.mulf %110, %47 : vector<8x128xf32>
    %122 = arith.mulf %102, %112 : vector<8x128xf32>
    %123 = arith.addf %121, %122 : vector<8x128xf32>
    %124 = math.tanh %123 : vector<8x128xf32>
    %125 = arith.mulf %120, %124 : vector<8x128xf32>
    %126 = tpu.concatenate %125, %84 in 1 : vector<8x128xf32>, vector<8x128xf32> -> vector<8x256xf32>
    %c0_54 = arith.constant 0 : index
    %c0_55 = arith.constant 0 : index
    %127 = vector.load %arg4[%c0_54, %c0_55] : memref<256x512xf32, #tpu.memory_space<vmem>>, vector<256x512xf32>
    %cst_56 = arith.constant dense<0.000000e+00> : vector<8x512xf32>
    %128 = tpu.matmul %126, %127, %cst_56 {dimension_numbers = #tpu.dot_dimension_numbers<[1], [0], [0], [1], [0, 0, 1, 1], [], []>} : vector<8x256xf32>, vector<256x512xf32>, vector<8x512xf32> -> vector<8x512xf32>
    %129 = arith.addf %128, %11 : vector<8x512xf32>
    %130 = vector.extract_strided_slice %129 {offsets = [0, 0], sizes = [8, 128], strides = [1, 1]} : vector<8x512xf32> to vector<8x128xf32>
    %cst_57 = arith.constant 5.000000e-01 : f32
    %131 = vector.broadcast %cst_57 : f32 to vector<8x128xf32>
    %132 = arith.mulf %131, %130 : vector<8x128xf32>
    %133 = math.tanh %132 : vector<8x128xf32>
    %cst_58 = arith.constant 5.000000e-01 : f32
    %134 = vector.broadcast %cst_58 : f32 to vector<8x128xf32>
    %135 = arith.mulf %134, %133 : vector<8x128xf32>
    %cst_59 = arith.constant 5.000000e-01 : f32
    %136 = vector.broadcast %cst_59 : f32 to vector<8x128xf32>
    %137 = arith.addf %135, %136 : vector<8x128xf32>
    %138 = vector.extract_strided_slice %129 {offsets = [0, 128], sizes = [8, 128], strides = [1, 1]} : vector<8x512xf32> to vector<8x128xf32>
    %cst_60 = arith.constant 5.000000e-01 : f32
    %139 = vector.broadcast %cst_60 : f32 to vector<8x128xf32>
    %140 = arith.mulf %139, %138 : vector<8x128xf32>
    %141 = math.tanh %140 : vector<8x128xf32>
    %cst_61 = arith.constant 5.000000e-01 : f32
    %142 = vector.broadcast %cst_61 : f32 to vector<8x128xf32>
    %143 = arith.mulf %142, %141 : vector<8x128xf32>
    %cst_62 = arith.constant 5.000000e-01 : f32
    %144 = vector.broadcast %cst_62 : f32 to vector<8x128xf32>
    %145 = arith.addf %143, %144 : vector<8x128xf32>
    %146 = vector.extract_strided_slice %129 {offsets = [0, 256], sizes = [8, 128], strides = [1, 1]} : vector<8x512xf32> to vector<8x128xf32>
    %147 = math.tanh %146 : vector<8x128xf32>
    %148 = vector.extract_strided_slice %129 {offsets = [0, 384], sizes = [8, 128], strides = [1, 1]} : vector<8x512xf32> to vector<8x128xf32>
    %cst_63 = arith.constant 5.000000e-01 : f32
    %149 = vector.broadcast %cst_63 : f32 to vector<8x128xf32>
    %150 = arith.mulf %149, %148 : vector<8x128xf32>
    %151 = math.tanh %150 : vector<8x128xf32>
    %cst_64 = arith.constant 5.000000e-01 : f32
    %152 = vector.broadcast %cst_64 : f32 to vector<8x128xf32>
    %153 = arith.mulf %152, %151 : vector<8x128xf32>
    %cst_65 = arith.constant 5.000000e-01 : f32
    %154 = vector.broadcast %cst_65 : f32 to vector<8x128xf32>
    %155 = arith.addf %153, %154 : vector<8x128xf32>
    %156 = arith.mulf %145, %82 : vector<8x128xf32>
    %157 = arith.mulf %137, %147 : vector<8x128xf32>
    %158 = arith.addf %156, %157 : vector<8x128xf32>
    %159 = math.tanh %158 : vector<8x128xf32>
    %160 = arith.mulf %155, %159 : vector<8x128xf32>
    %161 = arith.index_cast %c1_i32 : i32 to index
    %c0_66 = arith.constant 0 : index
    %c0_67 = arith.constant 0 : index
    %162 = vector.load %arg10[%161, %c0_66, %c0_67] : memref<8x8x128xf32, #tpu.memory_space<vmem>>, vector<1x8x128xf32>
    %163 = vector.shape_cast %162 : vector<1x8x128xf32> to vector<8x128xf32>
    %164 = vector.shape_cast %160 : vector<8x128xf32> to vector<1x8x128xf32>
    tpu.vector_store %arg10[%161, %c0_66, %c0_67], %164 {strides = array<i32>} : memref<8x8x128xf32, #tpu.memory_space<vmem>>, vector<1x8x128xf32>,
    %c2_i32 = arith.constant 2 : i32
    %165 = arith.index_cast %c2_i32 : i32 to index
    %c0_68 = arith.constant 0 : index
    %c0_69 = arith.constant 0 : index
    %166 = vector.load %arg9[%165, %c0_68, %c0_69] : memref<8x8x512xf32, #tpu.memory_space<vmem>>, vector<1x8x512xf32>
    %167 = vector.shape_cast %166 : vector<1x8x512xf32> to vector<8x512xf32>
    %c0_70 = arith.constant 0 : index
    %c0_71 = arith.constant 0 : index
    %168 = vector.load %arg2[%c0_70, %c0_71] : memref<128x512xf32, #tpu.memory_space<vmem>>, vector<128x512xf32>
    %cst_72 = arith.constant dense<0.000000e+00> : vector<8x512xf32>
    %169 = tpu.matmul %125, %168, %cst_72 {dimension_numbers = #tpu.dot_dimension_numbers<[1], [0], [0], [1], [0, 0, 1, 1], [], []>} : vector<8x128xf32>, vector<128x512xf32>, vector<8x512xf32> -> vector<8x512xf32>
    %170 = arith.addf %167, %169 : vector<8x512xf32>
    %171 = vector.extract_strided_slice %170 {offsets = [0, 0], sizes = [8, 128], strides = [1, 1]} : vector<8x512xf32> to vector<8x128xf32>
    %cst_73 = arith.constant 5.000000e-01 : f32
    %172 = vector.broadcast %cst_73 : f32 to vector<8x128xf32>
    %173 = arith.mulf %172, %171 : vector<8x128xf32>
    %174 = math.tanh %173 : vector<8x128xf32>
    %cst_74 = arith.constant 5.000000e-01 : f32
    %175 = vector.broadcast %cst_74 : f32 to vector<8x128xf32>
    %176 = arith.mulf %175, %174 : vector<8x128xf32>
    %cst_75 = arith.constant 5.000000e-01 : f32
    %177 = vector.broadcast %cst_75 : f32 to vector<8x128xf32>
    %178 = arith.addf %176, %177 : vector<8x128xf32>
    %179 = vector.extract_strided_slice %170 {offsets = [0, 128], sizes = [8, 128], strides = [1, 1]} : vector<8x512xf32> to vector<8x128xf32>
    %cst_76 = arith.constant 5.000000e-01 : f32
    %180 = vector.broadcast %cst_76 : f32 to vector<8x128xf32>
    %181 = arith.mulf %180, %179 : vector<8x128xf32>
    %182 = math.tanh %181 : vector<8x128xf32>
    %cst_77 = arith.constant 5.000000e-01 : f32
    %183 = vector.broadcast %cst_77 : f32 to vector<8x128xf32>
    %184 = arith.mulf %183, %182 : vector<8x128xf32>
    %cst_78 = arith.constant 5.000000e-01 : f32
    %185 = vector.broadcast %cst_78 : f32 to vector<8x128xf32>
    %186 = arith.addf %184, %185 : vector<8x128xf32>
    %187 = vector.extract_strided_slice %170 {offsets = [0, 256], sizes = [8, 128], strides = [1, 1]} : vector<8x512xf32> to vector<8x128xf32>
    %188 = math.tanh %187 : vector<8x128xf32>
    %189 = vector.extract_strided_slice %170 {offsets = [0, 384], sizes = [8, 128], strides = [1, 1]} : vector<8x512xf32> to vector<8x128xf32>
    %cst_79 = arith.constant 5.000000e-01 : f32
    %190 = vector.broadcast %cst_79 : f32 to vector<8x128xf32>
    %191 = arith.mulf %190, %189 : vector<8x128xf32>
    %192 = math.tanh %191 : vector<8x128xf32>
    %cst_80 = arith.constant 5.000000e-01 : f32
    %193 = vector.broadcast %cst_80 : f32 to vector<8x128xf32>
    %194 = arith.mulf %193, %192 : vector<8x128xf32>
    %cst_81 = arith.constant 5.000000e-01 : f32
    %195 = vector.broadcast %cst_81 : f32 to vector<8x128xf32>
    %196 = arith.addf %194, %195 : vector<8x128xf32>
    %197 = arith.mulf %186, %123 : vector<8x128xf32>
    %198 = arith.mulf %178, %188 : vector<8x128xf32>
    %199 = arith.addf %197, %198 : vector<8x128xf32>
    %200 = math.tanh %199 : vector<8x128xf32>
    %201 = arith.mulf %196, %200 : vector<8x128xf32>
    %202 = tpu.concatenate %201, %160 in 1 : vector<8x128xf32>, vector<8x128xf32> -> vector<8x256xf32>
    %c0_82 = arith.constant 0 : index
    %c0_83 = arith.constant 0 : index
    %203 = vector.load %arg4[%c0_82, %c0_83] : memref<256x512xf32, #tpu.memory_space<vmem>>, vector<256x512xf32>
    %cst_84 = arith.constant dense<0.000000e+00> : vector<8x512xf32>
    %204 = tpu.matmul %202, %203, %cst_84 {dimension_numbers = #tpu.dot_dimension_numbers<[1], [0], [0], [1], [0, 0, 1, 1], [], []>} : vector<8x256xf32>, vector<256x512xf32>, vector<8x512xf32> -> vector<8x512xf32>
    %205 = arith.addf %204, %11 : vector<8x512xf32>
    %206 = vector.extract_strided_slice %205 {offsets = [0, 0], sizes = [8, 128], strides = [1, 1]} : vector<8x512xf32> to vector<8x128xf32>
    %cst_85 = arith.constant 5.000000e-01 : f32
    %207 = vector.broadcast %cst_85 : f32 to vector<8x128xf32>
    %208 = arith.mulf %207, %206 : vector<8x128xf32>
    %209 = math.tanh %208 : vector<8x128xf32>
    %cst_86 = arith.constant 5.000000e-01 : f32
    %210 = vector.broadcast %cst_86 : f32 to vector<8x128xf32>
    %211 = arith.mulf %210, %209 : vector<8x128xf32>
    %cst_87 = arith.constant 5.000000e-01 : f32
    %212 = vector.broadcast %cst_87 : f32 to vector<8x128xf32>
    %213 = arith.addf %211, %212 : vector<8x128xf32>
    %214 = vector.extract_strided_slice %205 {offsets = [0, 128], sizes = [8, 128], strides = [1, 1]} : vector<8x512xf32> to vector<8x128xf32>
    %cst_88 = arith.constant 5.000000e-01 : f32
    %215 = vector.broadcast %cst_88 : f32 to vector<8x128xf32>
    %216 = arith.mulf %215, %214 : vector<8x128xf32>
    %217 = math.tanh %216 : vector<8x128xf32>
    %cst_89 = arith.constant 5.000000e-01 : f32
    %218 = vector.broadcast %cst_89 : f32 to vector<8x128xf32>
    %219 = arith.mulf %218, %217 : vector<8x128xf32>
    %cst_90 = arith.constant 5.000000e-01 : f32
    %220 = vector.broadcast %cst_90 : f32 to vector<8x128xf32>
    %221 = arith.addf %219, %220 : vector<8x128xf32>
    %222 = vector.extract_strided_slice %205 {offsets = [0, 256], sizes = [8, 128], strides = [1, 1]} : vector<8x512xf32> to vector<8x128xf32>
    %223 = math.tanh %222 : vector<8x128xf32>
    %224 = vector.extract_strided_slice %205 {offsets = [0, 384], sizes = [8, 128], strides = [1, 1]} : vector<8x512xf32> to vector<8x128xf32>
    %cst_91 = arith.constant 5.000000e-01 : f32
    %225 = vector.broadcast %cst_91 : f32 to vector<8x128xf32>
    %226 = arith.mulf %225, %224 : vector<8x128xf32>
    %227 = math.tanh %226 : vector<8x128xf32>
    %cst_92 = arith.constant 5.000000e-01 : f32
    %228 = vector.broadcast %cst_92 : f32 to vector<8x128xf32>
    %229 = arith.mulf %228, %227 : vector<8x128xf32>
    %cst_93 = arith.constant 5.000000e-01 : f32
    %230 = vector.broadcast %cst_93 : f32 to vector<8x128xf32>
    %231 = arith.addf %229, %230 : vector<8x128xf32>
    %232 = arith.mulf %221, %158 : vector<8x128xf32>
    %233 = arith.mulf %213, %223 : vector<8x128xf32>
    %234 = arith.addf %232, %233 : vector<8x128xf32>
    %235 = math.tanh %234 : vector<8x128xf32>
    %236 = arith.mulf %231, %235 : vector<8x128xf32>
    %237 = arith.index_cast %c2_i32 : i32 to index
    %c0_94 = arith.constant 0 : index
    %c0_95 = arith.constant 0 : index
    %238 = vector.load %arg10[%237, %c0_94, %c0_95] : memref<8x8x128xf32, #tpu.memory_space<vmem>>, vector<1x8x128xf32>
    %239 = vector.shape_cast %238 : vector<1x8x128xf32> to vector<8x128xf32>
    %240 = vector.shape_cast %236 : vector<8x128xf32> to vector<1x8x128xf32>
    tpu.vector_store %arg10[%237, %c0_94, %c0_95], %240 {strides = array<i32>} : memref<8x8x128xf32, #tpu.memory_space<vmem>>, vector<1x8x128xf32>,
    %c3_i32 = arith.constant 3 : i32
    %241 = arith.index_cast %c3_i32 : i32 to index
    %c0_96 = arith.constant 0 : index
    %c0_97 = arith.constant 0 : index
    %242 = vector.load %arg9[%241, %c0_96, %c0_97] : memref<8x8x512xf32, #tpu.memory_space<vmem>>, vector<1x8x512xf32>
    %243 = vector.shape_cast %242 : vector<1x8x512xf32> to vector<8x512xf32>
    %c0_98 = arith.constant 0 : index
    %c0_99 = arith.constant 0 : index
    %244 = vector.load %arg2[%c0_98, %c0_99] : memref<128x512xf32, #tpu.memory_space<vmem>>, vector<128x512xf32>
    %cst_100 = arith.constant dense<0.000000e+00> : vector<8x512xf32>
    %245 = tpu.matmul %201, %244, %cst_100 {dimension_numbers = #tpu.dot_dimension_numbers<[1], [0], [0], [1], [0, 0, 1, 1], [], []>} : vector<8x128xf32>, vector<128x512xf32>, vector<8x512xf32> -> vector<8x512xf32>
    %246 = arith.addf %243, %245 : vector<8x512xf32>
    %247 = vector.extract_strided_slice %246 {offsets = [0, 0], sizes = [8, 128], strides = [1, 1]} : vector<8x512xf32> to vector<8x128xf32>
    %cst_101 = arith.constant 5.000000e-01 : f32
    %248 = vector.broadcast %cst_101 : f32 to vector<8x128xf32>
    %249 = arith.mulf %248, %247 : vector<8x128xf32>
    %250 = math.tanh %249 : vector<8x128xf32>
    %cst_102 = arith.constant 5.000000e-01 : f32
    %251 = vector.broadcast %cst_102 : f32 to vector<8x128xf32>
    %252 = arith.mulf %251, %250 : vector<8x128xf32>
    %cst_103 = arith.constant 5.000000e-01 : f32
    %253 = vector.broadcast %cst_103 : f32 to vector<8x128xf32>
    %254 = arith.addf %252, %253 : vector<8x128xf32>
    %255 = vector.extract_strided_slice %246 {offsets = [0, 128], sizes = [8, 128], strides = [1, 1]} : vector<8x512xf32> to vector<8x128xf32>
    %cst_104 = arith.constant 5.000000e-01 : f32
    %256 = vector.broadcast %cst_104 : f32 to vector<8x128xf32>
    %257 = arith.mulf %256, %255 : vector<8x128xf32>
    %258 = math.tanh %257 : vector<8x128xf32>
    %cst_105 = arith.constant 5.000000e-01 : f32
    %259 = vector.broadcast %cst_105 : f32 to vector<8x128xf32>
    %260 = arith.mulf %259, %258 : vector<8x128xf32>
    %cst_106 = arith.constant 5.000000e-01 : f32
    %261 = vector.broadcast %cst_106 : f32 to vector<8x128xf32>
    %262 = arith.addf %260, %261 : vector<8x128xf32>
    %263 = vector.extract_strided_slice %246 {offsets = [0, 256], sizes = [8, 128], strides = [1, 1]} : vector<8x512xf32> to vector<8x128xf32>
    %264 = math.tanh %263 : vector<8x128xf32>
    %265 = vector.extract_strided_slice %246 {offsets = [0, 384], sizes = [8, 128], strides = [1, 1]} : vector<8x512xf32> to vector<8x128xf32>
    %cst_107 = arith.constant 5.000000e-01 : f32
    %266 = vector.broadcast %cst_107 : f32 to vector<8x128xf32>
    %267 = arith.mulf %266, %265 : vector<8x128xf32>
    %268 = math.tanh %267 : vector<8x128xf32>
    %cst_108 = arith.constant 5.000000e-01 : f32
    %269 = vector.broadcast %cst_108 : f32 to vector<8x128xf32>
    %270 = arith.mulf %269, %268 : vector<8x128xf32>
    %cst_109 = arith.constant 5.000000e-01 : f32
    %271 = vector.broadcast %cst_109 : f32 to vector<8x128xf32>
    %272 = arith.addf %270, %271 : vector<8x128xf32>
    %273 = arith.mulf %262, %199 : vector<8x128xf32>
    %274 = arith.mulf %254, %264 : vector<8x128xf32>
    %275 = arith.addf %273, %274 : vector<8x128xf32>
    %276 = math.tanh %275 : vector<8x128xf32>
    %277 = arith.mulf %272, %276 : vector<8x128xf32>
    %278 = tpu.concatenate %277, %236 in 1 : vector<8x128xf32>, vector<8x128xf32> -> vector<8x256xf32>
    %c0_110 = arith.constant 0 : index
    %c0_111 = arith.constant 0 : index
    %279 = vector.load %arg4[%c0_110, %c0_111] : memref<256x512xf32, #tpu.memory_space<vmem>>, vector<256x512xf32>
    %cst_112 = arith.constant dense<0.000000e+00> : vector<8x512xf32>
    %280 = tpu.matmul %278, %279, %cst_112 {dimension_numbers = #tpu.dot_dimension_numbers<[1], [0], [0], [1], [0, 0, 1, 1], [], []>} : vector<8x256xf32>, vector<256x512xf32>, vector<8x512xf32> -> vector<8x512xf32>
    %281 = arith.addf %280, %11 : vector<8x512xf32>
    %282 = vector.extract_strided_slice %281 {offsets = [0, 0], sizes = [8, 128], strides = [1, 1]} : vector<8x512xf32> to vector<8x128xf32>
    %cst_113 = arith.constant 5.000000e-01 : f32
    %283 = vector.broadcast %cst_113 : f32 to vector<8x128xf32>
    %284 = arith.mulf %283, %282 : vector<8x128xf32>
    %285 = math.tanh %284 : vector<8x128xf32>
    %cst_114 = arith.constant 5.000000e-01 : f32
    %286 = vector.broadcast %cst_114 : f32 to vector<8x128xf32>
    %287 = arith.mulf %286, %285 : vector<8x128xf32>
    %cst_115 = arith.constant 5.000000e-01 : f32
    %288 = vector.broadcast %cst_115 : f32 to vector<8x128xf32>
    %289 = arith.addf %287, %288 : vector<8x128xf32>
    %290 = vector.extract_strided_slice %281 {offsets = [0, 128], sizes = [8, 128], strides = [1, 1]} : vector<8x512xf32> to vector<8x128xf32>
    %cst_116 = arith.constant 5.000000e-01 : f32
    %291 = vector.broadcast %cst_116 : f32 to vector<8x128xf32>
    %292 = arith.mulf %291, %290 : vector<8x128xf32>
    %293 = math.tanh %292 : vector<8x128xf32>
    %cst_117 = arith.constant 5.000000e-01 : f32
    %294 = vector.broadcast %cst_117 : f32 to vector<8x128xf32>
    %295 = arith.mulf %294, %293 : vector<8x128xf32>
    %cst_118 = arith.constant 5.000000e-01 : f32
    %296 = vector.broadcast %cst_118 : f32 to vector<8x128xf32>
    %297 = arith.addf %295, %296 : vector<8x128xf32>
    %298 = vector.extract_strided_slice %281 {offsets = [0, 256], sizes = [8, 128], strides = [1, 1]} : vector<8x512xf32> to vector<8x128xf32>
    %299 = math.tanh %298 : vector<8x128xf32>
    %300 = vector.extract_strided_slice %281 {offsets = [0, 384], sizes = [8, 128], strides = [1, 1]} : vector<8x512xf32> to vector<8x128xf32>
    %cst_119 = arith.constant 5.000000e-01 : f32
    %301 = vector.broadcast %cst_119 : f32 to vector<8x128xf32>
    %302 = arith.mulf %301, %300 : vector<8x128xf32>
    %303 = math.tanh %302 : vector<8x128xf32>
    %cst_120 = arith.constant 5.000000e-01 : f32
    %304 = vector.broadcast %cst_120 : f32 to vector<8x128xf32>
    %305 = arith.mulf %304, %303 : vector<8x128xf32>
    %cst_121 = arith.constant 5.000000e-01 : f32
    %306 = vector.broadcast %cst_121 : f32 to vector<8x128xf32>
    %307 = arith.addf %305, %306 : vector<8x128xf32>
    %308 = arith.mulf %297, %234 : vector<8x128xf32>
    %309 = arith.mulf %289, %299 : vector<8x128xf32>
    %310 = arith.addf %308, %309 : vector<8x128xf32>
    %311 = math.tanh %310 : vector<8x128xf32>
    %312 = arith.mulf %307, %311 : vector<8x128xf32>
    %313 = arith.index_cast %c3_i32 : i32 to index
    %c0_122 = arith.constant 0 : index
    %c0_123 = arith.constant 0 : index
    %314 = vector.load %arg10[%313, %c0_122, %c0_123] : memref<8x8x128xf32, #tpu.memory_space<vmem>>, vector<1x8x128xf32>
    %315 = vector.shape_cast %314 : vector<1x8x128xf32> to vector<8x128xf32>
    %316 = vector.shape_cast %312 : vector<8x128xf32> to vector<1x8x128xf32>
    tpu.vector_store %arg10[%313, %c0_122, %c0_123], %316 {strides = array<i32>} : memref<8x8x128xf32, #tpu.memory_space<vmem>>, vector<1x8x128xf32>,
    %c4_i32 = arith.constant 4 : i32
    %317 = arith.index_cast %c4_i32 : i32 to index
    %c0_124 = arith.constant 0 : index
    %c0_125 = arith.constant 0 : index
    %318 = vector.load %arg9[%317, %c0_124, %c0_125] : memref<8x8x512xf32, #tpu.memory_space<vmem>>, vector<1x8x512xf32>
    %319 = vector.shape_cast %318 : vector<1x8x512xf32> to vector<8x512xf32>
    %c0_126 = arith.constant 0 : index
    %c0_127 = arith.constant 0 : index
    %320 = vector.load %arg2[%c0_126, %c0_127] : memref<128x512xf32, #tpu.memory_space<vmem>>, vector<128x512xf32>
    %cst_128 = arith.constant dense<0.000000e+00> : vector<8x512xf32>
    %321 = tpu.matmul %277, %320, %cst_128 {dimension_numbers = #tpu.dot_dimension_numbers<[1], [0], [0], [1], [0, 0, 1, 1], [], []>} : vector<8x128xf32>, vector<128x512xf32>, vector<8x512xf32> -> vector<8x512xf32>
    %322 = arith.addf %319, %321 : vector<8x512xf32>
    %323 = vector.extract_strided_slice %322 {offsets = [0, 0], sizes = [8, 128], strides = [1, 1]} : vector<8x512xf32> to vector<8x128xf32>
    %cst_129 = arith.constant 5.000000e-01 : f32
    %324 = vector.broadcast %cst_129 : f32 to vector<8x128xf32>
    %325 = arith.mulf %324, %323 : vector<8x128xf32>
    %326 = math.tanh %325 : vector<8x128xf32>
    %cst_130 = arith.constant 5.000000e-01 : f32
    %327 = vector.broadcast %cst_130 : f32 to vector<8x128xf32>
    %328 = arith.mulf %327, %326 : vector<8x128xf32>
    %cst_131 = arith.constant 5.000000e-01 : f32
    %329 = vector.broadcast %cst_131 : f32 to vector<8x128xf32>
    %330 = arith.addf %328, %329 : vector<8x128xf32>
    %331 = vector.extract_strided_slice %322 {offsets = [0, 128], sizes = [8, 128], strides = [1, 1]} : vector<8x512xf32> to vector<8x128xf32>
    %cst_132 = arith.constant 5.000000e-01 : f32
    %332 = vector.broadcast %cst_132 : f32 to vector<8x128xf32>
    %333 = arith.mulf %332, %331 : vector<8x128xf32>
    %334 = math.tanh %333 : vector<8x128xf32>
    %cst_133 = arith.constant 5.000000e-01 : f32
    %335 = vector.broadcast %cst_133 : f32 to vector<8x128xf32>
    %336 = arith.mulf %335, %334 : vector<8x128xf32>
    %cst_134 = arith.constant 5.000000e-01 : f32
    %337 = vector.broadcast %cst_134 : f32 to vector<8x128xf32>
    %338 = arith.addf %336, %337 : vector<8x128xf32>
    %339 = vector.extract_strided_slice %322 {offsets = [0, 256], sizes = [8, 128], strides = [1, 1]} : vector<8x512xf32> to vector<8x128xf32>
    %340 = math.tanh %339 : vector<8x128xf32>
    %341 = vector.extract_strided_slice %322 {offsets = [0, 384], sizes = [8, 128], strides = [1, 1]} : vector<8x512xf32> to vector<8x128xf32>
    %cst_135 = arith.constant 5.000000e-01 : f32
    %342 = vector.broadcast %cst_135 : f32 to vector<8x128xf32>
    %343 = arith.mulf %342, %341 : vector<8x128xf32>
    %344 = math.tanh %343 : vector<8x128xf32>
    %cst_136 = arith.constant 5.000000e-01 : f32
    %345 = vector.broadcast %cst_136 : f32 to vector<8x128xf32>
    %346 = arith.mulf %345, %344 : vector<8x128xf32>
    %cst_137 = arith.constant 5.000000e-01 : f32
    %347 = vector.broadcast %cst_137 : f32 to vector<8x128xf32>
    %348 = arith.addf %346, %347 : vector<8x128xf32>
    %349 = arith.mulf %338, %275 : vector<8x128xf32>
    %350 = arith.mulf %330, %340 : vector<8x128xf32>
    %351 = arith.addf %349, %350 : vector<8x128xf32>
    %352 = math.tanh %351 : vector<8x128xf32>
    %353 = arith.mulf %348, %352 : vector<8x128xf32>
    %354 = tpu.concatenate %353, %312 in 1 : vector<8x128xf32>, vector<8x128xf32> -> vector<8x256xf32>
    %c0_138 = arith.constant 0 : index
    %c0_139 = arith.constant 0 : index
    %355 = vector.load %arg4[%c0_138, %c0_139] : memref<256x512xf32, #tpu.memory_space<vmem>>, vector<256x512xf32>
    %cst_140 = arith.constant dense<0.000000e+00> : vector<8x512xf32>
    %356 = tpu.matmul %354, %355, %cst_140 {dimension_numbers = #tpu.dot_dimension_numbers<[1], [0], [0], [1], [0, 0, 1, 1], [], []>} : vector<8x256xf32>, vector<256x512xf32>, vector<8x512xf32> -> vector<8x512xf32>
    %357 = arith.addf %356, %11 : vector<8x512xf32>
    %358 = vector.extract_strided_slice %357 {offsets = [0, 0], sizes = [8, 128], strides = [1, 1]} : vector<8x512xf32> to vector<8x128xf32>
    %cst_141 = arith.constant 5.000000e-01 : f32
    %359 = vector.broadcast %cst_141 : f32 to vector<8x128xf32>
    %360 = arith.mulf %359, %358 : vector<8x128xf32>
    %361 = math.tanh %360 : vector<8x128xf32>
    %cst_142 = arith.constant 5.000000e-01 : f32
    %362 = vector.broadcast %cst_142 : f32 to vector<8x128xf32>
    %363 = arith.mulf %362, %361 : vector<8x128xf32>
    %cst_143 = arith.constant 5.000000e-01 : f32
    %364 = vector.broadcast %cst_143 : f32 to vector<8x128xf32>
    %365 = arith.addf %363, %364 : vector<8x128xf32>
    %366 = vector.extract_strided_slice %357 {offsets = [0, 128], sizes = [8, 128], strides = [1, 1]} : vector<8x512xf32> to vector<8x128xf32>
    %cst_144 = arith.constant 5.000000e-01 : f32
    %367 = vector.broadcast %cst_144 : f32 to vector<8x128xf32>
    %368 = arith.mulf %367, %366 : vector<8x128xf32>
    %369 = math.tanh %368 : vector<8x128xf32>
    %cst_145 = arith.constant 5.000000e-01 : f32
    %370 = vector.broadcast %cst_145 : f32 to vector<8x128xf32>
    %371 = arith.mulf %370, %369 : vector<8x128xf32>
    %cst_146 = arith.constant 5.000000e-01 : f32
    %372 = vector.broadcast %cst_146 : f32 to vector<8x128xf32>
    %373 = arith.addf %371, %372 : vector<8x128xf32>
    %374 = vector.extract_strided_slice %357 {offsets = [0, 256], sizes = [8, 128], strides = [1, 1]} : vector<8x512xf32> to vector<8x128xf32>
    %375 = math.tanh %374 : vector<8x128xf32>
    %376 = vector.extract_strided_slice %357 {offsets = [0, 384], sizes = [8, 128], strides = [1, 1]} : vector<8x512xf32> to vector<8x128xf32>
    %cst_147 = arith.constant 5.000000e-01 : f32
    %377 = vector.broadcast %cst_147 : f32 to vector<8x128xf32>
    %378 = arith.mulf %377, %376 : vector<8x128xf32>
    %379 = math.tanh %378 : vector<8x128xf32>
    %cst_148 = arith.constant 5.000000e-01 : f32
    %380 = vector.broadcast %cst_148 : f32 to vector<8x128xf32>
    %381 = arith.mulf %380, %379 : vector<8x128xf32>
    %cst_149 = arith.constant 5.000000e-01 : f32
    %382 = vector.broadcast %cst_149 : f32 to vector<8x128xf32>
    %383 = arith.addf %381, %382 : vector<8x128xf32>
    %384 = arith.mulf %373, %310 : vector<8x128xf32>
    %385 = arith.mulf %365, %375 : vector<8x128xf32>
    %386 = arith.addf %384, %385 : vector<8x128xf32>
    %387 = math.tanh %386 : vector<8x128xf32>
    %388 = arith.mulf %383, %387 : vector<8x128xf32>
    %389 = arith.index_cast %c4_i32 : i32 to index
    %c0_150 = arith.constant 0 : index
    %c0_151 = arith.constant 0 : index
    %390 = vector.load %arg10[%389, %c0_150, %c0_151] : memref<8x8x128xf32, #tpu.memory_space<vmem>>, vector<1x8x128xf32>
    %391 = vector.shape_cast %390 : vector<1x8x128xf32> to vector<8x128xf32>
    %392 = vector.shape_cast %388 : vector<8x128xf32> to vector<1x8x128xf32>
    tpu.vector_store %arg10[%389, %c0_150, %c0_151], %392 {strides = array<i32>} : memref<8x8x128xf32, #tpu.memory_space<vmem>>, vector<1x8x128xf32>,
    %c5_i32 = arith.constant 5 : i32
    %393 = arith.index_cast %c5_i32 : i32 to index
    %c0_152 = arith.constant 0 : index
    %c0_153 = arith.constant 0 : index
    %394 = vector.load %arg9[%393, %c0_152, %c0_153] : memref<8x8x512xf32, #tpu.memory_space<vmem>>, vector<1x8x512xf32>
    %395 = vector.shape_cast %394 : vector<1x8x512xf32> to vector<8x512xf32>
    %c0_154 = arith.constant 0 : index
    %c0_155 = arith.constant 0 : index
    %396 = vector.load %arg2[%c0_154, %c0_155] : memref<128x512xf32, #tpu.memory_space<vmem>>, vector<128x512xf32>
    %cst_156 = arith.constant dense<0.000000e+00> : vector<8x512xf32>
    %397 = tpu.matmul %353, %396, %cst_156 {dimension_numbers = #tpu.dot_dimension_numbers<[1], [0], [0], [1], [0, 0, 1, 1], [], []>} : vector<8x128xf32>, vector<128x512xf32>, vector<8x512xf32> -> vector<8x512xf32>
    %398 = arith.addf %395, %397 : vector<8x512xf32>
    %399 = vector.extract_strided_slice %398 {offsets = [0, 0], sizes = [8, 128], strides = [1, 1]} : vector<8x512xf32> to vector<8x128xf32>
    %cst_157 = arith.constant 5.000000e-01 : f32
    %400 = vector.broadcast %cst_157 : f32 to vector<8x128xf32>
    %401 = arith.mulf %400, %399 : vector<8x128xf32>
    %402 = math.tanh %401 : vector<8x128xf32>
    %cst_158 = arith.constant 5.000000e-01 : f32
    %403 = vector.broadcast %cst_158 : f32 to vector<8x128xf32>
    %404 = arith.mulf %403, %402 : vector<8x128xf32>
    %cst_159 = arith.constant 5.000000e-01 : f32
    %405 = vector.broadcast %cst_159 : f32 to vector<8x128xf32>
    %406 = arith.addf %404, %405 : vector<8x128xf32>
    %407 = vector.extract_strided_slice %398 {offsets = [0, 128], sizes = [8, 128], strides = [1, 1]} : vector<8x512xf32> to vector<8x128xf32>
    %cst_160 = arith.constant 5.000000e-01 : f32
    %408 = vector.broadcast %cst_160 : f32 to vector<8x128xf32>
    %409 = arith.mulf %408, %407 : vector<8x128xf32>
    %410 = math.tanh %409 : vector<8x128xf32>
    %cst_161 = arith.constant 5.000000e-01 : f32
    %411 = vector.broadcast %cst_161 : f32 to vector<8x128xf32>
    %412 = arith.mulf %411, %410 : vector<8x128xf32>
    %cst_162 = arith.constant 5.000000e-01 : f32
    %413 = vector.broadcast %cst_162 : f32 to vector<8x128xf32>
    %414 = arith.addf %412, %413 : vector<8x128xf32>
    %415 = vector.extract_strided_slice %398 {offsets = [0, 256], sizes = [8, 128], strides = [1, 1]} : vector<8x512xf32> to vector<8x128xf32>
    %416 = math.tanh %415 : vector<8x128xf32>
    %417 = vector.extract_strided_slice %398 {offsets = [0, 384], sizes = [8, 128], strides = [1, 1]} : vector<8x512xf32> to vector<8x128xf32>
    %cst_163 = arith.constant 5.000000e-01 : f32
    %418 = vector.broadcast %cst_163 : f32 to vector<8x128xf32>
    %419 = arith.mulf %418, %417 : vector<8x128xf32>
    %420 = math.tanh %419 : vector<8x128xf32>
    %cst_164 = arith.constant 5.000000e-01 : f32
    %421 = vector.broadcast %cst_164 : f32 to vector<8x128xf32>
    %422 = arith.mulf %421, %420 : vector<8x128xf32>
    %cst_165 = arith.constant 5.000000e-01 : f32
    %423 = vector.broadcast %cst_165 : f32 to vector<8x128xf32>
    %424 = arith.addf %422, %423 : vector<8x128xf32>
    %425 = arith.mulf %414, %351 : vector<8x128xf32>
    %426 = arith.mulf %406, %416 : vector<8x128xf32>
    %427 = arith.addf %425, %426 : vector<8x128xf32>
    %428 = math.tanh %427 : vector<8x128xf32>
    %429 = arith.mulf %424, %428 : vector<8x128xf32>
    %430 = tpu.concatenate %429, %388 in 1 : vector<8x128xf32>, vector<8x128xf32> -> vector<8x256xf32>
    %c0_166 = arith.constant 0 : index
    %c0_167 = arith.constant 0 : index
    %431 = vector.load %arg4[%c0_166, %c0_167] : memref<256x512xf32, #tpu.memory_space<vmem>>, vector<256x512xf32>
    %cst_168 = arith.constant dense<0.000000e+00> : vector<8x512xf32>
    %432 = tpu.matmul %430, %431, %cst_168 {dimension_numbers = #tpu.dot_dimension_numbers<[1], [0], [0], [1], [0, 0, 1, 1], [], []>} : vector<8x256xf32>, vector<256x512xf32>, vector<8x512xf32> -> vector<8x512xf32>
    %433 = arith.addf %432, %11 : vector<8x512xf32>
    %434 = vector.extract_strided_slice %433 {offsets = [0, 0], sizes = [8, 128], strides = [1, 1]} : vector<8x512xf32> to vector<8x128xf32>
    %cst_169 = arith.constant 5.000000e-01 : f32
    %435 = vector.broadcast %cst_169 : f32 to vector<8x128xf32>
    %436 = arith.mulf %435, %434 : vector<8x128xf32>
    %437 = math.tanh %436 : vector<8x128xf32>
    %cst_170 = arith.constant 5.000000e-01 : f32
    %438 = vector.broadcast %cst_170 : f32 to vector<8x128xf32>
    %439 = arith.mulf %438, %437 : vector<8x128xf32>
    %cst_171 = arith.constant 5.000000e-01 : f32
    %440 = vector.broadcast %cst_171 : f32 to vector<8x128xf32>
    %441 = arith.addf %439, %440 : vector<8x128xf32>
    %442 = vector.extract_strided_slice %433 {offsets = [0, 128], sizes = [8, 128], strides = [1, 1]} : vector<8x512xf32> to vector<8x128xf32>
    %cst_172 = arith.constant 5.000000e-01 : f32
    %443 = vector.broadcast %cst_172 : f32 to vector<8x128xf32>
    %444 = arith.mulf %443, %442 : vector<8x128xf32>
    %445 = math.tanh %444 : vector<8x128xf32>
    %cst_173 = arith.constant 5.000000e-01 : f32
    %446 = vector.broadcast %cst_173 : f32 to vector<8x128xf32>
    %447 = arith.mulf %446, %445 : vector<8x128xf32>
    %cst_174 = arith.constant 5.000000e-01 : f32
    %448 = vector.broadcast %cst_174 : f32 to vector<8x128xf32>
    %449 = arith.addf %447, %448 : vector<8x128xf32>
    %450 = vector.extract_strided_slice %433 {offsets = [0, 256], sizes = [8, 128], strides = [1, 1]} : vector<8x512xf32> to vector<8x128xf32>
    %451 = math.tanh %450 : vector<8x128xf32>
    %452 = vector.extract_strided_slice %433 {offsets = [0, 384], sizes = [8, 128], strides = [1, 1]} : vector<8x512xf32> to vector<8x128xf32>
    %cst_175 = arith.constant 5.000000e-01 : f32
    %453 = vector.broadcast %cst_175 : f32 to vector<8x128xf32>
    %454 = arith.mulf %453, %452 : vector<8x128xf32>
    %455 = math.tanh %454 : vector<8x128xf32>
    %cst_176 = arith.constant 5.000000e-01 : f32
    %456 = vector.broadcast %cst_176 : f32 to vector<8x128xf32>
    %457 = arith.mulf %456, %455 : vector<8x128xf32>
    %cst_177 = arith.constant 5.000000e-01 : f32
    %458 = vector.broadcast %cst_177 : f32 to vector<8x128xf32>
    %459 = arith.addf %457, %458 : vector<8x128xf32>
    %460 = arith.mulf %449, %386 : vector<8x128xf32>
    %461 = arith.mulf %441, %451 : vector<8x128xf32>
    %462 = arith.addf %460, %461 : vector<8x128xf32>
    %463 = math.tanh %462 : vector<8x128xf32>
    %464 = arith.mulf %459, %463 : vector<8x128xf32>
    %465 = arith.index_cast %c5_i32 : i32 to index
    %c0_178 = arith.constant 0 : index
    %c0_179 = arith.constant 0 : index
    %466 = vector.load %arg10[%465, %c0_178, %c0_179] : memref<8x8x128xf32, #tpu.memory_space<vmem>>, vector<1x8x128xf32>
    %467 = vector.shape_cast %466 : vector<1x8x128xf32> to vector<8x128xf32>
    %468 = vector.shape_cast %464 : vector<8x128xf32> to vector<1x8x128xf32>
    tpu.vector_store %arg10[%465, %c0_178, %c0_179], %468 {strides = array<i32>} : memref<8x8x128xf32, #tpu.memory_space<vmem>>, vector<1x8x128xf32>,
    %c6_i32 = arith.constant 6 : i32
    %469 = arith.index_cast %c6_i32 : i32 to index
    %c0_180 = arith.constant 0 : index
    %c0_181 = arith.constant 0 : index
    %470 = vector.load %arg9[%469, %c0_180, %c0_181] : memref<8x8x512xf32, #tpu.memory_space<vmem>>, vector<1x8x512xf32>
    %471 = vector.shape_cast %470 : vector<1x8x512xf32> to vector<8x512xf32>
    %c0_182 = arith.constant 0 : index
    %c0_183 = arith.constant 0 : index
    %472 = vector.load %arg2[%c0_182, %c0_183] : memref<128x512xf32, #tpu.memory_space<vmem>>, vector<128x512xf32>
    %cst_184 = arith.constant dense<0.000000e+00> : vector<8x512xf32>
    %473 = tpu.matmul %429, %472, %cst_184 {dimension_numbers = #tpu.dot_dimension_numbers<[1], [0], [0], [1], [0, 0, 1, 1], [], []>} : vector<8x128xf32>, vector<128x512xf32>, vector<8x512xf32> -> vector<8x512xf32>
    %474 = arith.addf %471, %473 : vector<8x512xf32>
    %475 = vector.extract_strided_slice %474 {offsets = [0, 0], sizes = [8, 128], strides = [1, 1]} : vector<8x512xf32> to vector<8x128xf32>
    %cst_185 = arith.constant 5.000000e-01 : f32
    %476 = vector.broadcast %cst_185 : f32 to vector<8x128xf32>
    %477 = arith.mulf %476, %475 : vector<8x128xf32>
    %478 = math.tanh %477 : vector<8x128xf32>
    %cst_186 = arith.constant 5.000000e-01 : f32
    %479 = vector.broadcast %cst_186 : f32 to vector<8x128xf32>
    %480 = arith.mulf %479, %478 : vector<8x128xf32>
    %cst_187 = arith.constant 5.000000e-01 : f32
    %481 = vector.broadcast %cst_187 : f32 to vector<8x128xf32>
    %482 = arith.addf %480, %481 : vector<8x128xf32>
    %483 = vector.extract_strided_slice %474 {offsets = [0, 128], sizes = [8, 128], strides = [1, 1]} : vector<8x512xf32> to vector<8x128xf32>
    %cst_188 = arith.constant 5.000000e-01 : f32
    %484 = vector.broadcast %cst_188 : f32 to vector<8x128xf32>
    %485 = arith.mulf %484, %483 : vector<8x128xf32>
    %486 = math.tanh %485 : vector<8x128xf32>
    %cst_189 = arith.constant 5.000000e-01 : f32
    %487 = vector.broadcast %cst_189 : f32 to vector<8x128xf32>
    %488 = arith.mulf %487, %486 : vector<8x128xf32>
    %cst_190 = arith.constant 5.000000e-01 : f32
    %489 = vector.broadcast %cst_190 : f32 to vector<8x128xf32>
    %490 = arith.addf %488, %489 : vector<8x128xf32>
    %491 = vector.extract_strided_slice %474 {offsets = [0, 256], sizes = [8, 128], strides = [1, 1]} : vector<8x512xf32> to vector<8x128xf32>
    %492 = math.tanh %491 : vector<8x128xf32>
    %493 = vector.extract_strided_slice %474 {offsets = [0, 384], sizes = [8, 128], strides = [1, 1]} : vector<8x512xf32> to vector<8x128xf32>
    %cst_191 = arith.constant 5.000000e-01 : f32
    %494 = vector.broadcast %cst_191 : f32 to vector<8x128xf32>
    %495 = arith.mulf %494, %493 : vector<8x128xf32>
    %496 = math.tanh %495 : vector<8x128xf32>
    %cst_192 = arith.constant 5.000000e-01 : f32
    %497 = vector.broadcast %cst_192 : f32 to vector<8x128xf32>
    %498 = arith.mulf %497, %496 : vector<8x128xf32>
    %cst_193 = arith.constant 5.000000e-01 : f32
    %499 = vector.broadcast %cst_193 : f32 to vector<8x128xf32>
    %500 = arith.addf %498, %499 : vector<8x128xf32>
    %501 = arith.mulf %490, %427 : vector<8x128xf32>
    %502 = arith.mulf %482, %492 : vector<8x128xf32>
    %503 = arith.addf %501, %502 : vector<8x128xf32>
    %504 = math.tanh %503 : vector<8x128xf32>
    %505 = arith.mulf %500, %504 : vector<8x128xf32>
    %506 = tpu.concatenate %505, %464 in 1 : vector<8x128xf32>, vector<8x128xf32> -> vector<8x256xf32>
    %c0_194 = arith.constant 0 : index
    %c0_195 = arith.constant 0 : index
    %507 = vector.load %arg4[%c0_194, %c0_195] : memref<256x512xf32, #tpu.memory_space<vmem>>, vector<256x512xf32>
    %cst_196 = arith.constant dense<0.000000e+00> : vector<8x512xf32>
    %508 = tpu.matmul %506, %507, %cst_196 {dimension_numbers = #tpu.dot_dimension_numbers<[1], [0], [0], [1], [0, 0, 1, 1], [], []>} : vector<8x256xf32>, vector<256x512xf32>, vector<8x512xf32> -> vector<8x512xf32>
    %509 = arith.addf %508, %11 : vector<8x512xf32>
    %510 = vector.extract_strided_slice %509 {offsets = [0, 0], sizes = [8, 128], strides = [1, 1]} : vector<8x512xf32> to vector<8x128xf32>
    %cst_197 = arith.constant 5.000000e-01 : f32
    %511 = vector.broadcast %cst_197 : f32 to vector<8x128xf32>
    %512 = arith.mulf %511, %510 : vector<8x128xf32>
    %513 = math.tanh %512 : vector<8x128xf32>
    %cst_198 = arith.constant 5.000000e-01 : f32
    %514 = vector.broadcast %cst_198 : f32 to vector<8x128xf32>
    %515 = arith.mulf %514, %513 : vector<8x128xf32>
    %cst_199 = arith.constant 5.000000e-01 : f32
    %516 = vector.broadcast %cst_199 : f32 to vector<8x128xf32>
    %517 = arith.addf %515, %516 : vector<8x128xf32>
    %518 = vector.extract_strided_slice %509 {offsets = [0, 128], sizes = [8, 128], strides = [1, 1]} : vector<8x512xf32> to vector<8x128xf32>
    %cst_200 = arith.constant 5.000000e-01 : f32
    %519 = vector.broadcast %cst_200 : f32 to vector<8x128xf32>
    %520 = arith.mulf %519, %518 : vector<8x128xf32>
    %521 = math.tanh %520 : vector<8x128xf32>
    %cst_201 = arith.constant 5.000000e-01 : f32
    %522 = vector.broadcast %cst_201 : f32 to vector<8x128xf32>
    %523 = arith.mulf %522, %521 : vector<8x128xf32>
    %cst_202 = arith.constant 5.000000e-01 : f32
    %524 = vector.broadcast %cst_202 : f32 to vector<8x128xf32>
    %525 = arith.addf %523, %524 : vector<8x128xf32>
    %526 = vector.extract_strided_slice %509 {offsets = [0, 256], sizes = [8, 128], strides = [1, 1]} : vector<8x512xf32> to vector<8x128xf32>
    %527 = math.tanh %526 : vector<8x128xf32>
    %528 = vector.extract_strided_slice %509 {offsets = [0, 384], sizes = [8, 128], strides = [1, 1]} : vector<8x512xf32> to vector<8x128xf32>
    %cst_203 = arith.constant 5.000000e-01 : f32
    %529 = vector.broadcast %cst_203 : f32 to vector<8x128xf32>
    %530 = arith.mulf %529, %528 : vector<8x128xf32>
    %531 = math.tanh %530 : vector<8x128xf32>
    %cst_204 = arith.constant 5.000000e-01 : f32
    %532 = vector.broadcast %cst_204 : f32 to vector<8x128xf32>
    %533 = arith.mulf %532, %531 : vector<8x128xf32>
    %cst_205 = arith.constant 5.000000e-01 : f32
    %534 = vector.broadcast %cst_205 : f32 to vector<8x128xf32>
    %535 = arith.addf %533, %534 : vector<8x128xf32>
    %536 = arith.mulf %525, %462 : vector<8x128xf32>
    %537 = arith.mulf %517, %527 : vector<8x128xf32>
    %538 = arith.addf %536, %537 : vector<8x128xf32>
    %539 = math.tanh %538 : vector<8x128xf32>
    %540 = arith.mulf %535, %539 : vector<8x128xf32>
    %541 = arith.index_cast %c6_i32 : i32 to index
    %c0_206 = arith.constant 0 : index
    %c0_207 = arith.constant 0 : index
    %542 = vector.load %arg10[%541, %c0_206, %c0_207] : memref<8x8x128xf32, #tpu.memory_space<vmem>>, vector<1x8x128xf32>
    %543 = vector.shape_cast %542 : vector<1x8x128xf32> to vector<8x128xf32>
    %544 = vector.shape_cast %540 : vector<8x128xf32> to vector<1x8x128xf32>
    tpu.vector_store %arg10[%541, %c0_206, %c0_207], %544 {strides = array<i32>} : memref<8x8x128xf32, #tpu.memory_space<vmem>>, vector<1x8x128xf32>,
    %c7_i32 = arith.constant 7 : i32
    %545 = arith.index_cast %c7_i32 : i32 to index
    %c0_208 = arith.constant 0 : index
    %c0_209 = arith.constant 0 : index
    %546 = vector.load %arg9[%545, %c0_208, %c0_209] : memref<8x8x512xf32, #tpu.memory_space<vmem>>, vector<1x8x512xf32>
    %547 = vector.shape_cast %546 : vector<1x8x512xf32> to vector<8x512xf32>
    %c0_210 = arith.constant 0 : index
    %c0_211 = arith.constant 0 : index
    %548 = vector.load %arg2[%c0_210, %c0_211] : memref<128x512xf32, #tpu.memory_space<vmem>>, vector<128x512xf32>
    %cst_212 = arith.constant dense<0.000000e+00> : vector<8x512xf32>
    %549 = tpu.matmul %505, %548, %cst_212 {dimension_numbers = #tpu.dot_dimension_numbers<[1], [0], [0], [1], [0, 0, 1, 1], [], []>} : vector<8x128xf32>, vector<128x512xf32>, vector<8x512xf32> -> vector<8x512xf32>
    %550 = arith.addf %547, %549 : vector<8x512xf32>
    %551 = vector.extract_strided_slice %550 {offsets = [0, 0], sizes = [8, 128], strides = [1, 1]} : vector<8x512xf32> to vector<8x128xf32>
    %cst_213 = arith.constant 5.000000e-01 : f32
    %552 = vector.broadcast %cst_213 : f32 to vector<8x128xf32>
    %553 = arith.mulf %552, %551 : vector<8x128xf32>
    %554 = math.tanh %553 : vector<8x128xf32>
    %cst_214 = arith.constant 5.000000e-01 : f32
    %555 = vector.broadcast %cst_214 : f32 to vector<8x128xf32>
    %556 = arith.mulf %555, %554 : vector<8x128xf32>
    %cst_215 = arith.constant 5.000000e-01 : f32
    %557 = vector.broadcast %cst_215 : f32 to vector<8x128xf32>
    %558 = arith.addf %556, %557 : vector<8x128xf32>
    %559 = vector.extract_strided_slice %550 {offsets = [0, 128], sizes = [8, 128], strides = [1, 1]} : vector<8x512xf32> to vector<8x128xf32>
    %cst_216 = arith.constant 5.000000e-01 : f32
    %560 = vector.broadcast %cst_216 : f32 to vector<8x128xf32>
    %561 = arith.mulf %560, %559 : vector<8x128xf32>
    %562 = math.tanh %561 : vector<8x128xf32>
    %cst_217 = arith.constant 5.000000e-01 : f32
    %563 = vector.broadcast %cst_217 : f32 to vector<8x128xf32>
    %564 = arith.mulf %563, %562 : vector<8x128xf32>
    %cst_218 = arith.constant 5.000000e-01 : f32
    %565 = vector.broadcast %cst_218 : f32 to vector<8x128xf32>
    %566 = arith.addf %564, %565 : vector<8x128xf32>
    %567 = vector.extract_strided_slice %550 {offsets = [0, 256], sizes = [8, 128], strides = [1, 1]} : vector<8x512xf32> to vector<8x128xf32>
    %568 = math.tanh %567 : vector<8x128xf32>
    %569 = vector.extract_strided_slice %550 {offsets = [0, 384], sizes = [8, 128], strides = [1, 1]} : vector<8x512xf32> to vector<8x128xf32>
    %cst_219 = arith.constant 5.000000e-01 : f32
    %570 = vector.broadcast %cst_219 : f32 to vector<8x128xf32>
    %571 = arith.mulf %570, %569 : vector<8x128xf32>
    %572 = math.tanh %571 : vector<8x128xf32>
    %cst_220 = arith.constant 5.000000e-01 : f32
    %573 = vector.broadcast %cst_220 : f32 to vector<8x128xf32>
    %574 = arith.mulf %573, %572 : vector<8x128xf32>
    %cst_221 = arith.constant 5.000000e-01 : f32
    %575 = vector.broadcast %cst_221 : f32 to vector<8x128xf32>
    %576 = arith.addf %574, %575 : vector<8x128xf32>
    %577 = arith.mulf %566, %503 : vector<8x128xf32>
    %578 = arith.mulf %558, %568 : vector<8x128xf32>
    %579 = arith.addf %577, %578 : vector<8x128xf32>
    %580 = math.tanh %579 : vector<8x128xf32>
    %581 = arith.mulf %576, %580 : vector<8x128xf32>
    %582 = tpu.concatenate %581, %540 in 1 : vector<8x128xf32>, vector<8x128xf32> -> vector<8x256xf32>
    %c0_222 = arith.constant 0 : index
    %c0_223 = arith.constant 0 : index
    %583 = vector.load %arg4[%c0_222, %c0_223] : memref<256x512xf32, #tpu.memory_space<vmem>>, vector<256x512xf32>
    %cst_224 = arith.constant dense<0.000000e+00> : vector<8x512xf32>
    %584 = tpu.matmul %582, %583, %cst_224 {dimension_numbers = #tpu.dot_dimension_numbers<[1], [0], [0], [1], [0, 0, 1, 1], [], []>} : vector<8x256xf32>, vector<256x512xf32>, vector<8x512xf32> -> vector<8x512xf32>
    %585 = arith.addf %584, %11 : vector<8x512xf32>
    %586 = vector.extract_strided_slice %585 {offsets = [0, 0], sizes = [8, 128], strides = [1, 1]} : vector<8x512xf32> to vector<8x128xf32>
    %cst_225 = arith.constant 5.000000e-01 : f32
    %587 = vector.broadcast %cst_225 : f32 to vector<8x128xf32>
    %588 = arith.mulf %587, %586 : vector<8x128xf32>
    %589 = math.tanh %588 : vector<8x128xf32>
    %cst_226 = arith.constant 5.000000e-01 : f32
    %590 = vector.broadcast %cst_226 : f32 to vector<8x128xf32>
    %591 = arith.mulf %590, %589 : vector<8x128xf32>
    %cst_227 = arith.constant 5.000000e-01 : f32
    %592 = vector.broadcast %cst_227 : f32 to vector<8x128xf32>
    %593 = arith.addf %591, %592 : vector<8x128xf32>
    %594 = vector.extract_strided_slice %585 {offsets = [0, 128], sizes = [8, 128], strides = [1, 1]} : vector<8x512xf32> to vector<8x128xf32>
    %cst_228 = arith.constant 5.000000e-01 : f32
    %595 = vector.broadcast %cst_228 : f32 to vector<8x128xf32>
    %596 = arith.mulf %595, %594 : vector<8x128xf32>
    %597 = math.tanh %596 : vector<8x128xf32>
    %cst_229 = arith.constant 5.000000e-01 : f32
    %598 = vector.broadcast %cst_229 : f32 to vector<8x128xf32>
    %599 = arith.mulf %598, %597 : vector<8x128xf32>
    %cst_230 = arith.constant 5.000000e-01 : f32
    %600 = vector.broadcast %cst_230 : f32 to vector<8x128xf32>
    %601 = arith.addf %599, %600 : vector<8x128xf32>
    %602 = vector.extract_strided_slice %585 {offsets = [0, 256], sizes = [8, 128], strides = [1, 1]} : vector<8x512xf32> to vector<8x128xf32>
    %603 = math.tanh %602 : vector<8x128xf32>
    %604 = vector.extract_strided_slice %585 {offsets = [0, 384], sizes = [8, 128], strides = [1, 1]} : vector<8x512xf32> to vector<8x128xf32>
    %cst_231 = arith.constant 5.000000e-01 : f32
    %605 = vector.broadcast %cst_231 : f32 to vector<8x128xf32>
    %606 = arith.mulf %605, %604 : vector<8x128xf32>
    %607 = math.tanh %606 : vector<8x128xf32>
    %cst_232 = arith.constant 5.000000e-01 : f32
    %608 = vector.broadcast %cst_232 : f32 to vector<8x128xf32>
    %609 = arith.mulf %608, %607 : vector<8x128xf32>
    %cst_233 = arith.constant 5.000000e-01 : f32
    %610 = vector.broadcast %cst_233 : f32 to vector<8x128xf32>
    %611 = arith.addf %609, %610 : vector<8x128xf32>
    %612 = arith.mulf %601, %538 : vector<8x128xf32>
    %613 = arith.mulf %593, %603 : vector<8x128xf32>
    %614 = arith.addf %612, %613 : vector<8x128xf32>
    %615 = math.tanh %614 : vector<8x128xf32>
    %616 = arith.mulf %611, %615 : vector<8x128xf32>
    %617 = arith.index_cast %c7_i32 : i32 to index
    %c0_234 = arith.constant 0 : index
    %c0_235 = arith.constant 0 : index
    %618 = vector.load %arg10[%617, %c0_234, %c0_235] : memref<8x8x128xf32, #tpu.memory_space<vmem>>, vector<1x8x128xf32>
    %619 = vector.shape_cast %618 : vector<1x8x128xf32> to vector<8x128xf32>
    %620 = vector.shape_cast %616 : vector<8x128xf32> to vector<1x8x128xf32>
    tpu.vector_store %arg10[%617, %c0_234, %c0_235], %620 {strides = array<i32>} : memref<8x8x128xf32, #tpu.memory_space<vmem>>, vector<1x8x128xf32>,
    %c8_i32 = arith.constant 8 : i32
    %c0_236 = arith.constant 0 : index
    %c0_237 = arith.constant 0 : index
    %c0_238 = arith.constant 0 : index
    %621 = vector.load %arg10[%c0_236, %c0_237, %c0_238] : memref<8x8x128xf32, #tpu.memory_space<vmem>>, vector<8x8x128xf32>
    %622 = vector.shape_cast %621 : vector<8x8x128xf32> to vector<64x128xf32>
    %c0_239 = arith.constant 0 : index
    %c0_240 = arith.constant 0 : index
    %623 = vector.load %arg6[%c0_239, %c0_240] : memref<128x128xf32, #tpu.memory_space<vmem>>, vector<128x128xf32>
    %cst_241 = arith.constant dense<0.000000e+00> : vector<64x128xf32>
    %624 = tpu.matmul %622, %623, %cst_241 {dimension_numbers = #tpu.dot_dimension_numbers<[1], [0], [0], [1], [0, 0, 1, 1], [], []>} : vector<64x128xf32>, vector<128x128xf32>, vector<64x128xf32> -> vector<64x128xf32>
    %c0_242 = arith.constant 0 : index
    %c0_243 = arith.constant 0 : index
    %625 = vector.load %arg7[%c0_242, %c0_243] : memref<1x128xf32, #tpu.memory_space<vmem>>, vector<1x128xf32>
    %626 = vector.broadcast %625 : vector<1x128xf32> to vector<64x128xf32>
    %627 = arith.addf %624, %626 : vector<64x128xf32>
    %cst_244 = arith.constant dense<0xFF800000> : vector<64xf32>
    %628 = vector.multi_reduction <maximumf>, %627, %cst_244 [1] : vector<64x128xf32> to vector<64xf32>
    %629 = vector.shape_cast %628 : vector<64xf32> to vector<64x1xf32>
    %630 = vector.broadcast %629 : vector<64x1xf32> to vector<64x128xf32>
    %631 = arith.subf %627, %630 : vector<64x128xf32>
    %632 = math.exp %631 : vector<64x128xf32>
    %cst_245 = arith.constant dense<0.000000e+00> : vector<64xf32>
    %633 = vector.multi_reduction <add>, %632, %cst_245 [1] : vector<64x128xf32> to vector<64xf32>
    %634 = vector.shape_cast %633 : vector<64xf32> to vector<64x1xf32>
    %635 = vector.broadcast %634 : vector<64x1xf32> to vector<64x128xf32>
    %636 = arith.divf %632, %635 : vector<64x128xf32>
    %c0_246 = arith.constant 0 : index
    %c0_247 = arith.constant 0 : index
    %637 = vector.load %arg8[%c0_246, %c0_247] : memref<64x128xf32, #tpu.memory_space<vmem>>, vector<64x128xf32>
    tpu.vector_store %arg8[%c0_246, %c0_247], %636 {strides = array<i32>} : memref<64x128xf32, #tpu.memory_space<vmem>>, vector<64x128xf32>,
    return
  }
}

</mosaic_0001>

<bundles_post_ra>
// kernel: lstm_forward.1
= control target key start
LH: loop header
LB: loop body
LE: loop exit
PB: predicated region body
PF: predicated region fallthrough
CT: control target
= control target key end

     0   :  { %v11316_v3 = vmov 0.0   ;;  %s11307_s1 = inlined_call_operand.vmem [shape: f32[128,512], index: 1, kind: input, shape index: {}]   ;;  %s11308_s2 = inlined_call_operand.vmem [shape: f32[128,512], index: 2, kind: input, shape index: {}]   ;;  %s11309_s0 = inlined_call_operand.vmem [shape: f32[8,8,128], index: 0, kind: input, shape index: {}]   ;;  %s11310_s4 = inlined_call_operand.vmem [shape: f32[256,512], index: 4, kind: input, shape index: {}]   ;;  %s11311_s3 = inlined_call_operand.vmem [shape: f32[1,512], index: 3, kind: input, shape index: {}]   ;;  %s11312_s5 = inlined_call_operand.vmem [shape: f32[1,512], index: 5, kind: input, shape index: {}]   ;;  %s11313_s6 = inlined_call_operand.vmem [shape: f32[128,128], index: 6, kind: input, shape index: {}]   ;;  %s11314_s7 = inlined_call_operand.vmem [shape: f32[1,128], index: 7, kind: input, shape index: {}]   ;;  %s11315_s8 = inlined_call_operand.vmem [shape: f32[64,128], index: 8, kind: output, shape index: {}]  }
   0x1   :  { %v38_v0 = vld [vmem:[%s11307_s1 + $0x8] sm:$0xff]  ;;  %v37_v2 = vld [vmem:[%s11307_s1] sm:$0xff]  ;;  %187 = vmatprep.mubr.f32.mxu1 %v11316_v3  ;;  %535 = vmatprep.mubr.f32.mxu0 %v11316_v3 }
   0x2   :  { %v42_v1 = vld [vmem:[%s11307_s1 + $0x28] sm:$0xff]  ;;  %v41_v5 = vld [vmem:[%s11307_s1 + $0x20] sm:$0xff] }
   0x3   :  { %v4874_v4 = vpack.c.bf16 %v42_v1, %v38_v0  ;;  %v408_v6 = vld [vmem:[%s11308_s2 + $0x8] sm:$0xff]  ;;  %v4876_v8 = vpack.c.bf16 %v41_v5, %v37_v2  ;;  %v407_v10 = vld [vmem:[%s11308_s2] sm:$0xff] }
   0x4   :  { %v412_v7 = vld [vmem:[%s11308_s2 + $0x28] sm:$0xff]  ;;  %v411_v11 = vld [vmem:[%s11308_s2 + $0x20] sm:$0xff] }
   0x5   :  { %v4938_v9 = vpack.c.bf16 %v412_v7, %v408_v6  ;;  %v46_v12 = vld [vmem:[%s11307_s1 + $0x48] sm:$0xff]  ;;  %4875 = vmatprep.subr.bf16.mxu1 %v4874_v4  ;;  %v4940_v13 = vpack.c.bf16 %v411_v11, %v407_v10  ;;  %v45_v15 = vld [vmem:[%s11307_s1 + $0x40] sm:$0xff] }
   0x6   :  { %v50_v14 = vld [vmem:[%s11307_s1 + $0x68] sm:$0xff]  ;;  %v49_v16 = vld [vmem:[%s11307_s1 + $0x60] sm:$0xff]  ;;  %4877 = vmatpush1.bf16.msra.mxu1 %v4876_v8 }
   0x7   :  { %4939 = vmatprep.subr.bf16.mxu0 %v4938_v9  ;;  %v4878_v17 = vpack.c.bf16 %v50_v14, %v46_v12  ;;  %v4880_v18 = vpack.c.bf16 %v49_v16, %v45_v15  ;;  %v416_v19 = vld [vmem:[%s11308_s2 + $0x48] sm:$0xff]  ;;  %v415_v21 = vld [vmem:[%s11308_s2 + $0x40] sm:$0xff] }
   0x8   :  { %v420_v20 = vld [vmem:[%s11308_s2 + $0x68] sm:$0xff]  ;;  %4941 = vmatpush1.bf16.msra.mxu0 %v4940_v13  ;;  %v419_v23 = vld [vmem:[%s11308_s2 + $0x60] sm:$0xff] }
   0x9   :  { %v4942_v22 = vpack.c.bf16 %v420_v20, %v416_v19  ;;  %v54_v24 = vld [vmem:[%s11307_s1 + $0x88] sm:$0xff]  ;;  %4879 = vmatprep.subr.bf16.mxu1 %v4878_v17  ;;  %v4944_v26 = vpack.c.bf16 %v419_v23, %v415_v21  ;;  %v53_v28 = vld [vmem:[%s11307_s1 + $0x80] sm:$0xff] }
   0xa   :  { %v58_v25 = vld [vmem:[%s11307_s1 + $0xa8] sm:$0xff]  ;;  %v57_v29 = vld [vmem:[%s11307_s1 + $0xa0] sm:$0xff]  ;;  %4881 = vmatpush1.bf16.msra.mxu1 %v4880_v18 }
   0xb   :  { %v4882_v27 = vpack.c.bf16 %v58_v25, %v54_v24  ;;  %v424_v30 = vld [vmem:[%s11308_s2 + $0x88] sm:$0xff]  ;;  %4943 = vmatprep.subr.bf16.mxu0 %v4942_v22  ;;  %v423_v32 = vld [vmem:[%s11308_s2 + $0x80] sm:$0xff]  ;;  %v4884_v34 = vpack.c.bf16 %v57_v29, %v53_v28 }
   0xc   :  { %v428_v31 = vld [vmem:[%s11308_s2 + $0xa8] sm:$0xff]  ;;  %v427_v33 = vld [vmem:[%s11308_s2 + $0xa0] sm:$0xff]  ;;  %4945 = vmatpush1.bf16.msra.mxu0 %v4944_v26 }
   0xd   :  { %v4946_v35 = vpack.c.bf16 %v428_v31, %v424_v30  ;;  %v62_v36 = vld [vmem:[%s11307_s1 + $0xc8] sm:$0xff]  ;;  %v61_v38 = vld [vmem:[%s11307_s1 + $0xc0] sm:$0xff]  ;;  %4883 = vmatprep.subr.bf16.mxu1 %v4882_v27  ;;  %v4948_v39 = vpack.c.bf16 %v427_v33, %v423_v32  ;;  %v40_v32 = vld [vmem:[%s11307_s1 + $0x18] sm:$0xff] }
   0xe   :  { %v66_v37 = vld [vmem:[%s11307_s1 + $0xe8] sm:$0xff]  ;;  %v65_v41 = vld [vmem:[%s11307_s1 + $0xe0] sm:$0xff]  ;;  %4885 = vmatpush1.bf16.msra.mxu1 %v4884_v34  ;;  %v44_v33 = vld [vmem:[%s11307_s1 + $0x38] sm:$0xff] }
   0xf   :  { %v4886_v40 = vpack.c.bf16 %v66_v37, %v62_v36  ;;  %v432_v42 = vld [vmem:[%s11308_s2 + $0xc8] sm:$0xff]  ;;  %4947 = vmatprep.subr.bf16.mxu0 %v4946_v35  ;;  %v431_v45 = vld [vmem:[%s11308_s2 + $0xc0] sm:$0xff]  ;;  %v4888_v49 = vpack.c.bf16 %v65_v41, %v61_v38  ;;  %v4906_v36 = vpack.c.bf16 %v44_v33, %v40_v32  ;;  %v39_v37 = vld [vmem:[%s11307_s1 + $0x10] sm:$0xff] }
  0x10   :  { %v436_v43 = vld [vmem:[%s11308_s2 + $0xe8] sm:$0xff]  ;;  %v435_v46 = vld [vmem:[%s11308_s2 + $0xe0] sm:$0xff]  ;;  %4949 = vmatpush1.bf16.msra.mxu0 %v4948_v39  ;;  %v43_v38 = vld [vmem:[%s11307_s1 + $0x30] sm:$0xff] }
  0x11   :  { %v4950_v44 = vpack.c.bf16 %v436_v43, %v432_v42  ;;  %v70_v47 = vld [vmem:[%s11307_s1 + $0x108] sm:$0xff]  ;;  %4887 = vmatprep.subr.bf16.mxu1 %v4886_v40  ;;  %v4952_v52 = vpack.c.bf16 %v435_v46, %v431_v45  ;;  %v69_v54 = vld [vmem:[%s11307_s1 + $0x100] sm:$0xff]  ;;  %v48_v39 = vld [vmem:[%s11307_s1 + $0x58] sm:$0xff]  ;;  %v4908_v42 = vpack.c.bf16 %v43_v38, %v39_v37 }
  0x12   :  { %v74_v48 = vld [vmem:[%s11307_s1 + $0x128] sm:$0xff]  ;;  %v73_v55 = vld [vmem:[%s11307_s1 + $0x120] sm:$0xff]  ;;  %4889 = vmatpush1.bf16.msra.mxu1 %v4888_v49  ;;  %v52_v40 = vld [vmem:[%s11307_s1 + $0x78] sm:$0xff] }
  0x13   :  { %v440_v50 = vld [vmem:[%s11308_s2 + $0x108] sm:$0xff]  ;;  %v4890_v53 = vpack.c.bf16 %v74_v48, %v70_v47  ;;  %v439_v56 = vld [vmem:[%s11308_s2 + $0x100] sm:$0xff]  ;;  %4951 = vmatprep.subr.bf16.mxu0 %v4950_v44  ;;  %v4892_v63 = vpack.c.bf16 %v73_v55, %v69_v54  ;;  %v4910_v43 = vpack.c.bf16 %v52_v40, %v48_v39  ;;  %v47_v44 = vld [vmem:[%s11307_s1 + $0x50] sm:$0xff] }
  0x14   :  { %v444_v51 = vld [vmem:[%s11308_s2 + $0x128] sm:$0xff]  ;;  %v443_v58 = vld [vmem:[%s11308_s2 + $0x120] sm:$0xff]  ;;  %4953 = vmatpush1.bf16.msra.mxu0 %v4952_v52  ;;  %v51_v45 = vld [vmem:[%s11307_s1 + $0x70] sm:$0xff] }
  0x15   :  { %v4954_v57 = vpack.c.bf16 %v444_v51, %v440_v50  ;;  %v78_v59 = vld [vmem:[%s11307_s1 + $0x148] sm:$0xff]  ;;  %4891 = vmatprep.subr.bf16.mxu1 %v4890_v53  ;;  %v4956_v0 = vpack.c.bf16 %v443_v58, %v439_v56  ;;  %v77_v2 = vld [vmem:[%s11307_s1 + $0x140] sm:$0xff]  ;;  %v56_v46 = vld [vmem:[%s11307_s1 + $0x98] sm:$0xff]  ;;  %v4912_v49 = vpack.c.bf16 %v51_v45, %v47_v44 }
  0x16   :  { %v82_v60 = vld [vmem:[%s11307_s1 + $0x168] sm:$0xff]  ;;  %v81_v4 = vld [vmem:[%s11307_s1 + $0x160] sm:$0xff]  ;;  %4893 = vmatpush1.bf16.msra.mxu1 %v4892_v63  ;;  %v60_v47 = vld [vmem:[%s11307_s1 + $0xb8] sm:$0xff] }
  0x17   :  { %v448_v61 = vld [vmem:[%s11308_s2 + $0x148] sm:$0xff]  ;;  %v4894_v1 = vpack.c.bf16 %v82_v60, %v78_v59  ;;  %v447_v5 = vld [vmem:[%s11308_s2 + $0x140] sm:$0xff]  ;;  %4955 = vmatprep.subr.bf16.mxu0 %v4954_v57  ;;  %v4896_v12 = vpack.c.bf16 %v81_v4, %v77_v2  ;;  %v4914_v50 = vpack.c.bf16 %v60_v47, %v56_v46  ;;  %v55_v51 = vld [vmem:[%s11307_s1 + $0x90] sm:$0xff] }
  0x18   :  { %v452_v62 = vld [vmem:[%s11308_s2 + $0x168] sm:$0xff]  ;;  %v451_v7 = vld [vmem:[%s11308_s2 + $0x160] sm:$0xff]  ;;  %4957 = vmatpush1.bf16.msra.mxu0 %v4956_v0  ;;  %v59_v52 = vld [vmem:[%s11307_s1 + $0xb0] sm:$0xff] }
  0x19   :  { %v4958_v6 = vpack.c.bf16 %v452_v62, %v448_v61  ;;  %v86_v8 = vld [vmem:[%s11307_s1 + $0x188] sm:$0xff]  ;;  %4895 = vmatprep.subr.bf16.mxu1 %v4894_v1  ;;  %v4960_v13 = vpack.c.bf16 %v451_v7, %v447_v5  ;;  %v85_v15 = vld [vmem:[%s11307_s1 + $0x180] sm:$0xff]  ;;  %v64_v53 = vld [vmem:[%s11307_s1 + $0xd8] sm:$0xff]  ;;  %v4916_v56 = vpack.c.bf16 %v59_v52, %v55_v51 }
  0x1a   :  { %v90_v9 = vld [vmem:[%s11307_s1 + $0x1a8] sm:$0xff]  ;;  %v89_v16 = vld [vmem:[%s11307_s1 + $0x1a0] sm:$0xff]  ;;  %4897 = vmatpush1.bf16.msra.mxu1 %v4896_v12  ;;  %v68_v54 = vld [vmem:[%s11307_s1 + $0xf8] sm:$0xff] }
  0x1b   :  { %v456_v10 = vld [vmem:[%s11308_s2 + $0x188] sm:$0xff]  ;;  %v4898_v14 = vpack.c.bf16 %v90_v9, %v86_v8  ;;  %v455_v17 = vld [vmem:[%s11308_s2 + $0x180] sm:$0xff]  ;;  %4959 = vmatprep.subr.bf16.mxu0 %v4958_v6  ;;  %v4900_v24 = vpack.c.bf16 %v89_v16, %v85_v15  ;;  %v7064_v55 = vld [vmem:[%s11309_s0 + $0x10] sm:$0xff]  ;;  %v4918_v57 = vpack.c.bf16 %v68_v54, %v64_v53 }
  0x1c   :  { %v460_v11 = vld [vmem:[%s11308_s2 + $0x1a8] sm:$0xff]  ;;  %v459_v19 = vld [vmem:[%s11308_s2 + $0x1a0] sm:$0xff]  ;;  %4961 = vmatpush1.bf16.msra.mxu0 %v4960_v13  ;;  %v63_v58 = vld [vmem:[%s11307_s1 + $0xd0] sm:$0xff] }
  0x1d   :  { %v4962_v18 = vpack.c.bf16 %v460_v11, %v456_v10  ;;  %v94_v20 = vld [vmem:[%s11307_s1 + $0x1c8] sm:$0xff]  ;;  %4899 = vmatprep.subr.bf16.mxu1 %v4898_v14  ;;  %v4964_v25 = vpack.c.bf16 %v459_v19, %v455_v17  ;;  %v93_v27 = vld [vmem:[%s11307_s1 + $0x1c0] sm:$0xff]  ;;  %v67_v59 = vld [vmem:[%s11307_s1 + $0xf0] sm:$0xff] }
  0x1e   :  { %v98_v21 = vld [vmem:[%s11307_s1 + $0x1e8] sm:$0xff]  ;;  %v97_v28 = vld [vmem:[%s11307_s1 + $0x1e0] sm:$0xff]  ;;  %4901 = vmatpush1.bf16.msra.mxu1 %v4900_v24  ;;  %v72_v60 = vld [vmem:[%s11307_s1 + $0x118] sm:$0xff]  ;;  %v4920_v63 = vpack.c.bf16 %v67_v59, %v63_v58 }
  0x1f   :  { %v464_v22 = vld [vmem:[%s11308_s2 + $0x1c8] sm:$0xff]  ;;  %v4902_v26 = vpack.c.bf16 %v98_v21, %v94_v20  ;;  %v463_v29 = vld [vmem:[%s11308_s2 + $0x1c0] sm:$0xff]  ;;  %4963 = vmatprep.subr.bf16.mxu0 %v4962_v18  ;;  %v4904_v34 = vpack.c.bf16 %v97_v28, %v93_v27  ;;  %v76_v61 = vld [vmem:[%s11307_s1 + $0x138] sm:$0xff] }
  0x20   :  { %v468_v23 = vld [vmem:[%s11308_s2 + $0x1e8] sm:$0xff]  ;;  %v467_v31 = vld [vmem:[%s11308_s2 + $0x1e0] sm:$0xff]  ;;  %4965 = vmatpush1.bf16.msra.mxu0 %v4964_v25  ;;  %v7083_v62 = vld [vmem:[%s11309_s0 + $0x18] sm:$0xff]  ;;  %v4922_v0 = vpack.c.bf16 %v76_v61, %v72_v60 }
  0x21   :  { %v4966_v30 = vpack.c.bf16 %v468_v23, %v464_v22  ;;  %4903 = vmatprep.subr.bf16.mxu1 %v4902_v26  ;;  %v4968_v35 = vpack.c.bf16 %v467_v31, %v463_v29  ;;  %v7024_v41 = vld [vmem:[%s11309_s0] sm:$0xff]  ;;  %v7043_v48 = vld [vmem:[%s11309_s0 + $0x8] sm:$0xff]  ;;  %v71_v1 = vld [vmem:[%s11307_s1 + $0x110] sm:$0xff] }
  0x22   :  { %4905 = vmatpush1.bf16.msra.mxu1 %v4904_v34  ;;  %v75_v2 = vld [vmem:[%s11307_s1 + $0x130] sm:$0xff]  ;;  %v80_v4 = vld [vmem:[%s11307_s1 + $0x158] sm:$0xff]  ;;  %v7102_v6 = vld [vmem:[%s11309_s0 + $0x20] sm:$0xff] }
  0x23   :  { %4967 = vmatprep.subr.bf16.mxu0 %v4966_v30  ;;  %4907 = vmatprep.subr.bf16.mxu1 %v4906_v36  ;;  %v84_v5 = vld [vmem:[%s11307_s1 + $0x178] sm:$0xff]  ;;  %v4924_v7 = vpack.c.bf16 %v75_v2, %v71_v1  ;;  %v79_v9 = vld [vmem:[%s11307_s1 + $0x150] sm:$0xff]  ;;  %v7121_v13 = vld [vmem:[%s11309_s0 + $0x28] sm:$0xff] }
  0x24   :  { %4969 = vmatpush1.bf16.msra.mxu0 %v4968_v35  ;;  %v4926_v8 = vpack.c.bf16 %v84_v5, %v80_v4  ;;  %v83_v10 = vld [vmem:[%s11307_s1 + $0x170] sm:$0xff]  ;;  %v88_v11 = vld [vmem:[%s11307_s1 + $0x198] sm:$0xff] }
  0x25   :  { %188 = vmatmul.mubr.f32.vlgmr.msra.gmra.mrb[0].mxu1 %v7024_v41  ;;  %v92_v12 = vld [vmem:[%s11307_s1 + $0x1b8] sm:$0xff]  ;;  %v4928_v14 = vpack.c.bf16 %v83_v10, %v79_v9  ;;  %v87_v16 = vld [vmem:[%s11307_s1 + $0x190] sm:$0xff] }
  0x26   :  { %4909 = vmatpush1.bf16.msra.mxu1 %v4908_v42  ;;  %193 = vmatprep.mubr.f32.mxu1 %v11316_v3  ;;  %v4930_v15 = vpack.c.bf16 %v92_v12, %v88_v11  ;;  %v91_v17 = vld [vmem:[%s11307_s1 + $0x1b0] sm:$0xff]  ;;  %v96_v18 = vld [vmem:[%s11307_s1 + $0x1d8] sm:$0xff]  ;;  %v636_v12 = vld [vmem:[%s11310_s4 + $0x8] sm:$0xff] }
  0x27   :  { %536 = vmatmul.mubr.f32.vlgmr.msra.gmra.mrb[0].mxu0 %v11316_v3  ;;  %4911 = vmatprep.subr.bf16.mxu1 %v4910_v43  ;;  %v100_v19 = vld [vmem:[%s11307_s1 + $0x1f8] sm:$0xff]  ;;  %v7140_v20 = vld [vmem:[%s11309_s0 + $0x30] sm:$0xff]  ;;  %v4932_v21 = vpack.c.bf16 %v91_v17, %v87_v16  ;;  %v635_v17 = vld [vmem:[%s11310_s4] sm:$0xff] }
  0x28   :  { %827 = vmatprep.mubr.f32.mxu0 %v11316_v3  ;;  %v4934_v22 = vpack.c.bf16 %v100_v19, %v96_v18  ;;  %v95_v23 = vld [vmem:[%s11307_s1 + $0x1d0] sm:$0xff]  ;;  %v410_v25 = vld [vmem:[%s11308_s2 + $0x18] sm:$0xff]  ;;  %v639_v18 = vld [vmem:[%s11310_s4 + $0x20] sm:$0xff] }
  0x29   :  { %194 = vmatmul.mubr.f32.gmra.mrb[2].mxu1 %v7043_v48  ;;  %v99_v24 = vld [vmem:[%s11307_s1 + $0x1f0] sm:$0xff]  ;;  %v414_v26 = vld [vmem:[%s11308_s2 + $0x38] sm:$0xff] }
  0x2a   :  { %4913 = vmatpush1.bf16.msra.mxu1 %v4912_v49  ;;  %199 = vmatprep.mubr.f32.mxu1 %v11316_v3  ;;  %v7159_v27 = vld [vmem:[%s11309_s0 + $0x38] sm:$0xff]  ;;  %v4936_v28 = vpack.c.bf16 %v99_v24, %v95_v23  ;;  %v7161_v29 = vpack.c.bf16 %v414_v26, %v410_v25  ;;  %v409_v30 = vld [vmem:[%s11308_s2 + $0x10] sm:$0xff]  ;;  %v644_v24 = vld [vmem:[%s11310_s4 + $0x48] sm:$0xff] }
  0x2b   :  { %4915 = vmatprep.subr.bf16.mxu1 %v4914_v50  ;;  %v413_v31 = vld [vmem:[%s11308_s2 + $0x30] sm:$0xff]  ;;  %v418_v32 = vld [vmem:[%s11308_s2 + $0x58] sm:$0xff]  ;;  %v648_v25 = vld [vmem:[%s11310_s4 + $0x68] sm:$0xff] }
  0x2c   :  { %v422_v33 = vld [vmem:[%s11308_s2 + $0x78] sm:$0xff]  ;;  %v7177_v34 = vpack.c.bf16 %v413_v31, %v409_v30  ;;  %v417_v36 = vld [vmem:[%s11308_s2 + $0x50] sm:$0xff]  ;;  %v643_v30 = vld [vmem:[%s11310_s4 + $0x40] sm:$0xff] }
  0x2d   :  { %200 = vmatmul.mubr.f32.gmra.mrb[4].mxu1 %v7064_v55  ;;  %v7180_v35 = vpack.c.bf16 %v422_v33, %v418_v32  ;;  %v421_v37 = vld [vmem:[%s11308_s2 + $0x70] sm:$0xff]  ;;  %v426_v38 = vld [vmem:[%s11308_s2 + $0x98] sm:$0xff]  ;;  %v647_v31 = vld [vmem:[%s11310_s4 + $0x60] sm:$0xff] }
  0x2e   :  { %4917 = vmatpush1.bf16.msra.mxu1 %v4916_v56  ;;  %205 = vmatprep.mubr.f32.mxu1 %v11316_v3  ;;  %v430_v39 = vld [vmem:[%s11308_s2 + $0xb8] sm:$0xff]  ;;  %v7197_v40 = vpack.c.bf16 %v421_v37, %v417_v36  ;;  %v425_v43 = vld [vmem:[%s11308_s2 + $0x90] sm:$0xff]  ;;  %v7377_v33 = vpack.c.bf16 %v647_v31, %v643_v30  ;;  %v680_v30 = vld [vmem:[%s11310_s4 + $0x168] sm:$0xff] }
  0x2f   :  { %4919 = vmatprep.subr.bf16.mxu1 %v4918_v57  ;;  %v7200_v42 = vpack.c.bf16 %v430_v39, %v426_v38  ;;  %v429_v44 = vld [vmem:[%s11308_s2 + $0xb0] sm:$0xff]  ;;  %v438_v45 = vld [vmem:[%s11308_s2 + $0xf8] sm:$0xff]  ;;  %v652_v38 = vld [vmem:[%s11310_s4 + $0x88] sm:$0xff] }
  0x30   :  { %v7217_v46 = vpack.c.bf16 %v429_v44, %v425_v43  ;;  %v433_v49 = vld [vmem:[%s11308_s2 + $0xd0] sm:$0xff]  ;;  %v446_v51 = vld [vmem:[%s11308_s2 + $0x138] sm:$0xff]  ;;  %v656_v43 = vld [vmem:[%s11310_s4 + $0xa8] sm:$0xff] }
  0x31   :  { %206 = vmatmul.mubr.f32.gmra.mrb[6].mxu1 %v7083_v62  ;;  %v437_v50 = vld [vmem:[%s11308_s2 + $0xf0] sm:$0xff]  ;;  %v454_v57 = vld [vmem:[%s11308_s2 + $0x178] sm:$0xff] }
  0x32   :  { %4921 = vmatpush1.bf16.msra.mxu1 %v4920_v63  ;;  %211 = vmatprep.mubr.f32.mxu1 %v11316_v3  ;;  %v7237_v52 = vpack.c.bf16 %v437_v50, %v433_v49  ;;  %v441_v54 = vld [vmem:[%s11308_s2 + $0x110] sm:$0xff]  ;;  %v462_v63 = vld [vmem:[%s11308_s2 + $0x1b8] sm:$0xff]  ;;  %v651_v50 = vld [vmem:[%s11310_s4 + $0x80] sm:$0xff] }
  0x33   :  { %4923 = vmatprep.subr.bf16.mxu1 %v4922_v0  ;;  %v445_v56 = vld [vmem:[%s11308_s2 + $0x130] sm:$0xff]  ;;  %v466_v5 = vld [vmem:[%s11308_s2 + $0x1d8] sm:$0xff] }
  0x34   :  { %v7257_v58 = vpack.c.bf16 %v445_v56, %v441_v54  ;;  %v449_v60 = vld [vmem:[%s11308_s2 + $0x150] sm:$0xff]  ;;  %v642_v16 = vld [vmem:[%s11310_s4 + $0x38] sm:$0xff] }
  0x35   :  { %212 = vmatmul.mubr.f32.gmra.mrb[8].mxu1 %v7102_v6  ;;  %v453_v61 = vld [vmem:[%s11308_s2 + $0x170] sm:$0xff]  ;;  %v646_v26 = vld [vmem:[%s11310_s4 + $0x58] sm:$0xff] }
  0x36   :  { %4925 = vmatpush1.bf16.msra.mxu1 %v4924_v7  ;;  %217 = vmatprep.mubr.f32.mxu1 %v11316_v3  ;;  %v7277_v0 = vpack.c.bf16 %v453_v61, %v449_v60  ;;  %v457_v2 = vld [vmem:[%s11308_s2 + $0x190] sm:$0xff]  ;;  %v654_v44 = vld [vmem:[%s11310_s4 + $0x98] sm:$0xff] }
  0x37   :  { %4927 = vmatprep.subr.bf16.mxu1 %v4926_v8  ;;  %v461_v4 = vld [vmem:[%s11308_s2 + $0x1b0] sm:$0xff]  ;;  %v678_v31 = vld [vmem:[%s11310_s4 + $0x158] sm:$0xff] }
  0x38   :  { %v7297_v7 = vpack.c.bf16 %v461_v4, %v457_v2  ;;  %v465_v9 = vld [vmem:[%s11308_s2 + $0x1d0] sm:$0xff]  ;;  %v659_v2 = vld [vmem:[%s11310_s4 + $0xc0] sm:$0xff] }
  0x39   :  { %218 = vmatmul.mubr.f32.gmra.mrb[10].mxu1 %v7121_v13  ;;  %v469_v10 = vld [vmem:[%s11308_s2 + $0x1f0] sm:$0xff] }
  0x3a   :  { %4929 = vmatpush1.bf16.msra.mxu1 %v4928_v14  ;;  %223 = vmatprep.mubr.f32.mxu1 %v11316_v3  ;;  %v7311_v11 = vpack.c.bf16 %v469_v10, %v465_v9  ;;  %v638_v14 = vld [vmem:[%s11310_s4 + $0x18] sm:$0xff]  ;;  %v645_v36 = vld [vmem:[%s11310_s4 + $0x50] sm:$0xff]  ;;  %v668_v10 = vld [vmem:[%s11310_s4 + $0x108] sm:$0xff] }
  0x3b   :  { %4931 = vmatprep.subr.bf16.mxu1 %v4930_v15  ;;  %v7339_v19 = vpack.c.bf16 %v642_v16, %v638_v14  ;;  %v649_v37 = vld [vmem:[%s11310_s4 + $0x70] sm:$0xff]  ;;  %v674_v16 = vld [vmem:[%s11310_s4 + $0x138] sm:$0xff] }
  0x3c   :  { %v7389_v39 = vpack.c.bf16 %v649_v37, %v645_v36  ;;  %v657_v56 = vld [vmem:[%s11310_s4 + $0xb0] sm:$0xff]  ;;  %v682_v36 = vld [vmem:[%s11310_s4 + $0x178] sm:$0xff] }
  0x3d   :  { %224 = vmatmul.mubr.f32.gmra.mrb[12].mxu1 %v7140_v20  ;;  %v665_v9 = vld [vmem:[%s11310_s4 + $0xf0] sm:$0xff] }
  0x3e   :  { %4933 = vmatpush1.bf16.msra.mxu1 %v4932_v21  ;;  %229 = vmatprep.mubr.f32.mxu1 %v11316_v3  ;;  %v637_v21 = vld [vmem:[%s11310_s4 + $0x10] sm:$0xff] }
  0x3f   :  { %4935 = vmatprep.subr.bf16.mxu1 %v4934_v22  ;;  %v641_v22 = vld [vmem:[%s11310_s4 + $0x30] sm:$0xff] }
  0x40   :  { %v7350_v23 = vpack.c.bf16 %v641_v22, %v637_v21  ;;  %v667_v21 = vld [vmem:[%s11310_s4 + $0x100] sm:$0xff] }
  0x41   :  { %230 = vmatmul.mubr.f32.gmra.mrb[14].mxu1 %v7159_v27  ;;  %v671_v22 = vld [vmem:[%s11310_s4 + $0x120] sm:$0xff] }
  0x42   :  { %4937 = vmatpush1.bf16.msra.mxu1 %v4936_v28  ;;  %300 = vmatprep.mubr.f32.mxu1 %v11316_v3  ;;  %v650_v28 = vld [vmem:[%s11310_s4 + $0x78] sm:$0xff]  ;;  %v7502_v37 = vpack.c.bf16 %v671_v22, %v667_v21  ;;  %v696_v21 = vld [vmem:[%s11310_s4 + $0x1e8] sm:$0xff] }
  0x43   :  { %4971 = vmatprep.subr.bf16.mxu1 %v7161_v29  ;;  %v7375_v32 = vpack.c.bf16 %v650_v28, %v646_v26  ;;  %v673_v26 = vld [vmem:[%s11310_s4 + $0x130] sm:$0xff]  ;;  %v676_v28 = vld [vmem:[%s11310_s4 + $0x148] sm:$0xff]  ;;  %v694_v22 = vld [vmem:[%s11310_s4 + $0x1d8] sm:$0xff] }
  0x45   :  { %301 = vmatmul.mubr.f32.vlgmr.msra.gmra.mrb[16].mxu1 %v7024_v41  ;;  %v434_v41 = vld [vmem:[%s11308_s2 + $0xd8] sm:$0xff] }
  0x46   :  { %4973 = vmatpush1.bf16.msra.mxu1 %v7177_v34  ;;  %306 = vmatprep.mubr.f32.mxu1 %v11316_v3  ;;  %v7220_v47 = vpack.c.bf16 %v438_v45, %v434_v41  ;;  %v658_v41 = vld [vmem:[%s11310_s4 + $0xb8] sm:$0xff]  ;;  %v7401_v45 = vpack.c.bf16 %v656_v43, %v652_v38  ;;  %v7508_v43 = vpack.c.bf16 %v680_v30, %v676_v28 }
  0x47   :  { %4975 = vmatprep.subr.bf16.mxu1 %v7180_v35  ;;  %v7403_v49 = vpack.c.bf16 %v658_v41, %v654_v44  ;;  %v675_v44 = vld [vmem:[%s11310_s4 + $0x140] sm:$0xff] }
  0x48   :  { %v679_v41 = vld [vmem:[%s11310_s4 + $0x160] sm:$0xff] }
  0x49   :  { %307 = vmatmul.mubr.f32.gmra.mrb[18].mxu1 %v7043_v48  ;;  %v442_v48 = vld [vmem:[%s11308_s2 + $0x118] sm:$0xff] }
  0x4a   :  { %4977 = vmatpush1.bf16.msra.mxu1 %v7197_v40  ;;  %312 = vmatprep.mubr.f32.mxu1 %v11316_v3  ;;  %v7240_v53 = vpack.c.bf16 %v446_v51, %v442_v48  ;;  %v655_v48 = vld [vmem:[%s11310_s4 + $0xa0] sm:$0xff]  ;;  %v653_v51 = vld [vmem:[%s11310_s4 + $0x90] sm:$0xff] }
  0x4b   :  { %4979 = vmatprep.subr.bf16.mxu1 %v7200_v42  ;;  %v7415_v54 = vpack.c.bf16 %v655_v48, %v651_v50  ;;  %v7428_v60 = vpack.c.bf16 %v657_v56, %v653_v51  ;;  %v677_v50 = vld [vmem:[%s11310_s4 + $0x150] sm:$0xff]  ;;  %v7520_v48 = vpack.c.bf16 %v682_v36, %v678_v31  ;;  %v684_v56 = vld [vmem:[%s11310_s4 + $0x188] sm:$0xff]  ;;  %v691_v31 = vld [vmem:[%s11310_s4 + $0x1c0] sm:$0xff] }
  0x4c   :  { %v681_v51 = vld [vmem:[%s11310_s4 + $0x170] sm:$0xff]  ;;  %v695_v36 = vld [vmem:[%s11310_s4 + $0x1e0] sm:$0xff] }
  0x4d   :  { %313 = vmatmul.mubr.f32.gmra.mrb[20].mxu1 %v7064_v55  ;;  %v450_v55 = vld [vmem:[%s11308_s2 + $0x158] sm:$0xff] }
  0x4e   :  { %4981 = vmatpush1.bf16.msra.mxu1 %v7217_v46  ;;  %318 = vmatprep.mubr.f32.mxu1 %v11316_v3  ;;  %v7260_v59 = vpack.c.bf16 %v454_v57, %v450_v55  ;;  %v660_v55 = vld [vmem:[%s11310_s4 + $0xc8] sm:$0xff] }
  0x4f   :  { %4983 = vmatprep.subr.bf16.mxu1 %v7220_v47  ;;  %v664_v57 = vld [vmem:[%s11310_s4 + $0xe8] sm:$0xff] }
  0x50   :  { %v7430_v61 = vpack.c.bf16 %v664_v57, %v660_v55  ;;  %v688_v55 = vld [vmem:[%s11310_s4 + $0x1a8] sm:$0xff]  ;;  %v686_v57 = vld [vmem:[%s11310_s4 + $0x198] sm:$0xff] }
  0x51   :  { %319 = vmatmul.mubr.f32.gmra.mrb[22].mxu1 %v7083_v62  ;;  %v458_v62 = vld [vmem:[%s11308_s2 + $0x198] sm:$0xff] }
  0x52   :  { %4985 = vmatpush1.bf16.msra.mxu1 %v7237_v52  ;;  %324 = vmatprep.mubr.f32.mxu1 %v11316_v3  ;;  %v7280_v1 = vpack.c.bf16 %v462_v63, %v458_v62  ;;  %v662_v62 = vld [vmem:[%s11310_s4 + $0xd8] sm:$0xff] }
  0x53   :  { %4987 = vmatprep.subr.bf16.mxu1 %v7240_v53  ;;  %v666_v63 = vld [vmem:[%s11310_s4 + $0xf8] sm:$0xff] }
  0x54   :  { %v7442_v4 = vpack.c.bf16 %v666_v63, %v662_v62  ;;  %v690_v62 = vld [vmem:[%s11310_s4 + $0x1b8] sm:$0xff]  ;;  %v7538_v63 = vpack.c.bf16 %v679_v41, %v675_v44  ;;  %v693_v44 = vld [vmem:[%s11310_s4 + $0x1d0] sm:$0xff] }
  0x55   :  { %325 = vmatmul.mubr.f32.gmra.mrb[24].mxu1 %v7102_v6  ;;  %v470_v6 = vld [vmem:[%s11308_s2 + $0x1f8] sm:$0xff] }
  0x56   :  { %4989 = vmatpush1.bf16.msra.mxu1 %v7257_v58  ;;  %330 = vmatprep.mubr.f32.mxu1 %v11316_v3  ;;  %v7300_v8 = vpack.c.bf16 %v470_v6, %v466_v5  ;;  %v663_v5 = vld [vmem:[%s11310_s4 + $0xe0] sm:$0xff]  ;;  %v661_v6 = vld [vmem:[%s11310_s4 + $0xd0] sm:$0xff] }
  0x57   :  { %4991 = vmatprep.subr.bf16.mxu1 %v7260_v59  ;;  %v7463_v14 = vpack.c.bf16 %v663_v5, %v659_v2  ;;  %v7542_v2 = vpack.c.bf16 %v681_v51, %v677_v50  ;;  %v7544_v5 = vpack.c.bf16 %v688_v55, %v684_v56  ;;  %v697_v50 = vld [vmem:[%s11310_s4 + $0x1f0] sm:$0xff]  ;;  %v700_v51 = vld [vmem:[%s11310_s4 + $0x208] sm:$0xff]  ;;  %v702_v55 = vld [vmem:[%s11310_s4 + $0x218] sm:$0xff] }
  0x58   :  { %v704_v56 = vld [vmem:[%s11310_s4 + $0x228] sm:$0xff] }
  0x59   :  { %331 = vmatmul.mubr.f32.gmra.mrb[26].mxu1 %v7121_v13  ;;  %v640_v13 = vld [vmem:[%s11310_s4 + $0x28] sm:$0xff] }
  0x5a   :  { %4993 = vmatpush1.bf16.msra.mxu1 %v7277_v0  ;;  %336 = vmatprep.mubr.f32.mxu1 %v11316_v3  ;;  %v7328_v15 = vpack.c.bf16 %v640_v13, %v636_v12  ;;  %v672_v12 = vld [vmem:[%s11310_s4 + $0x128] sm:$0xff]  ;;  %v670_v13 = vld [vmem:[%s11310_s4 + $0x118] sm:$0xff] }
  0x5b   :  { %4995 = vmatprep.subr.bf16.mxu1 %v7280_v1 }
  0x5c   :  { %5003 = vmatprep.subr.bf16.mxu0 %v7328_v15 }
  0x5d   :  { %337 = vmatmul.mubr.f32.gmra.mrb[28].mxu1 %v7140_v20  ;;  %v7341_v20 = vpack.c.bf16 %v639_v18, %v635_v17  ;;  %v7470_v17 = vpack.c.bf16 %v665_v9, %v661_v6  ;;  %v7472_v18 = vpack.c.bf16 %v672_v12, %v668_v10  ;;  %v683_v6 = vld [vmem:[%s11310_s4 + $0x180] sm:$0xff]  ;;  %v685_v10 = vld [vmem:[%s11310_s4 + $0x190] sm:$0xff]  ;;  %v7556_v12 = vpack.c.bf16 %v690_v62, %v686_v57  ;;  %v706_v57 = vld [vmem:[%s11310_s4 + $0x238] sm:$0xff] }
  0x5e   :  { %4997 = vmatpush1.bf16.msra.mxu1 %v7297_v7  ;;  %342 = vmatprep.mubr.f32.mxu1 %v11316_v3  ;;  %v687_v9 = vld [vmem:[%s11310_s4 + $0x1a0] sm:$0xff]  ;;  %v7610_v62 = vpack.c.bf16 %v695_v36, %v691_v31  ;;  %v708_v36 = vld [vmem:[%s11310_s4 + $0x248] sm:$0xff] }
  0x5f   :  { %4999 = vmatprep.subr.bf16.mxu1 %v7300_v8  ;;  %5005 = vmatpush1.bf16.msra.mxu0 %v7341_v20 }
  0x60   :  { %11501 = vst [vmem:[#allocation7_spill] sm:$0xff] %v7610_v62 }
  0x61   :  { %343 = vmatmul.mubr.f32.gmra.mrb[30].mxu1 %v7159_v27  ;;  %v7363_v27 = vpack.c.bf16 %v648_v25, %v644_v24  ;;  %v669_v24 = vld [vmem:[%s11310_s4 + $0x110] sm:$0xff]  ;;  %v7484_v25 = vpack.c.bf16 %v674_v16, %v670_v13  ;;  %v692_v16 = vld [vmem:[%s11310_s4 + $0x1c8] sm:$0xff] }
  0x62   :  { %5001 = vmatpush1.bf16.msra.mxu1 %v7311_v11  ;;  %606 = vmatprep.mubr.f32.mxu1 %v11316_v3  ;;  %v7506_v38 = vpack.c.bf16 %v673_v26, %v669_v24  ;;  %v689_v13 = vld [vmem:[%s11310_s4 + $0x1b0] sm:$0xff]  ;;  %v698_v24 = vld [vmem:[%s11310_s4 + $0x1f8] sm:$0xff]  ;;  %v7574_v26 = vpack.c.bf16 %v687_v9, %v683_v6  ;;  %v7580_v30 = vpack.c.bf16 %v696_v21, %v692_v16 }
  0x63   :  { %5067 = vmatprep.subr.bf16.mxu1 %v7339_v19  ;;  %5007 = vmatprep.subr.bf16.mxu0 %v7363_v27  ;;  %v7578_v28 = vpack.c.bf16 %v689_v13, %v685_v10  ;;  %v7592_v41 = vpack.c.bf16 %v698_v24, %v694_v22  ;;  %v7614_v6 = vpack.c.bf16 %v697_v50, %v693_v44  ;;  %v699_v10 = vld [vmem:[%s11310_s4 + $0x200] sm:$0xff]  ;;  %v701_v21 = vld [vmem:[%s11310_s4 + $0x210] sm:$0xff]  ;;  %v712_v44 = vld [vmem:[%s11310_s4 + $0x268] sm:$0xff] }
  0x64   :  { %5009 = vmatpush1.bf16.msra.mxu0 %v7377_v33  ;;  %11499 = vst [vmem:[#allocation5_spill] sm:$0xff] %v7580_v30  ;;  %v7616_v9 = vpack.c.bf16 %v704_v56, %v700_v51  ;;  %v703_v13 = vld [vmem:[%s11310_s4 + $0x220] sm:$0xff]  ;;  %v7625_v16 = vpack.c.bf16 %v706_v57, %v702_v55  ;;  %v705_v22 = vld [vmem:[%s11310_s4 + $0x230] sm:$0xff]  ;;  %v710_v50 = vld [vmem:[%s11310_s4 + $0x258] sm:$0xff]  ;;  %v7652_v51 = vpack.c.bf16 %v712_v44, %v708_v36 }
  0x65   :  { %607 = vmatmul.mubr.f32.vlgmr.msra.gmra.mrb[16].mxu1 %v11316_v3  ;;  %5011 = vmatprep.subr.bf16.mxu0 %v7401_v45  ;;  %11498 = vst [vmem:[#allocation4_spill] sm:$0xff] %v7578_v28  ;;  %11500 = vst [vmem:[#allocation6_spill] sm:$0xff] %v7592_v41  ;;  %v7634_v24 = vpack.c.bf16 %v703_v13, %v699_v10  ;;  %v7638_v31 = vpack.c.bf16 %v705_v22, %v701_v21  ;;  %v714_v56 = vld [vmem:[%s11310_s4 + $0x278] sm:$0xff]  ;;  %v707_v55 = vld [vmem:[%s11310_s4 + $0x240] sm:$0xff] }
  0x66   :  { %898 = vmatprep.mubr.f32.mxu1 %v11316_v3  ;;  %5069 = vmatpush1.bf16.msra.mxu1 %v7350_v23  ;;  %11502 = vst [vmem:[#allocation8_spill] sm:$0xff] %v7614_v6  ;;  %11503 = vst [vmem:[#allocation9_spill] sm:$0xff] %v7616_v9  ;;  %v711_v57 = vld [vmem:[%s11310_s4 + $0x260] sm:$0xff]  ;;  %v7663_v10 = vpack.c.bf16 %v714_v56, %v710_v50  ;;  %v709_v21 = vld [vmem:[%s11310_s4 + $0x250] sm:$0xff] }
  0x67   :  { %5071 = vmatprep.subr.bf16.mxu1 %v7375_v32  ;;  %11504 = vst [vmem:[#allocation10_spill] sm:$0xff] %v7625_v16  ;;  %11505 = vst [vmem:[#allocation11_spill] sm:$0xff] %v7634_v24  ;;  %v7665_v13 = vpack.c.bf16 %v711_v57, %v707_v55  ;;  %v713_v22 = vld [vmem:[%s11310_s4 + $0x270] sm:$0xff]  ;;  %v716_v44 = vld [vmem:[%s11310_s4 + $0x288] sm:$0xff] }
  0x68   :  { %5013 = vmatpush1.bf16.msra.mxu0 %v7415_v54  ;;  %11506 = vst [vmem:[#allocation12_spill] sm:$0xff] %v7638_v31  ;;  %11507 = vst [vmem:[#allocation13_spill] sm:$0xff] %v7652_v51  ;;  %v7674_v36 = vpack.c.bf16 %v713_v22, %v709_v21  ;;  %v720_v50 = vld [vmem:[%s11310_s4 + $0x2a8] sm:$0xff]  ;;  %v718_v56 = vld [vmem:[%s11310_s4 + $0x298] sm:$0xff] }
  0x69   :  { %5015 = vmatprep.subr.bf16.mxu0 %v7430_v61  ;;  %11508 = vst [vmem:[#allocation14_spill] sm:$0xff] %v7663_v10  ;;  %11509 = vst [vmem:[#allocation15_spill] sm:$0xff] %v7665_v13  ;;  %v7688_v55 = vpack.c.bf16 %v720_v50, %v716_v44  ;;  %v722_v57 = vld [vmem:[%s11310_s4 + $0x2b8] sm:$0xff]  ;;  %v715_v21 = vld [vmem:[%s11310_s4 + $0x280] sm:$0xff] }
  0x6a   :  { %5073 = vmatpush1.bf16.msra.mxu1 %v7389_v39  ;;  %11510 = vst [vmem:[#allocation16_spill] sm:$0xff] %v7674_v36  ;;  %v719_v22 = vld [vmem:[%s11310_s4 + $0x2a0] sm:$0xff]  ;;  %v7699_v3 = vpack.c.bf16 %v722_v57, %v718_v56  ;;  %v717_v44 = vld [vmem:[%s11310_s4 + $0x290] sm:$0xff]  ;;  %v724_v56 = vld [vmem:[%s11310_s4 + $0x2c8] sm:$0xff] }
  0x6b   :  { %5075 = vmatprep.subr.bf16.mxu1 %v7403_v49  ;;  %11511 = vst [vmem:[#allocation17_spill] sm:$0xff] %v7688_v55  ;;  %v721_v50 = vld [vmem:[%s11310_s4 + $0x2b0] sm:$0xff]  ;;  %v728_v57 = vld [vmem:[%s11310_s4 + $0x2e8] sm:$0xff] }
  0x6c   :  { %5017 = vmatpush1.bf16.msra.mxu0 %v7463_v14  ;;  %11512 = vst [vmem:[#allocation18_spill] sm:$0xff] %v7699_v3 }
  0x6d   :  { %5019 = vmatprep.subr.bf16.mxu0 %v7472_v18 }
  0x6e   :  { %5077 = vmatpush1.bf16.msra.mxu1 %v7428_v60 }
  0x6f   :  { %5079 = vmatprep.subr.bf16.mxu1 %v7442_v4 }
  0x70   :  { %5021 = vmatpush1.bf16.msra.mxu0 %v7502_v37 }
  0x71   :  { %5023 = vmatprep.subr.bf16.mxu0 %v7508_v43 }
  0x72   :  { %5081 = vmatpush1.bf16.msra.mxu1 %v7470_v17 }
  0x73   :  { %5083 = vmatprep.subr.bf16.mxu1 %v7484_v25 }
  0x74   :  { %5025 = vmatpush1.bf16.msra.mxu0 %v7538_v63 }
  0x75   :  { %5027 = vmatprep.subr.bf16.mxu0 %v7544_v5 }
  0x76   :  { %5085 = vmatpush1.bf16.msra.mxu1 %v7506_v38 }
  0x77   :  { %5087 = vmatprep.subr.bf16.mxu1 %v7520_v48 }
  0x78   :  { %5029 = vmatpush1.bf16.msra.mxu0 %v7574_v26 }
  0x79   :  { %5031 = vmatprep.subr.bf16.mxu0 %v7580_v30 }
  0x7a   :  { %5089 = vmatpush1.bf16.msra.mxu1 %v7542_v2 }
  0x7b   :  { %5091 = vmatprep.subr.bf16.mxu1 %v7556_v12 }
  0x7c   :  { %5033 = vmatpush1.bf16.msra.mxu0 %v7610_v62 }
  0x7d   :  { %5035 = vmatprep.subr.bf16.mxu0 %v7616_v9 }
  0x7e   :  { %5093 = vmatpush1.bf16.msra.mxu1 %v7578_v28 }
  0x7f   :  { %5095 = vmatprep.subr.bf16.mxu1 %v7592_v41 }
  0x80   :  { %5037 = vmatpush1.bf16.msra.mxu0 %v7634_v24 }
  0x81   :  { %5039 = vmatprep.subr.bf16.mxu0 %v7652_v51 }
  0x82   :  { %5097 = vmatpush1.bf16.msra.mxu1 %v7614_v6 }
  0x83   :  { %5099 = vmatprep.subr.bf16.mxu1 %v7625_v16 }
  0x84   :  { %5041 = vmatpush1.bf16.msra.mxu0 %v7665_v13  ;;  %v7701_v13 = vpack.c.bf16 %v719_v22, %v715_v21  ;;  %v726_v21 = vld [vmem:[%s11310_s4 + $0x2d8] sm:$0xff]  ;;  %v7724_v22 = vpack.c.bf16 %v728_v57, %v724_v56  ;;  %v725_v56 = vld [vmem:[%s11310_s4 + $0x2d0] sm:$0xff] }
  0x85   :  { %5043 = vmatprep.subr.bf16.mxu0 %v7688_v55  ;;  %v729_v57 = vld [vmem:[%s11310_s4 + $0x2f0] sm:$0xff] }
  0x86   :  { %5101 = vmatpush1.bf16.msra.mxu1 %v7638_v31  ;;  %11513 = vst [vmem:[#allocation19_spill] sm:$0xff] %v7701_v13  ;;  %11515 = vst [vmem:[#allocation21_spill] sm:$0xff] %v7724_v22 }
  0x87   :  { %5103 = vmatprep.subr.bf16.mxu1 %v7663_v10 }
  0x88   :  { %5045 = vmatpush1.bf16.msra.mxu0 %v7701_v13  ;;  %v727_v13 = vld [vmem:[%s11310_s4 + $0x2e0] sm:$0xff] }
  0x89   :  { %5047 = vmatprep.subr.bf16.mxu0 %v7724_v22 }
  0x8a   :  { %5105 = vmatpush1.bf16.msra.mxu1 %v7674_v36  ;;  %v7710_v36 = vpack.c.bf16 %v721_v50, %v717_v44  ;;  %v730_v44 = vld [vmem:[%s11310_s4 + $0x2f8] sm:$0xff]  ;;  %v723_v50 = vld [vmem:[%s11310_s4 + $0x2c0] sm:$0xff] }
  0x8b   :  { %5107 = vmatprep.subr.bf16.mxu1 %v7699_v3  ;;  %v7735_v3 = vpack.c.bf16 %v730_v44, %v726_v21  ;;  %v7737_v55 = vpack.c.bf16 %v727_v13, %v723_v50  ;;  %v732_v13 = vld [vmem:[%s11310_s4 + $0x308] sm:$0xff]  ;;  %v734_v44 = vld [vmem:[%s11310_s4 + $0x318] sm:$0xff] }
  0x8c   :  { %11514 = vst [vmem:[#allocation20_spill] sm:$0xff] %v7710_v36  ;;  %v736_v21 = vld [vmem:[%s11310_s4 + $0x328] sm:$0xff] }
  0x8d   :  { %11516 = vst [vmem:[#allocation22_spill] sm:$0xff] %v7735_v3  ;;  %11517 = vst [vmem:[#allocation23_spill] sm:$0xff] %v7737_v55  ;;  %5049 = vmatpush1.bf16.msra.mxu0 %v7737_v55  ;;  %v7760_v50 = vpack.c.bf16 %v736_v21, %v732_v13  ;;  %v735_v55 = vld [vmem:[%s11310_s4 + $0x320] sm:$0xff]  ;;  %v733_v13 = vld [vmem:[%s11310_s4 + $0x310] sm:$0xff] }
  0x8e   :  { %5109 = vmatpush1.bf16.msra.mxu1 %v7710_v36  ;;  %v7746_v36 = vpack.c.bf16 %v729_v57, %v725_v56  ;;  %v738_v56 = vld [vmem:[%s11310_s4 + $0x338] sm:$0xff]  ;;  %v731_v57 = vld [vmem:[%s11310_s4 + $0x300] sm:$0xff]  ;;  %v737_v21 = vld [vmem:[%s11310_s4 + $0x330] sm:$0xff] }
  0x8f   :  { %5111 = vmatprep.subr.bf16.mxu1 %v7735_v3  ;;  %11519 = vst [vmem:[#allocation25_spill] sm:$0xff] %v7760_v50  ;;  %v7771_v3 = vpack.c.bf16 %v738_v56, %v734_v44  ;;  %v7773_v22 = vpack.c.bf16 %v735_v55, %v731_v57  ;;  %5051 = vmatprep.subr.bf16.mxu0 %v7760_v50  ;;  %v740_v55 = vld [vmem:[%s11310_s4 + $0x348] sm:$0xff]  ;;  %v742_v56 = vld [vmem:[%s11310_s4 + $0x358] sm:$0xff] }
  0x90   :  { %11518 = vst [vmem:[#allocation24_spill] sm:$0xff] %v7746_v36  ;;  %v744_v44 = vld [vmem:[%s11310_s4 + $0x368] sm:$0xff] }
  0x91   :  { %11520 = vst [vmem:[#allocation26_spill] sm:$0xff] %v7771_v3  ;;  %11521 = vst [vmem:[#allocation27_spill] sm:$0xff] %v7773_v22  ;;  %5053 = vmatpush1.bf16.msra.mxu0 %v7773_v22  ;;  %v7796_v57 = vpack.c.bf16 %v744_v44, %v740_v55  ;;  %v743_v22 = vld [vmem:[%s11310_s4 + $0x360] sm:$0xff]  ;;  %v741_v55 = vld [vmem:[%s11310_s4 + $0x350] sm:$0xff] }
  0x92   :  { %5113 = vmatpush1.bf16.msra.mxu1 %v7746_v36  ;;  %v7782_v36 = vpack.c.bf16 %v737_v21, %v733_v13  ;;  %v746_v13 = vld [vmem:[%s11310_s4 + $0x378] sm:$0xff]  ;;  %v739_v21 = vld [vmem:[%s11310_s4 + $0x340] sm:$0xff]  ;;  %v745_v44 = vld [vmem:[%s11310_s4 + $0x370] sm:$0xff] }
  0x93   :  { %5115 = vmatprep.subr.bf16.mxu1 %v7771_v3  ;;  %11523 = vst [vmem:[#allocation29_spill] sm:$0xff] %v7796_v57  ;;  %v7807_v3 = vpack.c.bf16 %v746_v13, %v742_v56  ;;  %v7809_v50 = vpack.c.bf16 %v743_v22, %v739_v21  ;;  %5055 = vmatprep.subr.bf16.mxu0 %v7796_v57  ;;  %v748_v22 = vld [vmem:[%s11310_s4 + $0x388] sm:$0xff]  ;;  %v750_v13 = vld [vmem:[%s11310_s4 + $0x398] sm:$0xff] }
  0x94   :  { %11522 = vst [vmem:[#allocation28_spill] sm:$0xff] %v7782_v36  ;;  %v752_v56 = vld [vmem:[%s11310_s4 + $0x3a8] sm:$0xff] }
  0x95   :  { %11524 = vst [vmem:[#allocation30_spill] sm:$0xff] %v7807_v3  ;;  %11525 = vst [vmem:[#allocation31_spill] sm:$0xff] %v7809_v50  ;;  %5057 = vmatpush1.bf16.msra.mxu0 %v7809_v50  ;;  %v7832_v21 = vpack.c.bf16 %v752_v56, %v748_v22  ;;  %v751_v50 = vld [vmem:[%s11310_s4 + $0x3a0] sm:$0xff]  ;;  %v749_v22 = vld [vmem:[%s11310_s4 + $0x390] sm:$0xff] }
  0x96   :  { %5117 = vmatpush1.bf16.msra.mxu1 %v7782_v36  ;;  %v7818_v36 = vpack.c.bf16 %v745_v44, %v741_v55  ;;  %v754_v55 = vld [vmem:[%s11310_s4 + $0x3b8] sm:$0xff]  ;;  %v747_v44 = vld [vmem:[%s11310_s4 + $0x380] sm:$0xff]  ;;  %v753_v56 = vld [vmem:[%s11310_s4 + $0x3b0] sm:$0xff] }
  0x97   :  { %5119 = vmatprep.subr.bf16.mxu1 %v7807_v3  ;;  %11527 = vst [vmem:[#allocation33_spill] sm:$0xff] %v7832_v21  ;;  %v7843_v3 = vpack.c.bf16 %v754_v55, %v750_v13  ;;  %v7845_v57 = vpack.c.bf16 %v751_v50, %v747_v44  ;;  %5059 = vmatprep.subr.bf16.mxu0 %v7832_v21  ;;  %v756_v50 = vld [vmem:[%s11310_s4 + $0x3c8] sm:$0xff]  ;;  %v758_v55 = vld [vmem:[%s11310_s4 + $0x3d8] sm:$0xff] }
  0x98   :  { %11526 = vst [vmem:[#allocation32_spill] sm:$0xff] %v7818_v36  ;;  %v760_v13 = vld [vmem:[%s11310_s4 + $0x3e8] sm:$0xff] }
  0x99   :  { %11528 = vst [vmem:[#allocation34_spill] sm:$0xff] %v7843_v3  ;;  %11529 = vst [vmem:[#allocation35_spill] sm:$0xff] %v7845_v57  ;;  %5061 = vmatpush1.bf16.msra.mxu0 %v7845_v57  ;;  %v7868_v44 = vpack.c.bf16 %v760_v13, %v756_v50  ;;  %v759_v57 = vld [vmem:[%s11310_s4 + $0x3e0] sm:$0xff]  ;;  %v757_v50 = vld [vmem:[%s11310_s4 + $0x3d0] sm:$0xff] }
  0x9a   :  { %5121 = vmatpush1.bf16.msra.mxu1 %v7818_v36  ;;  %v7854_v36 = vpack.c.bf16 %v753_v56, %v749_v22  ;;  %v762_v22 = vld [vmem:[%s11310_s4 + $0x3f8] sm:$0xff]  ;;  %v755_v56 = vld [vmem:[%s11310_s4 + $0x3c0] sm:$0xff]  ;;  %v761_v13 = vld [vmem:[%s11310_s4 + $0x3f0] sm:$0xff] }
  0x9b   :  { %5123 = vmatprep.subr.bf16.mxu1 %v7843_v3  ;;  %11531 = vst [vmem:[#allocation37_spill] sm:$0xff] %v7868_v44  ;;  %v7879_v3 = vpack.c.bf16 %v762_v22, %v758_v55  ;;  %v7881_v21 = vpack.c.bf16 %v759_v57, %v755_v56  ;;  %5063 = vmatprep.subr.bf16.mxu0 %v7868_v44  ;;  %v930_v57 = vld [vmem:[%s11308_s2 + $0x8] sm:$0xff]  ;;  %v103_v56 = vlaneseq }
  0x9c   :  { %11530 = vst [vmem:[#allocation36_spill] sm:$0xff] %v7854_v36  ;;  %v934_v55 = vld [vmem:[%s11308_s2 + $0x28] sm:$0xff] }
  0x9d   :  { %11532 = vst [vmem:[#allocation38_spill] sm:$0xff] %v7879_v3  ;;  %11533 = vst [vmem:[#allocation39_spill] sm:$0xff] %v7881_v21  ;;  %5065 = vmatpush1.bf16.msra.mxu0 %v7881_v21  ;;  %v7901_v22 = vpack.c.bf16 %v934_v55, %v930_v57  ;;  %v101_v21 = vld [vmem:[%s11311_s3] sm:$0xf] }
  0x9e   :  { %5125 = vmatpush1.bf16.msra.mxu1 %v7854_v36  ;;  %v7890_v36 = vpack.c.bf16 %v761_v13, %v757_v50  ;;  %v7905_v50 = vshrl.u32 %v103_v56, 7 }
  0x9f   :  { %5127 = vmatprep.subr.bf16.mxu1 %v7879_v3  ;;  %11535 = vst [vmem:[#allocation41_spill] sm:$0xff] %v7901_v22  ;;  %5131 = vmatprep.subr.bf16.mxu0 %v7901_v22 }
  0xa0   :  { %11534 = vst [vmem:[#allocation40_spill] sm:$0xff] %v7890_v36  ;;  %v11354_v13 = vsub.s32 0, %v7905_v50  ;;  %v11356_v3 = vsub.s32 1, %v7905_v50 }
  0xa2   :  { %5129 = vmatpush1.bf16.msra.mxu1 %v7890_v36  ;;  %v106_v36 = vrot.slane %v101_v21, %v11354_v13  ;;  %v110_v57 = vrot.slane %v101_v21, %v11356_v3 }
  0xa3   :  { %5163 = vmatprep.subr.bf16.mxu1 %v7161_v29 }
  0xf8   :  { %v189_v29 = vpop.f32.mrb[0].mxu1 }
  0xf9   :  { %v190_v55 = vadd.f32 %v189_v29, %v106_v36  ;;  %v191_v22 = vpop.f32.mrb[1].mxu1 }
  0xfa   :  { %v537_v44 = vpop.f32.mrb[0].mxu0  ;;  %v192_v56 = vadd.f32 %v191_v22, %v110_v57 }
  0xfb   :  { %v539_v10 = vpop.f32.mrb[1].mxu0  ;;  %v613_v51 = vadd.f32 %v537_v44, %v190_v55 }
  0xfc   :  { %v614_v31 = vadd.f32 %v539_v10, %v192_v56  ;;  %v195_v24 = vpop.f32.mrb[2].mxu1 }
  0xfd   :  { %v7916_v16 = vadd.f32 %v195_v24, %v106_v36  ;;  %v197_v9 = vpop.f32.mrb[3].mxu1 }
  0xfe   :  { %v7918_v6 = vadd.f32 %v197_v9, %v110_v57 }
 0x100   :  { %v201_v62 = vpop.f32.mrb[4].mxu1 }
 0x101   :  { %v7920_v41 = vadd.f32 %v201_v62, %v106_v36  ;;  %v203_v13 = vpop.f32.mrb[5].mxu1 }
 0x102   :  { %v7922_v30 = vadd.f32 %v203_v13, %v110_v57 }
 0x103   :  { %11536 = vst [vmem:[#allocation42_spill] sm:$0xff] %v7920_v41 }
 0x104   :  { %11537 = vst [vmem:[#allocation43_spill] sm:$0xff] %v7922_v30  ;;  %v207_v3 = vpop.f32.mrb[6].mxu1 }
 0x105   :  { %v7924_v29 = vadd.f32 %v207_v3, %v106_v36  ;;  %v209_v28 = vpop.f32.mrb[7].mxu1 }
 0x106   :  { %v7926_v22 = vadd.f32 %v209_v28, %v110_v57 }
 0x107   :  { %11538 = vst [vmem:[#allocation44_spill] sm:$0xff] %v7924_v29 }
 0x108   :  { %11539 = vst [vmem:[#allocation45_spill] sm:$0xff] %v7926_v22  ;;  %v213_v44 = vpop.f32.mrb[8].mxu1 }
 0x109   :  { %v7928_v10 = vadd.f32 %v213_v44, %v106_v36  ;;  %v215_v24 = vpop.f32.mrb[9].mxu1 }
 0x10a   :  { %v7930_v55 = vadd.f32 %v215_v24, %v110_v57  ;;  %v621_v24 = vmul.f32 0.5, %v614_v31 }
 0x10b   :  { %11540 = vst [vmem:[#allocation46_spill] sm:$0xff] %v7928_v10 }
 0x10c   :  { %11541 = vst [vmem:[#allocation47_spill] sm:$0xff] %v7930_v55  ;;  %v219_v9 = vpop.f32.mrb[10].mxu1  ;;  %v617_v55 = vmul.f32 0.5, %v613_v51  ;;  %6571 = vtanh.f32 %v621_v24 }
 0x10d   :  { %v7932_v56 = vadd.f32 %v219_v9, %v106_v36  ;;  %v221_v62 = vpop.f32.mrb[11].mxu1  ;;  %v11358_v9 = vsub.s32 2, %v7905_v50 }
 0x10e   :  { %v7934_v41 = vadd.f32 %v221_v62, %v110_v57  ;;  %v11359_v62 = vsub.s32 3, %v7905_v50  ;;  %6573 = vtanh.f32 %v617_v55 }
 0x10f   :  { %11542 = vst [vmem:[#allocation48_spill] sm:$0xff] %v7932_v56  ;;  %v1748_v56 = vld [vmem:[%s11310_s4 + $0x220] sm:$0xff] }
 0x110   :  { %11543 = vst [vmem:[#allocation49_spill] sm:$0xff] %v7934_v41  ;;  %v225_v13 = vpop.f32.mrb[12].mxu1 }
 0x111   :  { %v7936_v30 = vadd.f32 %v225_v13, %v106_v36  ;;  %v227_v3 = vpop.f32.mrb[13].mxu1  ;;  %v7948_v13 = vrot.slane %v101_v21, %v11358_v9 }
 0x112   :  { %v7938_v29 = vadd.f32 %v227_v3, %v110_v57  ;;  %v7952_v3 = vrot.slane %v101_v21, %v11359_v62 }
 0x113   :  { %11544 = vst [vmem:[#allocation50_spill] sm:$0xff] %v7936_v30 }
 0x114   :  { %11545 = vst [vmem:[#allocation51_spill] sm:$0xff] %v7938_v29  ;;  %v231_v28 = vpop.f32.mrb[14].mxu1 }
 0x115   :  { %v7940_v22 = vadd.f32 %v231_v28, %v106_v36  ;;  %v233_v44 = vpop.f32.mrb[15].mxu1 }
 0x116   :  { %v7942_v10 = vadd.f32 %v233_v44, %v110_v57  ;;  %v6572_v51 = vpop.eup %6571 }
 0x117   :  { %11546 = vst [vmem:[#allocation52_spill] sm:$0xff] %v7940_v22  ;;  %v623_v24 = vmul.f32 0.5, %v6572_v51  ;;  %v937_v51 = vld [vmem:[%s11308_s2 + $0x40] sm:$0xff] }
 0x118   :  { %11547 = vst [vmem:[#allocation53_spill] sm:$0xff] %v7942_v10  ;;  %v6574_v44 = vpop.eup %6573 }
 0x119   :  { %v619_v55 = vmul.f32 0.5, %v6574_v44  ;;  %v624_v22 = vadd.f32 0.5, %v623_v24  ;;  %v941_v44 = vld [vmem:[%s11308_s2 + $0x60] sm:$0xff]  ;;  %v946_v24 = vld [vmem:[%s11308_s2 + $0x88] sm:$0xff] }
 0x11b   :  { %v620_v9 = vadd.f32 0.5, %v619_v55  ;;  %v630_v30 = vmul.f32 0.0, %v624_v22  ;;  %v7993_v55 = vpack.c.bf16 %v941_v44, %v937_v51  ;;  %v957_v51 = vld [vmem:[%s11308_s2 + $0xe0] sm:$0xff]  ;;  %v966_v44 = vld [vmem:[%s11308_s2 + $0x128] sm:$0xff] }
 0x138   :  { %v608_v36 = vpop.f32.mrb[16].mxu1 }
 0x139   :  { %v6538_v57 = vadd.f32 %v608_v36, %v7948_v13  ;;  %v610_v28 = vpop.f32.mrb[17].mxu1 }
 0x13a   :  { %v6539_v31 = vadd.f32 %v610_v28, %v7952_v3  ;;  %v933_v28 = vld [vmem:[%s11308_s2 + $0x20] sm:$0xff] }
 0x13b   :  { %6575 = vtanh.f32 %v6538_v57  ;;  %v929_v57 = vld [vmem:[%s11308_s2] sm:$0xff] }
 0x13c   :  { %v626_v10 = vmul.f32 0.5, %v6539_v31  ;;  %v7971_v22 = vpack.c.bf16 %v933_v28, %v929_v57  ;;  %v945_v57 = vld [vmem:[%s11308_s2 + $0x80] sm:$0xff] }
 0x13d   :  { %v949_v28 = vld [vmem:[%s11308_s2 + $0xa0] sm:$0xff] }
 0x13e   :  { %6577 = vtanh.f32 %v626_v10  ;;  %v938_v10 = vld [vmem:[%s11308_s2 + $0x48] sm:$0xff] }
 0x145   :  { %v6576_v29 = vpop.eup %6575 }
 0x146   :  { %v631_v41 = vmul.f32 %v6576_v29, %v620_v9 }
 0x148   :  { %v7956_v21 = vadd.f32 %v631_v41, %v630_v30  ;;  %v6578_v36 = vpop.eup %6577  ;;  %v942_v30 = vld [vmem:[%s11308_s2 + $0x68] sm:$0xff] }
 0x149   :  { %v628_v62 = vmul.f32 0.5, %v6578_v36  ;;  %v7975_v31 = vpack.c.bf16 %v942_v30, %v938_v10  ;;  %v958_v10 = vld [vmem:[%s11308_s2 + $0xe8] sm:$0xff]  ;;  %v11548_v30 = vmov 0.0  }
 0x14a   :  { %6579 = vtanh.f32 %v7956_v21 }
 0x14b   :  { %v629_v41 = vadd.f32 0.5, %v628_v62  ;;  %v950_v62 = vld [vmem:[%s11308_s2 + $0xa8] sm:$0xff] }
 0x14c   :  { %v7997_v36 = vpack.c.bf16 %v950_v62, %v946_v24  ;;  %v961_v62 = vld [vmem:[%s11308_s2 + $0x100] sm:$0xff] }
 0x154   :  { %v6580_v29 = vpop.eup %6579 }
 0x155   :  { %v7973_v9 = vmul.f32 %v6580_v29, %v629_v41  ;;  %v953_v29 = vld [vmem:[%s11308_s2 + $0xc0] sm:$0xff] }
 0x157   :  { %828 = vmatmul.mubr.f32.vlgmr.msra.gmra.mrb[2].mxu0 %v7973_v9  ;;  %899 = vmatmul.mubr.f32.vlgmr.msra.gmra.mrb[32].mxu1 %v7973_v9 }
 0x158   :  { %5133 = vmatpush1.bf16.msra.mxu0 %v7971_v22  ;;  %5165 = vmatpush1.bf16.msra.mxu1 %v7177_v34  ;;  %v954_v34 = vld [vmem:[%s11308_s2 + $0xc8] sm:$0xff] }
 0x159   :  { %5135 = vmatprep.subr.bf16.mxu0 %v7975_v31  ;;  %5167 = vmatprep.subr.bf16.mxu1 %v7180_v35  ;;  %v8015_v35 = vpack.c.bf16 %v949_v28, %v945_v57  ;;  %v8019_v41 = vpack.c.bf16 %v958_v10, %v954_v34  ;;  %v965_v57 = vld [vmem:[%s11308_s2 + $0x120] sm:$0xff]  ;;  %v974_v28 = vld [vmem:[%s11308_s2 + $0x168] sm:$0xff] }
 0x15a   :  { %1057 = vmatprep.mubr.f32.mxu0 %v11548_v30  ;;  %1128 = vmatprep.mubr.f32.mxu1 %v11548_v30  ;;  %v969_v10 = vld [vmem:[%s11308_s2 + $0x140] sm:$0xff] }
 0x15c   :  { %5137 = vmatpush1.bf16.msra.mxu0 %v7993_v55  ;;  %5169 = vmatpush1.bf16.msra.mxu1 %v7197_v40  ;;  %v962_v40 = vld [vmem:[%s11308_s2 + $0x108] sm:$0xff] }
 0x15d   :  { %5139 = vmatprep.subr.bf16.mxu0 %v7997_v36  ;;  %5171 = vmatprep.subr.bf16.mxu1 %v7200_v42  ;;  %v8035_v42 = vpack.c.bf16 %v957_v51, %v953_v29  ;;  %v8039_v24 = vpack.c.bf16 %v966_v44, %v962_v40  ;;  %v973_v29 = vld [vmem:[%s11308_s2 + $0x160] sm:$0xff]  ;;  %v982_v51 = vld [vmem:[%s11308_s2 + $0x1a8] sm:$0xff] }
 0x15e   :  { %v977_v44 = vld [vmem:[%s11308_s2 + $0x180] sm:$0xff] }
 0x160   :  { %5141 = vmatpush1.bf16.msra.mxu0 %v8015_v35  ;;  %5173 = vmatpush1.bf16.msra.mxu1 %v7217_v46  ;;  %v970_v46 = vld [vmem:[%s11308_s2 + $0x148] sm:$0xff] }
 0x161   :  { %5143 = vmatprep.subr.bf16.mxu0 %v8019_v41  ;;  %5175 = vmatprep.subr.bf16.mxu1 %v7220_v47  ;;  %v8055_v47 = vpack.c.bf16 %v965_v57, %v961_v62  ;;  %v8059_v34 = vpack.c.bf16 %v974_v28, %v970_v46  ;;  %v981_v62 = vld [vmem:[%s11308_s2 + $0x1a0] sm:$0xff]  ;;  %v990_v57 = vld [vmem:[%s11308_s2 + $0x1e8] sm:$0xff] }
 0x162   :  { %v985_v28 = vld [vmem:[%s11308_s2 + $0x1c0] sm:$0xff] }
 0x164   :  { %5145 = vmatpush1.bf16.msra.mxu0 %v8035_v42  ;;  %5177 = vmatpush1.bf16.msra.mxu1 %v7237_v52  ;;  %v978_v52 = vld [vmem:[%s11308_s2 + $0x188] sm:$0xff] }
 0x165   :  { %5147 = vmatprep.subr.bf16.mxu0 %v8039_v24  ;;  %5179 = vmatprep.subr.bf16.mxu1 %v7240_v53  ;;  %v8075_v53 = vpack.c.bf16 %v973_v29, %v969_v10  ;;  %v8079_v40 = vpack.c.bf16 %v982_v51, %v978_v52  ;;  %v989_v10 = vld [vmem:[%s11308_s2 + $0x1e0] sm:$0xff]  ;;  %v11582_v52 = vld [vmem:[#allocation37_spill] sm:$0xff]  ;;  %v11583_v51 = vld [vmem:[#allocation38_spill] sm:$0xff] }
 0x166   :  { %v11581_v29 = vld [vmem:[#allocation36_spill] sm:$0xff] }
 0x168   :  { %5149 = vmatpush1.bf16.msra.mxu0 %v8055_v47  ;;  %5181 = vmatpush1.bf16.msra.mxu1 %v7257_v58  ;;  %v986_v58 = vld [vmem:[%s11308_s2 + $0x1c8] sm:$0xff] }
 0x169   :  { %5151 = vmatprep.subr.bf16.mxu0 %v8059_v34  ;;  %5183 = vmatprep.subr.bf16.mxu1 %v7260_v59  ;;  %v8095_v59 = vpack.c.bf16 %v981_v62, %v977_v44  ;;  %v8099_v46 = vpack.c.bf16 %v990_v57, %v986_v58  ;;  %v11584_v44 = vld [vmem:[#allocation39_spill] sm:$0xff]  ;;  %v11585_v62 = vld [vmem:[#allocation40_spill] sm:$0xff]  ;;  %v11586_v58 = vld [vmem:[#allocation41_spill] sm:$0xff] }
 0x16a   :  { %v1455_v57 = vld [vmem:[%s11308_s2 + $0x18] sm:$0xff] }
 0x16c   :  { %5153 = vmatpush1.bf16.msra.mxu0 %v8075_v53  ;;  %5185 = vmatpush1.bf16.msra.mxu1 %v7277_v0  ;;  %v8109_v0 = vpack.c.bf16 %v989_v10, %v985_v28  ;;  %v1459_v28 = vld [vmem:[%s11308_s2 + $0x38] sm:$0xff] }
 0x16d   :  { %5155 = vmatprep.subr.bf16.mxu0 %v8079_v40  ;;  %5187 = vmatprep.subr.bf16.mxu1 %v7280_v1  ;;  %v11549_v1 = vld [vmem:[#allocation4_spill] sm:$0xff]  ;;  %v8188_v10 = vpack.c.bf16 %v1459_v28, %v1455_v57 }
 0x170   :  { %5157 = vmatpush1.bf16.msra.mxu0 %v8095_v59  ;;  %5189 = vmatpush1.bf16.msra.mxu1 %v7297_v7  ;;  %v11550_v7 = vld [vmem:[#allocation5_spill] sm:$0xff] }
 0x171   :  { %5159 = vmatprep.subr.bf16.mxu0 %v8099_v46  ;;  %5191 = vmatprep.subr.bf16.mxu1 %v7300_v8  ;;  %v11551_v8 = vld [vmem:[#allocation6_spill] sm:$0xff] }
 0x174   :  { %5161 = vmatpush1.bf16.msra.mxu0 %v8109_v0  ;;  %5193 = vmatpush1.bf16.msra.mxu1 %v7311_v11  ;;  %v11552_v11 = vld [vmem:[#allocation7_spill] sm:$0xff] }
 0x175   :  { %5195 = vmatprep.subr.bf16.mxu0 %v7328_v15  ;;  %5259 = vmatprep.subr.bf16.mxu1 %v7339_v19  ;;  %v11553_v15 = vld [vmem:[#allocation8_spill] sm:$0xff]  ;;  %v11554_v19 = vld [vmem:[#allocation9_spill] sm:$0xff] }
 0x177   :  { %1058 = vmatmul.mubr.f32.vlgmr.msra.gmra.mrb[4].mxu0 %v7973_v9  ;;  %1129 = vmatmul.mubr.f32.vlgmr.msra.gmra.mrb[18].mxu1 %v7973_v9  ;;  %v11580_v9 = vld [vmem:[#allocation35_spill] sm:$0xff] }
 0x178   :  { %5197 = vmatpush1.bf16.msra.mxu0 %v7341_v20  ;;  %5261 = vmatpush1.bf16.msra.mxu1 %v7350_v23  ;;  %v11555_v20 = vld [vmem:[#allocation10_spill] sm:$0xff]  ;;  %v11556_v23 = vld [vmem:[#allocation11_spill] sm:$0xff] }
 0x179   :  { %5199 = vmatprep.subr.bf16.mxu0 %v7363_v27  ;;  %5263 = vmatprep.subr.bf16.mxu1 %v7375_v32  ;;  %v11557_v27 = vld [vmem:[#allocation12_spill] sm:$0xff]  ;;  %v11558_v32 = vld [vmem:[#allocation13_spill] sm:$0xff] }
 0x17c   :  { %5201 = vmatpush1.bf16.msra.mxu0 %v7377_v33  ;;  %5265 = vmatpush1.bf16.msra.mxu1 %v7389_v39  ;;  %v11559_v33 = vld [vmem:[#allocation14_spill] sm:$0xff]  ;;  %v11560_v39 = vld [vmem:[#allocation15_spill] sm:$0xff] }
 0x17d   :  { %5203 = vmatprep.subr.bf16.mxu0 %v7401_v45  ;;  %5267 = vmatprep.subr.bf16.mxu1 %v7403_v49  ;;  %v11561_v45 = vld [vmem:[#allocation16_spill] sm:$0xff]  ;;  %v11562_v49 = vld [vmem:[#allocation17_spill] sm:$0xff] }
 0x180   :  { %5205 = vmatpush1.bf16.msra.mxu0 %v7415_v54  ;;  %5269 = vmatpush1.bf16.msra.mxu1 %v7428_v60  ;;  %v11563_v54 = vld [vmem:[#allocation18_spill] sm:$0xff]  ;;  %v11564_v60 = vld [vmem:[#allocation19_spill] sm:$0xff] }
 0x181   :  { %5207 = vmatprep.subr.bf16.mxu0 %v7430_v61  ;;  %5271 = vmatprep.subr.bf16.mxu1 %v7442_v4  ;;  %v11565_v61 = vld [vmem:[#allocation20_spill] sm:$0xff]  ;;  %v11566_v4 = vld [vmem:[#allocation21_spill] sm:$0xff] }
 0x184   :  { %5209 = vmatpush1.bf16.msra.mxu0 %v7463_v14  ;;  %5273 = vmatpush1.bf16.msra.mxu1 %v7470_v17  ;;  %v11567_v14 = vld [vmem:[#allocation22_spill] sm:$0xff]  ;;  %v11568_v17 = vld [vmem:[#allocation23_spill] sm:$0xff] }
 0x185   :  { %5211 = vmatprep.subr.bf16.mxu0 %v7472_v18  ;;  %5275 = vmatprep.subr.bf16.mxu1 %v7484_v25  ;;  %v11569_v18 = vld [vmem:[#allocation24_spill] sm:$0xff]  ;;  %v11570_v25 = vld [vmem:[#allocation25_spill] sm:$0xff] }
 0x188   :  { %5213 = vmatpush1.bf16.msra.mxu0 %v7502_v37  ;;  %5277 = vmatpush1.bf16.msra.mxu1 %v7506_v38  ;;  %v11571_v37 = vld [vmem:[#allocation26_spill] sm:$0xff]  ;;  %v11572_v38 = vld [vmem:[#allocation27_spill] sm:$0xff] }
 0x189   :  { %5215 = vmatprep.subr.bf16.mxu0 %v7508_v43  ;;  %5279 = vmatprep.subr.bf16.mxu1 %v7520_v48  ;;  %v11573_v43 = vld [vmem:[#allocation28_spill] sm:$0xff]  ;;  %v11574_v48 = vld [vmem:[#allocation29_spill] sm:$0xff] }
 0x18c   :  { %5217 = vmatpush1.bf16.msra.mxu0 %v7538_v63  ;;  %5281 = vmatpush1.bf16.msra.mxu1 %v7542_v2  ;;  %v11575_v63 = vld [vmem:[#allocation30_spill] sm:$0xff]  ;;  %v11576_v2 = vld [vmem:[#allocation31_spill] sm:$0xff] }
 0x18d   :  { %5219 = vmatprep.subr.bf16.mxu0 %v7544_v5  ;;  %5283 = vmatprep.subr.bf16.mxu1 %v7556_v12  ;;  %v11577_v5 = vld [vmem:[#allocation32_spill] sm:$0xff]  ;;  %v11578_v12 = vld [vmem:[#allocation33_spill] sm:$0xff] }
 0x190   :  { %5221 = vmatpush1.bf16.msra.mxu0 %v7574_v26  ;;  %5285 = vmatpush1.bf16.msra.mxu1 %v11549_v1  ;;  %v11579_v26 = vld [vmem:[#allocation34_spill] sm:$0xff]  ;;  %v381_v1 = vld [vmem:[%s11312_s5] sm:$0xf] }
 0x191   :  { %5223 = vmatprep.subr.bf16.mxu0 %v11550_v7  ;;  %5287 = vmatprep.subr.bf16.mxu1 %v11551_v8  ;;  %v11587_v7 = vsub.s32 0, %v7905_v50 }
 0x193   :  { %v8196_v8 = vrot.slane %v381_v1, %v11587_v7 }
 0x194   :  { %5225 = vmatpush1.bf16.msra.mxu0 %v11552_v11  ;;  %5289 = vmatpush1.bf16.msra.mxu1 %v11553_v15  ;;  %v11589_v11 = vsub.s32 1, %v7905_v50 }
 0x195   :  { %5227 = vmatprep.subr.bf16.mxu0 %v11554_v19  ;;  %5291 = vmatprep.subr.bf16.mxu1 %v11555_v20  ;;  %11588 = vst [vmem:[#allocation4_spill] sm:$0xff] %v8196_v8 }
 0x196   :  { %v8200_v15 = vrot.slane %v381_v1, %v11589_v11 }
 0x198   :  { %5229 = vmatpush1.bf16.msra.mxu0 %v11556_v23  ;;  %5293 = vmatpush1.bf16.msra.mxu1 %v11557_v27  ;;  %v11590_v27 = vsub.s32 2, %v7905_v50 }
 0x199   :  { %5231 = vmatprep.subr.bf16.mxu0 %v11558_v32  ;;  %5295 = vmatprep.subr.bf16.mxu1 %v11559_v33 }
 0x19a   :  { %v8205_v32 = vrot.slane %v381_v1, %v11590_v27 }
 0x19c   :  { %5233 = vmatpush1.bf16.msra.mxu0 %v11560_v39  ;;  %5297 = vmatpush1.bf16.msra.mxu1 %v11561_v45 }
 0x19d   :  { %5235 = vmatprep.subr.bf16.mxu0 %v11562_v49  ;;  %5299 = vmatprep.subr.bf16.mxu1 %v11563_v54 }
 0x1a0   :  { %5237 = vmatpush1.bf16.msra.mxu0 %v11564_v60  ;;  %5301 = vmatpush1.bf16.msra.mxu1 %v11565_v61  ;;  %v11591_v61 = vsub.s32 3, %v7905_v50 }
 0x1a1   :  { %5239 = vmatprep.subr.bf16.mxu0 %v11566_v4  ;;  %5303 = vmatprep.subr.bf16.mxu1 %v11567_v14 }
 0x1a2   :  { %v8211_v4 = vrot.slane %v381_v1, %v11591_v61 }
 0x1a4   :  { %5241 = vmatpush1.bf16.msra.mxu0 %v11568_v17  ;;  %5305 = vmatpush1.bf16.msra.mxu1 %v11569_v18  ;;  %11592 = vst [vmem:[#allocation5_spill] sm:$0xff] %v8211_v4 }
 0x1a5   :  { %5243 = vmatprep.subr.bf16.mxu0 %v11570_v25  ;;  %5307 = vmatprep.subr.bf16.mxu1 %v11571_v37 }
 0x1a8   :  { %5245 = vmatpush1.bf16.msra.mxu0 %v11572_v38  ;;  %5309 = vmatpush1.bf16.msra.mxu1 %v11573_v43 }
 0x1a9   :  { %5247 = vmatprep.subr.bf16.mxu0 %v11574_v48  ;;  %5311 = vmatprep.subr.bf16.mxu1 %v11575_v63 }
 0x1ac   :  { %5249 = vmatpush1.bf16.msra.mxu0 %v11576_v2  ;;  %5313 = vmatpush1.bf16.msra.mxu1 %v11577_v5 }
 0x1ad   :  { %5251 = vmatprep.subr.bf16.mxu0 %v11578_v12  ;;  %5315 = vmatprep.subr.bf16.mxu1 %v11579_v26 }
 0x1b0   :  { %5253 = vmatpush1.bf16.msra.mxu0 %v11580_v9  ;;  %5317 = vmatpush1.bf16.msra.mxu1 %v11581_v29 }
 0x1b1   :  { %5255 = vmatprep.subr.bf16.mxu0 %v11582_v52  ;;  %5319 = vmatprep.subr.bf16.mxu1 %v11583_v51 }
 0x1b4   :  { %5257 = vmatpush1.bf16.msra.mxu0 %v11584_v44  ;;  %5321 = vmatpush1.bf16.msra.mxu1 %v11585_v62 }
 0x1b5   :  { %5323 = vmatprep.subr.bf16.mxu0 %v11586_v58  ;;  %5355 = vmatprep.subr.bf16.mxu1 %v8188_v10 }
 0x22a   :  { %v829_v19 = vpop.f32.mrb[2].mxu0  ;;  %v900_v20 = vpop.f32.mrb[32].mxu1 }
 0x22b   :  { %v830_v23 = vadd.f32 %v829_v19, %v8196_v8  ;;  %v831_v33 = vpop.f32.mrb[3].mxu0  ;;  %v902_v39 = vpop.f32.mrb[33].mxu1  ;;  %v901_v60 = vadd.f32 %v900_v20, %v8205_v32 }
 0x22c   :  { %v832_v45 = vadd.f32 %v831_v33, %v8200_v15  ;;  %v903_v14 = vadd.f32 %v902_v39, %v8211_v4 }
 0x22d   :  { %v905_v49 = vmul.f32 0.5, %v830_v23 }
 0x22e   :  { %v909_v54 = vmul.f32 0.5, %v832_v45  ;;  %v914_v17 = vmul.f32 0.5, %v903_v14 }
 0x22f   :  { %6581 = vtanh.f32 %v905_v49 }
 0x230   :  { %6583 = vtanh.f32 %v909_v54 }
 0x231   :  { %6585 = vtanh.f32 %v901_v60 }
 0x232   :  { %6587 = vtanh.f32 %v914_v17  ;;  %v1454_v17 = vld [vmem:[%s11308_s2 + $0x10] sm:$0xff] }
 0x239   :  { %v6582_v18 = vpop.eup %6581 }
 0x23a   :  { %v6584_v25 = vpop.eup %6583  ;;  %v907_v37 = vmul.f32 0.5, %v6582_v18  ;;  %v1458_v18 = vld [vmem:[%s11308_s2 + $0x30] sm:$0xff] }
 0x23b   :  { %v911_v38 = vmul.f32 0.5, %v6584_v25  ;;  %v6586_v48 = vpop.eup %6585  ;;  %v1463_v25 = vld [vmem:[%s11308_s2 + $0x58] sm:$0xff] }
 0x23c   :  { %v908_v43 = vadd.f32 0.5, %v907_v37  ;;  %v6588_v50 = vpop.eup %6587 }
 0x23d   :  { %v912_v63 = vadd.f32 0.5, %v911_v38  ;;  %v916_v26 = vmul.f32 0.5, %v6588_v50  ;;  %v1471_v50 = vld [vmem:[%s11308_s2 + $0x98] sm:$0xff] }
 0x23e   :  { %v919_v2 = vmul.f32 %v6586_v48, %v908_v43  ;;  %v8241_v43 = vpack.c.bf16 %v1458_v18, %v1454_v17  ;;  %v1680_v18 = vld [vmem:[%s11310_s4] sm:$0xff] }
 0x23f   :  { %v918_v5 = vmul.f32 0.0, %v912_v63  ;;  %v917_v62 = vadd.f32 0.5, %v916_v26  ;;  %v1475_v26 = vld [vmem:[%s11308_s2 + $0xb8] sm:$0xff] }
 0x241   :  { %v8214_v12 = vadd.f32 %v919_v2, %v918_v5  ;;  %v1462_v2 = vld [vmem:[%s11308_s2 + $0x50] sm:$0xff] }
 0x242   :  { %v1466_v5 = vld [vmem:[%s11308_s2 + $0x70] sm:$0xff] }
 0x243   :  { %6589 = vtanh.f32 %v8214_v12 }
 0x24a   :  { %v1059_v9 = vpop.f32.mrb[4].mxu0  ;;  %v1130_v29 = vpop.f32.mrb[18].mxu1 }
 0x24b   :  { %v1135_v52 = vadd.f32 %v1059_v9, %v7916_v16  ;;  %v1061_v51 = vpop.f32.mrb[5].mxu0  ;;  %v1132_v44 = vpop.f32.mrb[19].mxu1  ;;  %v6540_v11 = vadd.f32 %v1130_v29, %v7948_v13  ;;  %v8263_v9 = vpack.c.bf16 %v1466_v5, %v1462_v2  ;;  %v8267_v29 = vpack.c.bf16 %v1475_v26, %v1471_v50  ;;  %v1689_v5 = vld [vmem:[%s11310_s4 + $0x48] sm:$0xff]  ;;  %v1691_v26 = vld [vmem:[%s11310_s4 + $0x58] sm:$0xff] }
 0x24c   :  { %v1136_v58 = vadd.f32 %v1061_v51, %v7918_v6  ;;  %v6541_v16 = vadd.f32 %v1132_v44, %v7952_v3  ;;  %v1474_v51 = vld [vmem:[%s11308_s2 + $0xb0] sm:$0xff]  ;;  %v1693_v50 = vld [vmem:[%s11310_s4 + $0x68] sm:$0xff] }
 0x24d   :  { %v6590_v57 = vpop.eup %6589  ;;  %v1139_v28 = vmul.f32 0.5, %v1135_v52  ;;  %v1470_v52 = vld [vmem:[%s11308_s2 + $0x90] sm:$0xff] }
 0x24e   :  { %v1143_v1 = vmul.f32 0.5, %v1136_v58  ;;  %v8219_v7 = vmul.f32 %v6590_v57, %v917_v62  ;;  %v1148_v19 = vmul.f32 0.5, %v6541_v16  ;;  %v8285_v44 = vpack.c.bf16 %v1474_v51, %v1470_v52  ;;  %v1478_v58 = vld [vmem:[%s11308_s2 + $0xd0] sm:$0xff]  ;;  %v1695_v51 = vld [vmem:[%s11310_s4 + $0x78] sm:$0xff] }
 0x24f   :  { %6591 = vtanh.f32 %v1139_v28  ;;  %v1482_v57 = vld [vmem:[%s11308_s2 + $0xf0] sm:$0xff]  ;;  %v8432_v52 = vpack.c.bf16 %v1693_v50, %v1689_v5 }
 0x250   :  { %11593 = vst [vmem:[#allocation6_spill] sm:$0xff] %v8219_v7  ;;  %6593 = vtanh.f32 %v1143_v1  ;;  %1349 = vmatprep.mubr.f32.mxu0 %v8219_v7  ;;  %1420 = vmatprep.mubr.f32.mxu1 %v8219_v7  ;;  %v8305_v28 = vpack.c.bf16 %v1482_v57, %v1478_v58  ;;  %v1490_v16 = vld [vmem:[%s11308_s2 + $0x130] sm:$0xff]  ;;  %v8443_v58 = vpack.c.bf16 %v1695_v51, %v1691_v26  ;;  %v1713_v51 = vld [vmem:[%s11310_s4 + $0x108] sm:$0xff] }
 0x251   :  { %6595 = vtanh.f32 %v6540_v11  ;;  %v1486_v11 = vld [vmem:[%s11308_s2 + $0x110] sm:$0xff] }
 0x252   :  { %6597 = vtanh.f32 %v1148_v19  ;;  %v8325_v19 = vpack.c.bf16 %v1490_v16, %v1486_v11  ;;  %v1697_v16 = vld [vmem:[%s11310_s4 + $0x88] sm:$0xff]  ;;  %v1706_v5 = vld [vmem:[%s11310_s4 + $0xd0] sm:$0xff] }
 0x253   :  { %v1710_v50 = vld [vmem:[%s11310_s4 + $0xf0] sm:$0xff] }
 0x254   :  { %v8526_v26 = vpack.c.bf16 %v1710_v50, %v1706_v5 }
 0x259   :  { %v6592_v20 = vpop.eup %6591 }
 0x25a   :  { %v6594_v23 = vpop.eup %6593  ;;  %v1141_v6 = vmul.f32 0.5, %v6592_v20 }
 0x25b   :  { %v1145_v27 = vmul.f32 0.5, %v6594_v23  ;;  %v6596_v39 = vpop.eup %6595  ;;  %v1494_v23 = vld [vmem:[%s11308_s2 + $0x150] sm:$0xff] }
 0x25c   :  { %v1142_v33 = vadd.f32 0.5, %v1141_v6  ;;  %v6598_v61 = vpop.eup %6597  ;;  %v1498_v6 = vld [vmem:[%s11308_s2 + $0x170] sm:$0xff] }
 0x25d   :  { %v1146_v45 = vadd.f32 0.5, %v1145_v27  ;;  %v1150_v14 = vmul.f32 0.5, %v6598_v61  ;;  %v8345_v27 = vpack.c.bf16 %v1498_v6, %v1494_v23  ;;  %v1510_v61 = vld [vmem:[%s11308_s2 + $0x1d0] sm:$0xff]  ;;  %v1703_v6 = vld [vmem:[%s11310_s4 + $0xb8] sm:$0xff] }
 0x25e   :  { %v1153_v49 = vmul.f32 %v6596_v39, %v1142_v33  ;;  %v1502_v39 = vld [vmem:[%s11308_s2 + $0x190] sm:$0xff] }
 0x25f   :  { %v1152_v54 = vmul.f32 %v1146_v45, %v7956_v21  ;;  %v1467_v21 = vld [vmem:[%s11308_s2 + $0x78] sm:$0xff]  ;;  %v1151_v37 = vadd.f32 0.5, %v1150_v14  ;;  %v1506_v45 = vld [vmem:[%s11308_s2 + $0x1b0] sm:$0xff] }
 0x260   :  { %v8245_v63 = vpack.c.bf16 %v1467_v21, %v1463_v25  ;;  %v1514_v14 = vld [vmem:[%s11308_s2 + $0x1f0] sm:$0xff]  ;;  %v1684_v25 = vld [vmem:[%s11310_s4 + $0x20] sm:$0xff] }
 0x261   :  { %v8226_v60 = vadd.f32 %v1153_v49, %v1152_v54  ;;  %v8365_v49 = vpack.c.bf16 %v1506_v45, %v1502_v39 }
 0x263   :  { %6599 = vtanh.f32 %v8226_v60 }
 0x26d   :  { %v6600_v38 = vpop.eup %6599 }
 0x26e   :  { %v8243_v48 = vmul.f32 %v6600_v38, %v1151_v37  ;;  %v8409_v37 = vpack.c.bf16 %v1684_v25, %v1680_v18  ;;  %v1682_v38 = vld [vmem:[%s11310_s4 + $0x10] sm:$0xff]  ;;  %v1704_v18 = vld [vmem:[%s11310_s4 + $0xc0] sm:$0xff] }
 0x26f   :  { %v1708_v25 = vld [vmem:[%s11310_s4 + $0xe0] sm:$0xff] }
 0x270   :  { %1350 = vmatmul.mubr.f32.vlgmr.msra.gmra.mrb[6].mxu0 %v8243_v48  ;;  %1421 = vmatmul.mubr.f32.vlgmr.msra.gmra.mrb[34].mxu1 %v8243_v48 }
 0x271   :  { %5325 = vmatpush1.bf16.msra.mxu0 %v7971_v22  ;;  %5357 = vmatpush1.bf16.msra.mxu1 %v8241_v43  ;;  %v1479_v22 = vld [vmem:[%s11308_s2 + $0xd8] sm:$0xff] }
 0x272   :  { %5327 = vmatprep.subr.bf16.mxu0 %v7975_v31  ;;  %5359 = vmatprep.subr.bf16.mxu1 %v8245_v63  ;;  %v1483_v31 = vld [vmem:[%s11308_s2 + $0xf8] sm:$0xff] }
 0x273   :  { %1580 = vmatprep.mubr.f32.mxu0 %v11548_v30  ;;  %1651 = vmatprep.mubr.f32.mxu1 %v11548_v30  ;;  %v8289_v62 = vpack.c.bf16 %v1483_v31, %v1479_v22  ;;  %v1688_v22 = vld [vmem:[%s11310_s4 + $0x40] sm:$0xff] }
 0x274   :  { %v1692_v31 = vld [vmem:[%s11310_s4 + $0x60] sm:$0xff] }
 0x275   :  { %5329 = vmatpush1.bf16.msra.mxu0 %v7993_v55  ;;  %5361 = vmatpush1.bf16.msra.mxu1 %v8263_v9  ;;  %v1487_v55 = vld [vmem:[%s11308_s2 + $0x118] sm:$0xff]  ;;  %v8445_v57 = vpack.c.bf16 %v1692_v31, %v1688_v22  ;;  %v1717_v22 = vld [vmem:[%s11310_s4 + $0x128] sm:$0xff] }
 0x276   :  { %5331 = vmatprep.subr.bf16.mxu0 %v7997_v36  ;;  %5363 = vmatprep.subr.bf16.mxu1 %v8267_v29  ;;  %v1491_v36 = vld [vmem:[%s11308_s2 + $0x138] sm:$0xff] }
 0x277   :  { %v8309_v1 = vpack.c.bf16 %v1491_v36, %v1487_v55  ;;  %v1690_v55 = vld [vmem:[%s11310_s4 + $0x50] sm:$0xff]  ;;  %v1715_v31 = vld [vmem:[%s11310_s4 + $0x118] sm:$0xff] }
 0x278   :  { %v1694_v36 = vld [vmem:[%s11310_s4 + $0x70] sm:$0xff] }
 0x279   :  { %5333 = vmatpush1.bf16.msra.mxu0 %v8015_v35  ;;  %5365 = vmatpush1.bf16.msra.mxu1 %v8285_v44  ;;  %v1495_v35 = vld [vmem:[%s11308_s2 + $0x158] sm:$0xff]  ;;  %v8454_v11 = vpack.c.bf16 %v1694_v36, %v1690_v55  ;;  %v8540_v55 = vpack.c.bf16 %v1717_v22, %v1713_v51  ;;  %v1722_v51 = vld [vmem:[%s11310_s4 + $0x150] sm:$0xff] }
 0x27a   :  { %5335 = vmatprep.subr.bf16.mxu0 %v8019_v41  ;;  %5367 = vmatprep.subr.bf16.mxu1 %v8289_v62  ;;  %v1499_v41 = vld [vmem:[%s11308_s2 + $0x178] sm:$0xff]  ;;  %v1726_v22 = vld [vmem:[%s11310_s4 + $0x170] sm:$0xff] }
 0x27b   :  { %v8329_v20 = vpack.c.bf16 %v1499_v41, %v1495_v35  ;;  %v1701_v35 = vld [vmem:[%s11310_s4 + $0xa8] sm:$0xff]  ;;  %v1699_v41 = vld [vmem:[%s11310_s4 + $0x98] sm:$0xff] }
 0x27c   :  { %v8468_v23 = vpack.c.bf16 %v1701_v35, %v1697_v16  ;;  %v8479_v39 = vpack.c.bf16 %v1703_v6, %v1699_v41  ;;  %v1719_v36 = vld [vmem:[%s11310_s4 + $0x138] sm:$0xff]  ;;  %v1712_v16 = vld [vmem:[%s11310_s4 + $0x100] sm:$0xff] }
 0x27d   :  { %5337 = vmatpush1.bf16.msra.mxu0 %v8035_v42  ;;  %5369 = vmatpush1.bf16.msra.mxu1 %v8305_v28  ;;  %v1503_v42 = vld [vmem:[%s11308_s2 + $0x198] sm:$0xff]  ;;  %v1716_v35 = vld [vmem:[%s11310_s4 + $0x120] sm:$0xff]  ;;  %v8551_v41 = vpack.c.bf16 %v1719_v36, %v1715_v31  ;;  %v8598_v31 = vpack.c.bf16 %v1726_v22, %v1722_v51  ;;  %v1729_v36 = vld [vmem:[%s11310_s4 + $0x188] sm:$0xff] }
 0x27e   :  { %5339 = vmatprep.subr.bf16.mxu0 %v8039_v24  ;;  %5371 = vmatprep.subr.bf16.mxu1 %v8309_v1  ;;  %v1507_v24 = vld [vmem:[%s11308_s2 + $0x1b8] sm:$0xff]  ;;  %v8553_v6 = vpack.c.bf16 %v1716_v35, %v1712_v16  ;;  %v1733_v16 = vld [vmem:[%s11310_s4 + $0x1a8] sm:$0xff] }
 0x27f   :  { %v8349_v33 = vpack.c.bf16 %v1507_v24, %v1503_v42  ;;  %v1696_v42 = vld [vmem:[%s11310_s4 + $0x80] sm:$0xff]  ;;  %11594 = vst [vmem:[#allocation7_spill] sm:$0xff] %v8598_v31  ;;  %v1731_v35 = vld [vmem:[%s11310_s4 + $0x198] sm:$0xff]  ;;  %v1737_v22 = vld [vmem:[%s11310_s4 + $0x1c8] sm:$0xff] }
 0x280   :  { %v1700_v24 = vld [vmem:[%s11310_s4 + $0xa0] sm:$0xff] }
 0x281   :  { %5341 = vmatpush1.bf16.msra.mxu0 %v8055_v47  ;;  %5373 = vmatpush1.bf16.msra.mxu1 %v8325_v19  ;;  %v1511_v47 = vld [vmem:[%s11308_s2 + $0x1d8] sm:$0xff]  ;;  %v8481_v45 = vpack.c.bf16 %v1700_v24, %v1696_v42  ;;  %v1714_v42 = vld [vmem:[%s11310_s4 + $0x110] sm:$0xff] }
 0x282   :  { %5343 = vmatprep.subr.bf16.mxu0 %v8059_v34  ;;  %5375 = vmatprep.subr.bf16.mxu1 %v8329_v20  ;;  %v1515_v34 = vld [vmem:[%s11308_s2 + $0x1f8] sm:$0xff]  ;;  %v1718_v24 = vld [vmem:[%s11310_s4 + $0x130] sm:$0xff] }
 0x283   :  { %v8369_v54 = vpack.c.bf16 %v1515_v34, %v1511_v47  ;;  %v1698_v47 = vld [vmem:[%s11310_s4 + $0x90] sm:$0xff] }
 0x284   :  { %v1702_v34 = vld [vmem:[%s11310_s4 + $0xb0] sm:$0xff] }
 0x285   :  { %5345 = vmatpush1.bf16.msra.mxu0 %v8075_v53  ;;  %5377 = vmatpush1.bf16.msra.mxu1 %v8345_v27  ;;  %v8379_v53 = vpack.c.bf16 %v1514_v14, %v1510_v61  ;;  %v8490_v61 = vpack.c.bf16 %v1702_v34, %v1698_v47  ;;  %v1705_v14 = vld [vmem:[%s11310_s4 + $0xc8] sm:$0xff]  ;;  %v8562_v47 = vpack.c.bf16 %v1718_v24, %v1714_v42  ;;  %v1735_v24 = vld [vmem:[%s11310_s4 + $0x1b8] sm:$0xff] }
 0x286   :  { %5347 = vmatprep.subr.bf16.mxu0 %v8079_v40  ;;  %5379 = vmatprep.subr.bf16.mxu1 %v8349_v33  ;;  %v1681_v40 = vld [vmem:[%s11310_s4 + $0x8] sm:$0xff]  ;;  %v8611_v42 = vpack.c.bf16 %v1733_v16, %v1729_v36  ;;  %v1739_v16 = vld [vmem:[%s11310_s4 + $0x1d8] sm:$0xff] }
 0x287   :  { %v1721_v34 = vld [vmem:[%s11310_s4 + $0x148] sm:$0xff] }
 0x288   :  { %11595 = vst [vmem:[#allocation8_spill] sm:$0xff] %v8611_v42  ;;  %v1741_v36 = vld [vmem:[%s11310_s4 + $0x1e8] sm:$0xff] }
 0x289   :  { %5349 = vmatpush1.bf16.msra.mxu0 %v8095_v59  ;;  %5381 = vmatpush1.bf16.msra.mxu1 %v8365_v49  ;;  %v1685_v59 = vld [vmem:[%s11310_s4 + $0x28] sm:$0xff] }
 0x28a   :  { %5351 = vmatprep.subr.bf16.mxu0 %v8099_v46  ;;  %5383 = vmatprep.subr.bf16.mxu1 %v8369_v54  ;;  %v1683_v46 = vld [vmem:[%s11310_s4 + $0x18] sm:$0xff]  ;;  %v8396_v17 = vpack.c.bf16 %v1685_v59, %v1681_v40  ;;  %v1709_v40 = vld [vmem:[%s11310_s4 + $0xe8] sm:$0xff] }
 0x28b   :  { %v1707_v59 = vld [vmem:[%s11310_s4 + $0xd8] sm:$0xff] }
 0x28d   :  { %5353 = vmatpush1.bf16.msra.mxu0 %v8109_v0  ;;  %5385 = vmatpush1.bf16.msra.mxu1 %v8379_v53  ;;  %v1687_v0 = vld [vmem:[%s11310_s4 + $0x38] sm:$0xff] }
 0x28e   :  { %v8407_v21 = vpack.c.bf16 %v1687_v0, %v1683_v46  ;;  %5387 = vmatprep.subr.bf16.mxu0 %v8396_v17  ;;  %v8504_v46 = vpack.c.bf16 %v1709_v40, %v1705_v14  ;;  %v1711_v0 = vld [vmem:[%s11310_s4 + $0xf8] sm:$0xff]  ;;  %v1725_v14 = vld [vmem:[%s11310_s4 + $0x168] sm:$0xff] }
 0x28f   :  { %v1723_v40 = vld [vmem:[%s11310_s4 + $0x158] sm:$0xff] }
 0x290   :  { %1581 = vmatmul.mubr.f32.vlgmr.msra.gmra.mrb[8].mxu0 %v8243_v48  ;;  %1652 = vmatmul.mubr.f32.vlgmr.msra.gmra.mrb[20].mxu1 %v8243_v48  ;;  %v1686_v48 = vld [vmem:[%s11310_s4 + $0x30] sm:$0xff] }
 0x291   :  { %v8418_v2 = vpack.c.bf16 %v1686_v48, %v1682_v38  ;;  %5451 = vmatprep.subr.bf16.mxu1 %v8407_v21  ;;  %5389 = vmatpush1.bf16.msra.mxu0 %v8409_v37  ;;  %v8515_v38 = vpack.c.bf16 %v1711_v0, %v1707_v59  ;;  %v8517_v48 = vpack.c.bf16 %v1708_v25, %v1704_v18  ;;  %v1727_v0 = vld [vmem:[%s11310_s4 + $0x178] sm:$0xff]  ;;  %v1720_v18 = vld [vmem:[%s11310_s4 + $0x140] sm:$0xff] }
 0x292   :  { %5391 = vmatprep.subr.bf16.mxu0 %v8432_v52  ;;  %v8576_v59 = vpack.c.bf16 %v1725_v14, %v1721_v34  ;;  %v1724_v25 = vld [vmem:[%s11310_s4 + $0x160] sm:$0xff]  ;;  %v8587_v5 = vpack.c.bf16 %v1727_v0, %v1723_v40  ;;  %v8623_v40 = vpack.c.bf16 %v1735_v24, %v1731_v35  ;;  %v8648_v35 = vpack.c.bf16 %v1741_v36, %v1737_v22  ;;  %v1743_v24 = vld [vmem:[%s11310_s4 + $0x1f8] sm:$0xff]  ;;  %v1738_v22 = vld [vmem:[%s11310_s4 + $0x1d0] sm:$0xff] }
 0x293   :  { %5453 = vmatpush1.bf16.msra.mxu1 %v8418_v2  ;;  %v8589_v50 = vpack.c.bf16 %v1724_v25, %v1720_v18  ;;  %v1728_v34 = vld [vmem:[%s11310_s4 + $0x180] sm:$0xff]  ;;  %v1730_v18 = vld [vmem:[%s11310_s4 + $0x190] sm:$0xff] }
 0x294   :  { %5455 = vmatprep.subr.bf16.mxu1 %v8443_v58  ;;  %v1732_v14 = vld [vmem:[%s11310_s4 + $0x1a0] sm:$0xff]  ;;  %11596 = vst [vmem:[#allocation9_spill] sm:$0xff] %v8623_v40  ;;  %v1734_v25 = vld [vmem:[%s11310_s4 + $0x1b0] sm:$0xff]  ;;  %11599 = vst [vmem:[#allocation12_spill] sm:$0xff] %v8648_v35 }
 0x295   :  { %5393 = vmatpush1.bf16.msra.mxu0 %v8445_v57  ;;  %v8625_v0 = vpack.c.bf16 %v1732_v14, %v1728_v34  ;;  %v8634_v51 = vpack.c.bf16 %v1734_v25, %v1730_v18  ;;  %v1736_v34 = vld [vmem:[%s11310_s4 + $0x1c0] sm:$0xff]  ;;  %v8659_v18 = vpack.c.bf16 %v1743_v24, %v1739_v16  ;;  %v1742_v36 = vld [vmem:[%s11310_s4 + $0x1f0] sm:$0xff]  ;;  %v1745_v16 = vld [vmem:[%s11310_s4 + $0x208] sm:$0xff] }
 0x296   :  { %5395 = vmatprep.subr.bf16.mxu0 %v8468_v23  ;;  %v1740_v14 = vld [vmem:[%s11310_s4 + $0x1e0] sm:$0xff]  ;;  %v8670_v7 = vpack.c.bf16 %v1742_v36, %v1738_v22  ;;  %v1749_v24 = vld [vmem:[%s11310_s4 + $0x228] sm:$0xff]  ;;  %v1751_v22 = vld [vmem:[%s11310_s4 + $0x238] sm:$0xff] }
 0x297   :  { %5457 = vmatpush1.bf16.msra.mxu1 %v8454_v11  ;;  %11597 = vst [vmem:[#allocation10_spill] sm:$0xff] %v8625_v0  ;;  %11598 = vst [vmem:[#allocation11_spill] sm:$0xff] %v8634_v51  ;;  %v8661_v25 = vpack.c.bf16 %v1740_v14, %v1736_v34  ;;  %v1747_v34 = vld [vmem:[%s11310_s4 + $0x218] sm:$0xff]  ;;  %v8684_v14 = vpack.c.bf16 %v1749_v24, %v1745_v16  ;;  %v1744_v36 = vld [vmem:[%s11310_s4 + $0x200] sm:$0xff] }
 0x298   :  { %5459 = vmatprep.subr.bf16.mxu1 %v8479_v39  ;;  %11600 = vst [vmem:[#allocation13_spill] sm:$0xff] %v8659_v18  ;;  %11602 = vst [vmem:[#allocation15_spill] sm:$0xff] %v8670_v7  ;;  %v1746_v16 = vld [vmem:[%s11310_s4 + $0x210] sm:$0xff] }
 0x299   :  { %5397 = vmatpush1.bf16.msra.mxu0 %v8481_v45  ;;  %11601 = vst [vmem:[#allocation14_spill] sm:$0xff] %v8661_v25  ;;  %11603 = vst [vmem:[#allocation16_spill] sm:$0xff] %v8684_v14  ;;  %v1750_v24 = vld [vmem:[%s11310_s4 + $0x230] sm:$0xff] }
 0x29a   :  { %5399 = vmatprep.subr.bf16.mxu0 %v8504_v46 }
 0x29b   :  { %5461 = vmatpush1.bf16.msra.mxu1 %v8490_v61 }
 0x29c   :  { %5463 = vmatprep.subr.bf16.mxu1 %v8515_v38 }
 0x29d   :  { %5401 = vmatpush1.bf16.msra.mxu0 %v8517_v48 }
 0x29e   :  { %5403 = vmatprep.subr.bf16.mxu0 %v8540_v55 }
 0x29f   :  { %5465 = vmatpush1.bf16.msra.mxu1 %v8526_v26 }
 0x2a0   :  { %5467 = vmatprep.subr.bf16.mxu1 %v8551_v41 }
 0x2a1   :  { %5405 = vmatpush1.bf16.msra.mxu0 %v8553_v6 }
 0x2a2   :  { %5407 = vmatprep.subr.bf16.mxu0 %v8576_v59 }
 0x2a3   :  { %5469 = vmatpush1.bf16.msra.mxu1 %v8562_v47 }
 0x2a4   :  { %5471 = vmatprep.subr.bf16.mxu1 %v8587_v5 }
 0x2a5   :  { %5409 = vmatpush1.bf16.msra.mxu0 %v8589_v50 }
 0x2a6   :  { %5411 = vmatprep.subr.bf16.mxu0 %v8611_v42 }
 0x2a7   :  { %5473 = vmatpush1.bf16.msra.mxu1 %v8598_v31 }
 0x2a8   :  { %5475 = vmatprep.subr.bf16.mxu1 %v8623_v40 }
 0x2a9   :  { %5413 = vmatpush1.bf16.msra.mxu0 %v8625_v0 }
 0x2aa   :  { %5415 = vmatprep.subr.bf16.mxu0 %v8648_v35 }
 0x2ab   :  { %5477 = vmatpush1.bf16.msra.mxu1 %v8634_v51 }
 0x2ac   :  { %5479 = vmatprep.subr.bf16.mxu1 %v8659_v18  ;;  %v8697_v18 = vpack.c.bf16 %v1748_v56, %v1744_v36  ;;  %v1753_v56 = vld [vmem:[%s11310_s4 + $0x248] sm:$0xff] }
 0x2ad   :  { %5417 = vmatpush1.bf16.msra.mxu0 %v8661_v25  ;;  %v8695_v25 = vpack.c.bf16 %v1751_v22, %v1747_v34  ;;  %v1757_v34 = vld [vmem:[%s11310_s4 + $0x268] sm:$0xff]  ;;  %v1755_v22 = vld [vmem:[%s11310_s4 + $0x258] sm:$0xff] }
 0x2ae   :  { %11605 = vst [vmem:[#allocation18_spill] sm:$0xff] %v8697_v18  ;;  %5419 = vmatprep.subr.bf16.mxu0 %v8684_v14  ;;  %v8720_v36 = vpack.c.bf16 %v1757_v34, %v1753_v56  ;;  %v1754_v56 = vld [vmem:[%s11310_s4 + $0x250] sm:$0xff] }
 0x2af   :  { %5481 = vmatpush1.bf16.msra.mxu1 %v8670_v7  ;;  %11604 = vst [vmem:[#allocation17_spill] sm:$0xff] %v8695_v25  ;;  %v8706_v7 = vpack.c.bf16 %v1750_v24, %v1746_v16  ;;  %v1759_v16 = vld [vmem:[%s11310_s4 + $0x278] sm:$0xff]  ;;  %v1752_v24 = vld [vmem:[%s11310_s4 + $0x240] sm:$0xff]  ;;  %v1758_v34 = vld [vmem:[%s11310_s4 + $0x270] sm:$0xff] }
 0x2b0   :  { %5483 = vmatprep.subr.bf16.mxu1 %v8695_v25  ;;  %11607 = vst [vmem:[#allocation20_spill] sm:$0xff] %v8720_v36  ;;  %v8731_v25 = vpack.c.bf16 %v1759_v16, %v1755_v22  ;;  %v1765_v22 = vld [vmem:[%s11310_s4 + $0x2a8] sm:$0xff]  ;;  %v1763_v16 = vld [vmem:[%s11310_s4 + $0x298] sm:$0xff] }
 0x2b1   :  { %11606 = vst [vmem:[#allocation19_spill] sm:$0xff] %v8706_v7  ;;  %5421 = vmatpush1.bf16.msra.mxu0 %v8697_v18  ;;  %v1756_v18 = vld [vmem:[%s11310_s4 + $0x260] sm:$0xff] }
 0x2b2   :  { %11608 = vst [vmem:[#allocation21_spill] sm:$0xff] %v8731_v25  ;;  %v8733_v14 = vpack.c.bf16 %v1756_v18, %v1752_v24  ;;  %5423 = vmatprep.subr.bf16.mxu0 %v8720_v36  ;;  %v1761_v18 = vld [vmem:[%s11310_s4 + $0x288] sm:$0xff] }
 0x2b3   :  { %5485 = vmatpush1.bf16.msra.mxu1 %v8706_v7  ;;  %v8742_v7 = vpack.c.bf16 %v1758_v34, %v1754_v56  ;;  %v8756_v24 = vpack.c.bf16 %v1765_v22, %v1761_v18  ;;  %v1767_v56 = vld [vmem:[%s11310_s4 + $0x2b8] sm:$0xff]  ;;  %v1760_v34 = vld [vmem:[%s11310_s4 + $0x280] sm:$0xff]  ;;  %v1762_v18 = vld [vmem:[%s11310_s4 + $0x290] sm:$0xff] }
 0x2b4   :  { %11609 = vst [vmem:[#allocation22_spill] sm:$0xff] %v8733_v14  ;;  %5487 = vmatprep.subr.bf16.mxu1 %v8731_v25  ;;  %v8767_v25 = vpack.c.bf16 %v1767_v56, %v1763_v16  ;;  %v1766_v22 = vld [vmem:[%s11310_s4 + $0x2b0] sm:$0xff]  ;;  %v1773_v16 = vld [vmem:[%s11310_s4 + $0x2e8] sm:$0xff]  ;;  %v1771_v56 = vld [vmem:[%s11310_s4 + $0x2d8] sm:$0xff] }
 0x2b5   :  { %11610 = vst [vmem:[#allocation23_spill] sm:$0xff] %v8742_v7  ;;  %5425 = vmatpush1.bf16.msra.mxu0 %v8733_v14  ;;  %11611 = vst [vmem:[#allocation24_spill] sm:$0xff] %v8756_v24  ;;  %v1764_v14 = vld [vmem:[%s11310_s4 + $0x2a0] sm:$0xff] }
 0x2b6   :  { %11612 = vst [vmem:[#allocation25_spill] sm:$0xff] %v8767_v25  ;;  %v8769_v36 = vpack.c.bf16 %v1764_v14, %v1760_v34  ;;  %5427 = vmatprep.subr.bf16.mxu0 %v8756_v24  ;;  %v1769_v14 = vld [vmem:[%s11310_s4 + $0x2c8] sm:$0xff] }
 0x2b7   :  { %5489 = vmatpush1.bf16.msra.mxu1 %v8742_v7  ;;  %v8778_v7 = vpack.c.bf16 %v1766_v22, %v1762_v18  ;;  %v8792_v34 = vpack.c.bf16 %v1773_v16, %v1769_v14  ;;  %v1775_v18 = vld [vmem:[%s11310_s4 + $0x2f8] sm:$0xff]  ;;  %v1768_v22 = vld [vmem:[%s11310_s4 + $0x2c0] sm:$0xff]  ;;  %v1770_v14 = vld [vmem:[%s11310_s4 + $0x2d0] sm:$0xff] }
 0x2b8   :  { %11613 = vst [vmem:[#allocation26_spill] sm:$0xff] %v8769_v36  ;;  %5491 = vmatprep.subr.bf16.mxu1 %v8767_v25  ;;  %v8803_v25 = vpack.c.bf16 %v1775_v18, %v1771_v56  ;;  %v1774_v16 = vld [vmem:[%s11310_s4 + $0x2f0] sm:$0xff]  ;;  %v1781_v56 = vld [vmem:[%s11310_s4 + $0x328] sm:$0xff]  ;;  %v1779_v18 = vld [vmem:[%s11310_s4 + $0x318] sm:$0xff] }
 0x2b9   :  { %11614 = vst [vmem:[#allocation27_spill] sm:$0xff] %v8778_v7  ;;  %5429 = vmatpush1.bf16.msra.mxu0 %v8769_v36  ;;  %11615 = vst [vmem:[#allocation28_spill] sm:$0xff] %v8792_v34  ;;  %v1772_v36 = vld [vmem:[%s11310_s4 + $0x2e0] sm:$0xff] }
 0x2ba   :  { %11616 = vst [vmem:[#allocation29_spill] sm:$0xff] %v8803_v25  ;;  %v8805_v24 = vpack.c.bf16 %v1772_v36, %v1768_v22  ;;  %5431 = vmatprep.subr.bf16.mxu0 %v8792_v34  ;;  %v1777_v36 = vld [vmem:[%s11310_s4 + $0x308] sm:$0xff] }
 0x2bb   :  { %5493 = vmatpush1.bf16.msra.mxu1 %v8778_v7  ;;  %v8814_v7 = vpack.c.bf16 %v1774_v16, %v1770_v14  ;;  %v8828_v22 = vpack.c.bf16 %v1781_v56, %v1777_v36  ;;  %v1783_v14 = vld [vmem:[%s11310_s4 + $0x338] sm:$0xff]  ;;  %v1776_v16 = vld [vmem:[%s11310_s4 + $0x300] sm:$0xff]  ;;  %v1778_v36 = vld [vmem:[%s11310_s4 + $0x310] sm:$0xff] }
 0x2bc   :  { %11617 = vst [vmem:[#allocation30_spill] sm:$0xff] %v8805_v24  ;;  %5495 = vmatprep.subr.bf16.mxu1 %v8803_v25  ;;  %v8839_v25 = vpack.c.bf16 %v1783_v14, %v1779_v18  ;;  %v1782_v56 = vld [vmem:[%s11310_s4 + $0x330] sm:$0xff]  ;;  %v1789_v18 = vld [vmem:[%s11310_s4 + $0x368] sm:$0xff]  ;;  %v1787_v14 = vld [vmem:[%s11310_s4 + $0x358] sm:$0xff] }
 0x2bd   :  { %11618 = vst [vmem:[#allocation31_spill] sm:$0xff] %v8814_v7  ;;  %5433 = vmatpush1.bf16.msra.mxu0 %v8805_v24  ;;  %11619 = vst [vmem:[#allocation32_spill] sm:$0xff] %v8828_v22  ;;  %v1780_v24 = vld [vmem:[%s11310_s4 + $0x320] sm:$0xff] }
 0x2be   :  { %11620 = vst [vmem:[#allocation33_spill] sm:$0xff] %v8839_v25  ;;  %v8841_v34 = vpack.c.bf16 %v1780_v24, %v1776_v16  ;;  %5435 = vmatprep.subr.bf16.mxu0 %v8828_v22  ;;  %v1785_v24 = vld [vmem:[%s11310_s4 + $0x348] sm:$0xff] }
 0x2bf   :  { %5497 = vmatpush1.bf16.msra.mxu1 %v8814_v7  ;;  %v8850_v7 = vpack.c.bf16 %v1782_v56, %v1778_v36  ;;  %v8864_v16 = vpack.c.bf16 %v1789_v18, %v1785_v24  ;;  %v1791_v36 = vld [vmem:[%s11310_s4 + $0x378] sm:$0xff]  ;;  %v1784_v56 = vld [vmem:[%s11310_s4 + $0x340] sm:$0xff]  ;;  %v1786_v24 = vld [vmem:[%s11310_s4 + $0x350] sm:$0xff] }
 0x2c0   :  { %11621 = vst [vmem:[#allocation34_spill] sm:$0xff] %v8841_v34  ;;  %5499 = vmatprep.subr.bf16.mxu1 %v8839_v25  ;;  %v8875_v25 = vpack.c.bf16 %v1791_v36, %v1787_v14  ;;  %v1790_v18 = vld [vmem:[%s11310_s4 + $0x370] sm:$0xff]  ;;  %v1797_v14 = vld [vmem:[%s11310_s4 + $0x3a8] sm:$0xff]  ;;  %v1795_v36 = vld [vmem:[%s11310_s4 + $0x398] sm:$0xff] }
 0x2c1   :  { %11622 = vst [vmem:[#allocation35_spill] sm:$0xff] %v8850_v7  ;;  %5437 = vmatpush1.bf16.msra.mxu0 %v8841_v34  ;;  %11623 = vst [vmem:[#allocation36_spill] sm:$0xff] %v8864_v16  ;;  %v1788_v34 = vld [vmem:[%s11310_s4 + $0x360] sm:$0xff] }
 0x2c2   :  { %11624 = vst [vmem:[#allocation37_spill] sm:$0xff] %v8875_v25  ;;  %v8877_v22 = vpack.c.bf16 %v1788_v34, %v1784_v56  ;;  %5439 = vmatprep.subr.bf16.mxu0 %v8864_v16  ;;  %v1793_v34 = vld [vmem:[%s11310_s4 + $0x388] sm:$0xff] }
 0x2c3   :  { %5501 = vmatpush1.bf16.msra.mxu1 %v8850_v7  ;;  %v8886_v7 = vpack.c.bf16 %v1790_v18, %v1786_v24  ;;  %v8900_v56 = vpack.c.bf16 %v1797_v14, %v1793_v34  ;;  %v1799_v24 = vld [vmem:[%s11310_s4 + $0x3b8] sm:$0xff]  ;;  %v1792_v18 = vld [vmem:[%s11310_s4 + $0x380] sm:$0xff]  ;;  %v1794_v34 = vld [vmem:[%s11310_s4 + $0x390] sm:$0xff] }
 0x2c4   :  { %11625 = vst [vmem:[#allocation38_spill] sm:$0xff] %v8877_v22  ;;  %5503 = vmatprep.subr.bf16.mxu1 %v8875_v25  ;;  %v8911_v25 = vpack.c.bf16 %v1799_v24, %v1795_v36  ;;  %v1798_v14 = vld [vmem:[%s11310_s4 + $0x3b0] sm:$0xff]  ;;  %v1805_v36 = vld [vmem:[%s11310_s4 + $0x3e8] sm:$0xff]  ;;  %v1803_v24 = vld [vmem:[%s11310_s4 + $0x3d8] sm:$0xff] }
 0x2c5   :  { %11626 = vst [vmem:[#allocation39_spill] sm:$0xff] %v8886_v7  ;;  %5441 = vmatpush1.bf16.msra.mxu0 %v8877_v22  ;;  %11627 = vst [vmem:[#allocation40_spill] sm:$0xff] %v8900_v56  ;;  %v1796_v22 = vld [vmem:[%s11310_s4 + $0x3a0] sm:$0xff] }
 0x2c6   :  { %11628 = vst [vmem:[#allocation41_spill] sm:$0xff] %v8911_v25  ;;  %v8913_v16 = vpack.c.bf16 %v1796_v22, %v1792_v18  ;;  %5443 = vmatprep.subr.bf16.mxu0 %v8900_v56  ;;  %v1801_v22 = vld [vmem:[%s11310_s4 + $0x3c8] sm:$0xff] }
 0x2c7   :  { %5505 = vmatpush1.bf16.msra.mxu1 %v8886_v7  ;;  %v8922_v7 = vpack.c.bf16 %v1798_v14, %v1794_v34  ;;  %v8936_v18 = vpack.c.bf16 %v1805_v36, %v1801_v22  ;;  %v1807_v34 = vld [vmem:[%s11310_s4 + $0x3f8] sm:$0xff]  ;;  %v1800_v14 = vld [vmem:[%s11310_s4 + $0x3c0] sm:$0xff]  ;;  %v1802_v22 = vld [vmem:[%s11310_s4 + $0x3d0] sm:$0xff] }
 0x2c8   :  { %11629 = vst [vmem:[#allocation54_spill] sm:$0xff] %v8913_v16  ;;  %5507 = vmatprep.subr.bf16.mxu1 %v8911_v25  ;;  %v8947_v25 = vpack.c.bf16 %v1807_v34, %v1803_v24  ;;  %v1806_v36 = vld [vmem:[%s11310_s4 + $0x3f0] sm:$0xff]  ;;  %v1980_v24 = vld [vmem:[%s11308_s2 + $0x28] sm:$0xff] }
 0x2c9   :  { %11630 = vst [vmem:[#allocation55_spill] sm:$0xff] %v8922_v7  ;;  %5445 = vmatpush1.bf16.msra.mxu0 %v8913_v16  ;;  %11631 = vst [vmem:[#allocation56_spill] sm:$0xff] %v8936_v18  ;;  %v1804_v16 = vld [vmem:[%s11310_s4 + $0x3e0] sm:$0xff] }
 0x2ca   :  { %11632 = vst [vmem:[#allocation57_spill] sm:$0xff] %v8947_v25  ;;  %v8949_v56 = vpack.c.bf16 %v1804_v16, %v1800_v14  ;;  %5447 = vmatprep.subr.bf16.mxu0 %v8936_v18  ;;  %v1976_v16 = vld [vmem:[%s11308_s2 + $0x8] sm:$0xff] }
 0x2cb   :  { %5509 = vmatpush1.bf16.msra.mxu1 %v8922_v7  ;;  %v8958_v7 = vpack.c.bf16 %v1806_v36, %v1802_v22  ;;  %v8969_v34 = vpack.c.bf16 %v1980_v24, %v1976_v16 }
 0x2cc   :  { %11633 = vst [vmem:[#allocation58_spill] sm:$0xff] %v8949_v56  ;;  %5511 = vmatprep.subr.bf16.mxu1 %v8947_v25 }
 0x2cd   :  { %11634 = vst [vmem:[#allocation59_spill] sm:$0xff] %v8958_v7  ;;  %5449 = vmatpush1.bf16.msra.mxu0 %v8949_v56  ;;  %11635 = vst [vmem:[#allocation60_spill] sm:$0xff] %v8969_v34 }
 0x2ce   :  { %5515 = vmatprep.subr.bf16.mxu0 %v8969_v34 }
 0x2cf   :  { %5513 = vmatpush1.bf16.msra.mxu1 %v8958_v7 }
 0x2d0   :  { %5547 = vmatprep.subr.bf16.mxu1 %v8188_v10 }
 0x343   :  { %v1351_v14 = vpop.f32.mrb[6].mxu0  ;;  %v1422_v22 = vpop.f32.mrb[34].mxu1 }
 0x344   :  { %v1352_v36 = vadd.f32 %v1351_v14, %v8196_v8  ;;  %v1353_v56 = vpop.f32.mrb[7].mxu0  ;;  %v1424_v25 = vpop.f32.mrb[35].mxu1  ;;  %v1423_v0 = vadd.f32 %v1422_v22, %v8205_v32  ;;  %v11636_v22 = vld [vmem:[#allocation42_spill] sm:$0xff] }
 0x345   :  { %v1354_v18 = vadd.f32 %v1353_v56, %v8200_v15  ;;  %v1425_v16 = vadd.f32 %v1424_v25, %v8211_v4 }
 0x346   :  { %v1427_v35 = vmul.f32 0.5, %v1352_v36 }
 0x347   :  { %v1431_v51 = vmul.f32 0.5, %v1354_v18  ;;  %v1436_v10 = vmul.f32 0.5, %v1425_v16 }
 0x348   :  { %6601 = vtanh.f32 %v1427_v35 }
 0x349   :  { %6603 = vtanh.f32 %v1431_v51 }
 0x34a   :  { %6605 = vtanh.f32 %v1423_v0 }
 0x34b   :  { %6607 = vtanh.f32 %v1436_v10  ;;  %v11637_v10 = vld [vmem:[#allocation43_spill] sm:$0xff] }
 0x352   :  { %v6602_v24 = vpop.eup %6601 }
 0x353   :  { %v6604_v34 = vpop.eup %6603  ;;  %v1429_v7 = vmul.f32 0.5, %v6602_v24 }
 0x354   :  { %v1433_v40 = vmul.f32 0.5, %v6604_v34  ;;  %v6606_v8 = vpop.eup %6605 }
 0x355   :  { %v1430_v14 = vadd.f32 0.5, %v1429_v7  ;;  %v6608_v51 = vpop.eup %6607 }
 0x356   :  { %v1434_v42 = vadd.f32 0.5, %v1433_v40  ;;  %v1438_v0 = vmul.f32 0.5, %v6608_v51 }
 0x357   :  { %v1441_v31 = vmul.f32 %v6606_v8, %v1430_v14 }
 0x358   :  { %v1440_v56 = vmul.f32 %v1434_v42, %v8214_v12  ;;  %v1439_v34 = vadd.f32 0.5, %v1438_v0 }
 0x35a   :  { %v8978_v18 = vadd.f32 %v1441_v31, %v1440_v56 }
 0x35c   :  { %6609 = vtanh.f32 %v8978_v18 }
 0x363   :  { %v1582_v35 = vpop.f32.mrb[8].mxu0  ;;  %v1653_v25 = vpop.f32.mrb[20].mxu1 }
 0x364   :  { %v1658_v36 = vadd.f32 %v1582_v35, %v11636_v22  ;;  %v1584_v16 = vpop.f32.mrb[9].mxu0  ;;  %v1655_v24 = vpop.f32.mrb[21].mxu1  ;;  %v6542_v12 = vadd.f32 %v1653_v25, %v7948_v13 }
 0x365   :  { %v1659_v7 = vadd.f32 %v1584_v16, %v11637_v10  ;;  %v6543_v31 = vadd.f32 %v1655_v24, %v7952_v3  ;;  %v1975_v24 = vld [vmem:[%s11308_s2] sm:$0xff] }
 0x366   :  { %v6610_v4 = vpop.eup %6609  ;;  %v1662_v40 = vmul.f32 0.5, %v1658_v36 }
 0x367   :  { %v1666_v8 = vmul.f32 0.5, %v1659_v7  ;;  %v8983_v14 = vmul.f32 %v6610_v4, %v1439_v34  ;;  %v1671_v42 = vmul.f32 0.5, %v6543_v31 }
 0x368   :  { %6611 = vtanh.f32 %v1662_v40  ;;  %v1979_v40 = vld [vmem:[%s11308_s2 + $0x20] sm:$0xff] }
 0x369   :  { %11638 = vst [vmem:[#allocation42_spill] sm:$0xff] %v8983_v14  ;;  %6613 = vtanh.f32 %v1666_v8  ;;  %1872 = vmatprep.mubr.f32.mxu0 %v8983_v14  ;;  %1943 = vmatprep.mubr.f32.mxu1 %v8983_v14  ;;  %v1984_v8 = vld [vmem:[%s11308_s2 + $0x48] sm:$0xff]  ;;  %v2794_v14 = vld [vmem:[%s11310_s4 + $0x220] sm:$0xff] }
 0x36a   :  { %6615 = vtanh.f32 %v6542_v12 }
 0x36b   :  { %6617 = vtanh.f32 %v1671_v42  ;;  %v9005_v42 = vpack.c.bf16 %v1979_v40, %v1975_v24  ;;  %v1999_v40 = vld [vmem:[%s11308_s2 + $0xc0] sm:$0xff] }
 0x372   :  { %v6612_v56 = vpop.eup %6611 }
 0x373   :  { %v6614_v51 = vpop.eup %6613  ;;  %v1664_v0 = vmul.f32 0.5, %v6612_v56 }
 0x374   :  { %v1668_v35 = vmul.f32 0.5, %v6614_v51  ;;  %v6616_v4 = vpop.eup %6615 }
 0x375   :  { %v1665_v22 = vadd.f32 0.5, %v1664_v0  ;;  %v6618_v10 = vpop.eup %6617  ;;  %v1983_v0 = vld [vmem:[%s11308_s2 + $0x40] sm:$0xff] }
 0x376   :  { %v1669_v36 = vadd.f32 0.5, %v1668_v35  ;;  %v1673_v7 = vmul.f32 0.5, %v6618_v10  ;;  %v1987_v35 = vld [vmem:[%s11308_s2 + $0x60] sm:$0xff] }
 0x377   :  { %v1676_v16 = vmul.f32 %v6616_v4, %v1665_v22  ;;  %v1992_v22 = vld [vmem:[%s11308_s2 + $0x88] sm:$0xff]  ;;  %v1995_v10 = vld [vmem:[%s11308_s2 + $0xa0] sm:$0xff] }
 0x378   :  { %v1675_v25 = vmul.f32 %v1669_v36, %v8226_v60  ;;  %v1988_v60 = vld [vmem:[%s11308_s2 + $0x68] sm:$0xff]  ;;  %v1674_v12 = vadd.f32 0.5, %v1673_v7  ;;  %v9027_v36 = vpack.c.bf16 %v1987_v35, %v1983_v0  ;;  %v2011_v0 = vld [vmem:[%s11308_s2 + $0x120] sm:$0xff] }
 0x379   :  { %v9009_v51 = vpack.c.bf16 %v1988_v60, %v1984_v8  ;;  %v1996_v4 = vld [vmem:[%s11308_s2 + $0xa8] sm:$0xff]  ;;  %v2003_v8 = vld [vmem:[%s11308_s2 + $0xe0] sm:$0xff] }
 0x37a   :  { %v8990_v34 = vadd.f32 %v1676_v16, %v1675_v25  ;;  %v9031_v16 = vpack.c.bf16 %v1996_v4, %v1992_v22  ;;  %v1991_v25 = vld [vmem:[%s11308_s2 + $0x80] sm:$0xff]  ;;  %v2004_v7 = vld [vmem:[%s11308_s2 + $0xe8] sm:$0xff] }
 0x37b   :  { %v2012_v60 = vld [vmem:[%s11308_s2 + $0x128] sm:$0xff]  ;;  %v2015_v4 = vld [vmem:[%s11308_s2 + $0x140] sm:$0xff] }
 0x37c   :  { %6619 = vtanh.f32 %v8990_v34  ;;  %v2020_v35 = vld [vmem:[%s11308_s2 + $0x168] sm:$0xff] }
 0x386   :  { %v6620_v31 = vpop.eup %6619 }
 0x387   :  { %v9007_v56 = vmul.f32 %v6620_v31, %v1674_v12  ;;  %v2007_v31 = vld [vmem:[%s11308_s2 + $0x100] sm:$0xff] }
 0x389   :  { %1873 = vmatmul.mubr.f32.vlgmr.msra.gmra.mrb[10].mxu0 %v9007_v56  ;;  %1944 = vmatmul.mubr.f32.vlgmr.msra.gmra.mrb[36].mxu1 %v9007_v56 }
 0x38a   :  { %5517 = vmatpush1.bf16.msra.mxu0 %v9005_v42  ;;  %5549 = vmatpush1.bf16.msra.mxu1 %v8241_v43  ;;  %v2000_v43 = vld [vmem:[%s11308_s2 + $0xc8] sm:$0xff] }
 0x38b   :  { %5519 = vmatprep.subr.bf16.mxu0 %v9009_v51  ;;  %5551 = vmatprep.subr.bf16.mxu1 %v8245_v63  ;;  %v9049_v63 = vpack.c.bf16 %v1995_v10, %v1991_v25  ;;  %v9053_v24 = vpack.c.bf16 %v2004_v7, %v2000_v43  ;;  %v2019_v25 = vld [vmem:[%s11308_s2 + $0x160] sm:$0xff]  ;;  %v2028_v10 = vld [vmem:[%s11308_s2 + $0x1a8] sm:$0xff] }
 0x38c   :  { %2103 = vmatprep.mubr.f32.mxu0 %v11548_v30  ;;  %2174 = vmatprep.mubr.f32.mxu1 %v11548_v30  ;;  %v2023_v7 = vld [vmem:[%s11308_s2 + $0x180] sm:$0xff] }
 0x38e   :  { %5521 = vmatpush1.bf16.msra.mxu0 %v9027_v36  ;;  %5553 = vmatpush1.bf16.msra.mxu1 %v8263_v9  ;;  %v2008_v9 = vld [vmem:[%s11308_s2 + $0x108] sm:$0xff] }
 0x38f   :  { %5523 = vmatprep.subr.bf16.mxu0 %v9031_v16  ;;  %5555 = vmatprep.subr.bf16.mxu1 %v8267_v29  ;;  %v9069_v29 = vpack.c.bf16 %v2003_v8, %v1999_v40  ;;  %v9073_v12 = vpack.c.bf16 %v2012_v60, %v2008_v9  ;;  %v2027_v40 = vld [vmem:[%s11308_s2 + $0x1a0] sm:$0xff]  ;;  %v2036_v8 = vld [vmem:[%s11308_s2 + $0x1e8] sm:$0xff] }
 0x390   :  { %v2031_v60 = vld [vmem:[%s11308_s2 + $0x1c0] sm:$0xff] }
 0x392   :  { %5525 = vmatpush1.bf16.msra.mxu0 %v9049_v63  ;;  %5557 = vmatpush1.bf16.msra.mxu1 %v8285_v44  ;;  %v2016_v44 = vld [vmem:[%s11308_s2 + $0x148] sm:$0xff] }
 0x393   :  { %5527 = vmatprep.subr.bf16.mxu0 %v9053_v24  ;;  %5559 = vmatprep.subr.bf16.mxu1 %v8289_v62  ;;  %v9089_v62 = vpack.c.bf16 %v2011_v0, %v2007_v31  ;;  %v9093_v22 = vpack.c.bf16 %v2020_v35, %v2016_v44  ;;  %v2035_v31 = vld [vmem:[%s11308_s2 + $0x1e0] sm:$0xff]  ;;  %v11667_v0 = vld [vmem:[#allocation35_spill] sm:$0xff]  ;;  %v11669_v35 = vld [vmem:[#allocation37_spill] sm:$0xff] }
 0x394   :  { %v11668_v44 = vld [vmem:[#allocation36_spill] sm:$0xff] }
 0x396   :  { %5529 = vmatpush1.bf16.msra.mxu0 %v9069_v29  ;;  %5561 = vmatpush1.bf16.msra.mxu1 %v8305_v28  ;;  %v2024_v28 = vld [vmem:[%s11308_s2 + $0x188] sm:$0xff] }
 0x397   :  { %5531 = vmatprep.subr.bf16.mxu0 %v9073_v12  ;;  %5563 = vmatprep.subr.bf16.mxu1 %v8309_v1  ;;  %v9109_v1 = vpack.c.bf16 %v2019_v25, %v2015_v4  ;;  %v9113_v43 = vpack.c.bf16 %v2028_v10, %v2024_v28  ;;  %v11670_v4 = vld [vmem:[#allocation38_spill] sm:$0xff]  ;;  %v11671_v25 = vld [vmem:[#allocation39_spill] sm:$0xff]  ;;  %v11672_v28 = vld [vmem:[#allocation40_spill] sm:$0xff] }
 0x398   :  { %v11673_v10 = vld [vmem:[#allocation41_spill] sm:$0xff] }
 0x39a   :  { %5533 = vmatpush1.bf16.msra.mxu0 %v9089_v62  ;;  %5565 = vmatpush1.bf16.msra.mxu1 %v8325_v19  ;;  %v2032_v19 = vld [vmem:[%s11308_s2 + $0x1c8] sm:$0xff] }
 0x39b   :  { %5535 = vmatprep.subr.bf16.mxu0 %v9093_v22  ;;  %5567 = vmatprep.subr.bf16.mxu1 %v8329_v20  ;;  %v9129_v20 = vpack.c.bf16 %v2027_v40, %v2023_v7  ;;  %v9133_v9 = vpack.c.bf16 %v2036_v8, %v2032_v19  ;;  %v11674_v7 = vld [vmem:[#allocation54_spill] sm:$0xff]  ;;  %v11675_v40 = vld [vmem:[#allocation55_spill] sm:$0xff]  ;;  %v11676_v19 = vld [vmem:[#allocation56_spill] sm:$0xff] }
 0x39c   :  { %v11677_v8 = vld [vmem:[#allocation57_spill] sm:$0xff] }
 0x39e   :  { %5537 = vmatpush1.bf16.msra.mxu0 %v9109_v1  ;;  %5569 = vmatpush1.bf16.msra.mxu1 %v8345_v27  ;;  %v9143_v27 = vpack.c.bf16 %v2035_v31, %v2031_v60  ;;  %v11678_v60 = vld [vmem:[#allocation58_spill] sm:$0xff]  ;;  %v11679_v31 = vld [vmem:[#allocation59_spill] sm:$0xff] }
 0x39f   :  { %5539 = vmatprep.subr.bf16.mxu0 %v9113_v43  ;;  %5571 = vmatprep.subr.bf16.mxu1 %v8349_v33  ;;  %v11639_v33 = vld [vmem:[#allocation7_spill] sm:$0xff] }
 0x3a2   :  { %5541 = vmatpush1.bf16.msra.mxu0 %v9129_v20  ;;  %5573 = vmatpush1.bf16.msra.mxu1 %v8365_v49  ;;  %v11640_v49 = vld [vmem:[#allocation8_spill] sm:$0xff] }
 0x3a3   :  { %5543 = vmatprep.subr.bf16.mxu0 %v9133_v9  ;;  %5575 = vmatprep.subr.bf16.mxu1 %v8369_v54  ;;  %v11641_v54 = vld [vmem:[#allocation9_spill] sm:$0xff] }
 0x3a6   :  { %5545 = vmatpush1.bf16.msra.mxu0 %v9143_v27  ;;  %5577 = vmatpush1.bf16.msra.mxu1 %v8379_v53  ;;  %v11642_v53 = vld [vmem:[#allocation10_spill] sm:$0xff] }
 0x3a7   :  { %5579 = vmatprep.subr.bf16.mxu0 %v8396_v17  ;;  %5643 = vmatprep.subr.bf16.mxu1 %v8407_v21  ;;  %v11643_v17 = vld [vmem:[#allocation11_spill] sm:$0xff]  ;;  %v11644_v21 = vld [vmem:[#allocation12_spill] sm:$0xff] }
 0x3a9   :  { %2104 = vmatmul.mubr.f32.vlgmr.msra.gmra.mrb[12].mxu0 %v9007_v56  ;;  %2175 = vmatmul.mubr.f32.vlgmr.msra.gmra.mrb[22].mxu1 %v9007_v56  ;;  %v11666_v56 = vld [vmem:[#allocation34_spill] sm:$0xff] }
 0x3aa   :  { %5581 = vmatpush1.bf16.msra.mxu0 %v8409_v37  ;;  %5645 = vmatpush1.bf16.msra.mxu1 %v8418_v2  ;;  %v11645_v37 = vld [vmem:[#allocation13_spill] sm:$0xff]  ;;  %v11646_v2 = vld [vmem:[#allocation14_spill] sm:$0xff] }
 0x3ab   :  { %5583 = vmatprep.subr.bf16.mxu0 %v8432_v52  ;;  %5647 = vmatprep.subr.bf16.mxu1 %v8443_v58  ;;  %v11647_v52 = vld [vmem:[#allocation15_spill] sm:$0xff]  ;;  %v11648_v58 = vld [vmem:[#allocation16_spill] sm:$0xff] }
 0x3ae   :  { %5585 = vmatpush1.bf16.msra.mxu0 %v8445_v57  ;;  %5649 = vmatpush1.bf16.msra.mxu1 %v8454_v11  ;;  %v11649_v57 = vld [vmem:[#allocation17_spill] sm:$0xff]  ;;  %v11650_v11 = vld [vmem:[#allocation18_spill] sm:$0xff] }
 0x3af   :  { %5587 = vmatprep.subr.bf16.mxu0 %v8468_v23  ;;  %5651 = vmatprep.subr.bf16.mxu1 %v8479_v39  ;;  %v11651_v23 = vld [vmem:[#allocation19_spill] sm:$0xff]  ;;  %v11652_v39 = vld [vmem:[#allocation20_spill] sm:$0xff] }
 0x3b2   :  { %5589 = vmatpush1.bf16.msra.mxu0 %v8481_v45  ;;  %5653 = vmatpush1.bf16.msra.mxu1 %v8490_v61  ;;  %v11653_v45 = vld [vmem:[#allocation21_spill] sm:$0xff]  ;;  %v11654_v61 = vld [vmem:[#allocation22_spill] sm:$0xff] }
 0x3b3   :  { %5591 = vmatprep.subr.bf16.mxu0 %v8504_v46  ;;  %5655 = vmatprep.subr.bf16.mxu1 %v8515_v38  ;;  %v11655_v46 = vld [vmem:[#allocation23_spill] sm:$0xff]  ;;  %v11656_v38 = vld [vmem:[#allocation24_spill] sm:$0xff] }
 0x3b6   :  { %5593 = vmatpush1.bf16.msra.mxu0 %v8517_v48  ;;  %5657 = vmatpush1.bf16.msra.mxu1 %v8526_v26  ;;  %v11657_v48 = vld [vmem:[#allocation25_spill] sm:$0xff]  ;;  %v11658_v26 = vld [vmem:[#allocation26_spill] sm:$0xff] }
 0x3b7   :  { %5595 = vmatprep.subr.bf16.mxu0 %v8540_v55  ;;  %5659 = vmatprep.subr.bf16.mxu1 %v8551_v41  ;;  %v11659_v55 = vld [vmem:[#allocation27_spill] sm:$0xff]  ;;  %v11660_v41 = vld [vmem:[#allocation28_spill] sm:$0xff] }
 0x3ba   :  { %5597 = vmatpush1.bf16.msra.mxu0 %v8553_v6  ;;  %5661 = vmatpush1.bf16.msra.mxu1 %v8562_v47  ;;  %v11661_v6 = vld [vmem:[#allocation29_spill] sm:$0xff]  ;;  %v11662_v47 = vld [vmem:[#allocation30_spill] sm:$0xff] }
 0x3bb   :  { %5599 = vmatprep.subr.bf16.mxu0 %v8576_v59  ;;  %5663 = vmatprep.subr.bf16.mxu1 %v8587_v5  ;;  %v11663_v59 = vld [vmem:[#allocation31_spill] sm:$0xff]  ;;  %v11664_v5 = vld [vmem:[#allocation32_spill] sm:$0xff] }
 0x3be   :  { %5601 = vmatpush1.bf16.msra.mxu0 %v8589_v50  ;;  %5665 = vmatpush1.bf16.msra.mxu1 %v11639_v33  ;;  %v11665_v50 = vld [vmem:[#allocation33_spill] sm:$0xff]  ;;  %v11680_v33 = vld [vmem:[#allocation60_spill] sm:$0xff] }
 0x3bf   :  { %5603 = vmatprep.subr.bf16.mxu0 %v11640_v49  ;;  %5667 = vmatprep.subr.bf16.mxu1 %v11641_v54  ;;  %v2501_v49 = vld [vmem:[%s11308_s2 + $0x18] sm:$0xff] }
 0x3c0   :  { %v2505_v54 = vld [vmem:[%s11308_s2 + $0x38] sm:$0xff] }
 0x3c2   :  { %5605 = vmatpush1.bf16.msra.mxu0 %v11642_v53  ;;  %5669 = vmatpush1.bf16.msra.mxu1 %v11643_v17  ;;  %v9222_v53 = vpack.c.bf16 %v2505_v54, %v2501_v49 }
 0x3c3   :  { %5607 = vmatprep.subr.bf16.mxu0 %v11644_v21  ;;  %5671 = vmatprep.subr.bf16.mxu1 %v11645_v37  ;;  %v11681_v37 = vld [vmem:[#allocation4_spill] sm:$0xff] }
 0x3c6   :  { %5609 = vmatpush1.bf16.msra.mxu0 %v11646_v2  ;;  %5673 = vmatpush1.bf16.msra.mxu1 %v11647_v52 }
 0x3c7   :  { %5611 = vmatprep.subr.bf16.mxu0 %v11648_v58  ;;  %5675 = vmatprep.subr.bf16.mxu1 %v11649_v57 }
 0x3ca   :  { %5613 = vmatpush1.bf16.msra.mxu0 %v11650_v11  ;;  %5677 = vmatpush1.bf16.msra.mxu1 %v11651_v23 }
 0x3cb   :  { %5615 = vmatprep.subr.bf16.mxu0 %v11652_v39  ;;  %5679 = vmatprep.subr.bf16.mxu1 %v11653_v45  ;;  %v11682_v45 = vld [vmem:[#allocation5_spill] sm:$0xff] }
 0x3ce   :  { %5617 = vmatpush1.bf16.msra.mxu0 %v11654_v61  ;;  %5681 = vmatpush1.bf16.msra.mxu1 %v11655_v46 }
 0x3cf   :  { %5619 = vmatprep.subr.bf16.mxu0 %v11656_v38  ;;  %5683 = vmatprep.subr.bf16.mxu1 %v11657_v48 }
 0x3d2   :  { %5621 = vmatpush1.bf16.msra.mxu0 %v11658_v26  ;;  %5685 = vmatpush1.bf16.msra.mxu1 %v11659_v55 }
 0x3d3   :  { %5623 = vmatprep.subr.bf16.mxu0 %v11660_v41  ;;  %5687 = vmatprep.subr.bf16.mxu1 %v11661_v6 }
 0x3d6   :  { %5625 = vmatpush1.bf16.msra.mxu0 %v11662_v47  ;;  %5689 = vmatpush1.bf16.msra.mxu1 %v11663_v59 }
 0x3d7   :  { %5627 = vmatprep.subr.bf16.mxu0 %v11664_v5  ;;  %5691 = vmatprep.subr.bf16.mxu1 %v11665_v50 }
 0x3da   :  { %5629 = vmatpush1.bf16.msra.mxu0 %v11666_v56  ;;  %5693 = vmatpush1.bf16.msra.mxu1 %v11667_v0 }
 0x3db   :  { %5631 = vmatprep.subr.bf16.mxu0 %v11668_v44  ;;  %5695 = vmatprep.subr.bf16.mxu1 %v11669_v35 }
 0x3de   :  { %5633 = vmatpush1.bf16.msra.mxu0 %v11670_v4  ;;  %5697 = vmatpush1.bf16.msra.mxu1 %v11671_v25  ;;  %v11683_v4 = vld [vmem:[#allocation44_spill] sm:$0xff] }
 0x3df   :  { %5635 = vmatprep.subr.bf16.mxu0 %v11672_v28  ;;  %5699 = vmatprep.subr.bf16.mxu1 %v11673_v10 }
 0x3e2   :  { %5637 = vmatpush1.bf16.msra.mxu0 %v11674_v7  ;;  %5701 = vmatpush1.bf16.msra.mxu1 %v11675_v40  ;;  %v11684_v40 = vld [vmem:[#allocation45_spill] sm:$0xff] }
 0x3e3   :  { %5639 = vmatprep.subr.bf16.mxu0 %v11676_v19  ;;  %5703 = vmatprep.subr.bf16.mxu1 %v11677_v8 }
 0x3e6   :  { %5641 = vmatpush1.bf16.msra.mxu0 %v11678_v60  ;;  %5705 = vmatpush1.bf16.msra.mxu1 %v11679_v31 }
 0x3e7   :  { %5707 = vmatprep.subr.bf16.mxu0 %v11680_v33  ;;  %5739 = vmatprep.subr.bf16.mxu1 %v9222_v53 }
 0x45c   :  { %v1874_v17 = vpop.f32.mrb[10].mxu0  ;;  %v1945_v21 = vpop.f32.mrb[36].mxu1 }
 0x45d   :  { %v1875_v2 = vadd.f32 %v1874_v17, %v11681_v37  ;;  %v1876_v52 = vpop.f32.mrb[11].mxu0  ;;  %v1947_v58 = vpop.f32.mrb[37].mxu1  ;;  %v1946_v39 = vadd.f32 %v1945_v21, %v8205_v32 }
 0x45e   :  { %v1877_v57 = vadd.f32 %v1876_v52, %v8200_v15  ;;  %v1948_v61 = vadd.f32 %v1947_v58, %v11682_v45 }
 0x45f   :  { %v1950_v11 = vmul.f32 0.5, %v1875_v2 }
 0x460   :  { %v1954_v23 = vmul.f32 0.5, %v1877_v57  ;;  %v1959_v46 = vmul.f32 0.5, %v1948_v61 }
 0x461   :  { %6621 = vtanh.f32 %v1950_v11 }
 0x462   :  { %6623 = vtanh.f32 %v1954_v23 }
 0x463   :  { %6625 = vtanh.f32 %v1946_v39 }
 0x464   :  { %6627 = vtanh.f32 %v1959_v46 }
 0x46b   :  { %v6622_v38 = vpop.eup %6621 }
 0x46c   :  { %v6624_v48 = vpop.eup %6623  ;;  %v1952_v26 = vmul.f32 0.5, %v6622_v38 }
 0x46d   :  { %v1956_v55 = vmul.f32 0.5, %v6624_v48  ;;  %v6626_v6 = vpop.eup %6625  ;;  %v2500_v48 = vld [vmem:[%s11308_s2 + $0x10] sm:$0xff] }
 0x46e   :  { %v1953_v41 = vadd.f32 0.5, %v1952_v26  ;;  %v6628_v56 = vpop.eup %6627  ;;  %v2504_v26 = vld [vmem:[%s11308_s2 + $0x30] sm:$0xff] }
 0x46f   :  { %v1957_v47 = vadd.f32 0.5, %v1956_v55  ;;  %v1961_v0 = vmul.f32 0.5, %v6628_v56  ;;  %v2509_v55 = vld [vmem:[%s11308_s2 + $0x58] sm:$0xff]  ;;  %v2508_v56 = vld [vmem:[%s11308_s2 + $0x50] sm:$0xff] }
 0x470   :  { %v1964_v59 = vmul.f32 %v6626_v6, %v1953_v41 }
 0x471   :  { %v1963_v5 = vmul.f32 %v1957_v47, %v8978_v18  ;;  %v1962_v7 = vadd.f32 0.5, %v1961_v0  ;;  %v9257_v47 = vpack.c.bf16 %v2504_v26, %v2500_v48  ;;  %v2512_v0 = vld [vmem:[%s11308_s2 + $0x70] sm:$0xff]  ;;  %v2726_v26 = vld [vmem:[%s11310_s4] sm:$0xff] }
 0x473   :  { %v9230_v50 = vadd.f32 %v1964_v59, %v1963_v5 }
 0x475   :  { %6629 = vtanh.f32 %v9230_v50 }
 0x47c   :  { %v2105_v44 = vpop.f32.mrb[12].mxu0  ;;  %v2176_v35 = vpop.f32.mrb[22].mxu1 }
 0x47d   :  { %v2181_v25 = vadd.f32 %v2105_v44, %v11683_v4  ;;  %v2107_v28 = vpop.f32.mrb[13].mxu0  ;;  %v2178_v10 = vpop.f32.mrb[23].mxu1  ;;  %v6544_v18 = vadd.f32 %v2176_v35, %v7948_v13  ;;  %v2517_v44 = vld [vmem:[%s11308_s2 + $0x98] sm:$0xff]  ;;  %v9279_v4 = vpack.c.bf16 %v2512_v0, %v2508_v56  ;;  %v2735_v0 = vld [vmem:[%s11310_s4 + $0x48] sm:$0xff] }
 0x47e   :  { %v2182_v19 = vadd.f32 %v2107_v28, %v11684_v40  ;;  %v6545_v49 = vadd.f32 %v2178_v10, %v7952_v3  ;;  %v2521_v35 = vld [vmem:[%s11308_s2 + $0xb8] sm:$0xff]  ;;  %v2516_v28 = vld [vmem:[%s11308_s2 + $0x90] sm:$0xff] }
 0x47f   :  { %v6630_v8 = vpop.eup %6629  ;;  %v2185_v60 = vmul.f32 0.5, %v2181_v25  ;;  %v9283_v25 = vpack.c.bf16 %v2521_v35, %v2517_v44  ;;  %v2520_v10 = vld [vmem:[%s11308_s2 + $0xb0] sm:$0xff]  ;;  %v2739_v44 = vld [vmem:[%s11310_s4 + $0x68] sm:$0xff]  ;;  %v2737_v35 = vld [vmem:[%s11310_s4 + $0x58] sm:$0xff] }
 0x480   :  { %v2189_v31 = vmul.f32 0.5, %v2182_v19  ;;  %v9235_v33 = vmul.f32 %v6630_v8, %v1962_v7  ;;  %v2194_v54 = vmul.f32 0.5, %v6545_v49  ;;  %v9301_v7 = vpack.c.bf16 %v2520_v10, %v2516_v28  ;;  %v2524_v19 = vld [vmem:[%s11308_s2 + $0xd0] sm:$0xff]  ;;  %v2741_v10 = vld [vmem:[%s11310_s4 + $0x78] sm:$0xff] }
 0x481   :  { %6631 = vtanh.f32 %v2185_v60  ;;  %v2528_v8 = vld [vmem:[%s11308_s2 + $0xf0] sm:$0xff]  ;;  %v9448_v28 = vpack.c.bf16 %v2739_v44, %v2735_v0 }
 0x482   :  { %11685 = vst [vmem:[#allocation43_spill] sm:$0xff] %v9235_v33  ;;  %6633 = vtanh.f32 %v2189_v31  ;;  %2395 = vmatprep.mubr.f32.mxu0 %v9235_v33  ;;  %2466 = vmatprep.mubr.f32.mxu1 %v9235_v33  ;;  %v9321_v60 = vpack.c.bf16 %v2528_v8, %v2524_v19  ;;  %v2536_v49 = vld [vmem:[%s11308_s2 + $0x130] sm:$0xff]  ;;  %v9459_v19 = vpack.c.bf16 %v2741_v10, %v2737_v35  ;;  %v2759_v10 = vld [vmem:[%s11310_s4 + $0x108] sm:$0xff] }
 0x483   :  { %6635 = vtanh.f32 %v6544_v18  ;;  %v2532_v18 = vld [vmem:[%s11308_s2 + $0x110] sm:$0xff] }
 0x484   :  { %6637 = vtanh.f32 %v2194_v54  ;;  %v9341_v54 = vpack.c.bf16 %v2536_v49, %v2532_v18  ;;  %v2743_v49 = vld [vmem:[%s11310_s4 + $0x88] sm:$0xff]  ;;  %v2752_v0 = vld [vmem:[%s11310_s4 + $0xd0] sm:$0xff] }
 0x485   :  { %v2756_v44 = vld [vmem:[%s11310_s4 + $0xf0] sm:$0xff] }
 0x486   :  { %v9542_v35 = vpack.c.bf16 %v2756_v44, %v2752_v0 }
 0x48b   :  { %v6632_v17 = vpop.eup %6631 }
 0x48c   :  { %v6634_v21 = vpop.eup %6633  ;;  %v2187_v2 = vmul.f32 0.5, %v6632_v17 }
 0x48d   :  { %v2191_v52 = vmul.f32 0.5, %v6634_v21  ;;  %v6636_v57 = vpop.eup %6635  ;;  %v2540_v21 = vld [vmem:[%s11308_s2 + $0x150] sm:$0xff] }
 0x48e   :  { %v2188_v58 = vadd.f32 0.5, %v2187_v2  ;;  %v6638_v46 = vpop.eup %6637  ;;  %v2544_v2 = vld [vmem:[%s11308_s2 + $0x170] sm:$0xff] }
 0x48f   :  { %v2192_v11 = vadd.f32 0.5, %v2191_v52  ;;  %v2196_v38 = vmul.f32 0.5, %v6638_v46  ;;  %v9361_v52 = vpack.c.bf16 %v2544_v2, %v2540_v21  ;;  %v2556_v46 = vld [vmem:[%s11308_s2 + $0x1d0] sm:$0xff]  ;;  %v2749_v2 = vld [vmem:[%s11310_s4 + $0xb8] sm:$0xff] }
 0x490   :  { %v2199_v23 = vmul.f32 %v6636_v57, %v2188_v58  ;;  %v2548_v57 = vld [vmem:[%s11308_s2 + $0x190] sm:$0xff] }
 0x491   :  { %v2198_v39 = vmul.f32 %v2192_v11, %v8990_v34  ;;  %v2513_v34 = vld [vmem:[%s11308_s2 + $0x78] sm:$0xff]  ;;  %v2197_v41 = vadd.f32 0.5, %v2196_v38  ;;  %v2552_v11 = vld [vmem:[%s11308_s2 + $0x1b0] sm:$0xff] }
 0x492   :  { %v9261_v5 = vpack.c.bf16 %v2513_v34, %v2509_v55  ;;  %v2560_v38 = vld [vmem:[%s11308_s2 + $0x1f0] sm:$0xff]  ;;  %v2730_v55 = vld [vmem:[%s11310_s4 + $0x20] sm:$0xff] }
 0x493   :  { %v9242_v61 = vadd.f32 %v2199_v23, %v2198_v39  ;;  %v9381_v23 = vpack.c.bf16 %v2552_v11, %v2548_v57 }
 0x495   :  { %6639 = vtanh.f32 %v9242_v61 }
 0x49f   :  { %v6640_v6 = vpop.eup %6639 }
 0x4a0   :  { %v9259_v59 = vmul.f32 %v6640_v6, %v2197_v41  ;;  %v9425_v41 = vpack.c.bf16 %v2730_v55, %v2726_v26  ;;  %v2728_v6 = vld [vmem:[%s11310_s4 + $0x10] sm:$0xff]  ;;  %v2750_v26 = vld [vmem:[%s11310_s4 + $0xc0] sm:$0xff] }
 0x4a1   :  { %v2754_v55 = vld [vmem:[%s11310_s4 + $0xe0] sm:$0xff] }
 0x4a2   :  { %2396 = vmatmul.mubr.f32.vlgmr.msra.gmra.mrb[14].mxu0 %v9259_v59  ;;  %2467 = vmatmul.mubr.f32.vlgmr.msra.gmra.mrb[38].mxu1 %v9259_v59 }
 0x4a3   :  { %5709 = vmatpush1.bf16.msra.mxu0 %v9005_v42  ;;  %5741 = vmatpush1.bf16.msra.mxu1 %v9257_v47  ;;  %v2525_v42 = vld [vmem:[%s11308_s2 + $0xd8] sm:$0xff] }
 0x4a4   :  { %5711 = vmatprep.subr.bf16.mxu0 %v9009_v51  ;;  %5743 = vmatprep.subr.bf16.mxu1 %v9261_v5  ;;  %v2529_v51 = vld [vmem:[%s11308_s2 + $0xf8] sm:$0xff] }
 0x4a5   :  { %2626 = vmatprep.mubr.f32.mxu0 %v11548_v30  ;;  %2697 = vmatprep.mubr.f32.mxu1 %v11548_v30  ;;  %v9305_v40 = vpack.c.bf16 %v2529_v51, %v2525_v42  ;;  %v2734_v42 = vld [vmem:[%s11310_s4 + $0x40] sm:$0xff] }
 0x4a6   :  { %v2738_v51 = vld [vmem:[%s11310_s4 + $0x60] sm:$0xff] }
 0x4a7   :  { %5713 = vmatpush1.bf16.msra.mxu0 %v9027_v36  ;;  %5745 = vmatpush1.bf16.msra.mxu1 %v9279_v4  ;;  %v2533_v36 = vld [vmem:[%s11308_s2 + $0x118] sm:$0xff]  ;;  %v9461_v8 = vpack.c.bf16 %v2738_v51, %v2734_v42  ;;  %v2763_v42 = vld [vmem:[%s11310_s4 + $0x128] sm:$0xff] }
 0x4a8   :  { %5715 = vmatprep.subr.bf16.mxu0 %v9031_v16  ;;  %5747 = vmatprep.subr.bf16.mxu1 %v9283_v25  ;;  %v2537_v16 = vld [vmem:[%s11308_s2 + $0x138] sm:$0xff] }
 0x4a9   :  { %v9325_v31 = vpack.c.bf16 %v2537_v16, %v2533_v36  ;;  %v2736_v36 = vld [vmem:[%s11310_s4 + $0x50] sm:$0xff]  ;;  %v2761_v51 = vld [vmem:[%s11310_s4 + $0x118] sm:$0xff] }
 0x4aa   :  { %v2740_v16 = vld [vmem:[%s11310_s4 + $0x70] sm:$0xff] }
 0x4ab   :  { %5717 = vmatpush1.bf16.msra.mxu0 %v9049_v63  ;;  %5749 = vmatpush1.bf16.msra.mxu1 %v9301_v7  ;;  %v2541_v63 = vld [vmem:[%s11308_s2 + $0x158] sm:$0xff]  ;;  %v9470_v18 = vpack.c.bf16 %v2740_v16, %v2736_v36  ;;  %v9556_v36 = vpack.c.bf16 %v2763_v42, %v2759_v10  ;;  %v2768_v10 = vld [vmem:[%s11310_s4 + $0x150] sm:$0xff] }
 0x4ac   :  { %5719 = vmatprep.subr.bf16.mxu0 %v9053_v24  ;;  %5751 = vmatprep.subr.bf16.mxu1 %v9305_v40  ;;  %v2545_v24 = vld [vmem:[%s11308_s2 + $0x178] sm:$0xff]  ;;  %v2772_v42 = vld [vmem:[%s11310_s4 + $0x170] sm:$0xff] }
 0x4ad   :  { %v9345_v17 = vpack.c.bf16 %v2545_v24, %v2541_v63  ;;  %v2747_v63 = vld [vmem:[%s11310_s4 + $0xa8] sm:$0xff]  ;;  %v2745_v24 = vld [vmem:[%s11310_s4 + $0x98] sm:$0xff] }
 0x4ae   :  { %v9484_v21 = vpack.c.bf16 %v2747_v63, %v2743_v49  ;;  %v9495_v57 = vpack.c.bf16 %v2749_v2, %v2745_v24  ;;  %v2765_v16 = vld [vmem:[%s11310_s4 + $0x138] sm:$0xff]  ;;  %v2758_v49 = vld [vmem:[%s11310_s4 + $0x100] sm:$0xff] }
 0x4af   :  { %5721 = vmatpush1.bf16.msra.mxu0 %v9069_v29  ;;  %5753 = vmatpush1.bf16.msra.mxu1 %v9321_v60  ;;  %v2549_v29 = vld [vmem:[%s11308_s2 + $0x198] sm:$0xff]  ;;  %v2762_v63 = vld [vmem:[%s11310_s4 + $0x120] sm:$0xff]  ;;  %v9567_v24 = vpack.c.bf16 %v2765_v16, %v2761_v51  ;;  %v9614_v51 = vpack.c.bf16 %v2772_v42, %v2768_v10  ;;  %v2775_v16 = vld [vmem:[%s11310_s4 + $0x188] sm:$0xff] }
 0x4b0   :  { %5723 = vmatprep.subr.bf16.mxu0 %v9073_v12  ;;  %5755 = vmatprep.subr.bf16.mxu1 %v9325_v31  ;;  %v2553_v12 = vld [vmem:[%s11308_s2 + $0x1b8] sm:$0xff]  ;;  %v9569_v2 = vpack.c.bf16 %v2762_v63, %v2758_v49  ;;  %v2779_v49 = vld [vmem:[%s11310_s4 + $0x1a8] sm:$0xff] }
 0x4b1   :  { %v9365_v58 = vpack.c.bf16 %v2553_v12, %v2549_v29  ;;  %v2742_v29 = vld [vmem:[%s11310_s4 + $0x80] sm:$0xff]  ;;  %11686 = vst [vmem:[#allocation7_spill] sm:$0xff] %v9614_v51  ;;  %v2777_v63 = vld [vmem:[%s11310_s4 + $0x198] sm:$0xff]  ;;  %v2783_v42 = vld [vmem:[%s11310_s4 + $0x1c8] sm:$0xff] }
 0x4b2   :  { %v2746_v12 = vld [vmem:[%s11310_s4 + $0xa0] sm:$0xff] }
 0x4b3   :  { %5725 = vmatpush1.bf16.msra.mxu0 %v9089_v62  ;;  %5757 = vmatpush1.bf16.msra.mxu1 %v9341_v54  ;;  %v2557_v62 = vld [vmem:[%s11308_s2 + $0x1d8] sm:$0xff]  ;;  %v9497_v11 = vpack.c.bf16 %v2746_v12, %v2742_v29  ;;  %v2760_v29 = vld [vmem:[%s11310_s4 + $0x110] sm:$0xff] }
 0x4b4   :  { %5727 = vmatprep.subr.bf16.mxu0 %v9093_v22  ;;  %5759 = vmatprep.subr.bf16.mxu1 %v9345_v17  ;;  %v2561_v22 = vld [vmem:[%s11308_s2 + $0x1f8] sm:$0xff]  ;;  %v2764_v12 = vld [vmem:[%s11310_s4 + $0x130] sm:$0xff] }
 0x4b5   :  { %v9385_v39 = vpack.c.bf16 %v2561_v22, %v2557_v62  ;;  %v2744_v62 = vld [vmem:[%s11310_s4 + $0x90] sm:$0xff] }
 0x4b6   :  { %v2748_v22 = vld [vmem:[%s11310_s4 + $0xb0] sm:$0xff] }
 0x4b7   :  { %5729 = vmatpush1.bf16.msra.mxu0 %v9109_v1  ;;  %5761 = vmatpush1.bf16.msra.mxu1 %v9361_v52  ;;  %v9395_v1 = vpack.c.bf16 %v2560_v38, %v2556_v46  ;;  %v9506_v46 = vpack.c.bf16 %v2748_v22, %v2744_v62  ;;  %v2751_v38 = vld [vmem:[%s11310_s4 + $0xc8] sm:$0xff]  ;;  %v9578_v62 = vpack.c.bf16 %v2764_v12, %v2760_v29  ;;  %v2781_v12 = vld [vmem:[%s11310_s4 + $0x1b8] sm:$0xff] }
 0x4b8   :  { %5731 = vmatprep.subr.bf16.mxu0 %v9113_v43  ;;  %5763 = vmatprep.subr.bf16.mxu1 %v9365_v58  ;;  %v2727_v43 = vld [vmem:[%s11310_s4 + $0x8] sm:$0xff]  ;;  %v9627_v29 = vpack.c.bf16 %v2779_v49, %v2775_v16  ;;  %v2785_v49 = vld [vmem:[%s11310_s4 + $0x1d8] sm:$0xff] }
 0x4b9   :  { %v2767_v22 = vld [vmem:[%s11310_s4 + $0x148] sm:$0xff] }
 0x4ba   :  { %11687 = vst [vmem:[#allocation8_spill] sm:$0xff] %v9627_v29  ;;  %v2787_v16 = vld [vmem:[%s11310_s4 + $0x1e8] sm:$0xff] }
 0x4bb   :  { %5733 = vmatpush1.bf16.msra.mxu0 %v9129_v20  ;;  %5765 = vmatpush1.bf16.msra.mxu1 %v9381_v23  ;;  %v2731_v20 = vld [vmem:[%s11310_s4 + $0x28] sm:$0xff] }
 0x4bc   :  { %5735 = vmatprep.subr.bf16.mxu0 %v9133_v9  ;;  %5767 = vmatprep.subr.bf16.mxu1 %v9385_v39  ;;  %v2729_v9 = vld [vmem:[%s11310_s4 + $0x18] sm:$0xff]  ;;  %v9412_v48 = vpack.c.bf16 %v2731_v20, %v2727_v43  ;;  %v2755_v43 = vld [vmem:[%s11310_s4 + $0xe8] sm:$0xff] }
 0x4bd   :  { %v2753_v20 = vld [vmem:[%s11310_s4 + $0xd8] sm:$0xff] }
 0x4bf   :  { %5737 = vmatpush1.bf16.msra.mxu0 %v9143_v27  ;;  %5769 = vmatpush1.bf16.msra.mxu1 %v9395_v1  ;;  %v2733_v27 = vld [vmem:[%s11310_s4 + $0x38] sm:$0xff] }
 0x4c0   :  { %v9423_v34 = vpack.c.bf16 %v2733_v27, %v2729_v9  ;;  %5771 = vmatprep.subr.bf16.mxu0 %v9412_v48  ;;  %v9520_v9 = vpack.c.bf16 %v2755_v43, %v2751_v38  ;;  %v2757_v27 = vld [vmem:[%s11310_s4 + $0xf8] sm:$0xff]  ;;  %v2771_v38 = vld [vmem:[%s11310_s4 + $0x168] sm:$0xff] }
 0x4c1   :  { %v2769_v43 = vld [vmem:[%s11310_s4 + $0x158] sm:$0xff] }
 0x4c2   :  { %2627 = vmatmul.mubr.f32.vlgmr.msra.gmra.mrb[16].mxu0 %v9259_v59  ;;  %2698 = vmatmul.mubr.f32.vlgmr.msra.gmra.mrb[24].mxu1 %v9259_v59  ;;  %v2732_v59 = vld [vmem:[%s11310_s4 + $0x30] sm:$0xff] }
 0x4c3   :  { %v9434_v56 = vpack.c.bf16 %v2732_v59, %v2728_v6  ;;  %5835 = vmatprep.subr.bf16.mxu1 %v9423_v34  ;;  %5773 = vmatpush1.bf16.msra.mxu0 %v9425_v41  ;;  %v9531_v6 = vpack.c.bf16 %v2757_v27, %v2753_v20  ;;  %v9533_v59 = vpack.c.bf16 %v2754_v55, %v2750_v26  ;;  %v2773_v27 = vld [vmem:[%s11310_s4 + $0x178] sm:$0xff]  ;;  %v2766_v26 = vld [vmem:[%s11310_s4 + $0x140] sm:$0xff] }
 0x4c4   :  { %5775 = vmatprep.subr.bf16.mxu0 %v9448_v28  ;;  %v9592_v20 = vpack.c.bf16 %v2771_v38, %v2767_v22  ;;  %v2770_v55 = vld [vmem:[%s11310_s4 + $0x160] sm:$0xff]  ;;  %v9603_v0 = vpack.c.bf16 %v2773_v27, %v2769_v43  ;;  %v9639_v43 = vpack.c.bf16 %v2781_v12, %v2777_v63  ;;  %v9664_v63 = vpack.c.bf16 %v2787_v16, %v2783_v42  ;;  %v2789_v12 = vld [vmem:[%s11310_s4 + $0x1f8] sm:$0xff]  ;;  %v2784_v42 = vld [vmem:[%s11310_s4 + $0x1d0] sm:$0xff] }
 0x4c5   :  { %5837 = vmatpush1.bf16.msra.mxu1 %v9434_v56  ;;  %v9605_v44 = vpack.c.bf16 %v2770_v55, %v2766_v26  ;;  %v2774_v22 = vld [vmem:[%s11310_s4 + $0x180] sm:$0xff]  ;;  %v2776_v26 = vld [vmem:[%s11310_s4 + $0x190] sm:$0xff] }
 0x4c6   :  { %5839 = vmatprep.subr.bf16.mxu1 %v9459_v19  ;;  %v2778_v38 = vld [vmem:[%s11310_s4 + $0x1a0] sm:$0xff]  ;;  %11688 = vst [vmem:[#allocation9_spill] sm:$0xff] %v9639_v43  ;;  %v2780_v55 = vld [vmem:[%s11310_s4 + $0x1b0] sm:$0xff]  ;;  %11691 = vst [vmem:[#allocation12_spill] sm:$0xff] %v9664_v63 }
 0x4c7   :  { %5777 = vmatpush1.bf16.msra.mxu0 %v9461_v8  ;;  %v9641_v27 = vpack.c.bf16 %v2778_v38, %v2774_v22  ;;  %v9650_v10 = vpack.c.bf16 %v2780_v55, %v2776_v26  ;;  %v2782_v22 = vld [vmem:[%s11310_s4 + $0x1c0] sm:$0xff]  ;;  %v9675_v26 = vpack.c.bf16 %v2789_v12, %v2785_v49  ;;  %v2788_v16 = vld [vmem:[%s11310_s4 + $0x1f0] sm:$0xff]  ;;  %v2791_v49 = vld [vmem:[%s11310_s4 + $0x208] sm:$0xff] }
 0x4c8   :  { %5779 = vmatprep.subr.bf16.mxu0 %v9484_v21  ;;  %v2786_v38 = vld [vmem:[%s11310_s4 + $0x1e0] sm:$0xff]  ;;  %v9686_v33 = vpack.c.bf16 %v2788_v16, %v2784_v42  ;;  %v2795_v12 = vld [vmem:[%s11310_s4 + $0x228] sm:$0xff]  ;;  %v2797_v42 = vld [vmem:[%s11310_s4 + $0x238] sm:$0xff] }
 0x4c9   :  { %5841 = vmatpush1.bf16.msra.mxu1 %v9470_v18  ;;  %11689 = vst [vmem:[#allocation10_spill] sm:$0xff] %v9641_v27  ;;  %11690 = vst [vmem:[#allocation11_spill] sm:$0xff] %v9650_v10  ;;  %v9677_v55 = vpack.c.bf16 %v2786_v38, %v2782_v22  ;;  %v2793_v22 = vld [vmem:[%s11310_s4 + $0x218] sm:$0xff]  ;;  %v9700_v38 = vpack.c.bf16 %v2795_v12, %v2791_v49  ;;  %v2790_v16 = vld [vmem:[%s11310_s4 + $0x200] sm:$0xff] }
 0x4ca   :  { %5843 = vmatprep.subr.bf16.mxu1 %v9495_v57  ;;  %11692 = vst [vmem:[#allocation13_spill] sm:$0xff] %v9675_v26  ;;  %11694 = vst [vmem:[#allocation15_spill] sm:$0xff] %v9686_v33  ;;  %v2792_v49 = vld [vmem:[%s11310_s4 + $0x210] sm:$0xff] }
 0x4cb   :  { %5781 = vmatpush1.bf16.msra.mxu0 %v9497_v11  ;;  %11693 = vst [vmem:[#allocation14_spill] sm:$0xff] %v9677_v55  ;;  %11695 = vst [vmem:[#allocation16_spill] sm:$0xff] %v9700_v38  ;;  %v2796_v12 = vld [vmem:[%s11310_s4 + $0x230] sm:$0xff] }
 0x4cc   :  { %5783 = vmatprep.subr.bf16.mxu0 %v9520_v9 }
 0x4cd   :  { %5845 = vmatpush1.bf16.msra.mxu1 %v9506_v46 }
 0x4ce   :  { %5847 = vmatprep.subr.bf16.mxu1 %v9531_v6 }
 0x4cf   :  { %5785 = vmatpush1.bf16.msra.mxu0 %v9533_v59 }
 0x4d0   :  { %5787 = vmatprep.subr.bf16.mxu0 %v9556_v36 }
 0x4d1   :  { %5849 = vmatpush1.bf16.msra.mxu1 %v9542_v35 }
 0x4d2   :  { %5851 = vmatprep.subr.bf16.mxu1 %v9567_v24 }
 0x4d3   :  { %5789 = vmatpush1.bf16.msra.mxu0 %v9569_v2 }
 0x4d4   :  { %5791 = vmatprep.subr.bf16.mxu0 %v9592_v20 }
 0x4d5   :  { %5853 = vmatpush1.bf16.msra.mxu1 %v9578_v62 }
 0x4d6   :  { %5855 = vmatprep.subr.bf16.mxu1 %v9603_v0 }
 0x4d7   :  { %5793 = vmatpush1.bf16.msra.mxu0 %v9605_v44 }
 0x4d8   :  { %5795 = vmatprep.subr.bf16.mxu0 %v9627_v29 }
 0x4d9   :  { %5857 = vmatpush1.bf16.msra.mxu1 %v9614_v51 }
 0x4da   :  { %5859 = vmatprep.subr.bf16.mxu1 %v9639_v43 }
 0x4db   :  { %5797 = vmatpush1.bf16.msra.mxu0 %v9641_v27 }
 0x4dc   :  { %5799 = vmatprep.subr.bf16.mxu0 %v9664_v63 }
 0x4dd   :  { %5861 = vmatpush1.bf16.msra.mxu1 %v9650_v10 }
 0x4de   :  { %5863 = vmatprep.subr.bf16.mxu1 %v9675_v26  ;;  %v9713_v26 = vpack.c.bf16 %v2794_v14, %v2790_v16  ;;  %v2799_v14 = vld [vmem:[%s11310_s4 + $0x248] sm:$0xff] }
 0x4df   :  { %5801 = vmatpush1.bf16.msra.mxu0 %v9677_v55  ;;  %v9711_v55 = vpack.c.bf16 %v2797_v42, %v2793_v22  ;;  %v2803_v22 = vld [vmem:[%s11310_s4 + $0x268] sm:$0xff]  ;;  %v2801_v42 = vld [vmem:[%s11310_s4 + $0x258] sm:$0xff] }
 0x4e0   :  { %11697 = vst [vmem:[#allocation18_spill] sm:$0xff] %v9713_v26  ;;  %5803 = vmatprep.subr.bf16.mxu0 %v9700_v38  ;;  %v9736_v16 = vpack.c.bf16 %v2803_v22, %v2799_v14  ;;  %v2800_v14 = vld [vmem:[%s11310_s4 + $0x250] sm:$0xff] }
 0x4e1   :  { %5865 = vmatpush1.bf16.msra.mxu1 %v9686_v33  ;;  %11696 = vst [vmem:[#allocation17_spill] sm:$0xff] %v9711_v55  ;;  %v9722_v33 = vpack.c.bf16 %v2796_v12, %v2792_v49  ;;  %v2805_v49 = vld [vmem:[%s11310_s4 + $0x278] sm:$0xff]  ;;  %v2798_v12 = vld [vmem:[%s11310_s4 + $0x240] sm:$0xff]  ;;  %v2804_v22 = vld [vmem:[%s11310_s4 + $0x270] sm:$0xff] }
 0x4e2   :  { %5867 = vmatprep.subr.bf16.mxu1 %v9711_v55  ;;  %11699 = vst [vmem:[#allocation20_spill] sm:$0xff] %v9736_v16  ;;  %v9747_v55 = vpack.c.bf16 %v2805_v49, %v2801_v42  ;;  %v2811_v42 = vld [vmem:[%s11310_s4 + $0x2a8] sm:$0xff]  ;;  %v2809_v49 = vld [vmem:[%s11310_s4 + $0x298] sm:$0xff] }
 0x4e3   :  { %11698 = vst [vmem:[#allocation19_spill] sm:$0xff] %v9722_v33  ;;  %5805 = vmatpush1.bf16.msra.mxu0 %v9713_v26  ;;  %v2802_v26 = vld [vmem:[%s11310_s4 + $0x260] sm:$0xff] }
 0x4e4   :  { %11700 = vst [vmem:[#allocation21_spill] sm:$0xff] %v9747_v55  ;;  %v9749_v38 = vpack.c.bf16 %v2802_v26, %v2798_v12  ;;  %5807 = vmatprep.subr.bf16.mxu0 %v9736_v16  ;;  %v2807_v26 = vld [vmem:[%s11310_s4 + $0x288] sm:$0xff] }
 0x4e5   :  { %5869 = vmatpush1.bf16.msra.mxu1 %v9722_v33  ;;  %v9758_v33 = vpack.c.bf16 %v2804_v22, %v2800_v14  ;;  %v9772_v12 = vpack.c.bf16 %v2811_v42, %v2807_v26  ;;  %v2813_v14 = vld [vmem:[%s11310_s4 + $0x2b8] sm:$0xff]  ;;  %v2806_v22 = vld [vmem:[%s11310_s4 + $0x280] sm:$0xff]  ;;  %v2808_v26 = vld [vmem:[%s11310_s4 + $0x290] sm:$0xff] }
 0x4e6   :  { %11701 = vst [vmem:[#allocation22_spill] sm:$0xff] %v9749_v38  ;;  %5871 = vmatprep.subr.bf16.mxu1 %v9747_v55  ;;  %v9783_v55 = vpack.c.bf16 %v2813_v14, %v2809_v49  ;;  %v2812_v42 = vld [vmem:[%s11310_s4 + $0x2b0] sm:$0xff]  ;;  %v2819_v49 = vld [vmem:[%s11310_s4 + $0x2e8] sm:$0xff]  ;;  %v2817_v14 = vld [vmem:[%s11310_s4 + $0x2d8] sm:$0xff] }
 0x4e7   :  { %11702 = vst [vmem:[#allocation23_spill] sm:$0xff] %v9758_v33  ;;  %5809 = vmatpush1.bf16.msra.mxu0 %v9749_v38  ;;  %11703 = vst [vmem:[#allocation24_spill] sm:$0xff] %v9772_v12  ;;  %v2810_v38 = vld [vmem:[%s11310_s4 + $0x2a0] sm:$0xff] }
 0x4e8   :  { %11704 = vst [vmem:[#allocation25_spill] sm:$0xff] %v9783_v55  ;;  %v9785_v16 = vpack.c.bf16 %v2810_v38, %v2806_v22  ;;  %5811 = vmatprep.subr.bf16.mxu0 %v9772_v12  ;;  %v2815_v38 = vld [vmem:[%s11310_s4 + $0x2c8] sm:$0xff] }
 0x4e9   :  { %5873 = vmatpush1.bf16.msra.mxu1 %v9758_v33  ;;  %v9794_v33 = vpack.c.bf16 %v2812_v42, %v2808_v26  ;;  %v9808_v22 = vpack.c.bf16 %v2819_v49, %v2815_v38  ;;  %v2821_v26 = vld [vmem:[%s11310_s4 + $0x2f8] sm:$0xff]  ;;  %v2814_v42 = vld [vmem:[%s11310_s4 + $0x2c0] sm:$0xff]  ;;  %v2816_v38 = vld [vmem:[%s11310_s4 + $0x2d0] sm:$0xff] }
 0x4ea   :  { %11705 = vst [vmem:[#allocation26_spill] sm:$0xff] %v9785_v16  ;;  %5875 = vmatprep.subr.bf16.mxu1 %v9783_v55  ;;  %v9819_v55 = vpack.c.bf16 %v2821_v26, %v2817_v14  ;;  %v2820_v49 = vld [vmem:[%s11310_s4 + $0x2f0] sm:$0xff]  ;;  %v2827_v14 = vld [vmem:[%s11310_s4 + $0x328] sm:$0xff]  ;;  %v2825_v26 = vld [vmem:[%s11310_s4 + $0x318] sm:$0xff] }
 0x4eb   :  { %11706 = vst [vmem:[#allocation27_spill] sm:$0xff] %v9794_v33  ;;  %5813 = vmatpush1.bf16.msra.mxu0 %v9785_v16  ;;  %11707 = vst [vmem:[#allocation28_spill] sm:$0xff] %v9808_v22  ;;  %v2818_v16 = vld [vmem:[%s11310_s4 + $0x2e0] sm:$0xff] }
 0x4ec   :  { %11708 = vst [vmem:[#allocation29_spill] sm:$0xff] %v9819_v55  ;;  %v9821_v12 = vpack.c.bf16 %v2818_v16, %v2814_v42  ;;  %5815 = vmatprep.subr.bf16.mxu0 %v9808_v22  ;;  %v2823_v16 = vld [vmem:[%s11310_s4 + $0x308] sm:$0xff] }
 0x4ed   :  { %5877 = vmatpush1.bf16.msra.mxu1 %v9794_v33  ;;  %v9830_v33 = vpack.c.bf16 %v2820_v49, %v2816_v38  ;;  %v9844_v42 = vpack.c.bf16 %v2827_v14, %v2823_v16  ;;  %v2829_v38 = vld [vmem:[%s11310_s4 + $0x338] sm:$0xff]  ;;  %v2822_v49 = vld [vmem:[%s11310_s4 + $0x300] sm:$0xff]  ;;  %v2824_v16 = vld [vmem:[%s11310_s4 + $0x310] sm:$0xff] }
 0x4ee   :  { %11709 = vst [vmem:[#allocation30_spill] sm:$0xff] %v9821_v12  ;;  %5879 = vmatprep.subr.bf16.mxu1 %v9819_v55  ;;  %v9855_v55 = vpack.c.bf16 %v2829_v38, %v2825_v26  ;;  %v2828_v14 = vld [vmem:[%s11310_s4 + $0x330] sm:$0xff]  ;;  %v2835_v26 = vld [vmem:[%s11310_s4 + $0x368] sm:$0xff]  ;;  %v2833_v38 = vld [vmem:[%s11310_s4 + $0x358] sm:$0xff] }
 0x4ef   :  { %11710 = vst [vmem:[#allocation31_spill] sm:$0xff] %v9830_v33  ;;  %5817 = vmatpush1.bf16.msra.mxu0 %v9821_v12  ;;  %11711 = vst [vmem:[#allocation32_spill] sm:$0xff] %v9844_v42  ;;  %v2826_v12 = vld [vmem:[%s11310_s4 + $0x320] sm:$0xff] }
 0x4f0   :  { %11712 = vst [vmem:[#allocation33_spill] sm:$0xff] %v9855_v55  ;;  %v9857_v22 = vpack.c.bf16 %v2826_v12, %v2822_v49  ;;  %5819 = vmatprep.subr.bf16.mxu0 %v9844_v42  ;;  %v2831_v12 = vld [vmem:[%s11310_s4 + $0x348] sm:$0xff] }
 0x4f1   :  { %5881 = vmatpush1.bf16.msra.mxu1 %v9830_v33  ;;  %v9866_v33 = vpack.c.bf16 %v2828_v14, %v2824_v16  ;;  %v9880_v49 = vpack.c.bf16 %v2835_v26, %v2831_v12  ;;  %v2837_v16 = vld [vmem:[%s11310_s4 + $0x378] sm:$0xff]  ;;  %v2830_v14 = vld [vmem:[%s11310_s4 + $0x340] sm:$0xff]  ;;  %v2832_v12 = vld [vmem:[%s11310_s4 + $0x350] sm:$0xff] }
 0x4f2   :  { %11713 = vst [vmem:[#allocation34_spill] sm:$0xff] %v9857_v22  ;;  %5883 = vmatprep.subr.bf16.mxu1 %v9855_v55  ;;  %v9891_v55 = vpack.c.bf16 %v2837_v16, %v2833_v38  ;;  %v2836_v26 = vld [vmem:[%s11310_s4 + $0x370] sm:$0xff]  ;;  %v2843_v38 = vld [vmem:[%s11310_s4 + $0x3a8] sm:$0xff]  ;;  %v2841_v16 = vld [vmem:[%s11310_s4 + $0x398] sm:$0xff] }
 0x4f3   :  { %11714 = vst [vmem:[#allocation35_spill] sm:$0xff] %v9866_v33  ;;  %5821 = vmatpush1.bf16.msra.mxu0 %v9857_v22  ;;  %11715 = vst [vmem:[#allocation36_spill] sm:$0xff] %v9880_v49  ;;  %v2834_v22 = vld [vmem:[%s11310_s4 + $0x360] sm:$0xff] }
 0x4f4   :  { %11716 = vst [vmem:[#allocation37_spill] sm:$0xff] %v9891_v55  ;;  %v9893_v42 = vpack.c.bf16 %v2834_v22, %v2830_v14  ;;  %5823 = vmatprep.subr.bf16.mxu0 %v9880_v49  ;;  %v2839_v22 = vld [vmem:[%s11310_s4 + $0x388] sm:$0xff] }
 0x4f5   :  { %5885 = vmatpush1.bf16.msra.mxu1 %v9866_v33  ;;  %v9902_v33 = vpack.c.bf16 %v2836_v26, %v2832_v12  ;;  %v9916_v14 = vpack.c.bf16 %v2843_v38, %v2839_v22  ;;  %v2845_v12 = vld [vmem:[%s11310_s4 + $0x3b8] sm:$0xff]  ;;  %v2838_v26 = vld [vmem:[%s11310_s4 + $0x380] sm:$0xff]  ;;  %v2840_v22 = vld [vmem:[%s11310_s4 + $0x390] sm:$0xff] }
 0x4f6   :  { %11717 = vst [vmem:[#allocation38_spill] sm:$0xff] %v9893_v42  ;;  %5887 = vmatprep.subr.bf16.mxu1 %v9891_v55  ;;  %v9927_v55 = vpack.c.bf16 %v2845_v12, %v2841_v16  ;;  %v2844_v38 = vld [vmem:[%s11310_s4 + $0x3b0] sm:$0xff]  ;;  %v2851_v16 = vld [vmem:[%s11310_s4 + $0x3e8] sm:$0xff]  ;;  %v2849_v12 = vld [vmem:[%s11310_s4 + $0x3d8] sm:$0xff] }
 0x4f7   :  { %11718 = vst [vmem:[#allocation39_spill] sm:$0xff] %v9902_v33  ;;  %5825 = vmatpush1.bf16.msra.mxu0 %v9893_v42  ;;  %11719 = vst [vmem:[#allocation40_spill] sm:$0xff] %v9916_v14  ;;  %v2842_v42 = vld [vmem:[%s11310_s4 + $0x3a0] sm:$0xff] }
 0x4f8   :  { %11720 = vst [vmem:[#allocation41_spill] sm:$0xff] %v9927_v55  ;;  %v9929_v49 = vpack.c.bf16 %v2842_v42, %v2838_v26  ;;  %5827 = vmatprep.subr.bf16.mxu0 %v9916_v14  ;;  %v2847_v42 = vld [vmem:[%s11310_s4 + $0x3c8] sm:$0xff] }
 0x4f9   :  { %5889 = vmatpush1.bf16.msra.mxu1 %v9902_v33  ;;  %v9938_v33 = vpack.c.bf16 %v2844_v38, %v2840_v22  ;;  %v9952_v26 = vpack.c.bf16 %v2851_v16, %v2847_v42  ;;  %v2853_v22 = vld [vmem:[%s11310_s4 + $0x3f8] sm:$0xff]  ;;  %v2846_v38 = vld [vmem:[%s11310_s4 + $0x3c0] sm:$0xff]  ;;  %v2848_v42 = vld [vmem:[%s11310_s4 + $0x3d0] sm:$0xff] }
 0x4fa   :  { %11721 = vst [vmem:[#allocation54_spill] sm:$0xff] %v9929_v49  ;;  %5891 = vmatprep.subr.bf16.mxu1 %v9927_v55  ;;  %v9963_v55 = vpack.c.bf16 %v2853_v22, %v2849_v12  ;;  %v2852_v16 = vld [vmem:[%s11310_s4 + $0x3f0] sm:$0xff]  ;;  %v3026_v12 = vld [vmem:[%s11308_s2 + $0x28] sm:$0xff] }
 0x4fb   :  { %11722 = vst [vmem:[#allocation55_spill] sm:$0xff] %v9938_v33  ;;  %5829 = vmatpush1.bf16.msra.mxu0 %v9929_v49  ;;  %11723 = vst [vmem:[#allocation56_spill] sm:$0xff] %v9952_v26  ;;  %v2850_v49 = vld [vmem:[%s11310_s4 + $0x3e0] sm:$0xff] }
 0x4fc   :  { %11724 = vst [vmem:[#allocation57_spill] sm:$0xff] %v9963_v55  ;;  %v9965_v14 = vpack.c.bf16 %v2850_v49, %v2846_v38  ;;  %5831 = vmatprep.subr.bf16.mxu0 %v9952_v26  ;;  %v3022_v49 = vld [vmem:[%s11308_s2 + $0x8] sm:$0xff] }
 0x4fd   :  { %5893 = vmatpush1.bf16.msra.mxu1 %v9938_v33  ;;  %v9974_v33 = vpack.c.bf16 %v2852_v16, %v2848_v42  ;;  %v9985_v22 = vpack.c.bf16 %v3026_v12, %v3022_v49 }
 0x4fe   :  { %11725 = vst [vmem:[#allocation58_spill] sm:$0xff] %v9965_v14  ;;  %5895 = vmatprep.subr.bf16.mxu1 %v9963_v55 }
 0x4ff   :  { %11726 = vst [vmem:[#allocation59_spill] sm:$0xff] %v9974_v33  ;;  %5833 = vmatpush1.bf16.msra.mxu0 %v9965_v14  ;;  %11727 = vst [vmem:[#allocation60_spill] sm:$0xff] %v9985_v22 }
 0x500   :  { %5899 = vmatprep.subr.bf16.mxu0 %v9985_v22 }
 0x501   :  { %5897 = vmatpush1.bf16.msra.mxu1 %v9974_v33 }
 0x502   :  { %5931 = vmatprep.subr.bf16.mxu1 %v9222_v53 }
 0x575   :  { %v2397_v38 = vpop.f32.mrb[14].mxu0  ;;  %v2468_v42 = vpop.f32.mrb[38].mxu1 }
 0x576   :  { %v2398_v16 = vadd.f32 %v2397_v38, %v11681_v37  ;;  %v2399_v14 = vpop.f32.mrb[15].mxu0  ;;  %v2470_v55 = vpop.f32.mrb[39].mxu1  ;;  %v2469_v27 = vadd.f32 %v2468_v42, %v8205_v32  ;;  %v11728_v42 = vld [vmem:[#allocation46_spill] sm:$0xff] }
 0x577   :  { %v2400_v26 = vadd.f32 %v2399_v14, %v8200_v15  ;;  %v2471_v49 = vadd.f32 %v2470_v55, %v11682_v45 }
 0x578   :  { %v2473_v63 = vmul.f32 0.5, %v2398_v16 }
 0x579   :  { %v2477_v10 = vmul.f32 0.5, %v2400_v26  ;;  %v2482_v53 = vmul.f32 0.5, %v2471_v49 }
 0x57a   :  { %6641 = vtanh.f32 %v2473_v63 }
 0x57b   :  { %6643 = vtanh.f32 %v2477_v10 }
 0x57c   :  { %6645 = vtanh.f32 %v2469_v27 }
 0x57d   :  { %6647 = vtanh.f32 %v2482_v53  ;;  %v11729_v53 = vld [vmem:[#allocation47_spill] sm:$0xff] }
 0x584   :  { %v6642_v12 = vpop.eup %6641 }
 0x585   :  { %v6644_v22 = vpop.eup %6643  ;;  %v2475_v33 = vmul.f32 0.5, %v6642_v12 }
 0x586   :  { %v2479_v43 = vmul.f32 0.5, %v6644_v22  ;;  %v6646_v37 = vpop.eup %6645 }
 0x587   :  { %v2476_v38 = vadd.f32 0.5, %v2475_v33  ;;  %v6648_v10 = vpop.eup %6647 }
 0x588   :  { %v2480_v29 = vadd.f32 0.5, %v2479_v43  ;;  %v2484_v27 = vmul.f32 0.5, %v6648_v10 }
 0x589   :  { %v2487_v51 = vmul.f32 %v6646_v37, %v2476_v38 }
 0x58a   :  { %v2486_v14 = vmul.f32 %v2480_v29, %v9230_v50  ;;  %v2485_v22 = vadd.f32 0.5, %v2484_v27 }
 0x58c   :  { %v9994_v26 = vadd.f32 %v2487_v51, %v2486_v14 }
 0x58e   :  { %6649 = vtanh.f32 %v9994_v26 }
 0x595   :  { %v2628_v63 = vpop.f32.mrb[16].mxu0  ;;  %v2699_v55 = vpop.f32.mrb[24].mxu1 }
 0x596   :  { %v2704_v16 = vadd.f32 %v2628_v63, %v11728_v42  ;;  %v2630_v49 = vpop.f32.mrb[17].mxu0  ;;  %v2701_v12 = vpop.f32.mrb[25].mxu1  ;;  %v6546_v50 = vadd.f32 %v2699_v55, %v7948_v13 }
 0x597   :  { %v2705_v33 = vadd.f32 %v2630_v49, %v11729_v53  ;;  %v6547_v51 = vadd.f32 %v2701_v12, %v7952_v3  ;;  %v3021_v12 = vld [vmem:[%s11308_s2] sm:$0xff] }
 0x598   :  { %v6650_v45 = vpop.eup %6649  ;;  %v2708_v43 = vmul.f32 0.5, %v2704_v16 }
 0x599   :  { %v2712_v37 = vmul.f32 0.5, %v2705_v33  ;;  %v9999_v38 = vmul.f32 %v6650_v45, %v2485_v22  ;;  %v2717_v29 = vmul.f32 0.5, %v6547_v51 }
 0x59a   :  { %6651 = vtanh.f32 %v2708_v43  ;;  %v3025_v43 = vld [vmem:[%s11308_s2 + $0x20] sm:$0xff] }
 0x59b   :  { %11730 = vst [vmem:[#allocation44_spill] sm:$0xff] %v9999_v38  ;;  %6653 = vtanh.f32 %v2712_v37  ;;  %2918 = vmatprep.mubr.f32.mxu0 %v9999_v38  ;;  %2989 = vmatprep.mubr.f32.mxu1 %v9999_v38  ;;  %v3030_v37 = vld [vmem:[%s11308_s2 + $0x48] sm:$0xff]  ;;  %v3840_v38 = vld [vmem:[%s11310_s4 + $0x220] sm:$0xff] }
 0x59c   :  { %6655 = vtanh.f32 %v6546_v50 }
 0x59d   :  { %6657 = vtanh.f32 %v2717_v29  ;;  %v10021_v29 = vpack.c.bf16 %v3025_v43, %v3021_v12  ;;  %v3045_v43 = vld [vmem:[%s11308_s2 + $0xc0] sm:$0xff] }
 0x5a4   :  { %v6652_v14 = vpop.eup %6651 }
 0x5a5   :  { %v6654_v10 = vpop.eup %6653  ;;  %v2710_v27 = vmul.f32 0.5, %v6652_v14 }
 0x5a6   :  { %v2714_v63 = vmul.f32 0.5, %v6654_v10  ;;  %v6656_v45 = vpop.eup %6655 }
 0x5a7   :  { %v2711_v42 = vadd.f32 0.5, %v2710_v27  ;;  %v6658_v53 = vpop.eup %6657  ;;  %v3029_v27 = vld [vmem:[%s11308_s2 + $0x40] sm:$0xff] }
 0x5a8   :  { %v2715_v16 = vadd.f32 0.5, %v2714_v63  ;;  %v2719_v33 = vmul.f32 0.5, %v6658_v53  ;;  %v3033_v63 = vld [vmem:[%s11308_s2 + $0x60] sm:$0xff] }
 0x5a9   :  { %v2722_v49 = vmul.f32 %v6656_v45, %v2711_v42  ;;  %v3038_v42 = vld [vmem:[%s11308_s2 + $0x88] sm:$0xff]  ;;  %v3041_v53 = vld [vmem:[%s11308_s2 + $0xa0] sm:$0xff] }
 0x5aa   :  { %v2721_v55 = vmul.f32 %v2715_v16, %v9242_v61  ;;  %v3034_v61 = vld [vmem:[%s11308_s2 + $0x68] sm:$0xff]  ;;  %v2720_v50 = vadd.f32 0.5, %v2719_v33  ;;  %v10043_v16 = vpack.c.bf16 %v3033_v63, %v3029_v27  ;;  %v3057_v27 = vld [vmem:[%s11308_s2 + $0x120] sm:$0xff] }
 0x5ab   :  { %v10025_v10 = vpack.c.bf16 %v3034_v61, %v3030_v37  ;;  %v3042_v45 = vld [vmem:[%s11308_s2 + $0xa8] sm:$0xff]  ;;  %v3049_v37 = vld [vmem:[%s11308_s2 + $0xe0] sm:$0xff] }
 0x5ac   :  { %v10006_v22 = vadd.f32 %v2722_v49, %v2721_v55  ;;  %v10047_v49 = vpack.c.bf16 %v3042_v45, %v3038_v42  ;;  %v3037_v55 = vld [vmem:[%s11308_s2 + $0x80] sm:$0xff]  ;;  %v3050_v33 = vld [vmem:[%s11308_s2 + $0xe8] sm:$0xff] }
 0x5ad   :  { %v3058_v61 = vld [vmem:[%s11308_s2 + $0x128] sm:$0xff]  ;;  %v3061_v45 = vld [vmem:[%s11308_s2 + $0x140] sm:$0xff] }
 0x5ae   :  { %6659 = vtanh.f32 %v10006_v22  ;;  %v3066_v63 = vld [vmem:[%s11308_s2 + $0x168] sm:$0xff] }
 0x5b8   :  { %v6660_v51 = vpop.eup %6659 }
 0x5b9   :  { %v10023_v14 = vmul.f32 %v6660_v51, %v2720_v50  ;;  %v3053_v51 = vld [vmem:[%s11308_s2 + $0x100] sm:$0xff] }
 0x5bb   :  { %2919 = vmatmul.mubr.f32.vlgmr.msra.gmra.mrb[18].mxu0 %v10023_v14  ;;  %2990 = vmatmul.mubr.f32.vlgmr.msra.gmra.mrb[40].mxu1 %v10023_v14 }
 0x5bc   :  { %5901 = vmatpush1.bf16.msra.mxu0 %v10021_v29  ;;  %5933 = vmatpush1.bf16.msra.mxu1 %v9257_v47  ;;  %v3046_v47 = vld [vmem:[%s11308_s2 + $0xc8] sm:$0xff] }
 0x5bd   :  { %5903 = vmatprep.subr.bf16.mxu0 %v10025_v10  ;;  %5935 = vmatprep.subr.bf16.mxu1 %v9261_v5  ;;  %v10065_v5 = vpack.c.bf16 %v3041_v53, %v3037_v55  ;;  %v10069_v12 = vpack.c.bf16 %v3050_v33, %v3046_v47  ;;  %v3065_v55 = vld [vmem:[%s11308_s2 + $0x160] sm:$0xff]  ;;  %v3074_v53 = vld [vmem:[%s11308_s2 + $0x1a8] sm:$0xff] }
 0x5be   :  { %3149 = vmatprep.mubr.f32.mxu0 %v11548_v30  ;;  %3220 = vmatprep.mubr.f32.mxu1 %v11548_v30  ;;  %v3069_v33 = vld [vmem:[%s11308_s2 + $0x180] sm:$0xff] }
 0x5c0   :  { %5905 = vmatpush1.bf16.msra.mxu0 %v10043_v16  ;;  %5937 = vmatpush1.bf16.msra.mxu1 %v9279_v4  ;;  %v3054_v4 = vld [vmem:[%s11308_s2 + $0x108] sm:$0xff] }
 0x5c1   :  { %5907 = vmatprep.subr.bf16.mxu0 %v10047_v49  ;;  %5939 = vmatprep.subr.bf16.mxu1 %v9283_v25  ;;  %v10085_v25 = vpack.c.bf16 %v3049_v37, %v3045_v43  ;;  %v10089_v50 = vpack.c.bf16 %v3058_v61, %v3054_v4  ;;  %v3073_v43 = vld [vmem:[%s11308_s2 + $0x1a0] sm:$0xff]  ;;  %v3082_v37 = vld [vmem:[%s11308_s2 + $0x1e8] sm:$0xff] }
 0x5c2   :  { %v3077_v61 = vld [vmem:[%s11308_s2 + $0x1c0] sm:$0xff] }
 0x5c4   :  { %5909 = vmatpush1.bf16.msra.mxu0 %v10065_v5  ;;  %5941 = vmatpush1.bf16.msra.mxu1 %v9301_v7  ;;  %v3062_v7 = vld [vmem:[%s11308_s2 + $0x148] sm:$0xff] }
 0x5c5   :  { %5911 = vmatprep.subr.bf16.mxu0 %v10069_v12  ;;  %5943 = vmatprep.subr.bf16.mxu1 %v9305_v40  ;;  %v10105_v40 = vpack.c.bf16 %v3057_v27, %v3053_v51  ;;  %v10109_v42 = vpack.c.bf16 %v3066_v63, %v3062_v7  ;;  %v3081_v51 = vld [vmem:[%s11308_s2 + $0x1e0] sm:$0xff]  ;;  %v11759_v27 = vld [vmem:[#allocation35_spill] sm:$0xff]  ;;  %v11761_v63 = vld [vmem:[#allocation37_spill] sm:$0xff] }
 0x5c6   :  { %v11760_v7 = vld [vmem:[#allocation36_spill] sm:$0xff] }
 0x5c8   :  { %5913 = vmatpush1.bf16.msra.mxu0 %v10085_v25  ;;  %5945 = vmatpush1.bf16.msra.mxu1 %v9321_v60  ;;  %v3070_v60 = vld [vmem:[%s11308_s2 + $0x188] sm:$0xff] }
 0x5c9   :  { %5915 = vmatprep.subr.bf16.mxu0 %v10089_v50  ;;  %5947 = vmatprep.subr.bf16.mxu1 %v9325_v31  ;;  %v10125_v31 = vpack.c.bf16 %v3065_v55, %v3061_v45  ;;  %v10129_v47 = vpack.c.bf16 %v3074_v53, %v3070_v60  ;;  %v11762_v45 = vld [vmem:[#allocation38_spill] sm:$0xff]  ;;  %v11763_v55 = vld [vmem:[#allocation39_spill] sm:$0xff]  ;;  %v11764_v60 = vld [vmem:[#allocation40_spill] sm:$0xff] }
 0x5ca   :  { %v11765_v53 = vld [vmem:[#allocation41_spill] sm:$0xff] }
 0x5cc   :  { %5917 = vmatpush1.bf16.msra.mxu0 %v10105_v40  ;;  %5949 = vmatpush1.bf16.msra.mxu1 %v9341_v54  ;;  %v3078_v54 = vld [vmem:[%s11308_s2 + $0x1c8] sm:$0xff] }
 0x5cd   :  { %5919 = vmatprep.subr.bf16.mxu0 %v10109_v42  ;;  %5951 = vmatprep.subr.bf16.mxu1 %v9345_v17  ;;  %v10145_v17 = vpack.c.bf16 %v3073_v43, %v3069_v33  ;;  %v10149_v4 = vpack.c.bf16 %v3082_v37, %v3078_v54  ;;  %v11766_v33 = vld [vmem:[#allocation54_spill] sm:$0xff]  ;;  %v11767_v43 = vld [vmem:[#allocation55_spill] sm:$0xff]  ;;  %v11768_v54 = vld [vmem:[#allocation56_spill] sm:$0xff] }
 0x5ce   :  { %v11769_v37 = vld [vmem:[#allocation57_spill] sm:$0xff] }
 0x5d0   :  { %5921 = vmatpush1.bf16.msra.mxu0 %v10125_v31  ;;  %5953 = vmatpush1.bf16.msra.mxu1 %v9361_v52  ;;  %v10159_v52 = vpack.c.bf16 %v3081_v51, %v3077_v61  ;;  %v11770_v61 = vld [vmem:[#allocation58_spill] sm:$0xff]  ;;  %v11771_v51 = vld [vmem:[#allocation59_spill] sm:$0xff] }
 0x5d1   :  { %5923 = vmatprep.subr.bf16.mxu0 %v10129_v47  ;;  %5955 = vmatprep.subr.bf16.mxu1 %v9365_v58  ;;  %v11731_v58 = vld [vmem:[#allocation7_spill] sm:$0xff] }
 0x5d4   :  { %5925 = vmatpush1.bf16.msra.mxu0 %v10145_v17  ;;  %5957 = vmatpush1.bf16.msra.mxu1 %v9381_v23  ;;  %v11732_v23 = vld [vmem:[#allocation8_spill] sm:$0xff] }
 0x5d5   :  { %5927 = vmatprep.subr.bf16.mxu0 %v10149_v4  ;;  %5959 = vmatprep.subr.bf16.mxu1 %v9385_v39  ;;  %v11733_v39 = vld [vmem:[#allocation9_spill] sm:$0xff] }
 0x5d8   :  { %5929 = vmatpush1.bf16.msra.mxu0 %v10159_v52  ;;  %5961 = vmatpush1.bf16.msra.mxu1 %v9395_v1  ;;  %v11734_v1 = vld [vmem:[#allocation10_spill] sm:$0xff] }
 0x5d9   :  { %5963 = vmatprep.subr.bf16.mxu0 %v9412_v48  ;;  %6027 = vmatprep.subr.bf16.mxu1 %v9423_v34  ;;  %v11735_v48 = vld [vmem:[#allocation11_spill] sm:$0xff]  ;;  %v11736_v34 = vld [vmem:[#allocation12_spill] sm:$0xff] }
 0x5db   :  { %3150 = vmatmul.mubr.f32.vlgmr.msra.gmra.mrb[20].mxu0 %v10023_v14  ;;  %3221 = vmatmul.mubr.f32.vlgmr.msra.gmra.mrb[26].mxu1 %v10023_v14  ;;  %v11758_v14 = vld [vmem:[#allocation34_spill] sm:$0xff] }
 0x5dc   :  { %5965 = vmatpush1.bf16.msra.mxu0 %v9425_v41  ;;  %6029 = vmatpush1.bf16.msra.mxu1 %v9434_v56  ;;  %v11737_v41 = vld [vmem:[#allocation13_spill] sm:$0xff]  ;;  %v11738_v56 = vld [vmem:[#allocation14_spill] sm:$0xff] }
 0x5dd   :  { %5967 = vmatprep.subr.bf16.mxu0 %v9448_v28  ;;  %6031 = vmatprep.subr.bf16.mxu1 %v9459_v19  ;;  %v11739_v28 = vld [vmem:[#allocation15_spill] sm:$0xff]  ;;  %v11740_v19 = vld [vmem:[#allocation16_spill] sm:$0xff] }
 0x5e0   :  { %5969 = vmatpush1.bf16.msra.mxu0 %v9461_v8  ;;  %6033 = vmatpush1.bf16.msra.mxu1 %v9470_v18  ;;  %v11741_v8 = vld [vmem:[#allocation17_spill] sm:$0xff]  ;;  %v11742_v18 = vld [vmem:[#allocation18_spill] sm:$0xff] }
 0x5e1   :  { %5971 = vmatprep.subr.bf16.mxu0 %v9484_v21  ;;  %6035 = vmatprep.subr.bf16.mxu1 %v9495_v57  ;;  %v11743_v21 = vld [vmem:[#allocation19_spill] sm:$0xff]  ;;  %v11744_v57 = vld [vmem:[#allocation20_spill] sm:$0xff] }
 0x5e4   :  { %5973 = vmatpush1.bf16.msra.mxu0 %v9497_v11  ;;  %6037 = vmatpush1.bf16.msra.mxu1 %v9506_v46  ;;  %v11745_v11 = vld [vmem:[#allocation21_spill] sm:$0xff]  ;;  %v11746_v46 = vld [vmem:[#allocation22_spill] sm:$0xff] }
 0x5e5   :  { %5975 = vmatprep.subr.bf16.mxu0 %v9520_v9  ;;  %6039 = vmatprep.subr.bf16.mxu1 %v9531_v6  ;;  %v11747_v9 = vld [vmem:[#allocation23_spill] sm:$0xff]  ;;  %v11748_v6 = vld [vmem:[#allocation24_spill] sm:$0xff] }
 0x5e8   :  { %5977 = vmatpush1.bf16.msra.mxu0 %v9533_v59  ;;  %6041 = vmatpush1.bf16.msra.mxu1 %v9542_v35  ;;  %v11749_v59 = vld [vmem:[#allocation25_spill] sm:$0xff]  ;;  %v11750_v35 = vld [vmem:[#allocation26_spill] sm:$0xff] }
 0x5e9   :  { %5979 = vmatprep.subr.bf16.mxu0 %v9556_v36  ;;  %6043 = vmatprep.subr.bf16.mxu1 %v9567_v24  ;;  %v11751_v36 = vld [vmem:[#allocation27_spill] sm:$0xff]  ;;  %v11752_v24 = vld [vmem:[#allocation28_spill] sm:$0xff] }
 0x5ec   :  { %5981 = vmatpush1.bf16.msra.mxu0 %v9569_v2  ;;  %6045 = vmatpush1.bf16.msra.mxu1 %v9578_v62  ;;  %v11753_v2 = vld [vmem:[#allocation29_spill] sm:$0xff]  ;;  %v11754_v62 = vld [vmem:[#allocation30_spill] sm:$0xff] }
 0x5ed   :  { %5983 = vmatprep.subr.bf16.mxu0 %v9592_v20  ;;  %6047 = vmatprep.subr.bf16.mxu1 %v9603_v0  ;;  %v11755_v20 = vld [vmem:[#allocation31_spill] sm:$0xff]  ;;  %v11756_v0 = vld [vmem:[#allocation32_spill] sm:$0xff] }
 0x5f0   :  { %5985 = vmatpush1.bf16.msra.mxu0 %v9605_v44  ;;  %6049 = vmatpush1.bf16.msra.mxu1 %v11731_v58  ;;  %v11757_v44 = vld [vmem:[#allocation33_spill] sm:$0xff]  ;;  %v11772_v58 = vld [vmem:[#allocation60_spill] sm:$0xff] }
 0x5f1   :  { %5987 = vmatprep.subr.bf16.mxu0 %v11732_v23  ;;  %6051 = vmatprep.subr.bf16.mxu1 %v11733_v39  ;;  %v3547_v23 = vld [vmem:[%s11308_s2 + $0x18] sm:$0xff] }
 0x5f2   :  { %v3551_v39 = vld [vmem:[%s11308_s2 + $0x38] sm:$0xff] }
 0x5f4   :  { %5989 = vmatpush1.bf16.msra.mxu0 %v11734_v1  ;;  %6053 = vmatpush1.bf16.msra.mxu1 %v11735_v48  ;;  %v10238_v1 = vpack.c.bf16 %v3551_v39, %v3547_v23 }
 0x5f5   :  { %5991 = vmatprep.subr.bf16.mxu0 %v11736_v34  ;;  %6055 = vmatprep.subr.bf16.mxu1 %v11737_v41  ;;  %v11773_v41 = vld [vmem:[#allocation4_spill] sm:$0xff] }
 0x5f8   :  { %5993 = vmatpush1.bf16.msra.mxu0 %v11738_v56  ;;  %6057 = vmatpush1.bf16.msra.mxu1 %v11739_v28 }
 0x5f9   :  { %5995 = vmatprep.subr.bf16.mxu0 %v11740_v19  ;;  %6059 = vmatprep.subr.bf16.mxu1 %v11741_v8 }
 0x5fc   :  { %5997 = vmatpush1.bf16.msra.mxu0 %v11742_v18  ;;  %6061 = vmatpush1.bf16.msra.mxu1 %v11743_v21 }
 0x5fd   :  { %5999 = vmatprep.subr.bf16.mxu0 %v11744_v57  ;;  %6063 = vmatprep.subr.bf16.mxu1 %v11745_v11  ;;  %v11774_v11 = vld [vmem:[#allocation5_spill] sm:$0xff] }
 0x600   :  { %6001 = vmatpush1.bf16.msra.mxu0 %v11746_v46  ;;  %6065 = vmatpush1.bf16.msra.mxu1 %v11747_v9 }
 0x601   :  { %6003 = vmatprep.subr.bf16.mxu0 %v11748_v6  ;;  %6067 = vmatprep.subr.bf16.mxu1 %v11749_v59 }
 0x604   :  { %6005 = vmatpush1.bf16.msra.mxu0 %v11750_v35  ;;  %6069 = vmatpush1.bf16.msra.mxu1 %v11751_v36 }
 0x605   :  { %6007 = vmatprep.subr.bf16.mxu0 %v11752_v24  ;;  %6071 = vmatprep.subr.bf16.mxu1 %v11753_v2 }
 0x608   :  { %6009 = vmatpush1.bf16.msra.mxu0 %v11754_v62  ;;  %6073 = vmatpush1.bf16.msra.mxu1 %v11755_v20 }
 0x609   :  { %6011 = vmatprep.subr.bf16.mxu0 %v11756_v0  ;;  %6075 = vmatprep.subr.bf16.mxu1 %v11757_v44 }
 0x60c   :  { %6013 = vmatpush1.bf16.msra.mxu0 %v11758_v14  ;;  %6077 = vmatpush1.bf16.msra.mxu1 %v11759_v27 }
 0x60d   :  { %6015 = vmatprep.subr.bf16.mxu0 %v11760_v7  ;;  %6079 = vmatprep.subr.bf16.mxu1 %v11761_v63 }
 0x610   :  { %6017 = vmatpush1.bf16.msra.mxu0 %v11762_v45  ;;  %6081 = vmatpush1.bf16.msra.mxu1 %v11763_v55  ;;  %v11775_v45 = vld [vmem:[#allocation48_spill] sm:$0xff] }
 0x611   :  { %6019 = vmatprep.subr.bf16.mxu0 %v11764_v60  ;;  %6083 = vmatprep.subr.bf16.mxu1 %v11765_v53 }
 0x614   :  { %6021 = vmatpush1.bf16.msra.mxu0 %v11766_v33  ;;  %6085 = vmatpush1.bf16.msra.mxu1 %v11767_v43  ;;  %v11776_v43 = vld [vmem:[#allocation49_spill] sm:$0xff] }
 0x615   :  { %6023 = vmatprep.subr.bf16.mxu0 %v11768_v54  ;;  %6087 = vmatprep.subr.bf16.mxu1 %v11769_v37 }
 0x618   :  { %6025 = vmatpush1.bf16.msra.mxu0 %v11770_v61  ;;  %6089 = vmatpush1.bf16.msra.mxu1 %v11771_v51 }
 0x619   :  { %6091 = vmatprep.subr.bf16.mxu0 %v11772_v58  ;;  %6123 = vmatprep.subr.bf16.mxu1 %v10238_v1 }
 0x68e   :  { %v2920_v48 = vpop.f32.mrb[18].mxu0  ;;  %v2991_v34 = vpop.f32.mrb[40].mxu1 }
 0x68f   :  { %v2921_v56 = vadd.f32 %v2920_v48, %v11773_v41  ;;  %v2922_v28 = vpop.f32.mrb[19].mxu0  ;;  %v2993_v19 = vpop.f32.mrb[41].mxu1  ;;  %v2992_v57 = vadd.f32 %v2991_v34, %v8205_v32 }
 0x690   :  { %v2923_v8 = vadd.f32 %v2922_v28, %v8200_v15  ;;  %v2994_v46 = vadd.f32 %v2993_v19, %v11774_v11 }
 0x691   :  { %v2996_v18 = vmul.f32 0.5, %v2921_v56 }
 0x692   :  { %v3000_v21 = vmul.f32 0.5, %v2923_v8  ;;  %v3005_v9 = vmul.f32 0.5, %v2994_v46 }
 0x693   :  { %6661 = vtanh.f32 %v2996_v18 }
 0x694   :  { %6663 = vtanh.f32 %v3000_v21 }
 0x695   :  { %6665 = vtanh.f32 %v2992_v57 }
 0x696   :  { %6667 = vtanh.f32 %v3005_v9 }
 0x69d   :  { %v6662_v6 = vpop.eup %6661 }
 0x69e   :  { %v6664_v59 = vpop.eup %6663  ;;  %v2998_v35 = vmul.f32 0.5, %v6662_v6 }
 0x69f   :  { %v3002_v36 = vmul.f32 0.5, %v6664_v59  ;;  %v6666_v2 = vpop.eup %6665  ;;  %v3546_v59 = vld [vmem:[%s11308_s2 + $0x10] sm:$0xff] }
 0x6a0   :  { %v2999_v24 = vadd.f32 0.5, %v2998_v35  ;;  %v6668_v14 = vpop.eup %6667  ;;  %v3550_v35 = vld [vmem:[%s11308_s2 + $0x30] sm:$0xff] }
 0x6a1   :  { %v3003_v62 = vadd.f32 0.5, %v3002_v36  ;;  %v3007_v27 = vmul.f32 0.5, %v6668_v14  ;;  %v3555_v36 = vld [vmem:[%s11308_s2 + $0x58] sm:$0xff]  ;;  %v3554_v14 = vld [vmem:[%s11308_s2 + $0x50] sm:$0xff] }
 0x6a2   :  { %v3010_v20 = vmul.f32 %v6666_v2, %v2999_v24 }
 0x6a3   :  { %v3009_v0 = vmul.f32 %v3003_v62, %v9994_v26  ;;  %v3008_v33 = vadd.f32 0.5, %v3007_v27  ;;  %v10273_v62 = vpack.c.bf16 %v3550_v35, %v3546_v59  ;;  %v3558_v27 = vld [vmem:[%s11308_s2 + $0x70] sm:$0xff]  ;;  %v3772_v35 = vld [vmem:[%s11310_s4] sm:$0xff] }
 0x6a5   :  { %v10246_v44 = vadd.f32 %v3010_v20, %v3009_v0 }
 0x6a7   :  { %6669 = vtanh.f32 %v10246_v44 }
 0x6ae   :  { %v3151_v7 = vpop.f32.mrb[20].mxu0  ;;  %v3222_v63 = vpop.f32.mrb[26].mxu1 }
 0x6af   :  { %v3227_v55 = vadd.f32 %v3151_v7, %v11775_v45  ;;  %v3153_v60 = vpop.f32.mrb[21].mxu0  ;;  %v3224_v53 = vpop.f32.mrb[27].mxu1  ;;  %v6548_v26 = vadd.f32 %v3222_v63, %v7948_v13  ;;  %v3563_v7 = vld [vmem:[%s11308_s2 + $0x98] sm:$0xff]  ;;  %v10295_v45 = vpack.c.bf16 %v3558_v27, %v3554_v14  ;;  %v3781_v27 = vld [vmem:[%s11310_s4 + $0x48] sm:$0xff] }
 0x6b0   :  { %v3228_v54 = vadd.f32 %v3153_v60, %v11776_v43  ;;  %v6549_v23 = vadd.f32 %v3224_v53, %v7952_v3  ;;  %v3567_v63 = vld [vmem:[%s11308_s2 + $0xb8] sm:$0xff]  ;;  %v3562_v60 = vld [vmem:[%s11308_s2 + $0x90] sm:$0xff] }
 0x6b1   :  { %v6670_v37 = vpop.eup %6669  ;;  %v3231_v61 = vmul.f32 0.5, %v3227_v55  ;;  %v10299_v55 = vpack.c.bf16 %v3567_v63, %v3563_v7  ;;  %v3566_v53 = vld [vmem:[%s11308_s2 + $0xb0] sm:$0xff]  ;;  %v3785_v7 = vld [vmem:[%s11310_s4 + $0x68] sm:$0xff]  ;;  %v3783_v63 = vld [vmem:[%s11310_s4 + $0x58] sm:$0xff] }
 0x6b2   :  { %v3235_v51 = vmul.f32 0.5, %v3228_v54  ;;  %v10251_v58 = vmul.f32 %v6670_v37, %v3008_v33  ;;  %v3240_v39 = vmul.f32 0.5, %v6549_v23  ;;  %v10317_v33 = vpack.c.bf16 %v3566_v53, %v3562_v60  ;;  %v3570_v54 = vld [vmem:[%s11308_s2 + $0xd0] sm:$0xff]  ;;  %v3787_v53 = vld [vmem:[%s11310_s4 + $0x78] sm:$0xff] }
 0x6b3   :  { %6671 = vtanh.f32 %v3231_v61  ;;  %v3574_v37 = vld [vmem:[%s11308_s2 + $0xf0] sm:$0xff]  ;;  %v10464_v60 = vpack.c.bf16 %v3785_v7, %v3781_v27 }
 0x6b4   :  { %11777 = vst [vmem:[#allocation45_spill] sm:$0xff] %v10251_v58  ;;  %6673 = vtanh.f32 %v3235_v51  ;;  %3441 = vmatprep.mubr.f32.mxu0 %v10251_v58  ;;  %3512 = vmatprep.mubr.f32.mxu1 %v10251_v58  ;;  %v10337_v61 = vpack.c.bf16 %v3574_v37, %v3570_v54  ;;  %v3582_v23 = vld [vmem:[%s11308_s2 + $0x130] sm:$0xff]  ;;  %v10475_v54 = vpack.c.bf16 %v3787_v53, %v3783_v63  ;;  %v3805_v53 = vld [vmem:[%s11310_s4 + $0x108] sm:$0xff] }
 0x6b5   :  { %6675 = vtanh.f32 %v6548_v26  ;;  %v3578_v26 = vld [vmem:[%s11308_s2 + $0x110] sm:$0xff] }
 0x6b6   :  { %6677 = vtanh.f32 %v3240_v39  ;;  %v10357_v39 = vpack.c.bf16 %v3582_v23, %v3578_v26  ;;  %v3789_v23 = vld [vmem:[%s11310_s4 + $0x88] sm:$0xff]  ;;  %v3798_v27 = vld [vmem:[%s11310_s4 + $0xd0] sm:$0xff] }
 0x6b7   :  { %v3802_v7 = vld [vmem:[%s11310_s4 + $0xf0] sm:$0xff] }
 0x6b8   :  { %v10558_v63 = vpack.c.bf16 %v3802_v7, %v3798_v27 }
 0x6bd   :  { %v6672_v48 = vpop.eup %6671 }
 0x6be   :  { %v6674_v34 = vpop.eup %6673  ;;  %v3233_v56 = vmul.f32 0.5, %v6672_v48 }
 0x6bf   :  { %v3237_v28 = vmul.f32 0.5, %v6674_v34  ;;  %v6676_v8 = vpop.eup %6675  ;;  %v3586_v34 = vld [vmem:[%s11308_s2 + $0x150] sm:$0xff] }
 0x6c0   :  { %v3234_v19 = vadd.f32 0.5, %v3233_v56  ;;  %v6678_v9 = vpop.eup %6677  ;;  %v3590_v56 = vld [vmem:[%s11308_s2 + $0x170] sm:$0xff] }
 0x6c1   :  { %v3238_v18 = vadd.f32 0.5, %v3237_v28  ;;  %v3242_v6 = vmul.f32 0.5, %v6678_v9  ;;  %v10377_v28 = vpack.c.bf16 %v3590_v56, %v3586_v34  ;;  %v3602_v9 = vld [vmem:[%s11308_s2 + $0x1d0] sm:$0xff]  ;;  %v3795_v56 = vld [vmem:[%s11310_s4 + $0xb8] sm:$0xff] }
 0x6c2   :  { %v3245_v21 = vmul.f32 %v6676_v8, %v3234_v19  ;;  %v3594_v8 = vld [vmem:[%s11308_s2 + $0x190] sm:$0xff] }
 0x6c3   :  { %v3244_v57 = vmul.f32 %v3238_v18, %v10006_v22  ;;  %v3559_v22 = vld [vmem:[%s11308_s2 + $0x78] sm:$0xff]  ;;  %v3243_v24 = vadd.f32 0.5, %v3242_v6  ;;  %v3598_v18 = vld [vmem:[%s11308_s2 + $0x1b0] sm:$0xff] }
 0x6c4   :  { %v10277_v0 = vpack.c.bf16 %v3559_v22, %v3555_v36  ;;  %v3606_v6 = vld [vmem:[%s11308_s2 + $0x1f0] sm:$0xff]  ;;  %v3776_v36 = vld [vmem:[%s11310_s4 + $0x20] sm:$0xff] }
 0x6c5   :  { %v10258_v46 = vadd.f32 %v3245_v21, %v3244_v57  ;;  %v10397_v21 = vpack.c.bf16 %v3598_v18, %v3594_v8 }
 0x6c7   :  { %6679 = vtanh.f32 %v10258_v46 }
 0x6d1   :  { %v6680_v2 = vpop.eup %6679 }
 0x6d2   :  { %v10275_v20 = vmul.f32 %v6680_v2, %v3243_v24  ;;  %v10441_v24 = vpack.c.bf16 %v3776_v36, %v3772_v35  ;;  %v3774_v2 = vld [vmem:[%s11310_s4 + $0x10] sm:$0xff]  ;;  %v3796_v35 = vld [vmem:[%s11310_s4 + $0xc0] sm:$0xff] }
 0x6d3   :  { %v3800_v36 = vld [vmem:[%s11310_s4 + $0xe0] sm:$0xff] }
 0x6d4   :  { %3442 = vmatmul.mubr.f32.vlgmr.msra.gmra.mrb[22].mxu0 %v10275_v20  ;;  %3513 = vmatmul.mubr.f32.vlgmr.msra.gmra.mrb[42].mxu1 %v10275_v20 }
 0x6d5   :  { %6093 = vmatpush1.bf16.msra.mxu0 %v10021_v29  ;;  %6125 = vmatpush1.bf16.msra.mxu1 %v10273_v62  ;;  %v3571_v29 = vld [vmem:[%s11308_s2 + $0xd8] sm:$0xff] }
 0x6d6   :  { %6095 = vmatprep.subr.bf16.mxu0 %v10025_v10  ;;  %6127 = vmatprep.subr.bf16.mxu1 %v10277_v0  ;;  %v3575_v10 = vld [vmem:[%s11308_s2 + $0xf8] sm:$0xff] }
 0x6d7   :  { %3672 = vmatprep.mubr.f32.mxu0 %v11548_v30  ;;  %3743 = vmatprep.mubr.f32.mxu1 %v11548_v30  ;;  %v10321_v43 = vpack.c.bf16 %v3575_v10, %v3571_v29  ;;  %v3780_v29 = vld [vmem:[%s11310_s4 + $0x40] sm:$0xff] }
 0x6d8   :  { %v3784_v10 = vld [vmem:[%s11310_s4 + $0x60] sm:$0xff] }
 0x6d9   :  { %6097 = vmatpush1.bf16.msra.mxu0 %v10043_v16  ;;  %6129 = vmatpush1.bf16.msra.mxu1 %v10295_v45  ;;  %v3579_v16 = vld [vmem:[%s11308_s2 + $0x118] sm:$0xff]  ;;  %v10477_v37 = vpack.c.bf16 %v3784_v10, %v3780_v29  ;;  %v3809_v29 = vld [vmem:[%s11310_s4 + $0x128] sm:$0xff] }
 0x6da   :  { %6099 = vmatprep.subr.bf16.mxu0 %v10047_v49  ;;  %6131 = vmatprep.subr.bf16.mxu1 %v10299_v55  ;;  %v3583_v49 = vld [vmem:[%s11308_s2 + $0x138] sm:$0xff] }
 0x6db   :  { %v10341_v51 = vpack.c.bf16 %v3583_v49, %v3579_v16  ;;  %v3782_v16 = vld [vmem:[%s11310_s4 + $0x50] sm:$0xff]  ;;  %v3807_v10 = vld [vmem:[%s11310_s4 + $0x118] sm:$0xff] }
 0x6dc   :  { %v3786_v49 = vld [vmem:[%s11310_s4 + $0x70] sm:$0xff] }
 0x6dd   :  { %6101 = vmatpush1.bf16.msra.mxu0 %v10065_v5  ;;  %6133 = vmatpush1.bf16.msra.mxu1 %v10317_v33  ;;  %v3587_v5 = vld [vmem:[%s11308_s2 + $0x158] sm:$0xff]  ;;  %v10486_v26 = vpack.c.bf16 %v3786_v49, %v3782_v16  ;;  %v10572_v16 = vpack.c.bf16 %v3809_v29, %v3805_v53  ;;  %v3814_v53 = vld [vmem:[%s11310_s4 + $0x150] sm:$0xff] }
 0x6de   :  { %6103 = vmatprep.subr.bf16.mxu0 %v10069_v12  ;;  %6135 = vmatprep.subr.bf16.mxu1 %v10321_v43  ;;  %v3591_v12 = vld [vmem:[%s11308_s2 + $0x178] sm:$0xff]  ;;  %v3818_v29 = vld [vmem:[%s11310_s4 + $0x170] sm:$0xff] }
 0x6df   :  { %v10361_v48 = vpack.c.bf16 %v3591_v12, %v3587_v5  ;;  %v3793_v5 = vld [vmem:[%s11310_s4 + $0xa8] sm:$0xff]  ;;  %v3791_v12 = vld [vmem:[%s11310_s4 + $0x98] sm:$0xff] }
 0x6e0   :  { %v10500_v34 = vpack.c.bf16 %v3793_v5, %v3789_v23  ;;  %v10511_v8 = vpack.c.bf16 %v3795_v56, %v3791_v12  ;;  %v3811_v49 = vld [vmem:[%s11310_s4 + $0x138] sm:$0xff]  ;;  %v3804_v23 = vld [vmem:[%s11310_s4 + $0x100] sm:$0xff] }
 0x6e1   :  { %6105 = vmatpush1.bf16.msra.mxu0 %v10085_v25  ;;  %6137 = vmatpush1.bf16.msra.mxu1 %v10337_v61  ;;  %v3595_v25 = vld [vmem:[%s11308_s2 + $0x198] sm:$0xff]  ;;  %v3808_v5 = vld [vmem:[%s11310_s4 + $0x120] sm:$0xff]  ;;  %v10583_v12 = vpack.c.bf16 %v3811_v49, %v3807_v10  ;;  %v10630_v10 = vpack.c.bf16 %v3818_v29, %v3814_v53  ;;  %v3821_v49 = vld [vmem:[%s11310_s4 + $0x188] sm:$0xff] }
 0x6e2   :  { %6107 = vmatprep.subr.bf16.mxu0 %v10089_v50  ;;  %6139 = vmatprep.subr.bf16.mxu1 %v10341_v51  ;;  %v3599_v50 = vld [vmem:[%s11308_s2 + $0x1b8] sm:$0xff]  ;;  %v10585_v56 = vpack.c.bf16 %v3808_v5, %v3804_v23  ;;  %v3825_v23 = vld [vmem:[%s11310_s4 + $0x1a8] sm:$0xff] }
 0x6e3   :  { %v10381_v19 = vpack.c.bf16 %v3599_v50, %v3595_v25  ;;  %v3788_v25 = vld [vmem:[%s11310_s4 + $0x80] sm:$0xff]  ;;  %11778 = vst [vmem:[#allocation46_spill] sm:$0xff] %v10630_v10  ;;  %v3823_v5 = vld [vmem:[%s11310_s4 + $0x198] sm:$0xff]  ;;  %v3829_v29 = vld [vmem:[%s11310_s4 + $0x1c8] sm:$0xff] }
 0x6e4   :  { %v3792_v50 = vld [vmem:[%s11310_s4 + $0xa0] sm:$0xff] }
 0x6e5   :  { %6109 = vmatpush1.bf16.msra.mxu0 %v10105_v40  ;;  %6141 = vmatpush1.bf16.msra.mxu1 %v10357_v39  ;;  %v3603_v40 = vld [vmem:[%s11308_s2 + $0x1d8] sm:$0xff]  ;;  %v10513_v18 = vpack.c.bf16 %v3792_v50, %v3788_v25  ;;  %v3806_v25 = vld [vmem:[%s11310_s4 + $0x110] sm:$0xff] }
 0x6e6   :  { %6111 = vmatprep.subr.bf16.mxu0 %v10109_v42  ;;  %6143 = vmatprep.subr.bf16.mxu1 %v10361_v48  ;;  %v3607_v42 = vld [vmem:[%s11308_s2 + $0x1f8] sm:$0xff]  ;;  %v3810_v50 = vld [vmem:[%s11310_s4 + $0x130] sm:$0xff] }
 0x6e7   :  { %v10401_v57 = vpack.c.bf16 %v3607_v42, %v3603_v40  ;;  %v3790_v40 = vld [vmem:[%s11310_s4 + $0x90] sm:$0xff] }
 0x6e8   :  { %v3794_v42 = vld [vmem:[%s11310_s4 + $0xb0] sm:$0xff] }
 0x6e9   :  { %6113 = vmatpush1.bf16.msra.mxu0 %v10125_v31  ;;  %6145 = vmatpush1.bf16.msra.mxu1 %v10377_v28  ;;  %v10411_v31 = vpack.c.bf16 %v3606_v6, %v3602_v9  ;;  %v10522_v9 = vpack.c.bf16 %v3794_v42, %v3790_v40  ;;  %v3797_v6 = vld [vmem:[%s11310_s4 + $0xc8] sm:$0xff]  ;;  %v10594_v40 = vpack.c.bf16 %v3810_v50, %v3806_v25  ;;  %v3827_v50 = vld [vmem:[%s11310_s4 + $0x1b8] sm:$0xff] }
 0x6ea   :  { %6115 = vmatprep.subr.bf16.mxu0 %v10129_v47  ;;  %6147 = vmatprep.subr.bf16.mxu1 %v10381_v19  ;;  %v3773_v47 = vld [vmem:[%s11310_s4 + $0x8] sm:$0xff]  ;;  %v10643_v25 = vpack.c.bf16 %v3825_v23, %v3821_v49  ;;  %v3831_v23 = vld [vmem:[%s11310_s4 + $0x1d8] sm:$0xff] }
 0x6eb   :  { %v3813_v42 = vld [vmem:[%s11310_s4 + $0x148] sm:$0xff] }
 0x6ec   :  { %11779 = vst [vmem:[#allocation47_spill] sm:$0xff] %v10643_v25  ;;  %v3833_v49 = vld [vmem:[%s11310_s4 + $0x1e8] sm:$0xff] }
 0x6ed   :  { %6117 = vmatpush1.bf16.msra.mxu0 %v10145_v17  ;;  %6149 = vmatpush1.bf16.msra.mxu1 %v10397_v21  ;;  %v3777_v17 = vld [vmem:[%s11310_s4 + $0x28] sm:$0xff] }
 0x6ee   :  { %6119 = vmatprep.subr.bf16.mxu0 %v10149_v4  ;;  %6151 = vmatprep.subr.bf16.mxu1 %v10401_v57  ;;  %v3775_v4 = vld [vmem:[%s11310_s4 + $0x18] sm:$0xff]  ;;  %v10428_v59 = vpack.c.bf16 %v3777_v17, %v3773_v47  ;;  %v3801_v47 = vld [vmem:[%s11310_s4 + $0xe8] sm:$0xff] }
 0x6ef   :  { %v3799_v17 = vld [vmem:[%s11310_s4 + $0xd8] sm:$0xff] }
 0x6f1   :  { %6121 = vmatpush1.bf16.msra.mxu0 %v10159_v52  ;;  %6153 = vmatpush1.bf16.msra.mxu1 %v10411_v31  ;;  %v3779_v52 = vld [vmem:[%s11310_s4 + $0x38] sm:$0xff] }
 0x6f2   :  { %v10439_v22 = vpack.c.bf16 %v3779_v52, %v3775_v4  ;;  %6155 = vmatprep.subr.bf16.mxu0 %v10428_v59  ;;  %v10536_v4 = vpack.c.bf16 %v3801_v47, %v3797_v6  ;;  %v3803_v52 = vld [vmem:[%s11310_s4 + $0xf8] sm:$0xff]  ;;  %v3817_v6 = vld [vmem:[%s11310_s4 + $0x168] sm:$0xff] }
 0x6f3   :  { %v3815_v47 = vld [vmem:[%s11310_s4 + $0x158] sm:$0xff] }
 0x6f4   :  { %3673 = vmatmul.mubr.f32.vlgmr.msra.gmra.mrb[24].mxu0 %v10275_v20  ;;  %3744 = vmatmul.mubr.f32.vlgmr.msra.gmra.mrb[28].mxu1 %v10275_v20  ;;  %v3778_v20 = vld [vmem:[%s11310_s4 + $0x30] sm:$0xff] }
 0x6f5   :  { %v10450_v14 = vpack.c.bf16 %v3778_v20, %v3774_v2  ;;  %6219 = vmatprep.subr.bf16.mxu1 %v10439_v22  ;;  %6157 = vmatpush1.bf16.msra.mxu0 %v10441_v24  ;;  %v10547_v2 = vpack.c.bf16 %v3803_v52, %v3799_v17  ;;  %v10549_v20 = vpack.c.bf16 %v3800_v36, %v3796_v35  ;;  %v3819_v52 = vld [vmem:[%s11310_s4 + $0x178] sm:$0xff]  ;;  %v3812_v35 = vld [vmem:[%s11310_s4 + $0x140] sm:$0xff] }
 0x6f6   :  { %6159 = vmatprep.subr.bf16.mxu0 %v10464_v60  ;;  %v10608_v17 = vpack.c.bf16 %v3817_v6, %v3813_v42  ;;  %v3816_v36 = vld [vmem:[%s11310_s4 + $0x160] sm:$0xff]  ;;  %v10619_v27 = vpack.c.bf16 %v3819_v52, %v3815_v47  ;;  %v10655_v47 = vpack.c.bf16 %v3827_v50, %v3823_v5  ;;  %v10680_v5 = vpack.c.bf16 %v3833_v49, %v3829_v29  ;;  %v3835_v50 = vld [vmem:[%s11310_s4 + $0x1f8] sm:$0xff]  ;;  %v3830_v29 = vld [vmem:[%s11310_s4 + $0x1d0] sm:$0xff] }
 0x6f7   :  { %6221 = vmatpush1.bf16.msra.mxu1 %v10450_v14  ;;  %v10621_v7 = vpack.c.bf16 %v3816_v36, %v3812_v35  ;;  %v3820_v42 = vld [vmem:[%s11310_s4 + $0x180] sm:$0xff]  ;;  %v3822_v35 = vld [vmem:[%s11310_s4 + $0x190] sm:$0xff] }
 0x6f8   :  { %6223 = vmatprep.subr.bf16.mxu1 %v10475_v54  ;;  %v3824_v6 = vld [vmem:[%s11310_s4 + $0x1a0] sm:$0xff]  ;;  %11780 = vst [vmem:[#allocation7_spill] sm:$0xff] %v10655_v47  ;;  %v3826_v36 = vld [vmem:[%s11310_s4 + $0x1b0] sm:$0xff]  ;;  %11783 = vst [vmem:[#allocation10_spill] sm:$0xff] %v10680_v5 }
 0x6f9   :  { %6161 = vmatpush1.bf16.msra.mxu0 %v10477_v37  ;;  %v10657_v52 = vpack.c.bf16 %v3824_v6, %v3820_v42  ;;  %v10666_v53 = vpack.c.bf16 %v3826_v36, %v3822_v35  ;;  %v3828_v42 = vld [vmem:[%s11310_s4 + $0x1c0] sm:$0xff]  ;;  %v10691_v35 = vpack.c.bf16 %v3835_v50, %v3831_v23  ;;  %v3834_v49 = vld [vmem:[%s11310_s4 + $0x1f0] sm:$0xff]  ;;  %v3837_v23 = vld [vmem:[%s11310_s4 + $0x208] sm:$0xff] }
 0x6fa   :  { %6163 = vmatprep.subr.bf16.mxu0 %v10500_v34  ;;  %v3832_v6 = vld [vmem:[%s11310_s4 + $0x1e0] sm:$0xff]  ;;  %v10702_v58 = vpack.c.bf16 %v3834_v49, %v3830_v29  ;;  %v3841_v50 = vld [vmem:[%s11310_s4 + $0x228] sm:$0xff]  ;;  %v3843_v29 = vld [vmem:[%s11310_s4 + $0x238] sm:$0xff] }
 0x6fb   :  { %6225 = vmatpush1.bf16.msra.mxu1 %v10486_v26  ;;  %11781 = vst [vmem:[#allocation8_spill] sm:$0xff] %v10657_v52  ;;  %11782 = vst [vmem:[#allocation9_spill] sm:$0xff] %v10666_v53  ;;  %v10693_v36 = vpack.c.bf16 %v3832_v6, %v3828_v42  ;;  %v3839_v42 = vld [vmem:[%s11310_s4 + $0x218] sm:$0xff]  ;;  %v10716_v6 = vpack.c.bf16 %v3841_v50, %v3837_v23  ;;  %v3836_v49 = vld [vmem:[%s11310_s4 + $0x200] sm:$0xff] }
 0x6fc   :  { %6227 = vmatprep.subr.bf16.mxu1 %v10511_v8  ;;  %11784 = vst [vmem:[#allocation11_spill] sm:$0xff] %v10691_v35  ;;  %11786 = vst [vmem:[#allocation13_spill] sm:$0xff] %v10702_v58  ;;  %v3838_v23 = vld [vmem:[%s11310_s4 + $0x210] sm:$0xff] }
 0x6fd   :  { %6165 = vmatpush1.bf16.msra.mxu0 %v10513_v18  ;;  %11785 = vst [vmem:[#allocation12_spill] sm:$0xff] %v10693_v36  ;;  %11787 = vst [vmem:[#allocation14_spill] sm:$0xff] %v10716_v6  ;;  %v3842_v50 = vld [vmem:[%s11310_s4 + $0x230] sm:$0xff] }
 0x6fe   :  { %6167 = vmatprep.subr.bf16.mxu0 %v10536_v4 }
 0x6ff   :  { %6229 = vmatpush1.bf16.msra.mxu1 %v10522_v9 }
 0x700   :  { %6231 = vmatprep.subr.bf16.mxu1 %v10547_v2 }
 0x701   :  { %6169 = vmatpush1.bf16.msra.mxu0 %v10549_v20 }
 0x702   :  { %6171 = vmatprep.subr.bf16.mxu0 %v10572_v16 }
 0x703   :  { %6233 = vmatpush1.bf16.msra.mxu1 %v10558_v63 }
 0x704   :  { %6235 = vmatprep.subr.bf16.mxu1 %v10583_v12 }
 0x705   :  { %6173 = vmatpush1.bf16.msra.mxu0 %v10585_v56 }
 0x706   :  { %6175 = vmatprep.subr.bf16.mxu0 %v10608_v17 }
 0x707   :  { %6237 = vmatpush1.bf16.msra.mxu1 %v10594_v40 }
 0x708   :  { %6239 = vmatprep.subr.bf16.mxu1 %v10619_v27 }
 0x709   :  { %6177 = vmatpush1.bf16.msra.mxu0 %v10621_v7 }
 0x70a   :  { %6179 = vmatprep.subr.bf16.mxu0 %v10643_v25 }
 0x70b   :  { %6241 = vmatpush1.bf16.msra.mxu1 %v10630_v10 }
 0x70c   :  { %6243 = vmatprep.subr.bf16.mxu1 %v10655_v47 }
 0x70d   :  { %6181 = vmatpush1.bf16.msra.mxu0 %v10657_v52 }
 0x70e   :  { %6183 = vmatprep.subr.bf16.mxu0 %v10680_v5 }
 0x70f   :  { %6245 = vmatpush1.bf16.msra.mxu1 %v10666_v53 }
 0x710   :  { %6247 = vmatprep.subr.bf16.mxu1 %v10691_v35  ;;  %v10729_v35 = vpack.c.bf16 %v3840_v38, %v3836_v49  ;;  %v3845_v38 = vld [vmem:[%s11310_s4 + $0x248] sm:$0xff] }
 0x711   :  { %6185 = vmatpush1.bf16.msra.mxu0 %v10693_v36  ;;  %v10727_v36 = vpack.c.bf16 %v3843_v29, %v3839_v42  ;;  %v3849_v42 = vld [vmem:[%s11310_s4 + $0x268] sm:$0xff]  ;;  %v3847_v29 = vld [vmem:[%s11310_s4 + $0x258] sm:$0xff] }
 0x712   :  { %11789 = vst [vmem:[#allocation16_spill] sm:$0xff] %v10729_v35  ;;  %6187 = vmatprep.subr.bf16.mxu0 %v10716_v6  ;;  %v10752_v49 = vpack.c.bf16 %v3849_v42, %v3845_v38  ;;  %v3846_v38 = vld [vmem:[%s11310_s4 + $0x250] sm:$0xff] }
 0x713   :  { %6249 = vmatpush1.bf16.msra.mxu1 %v10702_v58  ;;  %11788 = vst [vmem:[#allocation15_spill] sm:$0xff] %v10727_v36  ;;  %v10738_v58 = vpack.c.bf16 %v3842_v50, %v3838_v23  ;;  %v3851_v23 = vld [vmem:[%s11310_s4 + $0x278] sm:$0xff]  ;;  %v3844_v50 = vld [vmem:[%s11310_s4 + $0x240] sm:$0xff]  ;;  %v3850_v42 = vld [vmem:[%s11310_s4 + $0x270] sm:$0xff] }
 0x714   :  { %6251 = vmatprep.subr.bf16.mxu1 %v10727_v36  ;;  %11791 = vst [vmem:[#allocation18_spill] sm:$0xff] %v10752_v49  ;;  %v10763_v36 = vpack.c.bf16 %v3851_v23, %v3847_v29  ;;  %v3857_v29 = vld [vmem:[%s11310_s4 + $0x2a8] sm:$0xff]  ;;  %v3855_v23 = vld [vmem:[%s11310_s4 + $0x298] sm:$0xff] }
 0x715   :  { %11790 = vst [vmem:[#allocation17_spill] sm:$0xff] %v10738_v58  ;;  %6189 = vmatpush1.bf16.msra.mxu0 %v10729_v35  ;;  %v3848_v35 = vld [vmem:[%s11310_s4 + $0x260] sm:$0xff] }
 0x716   :  { %11792 = vst [vmem:[#allocation19_spill] sm:$0xff] %v10763_v36  ;;  %v10765_v6 = vpack.c.bf16 %v3848_v35, %v3844_v50  ;;  %6191 = vmatprep.subr.bf16.mxu0 %v10752_v49  ;;  %v3853_v35 = vld [vmem:[%s11310_s4 + $0x288] sm:$0xff] }
 0x717   :  { %6253 = vmatpush1.bf16.msra.mxu1 %v10738_v58  ;;  %v10774_v58 = vpack.c.bf16 %v3850_v42, %v3846_v38  ;;  %v10788_v50 = vpack.c.bf16 %v3857_v29, %v3853_v35  ;;  %v3859_v38 = vld [vmem:[%s11310_s4 + $0x2b8] sm:$0xff]  ;;  %v3852_v42 = vld [vmem:[%s11310_s4 + $0x280] sm:$0xff]  ;;  %v3854_v35 = vld [vmem:[%s11310_s4 + $0x290] sm:$0xff] }
 0x718   :  { %11793 = vst [vmem:[#allocation20_spill] sm:$0xff] %v10765_v6  ;;  %6255 = vmatprep.subr.bf16.mxu1 %v10763_v36  ;;  %v10799_v36 = vpack.c.bf16 %v3859_v38, %v3855_v23  ;;  %v3858_v29 = vld [vmem:[%s11310_s4 + $0x2b0] sm:$0xff]  ;;  %v3865_v23 = vld [vmem:[%s11310_s4 + $0x2e8] sm:$0xff]  ;;  %v3863_v38 = vld [vmem:[%s11310_s4 + $0x2d8] sm:$0xff] }
 0x719   :  { %11794 = vst [vmem:[#allocation21_spill] sm:$0xff] %v10774_v58  ;;  %6193 = vmatpush1.bf16.msra.mxu0 %v10765_v6  ;;  %11795 = vst [vmem:[#allocation22_spill] sm:$0xff] %v10788_v50  ;;  %v3856_v6 = vld [vmem:[%s11310_s4 + $0x2a0] sm:$0xff] }
 0x71a   :  { %11796 = vst [vmem:[#allocation23_spill] sm:$0xff] %v10799_v36  ;;  %v10801_v49 = vpack.c.bf16 %v3856_v6, %v3852_v42  ;;  %6195 = vmatprep.subr.bf16.mxu0 %v10788_v50  ;;  %v3861_v6 = vld [vmem:[%s11310_s4 + $0x2c8] sm:$0xff] }
 0x71b   :  { %6257 = vmatpush1.bf16.msra.mxu1 %v10774_v58  ;;  %v10810_v58 = vpack.c.bf16 %v3858_v29, %v3854_v35  ;;  %v10824_v42 = vpack.c.bf16 %v3865_v23, %v3861_v6  ;;  %v3867_v35 = vld [vmem:[%s11310_s4 + $0x2f8] sm:$0xff]  ;;  %v3860_v29 = vld [vmem:[%s11310_s4 + $0x2c0] sm:$0xff]  ;;  %v3862_v6 = vld [vmem:[%s11310_s4 + $0x2d0] sm:$0xff] }
 0x71c   :  { %11797 = vst [vmem:[#allocation24_spill] sm:$0xff] %v10801_v49  ;;  %6259 = vmatprep.subr.bf16.mxu1 %v10799_v36  ;;  %v10835_v36 = vpack.c.bf16 %v3867_v35, %v3863_v38  ;;  %v3866_v23 = vld [vmem:[%s11310_s4 + $0x2f0] sm:$0xff]  ;;  %v3873_v38 = vld [vmem:[%s11310_s4 + $0x328] sm:$0xff]  ;;  %v3871_v35 = vld [vmem:[%s11310_s4 + $0x318] sm:$0xff] }
 0x71d   :  { %11798 = vst [vmem:[#allocation25_spill] sm:$0xff] %v10810_v58  ;;  %6197 = vmatpush1.bf16.msra.mxu0 %v10801_v49  ;;  %11799 = vst [vmem:[#allocation26_spill] sm:$0xff] %v10824_v42  ;;  %v3864_v49 = vld [vmem:[%s11310_s4 + $0x2e0] sm:$0xff] }
 0x71e   :  { %11800 = vst [vmem:[#allocation27_spill] sm:$0xff] %v10835_v36  ;;  %v10837_v50 = vpack.c.bf16 %v3864_v49, %v3860_v29  ;;  %6199 = vmatprep.subr.bf16.mxu0 %v10824_v42  ;;  %v3869_v49 = vld [vmem:[%s11310_s4 + $0x308] sm:$0xff] }
 0x71f   :  { %6261 = vmatpush1.bf16.msra.mxu1 %v10810_v58  ;;  %v10846_v58 = vpack.c.bf16 %v3866_v23, %v3862_v6  ;;  %v10860_v29 = vpack.c.bf16 %v3873_v38, %v3869_v49  ;;  %v3875_v6 = vld [vmem:[%s11310_s4 + $0x338] sm:$0xff]  ;;  %v3868_v23 = vld [vmem:[%s11310_s4 + $0x300] sm:$0xff]  ;;  %v3870_v49 = vld [vmem:[%s11310_s4 + $0x310] sm:$0xff] }
 0x720   :  { %11801 = vst [vmem:[#allocation28_spill] sm:$0xff] %v10837_v50  ;;  %6263 = vmatprep.subr.bf16.mxu1 %v10835_v36  ;;  %v10871_v36 = vpack.c.bf16 %v3875_v6, %v3871_v35  ;;  %v3874_v38 = vld [vmem:[%s11310_s4 + $0x330] sm:$0xff]  ;;  %v3881_v35 = vld [vmem:[%s11310_s4 + $0x368] sm:$0xff]  ;;  %v3879_v6 = vld [vmem:[%s11310_s4 + $0x358] sm:$0xff] }
 0x721   :  { %11802 = vst [vmem:[#allocation29_spill] sm:$0xff] %v10846_v58  ;;  %6201 = vmatpush1.bf16.msra.mxu0 %v10837_v50  ;;  %11803 = vst [vmem:[#allocation30_spill] sm:$0xff] %v10860_v29  ;;  %v3872_v50 = vld [vmem:[%s11310_s4 + $0x320] sm:$0xff] }
 0x722   :  { %11804 = vst [vmem:[#allocation31_spill] sm:$0xff] %v10871_v36  ;;  %v10873_v42 = vpack.c.bf16 %v3872_v50, %v3868_v23  ;;  %6203 = vmatprep.subr.bf16.mxu0 %v10860_v29  ;;  %v3877_v50 = vld [vmem:[%s11310_s4 + $0x348] sm:$0xff] }
 0x723   :  { %6265 = vmatpush1.bf16.msra.mxu1 %v10846_v58  ;;  %v10882_v58 = vpack.c.bf16 %v3874_v38, %v3870_v49  ;;  %v10896_v23 = vpack.c.bf16 %v3881_v35, %v3877_v50  ;;  %v3883_v49 = vld [vmem:[%s11310_s4 + $0x378] sm:$0xff]  ;;  %v3876_v38 = vld [vmem:[%s11310_s4 + $0x340] sm:$0xff]  ;;  %v3878_v50 = vld [vmem:[%s11310_s4 + $0x350] sm:$0xff] }
 0x724   :  { %11805 = vst [vmem:[#allocation32_spill] sm:$0xff] %v10873_v42  ;;  %6267 = vmatprep.subr.bf16.mxu1 %v10871_v36  ;;  %v10907_v36 = vpack.c.bf16 %v3883_v49, %v3879_v6  ;;  %v3882_v35 = vld [vmem:[%s11310_s4 + $0x370] sm:$0xff]  ;;  %v3889_v6 = vld [vmem:[%s11310_s4 + $0x3a8] sm:$0xff]  ;;  %v3887_v49 = vld [vmem:[%s11310_s4 + $0x398] sm:$0xff] }
 0x725   :  { %11806 = vst [vmem:[#allocation33_spill] sm:$0xff] %v10882_v58  ;;  %6205 = vmatpush1.bf16.msra.mxu0 %v10873_v42  ;;  %11807 = vst [vmem:[#allocation34_spill] sm:$0xff] %v10896_v23  ;;  %v3880_v42 = vld [vmem:[%s11310_s4 + $0x360] sm:$0xff] }
 0x726   :  { %11808 = vst [vmem:[#allocation35_spill] sm:$0xff] %v10907_v36  ;;  %v10909_v29 = vpack.c.bf16 %v3880_v42, %v3876_v38  ;;  %6207 = vmatprep.subr.bf16.mxu0 %v10896_v23  ;;  %v3885_v42 = vld [vmem:[%s11310_s4 + $0x388] sm:$0xff] }
 0x727   :  { %6269 = vmatpush1.bf16.msra.mxu1 %v10882_v58  ;;  %v10918_v58 = vpack.c.bf16 %v3882_v35, %v3878_v50  ;;  %v10932_v38 = vpack.c.bf16 %v3889_v6, %v3885_v42  ;;  %v3891_v50 = vld [vmem:[%s11310_s4 + $0x3b8] sm:$0xff]  ;;  %v3884_v35 = vld [vmem:[%s11310_s4 + $0x380] sm:$0xff]  ;;  %v3886_v42 = vld [vmem:[%s11310_s4 + $0x390] sm:$0xff] }
 0x728   :  { %11809 = vst [vmem:[#allocation36_spill] sm:$0xff] %v10909_v29  ;;  %6271 = vmatprep.subr.bf16.mxu1 %v10907_v36  ;;  %v10943_v36 = vpack.c.bf16 %v3891_v50, %v3887_v49  ;;  %v3890_v6 = vld [vmem:[%s11310_s4 + $0x3b0] sm:$0xff]  ;;  %v3897_v49 = vld [vmem:[%s11310_s4 + $0x3e8] sm:$0xff]  ;;  %v3895_v50 = vld [vmem:[%s11310_s4 + $0x3d8] sm:$0xff] }
 0x729   :  { %11810 = vst [vmem:[#allocation37_spill] sm:$0xff] %v10918_v58  ;;  %6209 = vmatpush1.bf16.msra.mxu0 %v10909_v29  ;;  %11811 = vst [vmem:[#allocation38_spill] sm:$0xff] %v10932_v38  ;;  %v3888_v29 = vld [vmem:[%s11310_s4 + $0x3a0] sm:$0xff] }
 0x72a   :  { %11812 = vst [vmem:[#allocation39_spill] sm:$0xff] %v10943_v36  ;;  %v10945_v23 = vpack.c.bf16 %v3888_v29, %v3884_v35  ;;  %6211 = vmatprep.subr.bf16.mxu0 %v10932_v38  ;;  %v3893_v29 = vld [vmem:[%s11310_s4 + $0x3c8] sm:$0xff] }
 0x72b   :  { %6273 = vmatpush1.bf16.msra.mxu1 %v10918_v58  ;;  %v10954_v58 = vpack.c.bf16 %v3890_v6, %v3886_v42  ;;  %v10968_v35 = vpack.c.bf16 %v3897_v49, %v3893_v29  ;;  %v3899_v42 = vld [vmem:[%s11310_s4 + $0x3f8] sm:$0xff]  ;;  %v3892_v6 = vld [vmem:[%s11310_s4 + $0x3c0] sm:$0xff]  ;;  %v3894_v29 = vld [vmem:[%s11310_s4 + $0x3d0] sm:$0xff] }
 0x72c   :  { %11813 = vst [vmem:[#allocation40_spill] sm:$0xff] %v10945_v23  ;;  %6275 = vmatprep.subr.bf16.mxu1 %v10943_v36  ;;  %v10979_v36 = vpack.c.bf16 %v3899_v42, %v3895_v50  ;;  %v3898_v49 = vld [vmem:[%s11310_s4 + $0x3f0] sm:$0xff]  ;;  %v4072_v50 = vld [vmem:[%s11308_s2 + $0x28] sm:$0xff] }
 0x72d   :  { %11814 = vst [vmem:[#allocation41_spill] sm:$0xff] %v10954_v58  ;;  %6213 = vmatpush1.bf16.msra.mxu0 %v10945_v23  ;;  %11815 = vst [vmem:[#allocation54_spill] sm:$0xff] %v10968_v35  ;;  %v3896_v23 = vld [vmem:[%s11310_s4 + $0x3e0] sm:$0xff] }
 0x72e   :  { %11816 = vst [vmem:[#allocation55_spill] sm:$0xff] %v10979_v36  ;;  %v10981_v38 = vpack.c.bf16 %v3896_v23, %v3892_v6  ;;  %6215 = vmatprep.subr.bf16.mxu0 %v10968_v35  ;;  %v4068_v23 = vld [vmem:[%s11308_s2 + $0x8] sm:$0xff] }
 0x72f   :  { %6277 = vmatpush1.bf16.msra.mxu1 %v10954_v58  ;;  %v10990_v58 = vpack.c.bf16 %v3898_v49, %v3894_v29  ;;  %v6282_v42 = vpack.c.bf16 %v4072_v50, %v4068_v23 }
 0x730   :  { %11817 = vst [vmem:[#allocation56_spill] sm:$0xff] %v10981_v38  ;;  %6279 = vmatprep.subr.bf16.mxu1 %v10979_v36 }
 0x731   :  { %11818 = vst [vmem:[#allocation57_spill] sm:$0xff] %v10990_v58  ;;  %6217 = vmatpush1.bf16.msra.mxu0 %v10981_v38 }
 0x732   :  { %6283 = vmatprep.subr.bf16.mxu0 %v6282_v42 }
 0x733   :  { %6281 = vmatpush1.bf16.msra.mxu1 %v10990_v58 }
 0x734   :  { %6315 = vmatprep.subr.bf16.mxu1 %v10238_v1 }
 0x7a7   :  { %v3443_v6 = vpop.f32.mrb[22].mxu0  ;;  %v3514_v29 = vpop.f32.mrb[42].mxu1 }
 0x7a8   :  { %v3444_v49 = vadd.f32 %v3443_v6, %v11773_v41  ;;  %v3445_v36 = vpop.f32.mrb[23].mxu0  ;;  %v3516_v38 = vpop.f32.mrb[43].mxu1  ;;  %v3515_v52 = vadd.f32 %v3514_v29, %v8205_v32  ;;  %v11819_v29 = vld [vmem:[#allocation50_spill] sm:$0xff] }
 0x7a9   :  { %v3446_v35 = vadd.f32 %v3445_v36, %v8200_v15  ;;  %v3517_v23 = vadd.f32 %v3516_v38, %v11774_v11 }
 0x7aa   :  { %v3519_v5 = vmul.f32 0.5, %v3444_v49 }
 0x7ab   :  { %v3523_v53 = vmul.f32 0.5, %v3446_v35  ;;  %v3528_v50 = vmul.f32 0.5, %v3517_v23 }
 0x7ac   :  { %6681 = vtanh.f32 %v3519_v5 }
 0x7ad   :  { %6683 = vtanh.f32 %v3523_v53 }
 0x7ae   :  { %6685 = vtanh.f32 %v3515_v52 }
 0x7af   :  { %6687 = vtanh.f32 %v3528_v50  ;;  %v11820_v50 = vld [vmem:[#allocation51_spill] sm:$0xff] }
 0x7b6   :  { %v6682_v1 = vpop.eup %6681 }
 0x7b7   :  { %v6684_v42 = vpop.eup %6683  ;;  %v3521_v58 = vmul.f32 0.5, %v6682_v1 }
 0x7b8   :  { %v3525_v47 = vmul.f32 0.5, %v6684_v42  ;;  %v6686_v41 = vpop.eup %6685 }
 0x7b9   :  { %v3522_v6 = vadd.f32 0.5, %v3521_v58  ;;  %v6688_v53 = vpop.eup %6687 }
 0x7ba   :  { %v3526_v25 = vadd.f32 0.5, %v3525_v47  ;;  %v3530_v52 = vmul.f32 0.5, %v6688_v53 }
 0x7bb   :  { %v3533_v10 = vmul.f32 %v6686_v41, %v3522_v6 }
 0x7bc   :  { %v3532_v36 = vmul.f32 %v3526_v25, %v10246_v44  ;;  %v3531_v42 = vadd.f32 0.5, %v3530_v52 }
 0x7be   :  { %v11007_v35 = vadd.f32 %v3533_v10, %v3532_v36 }
 0x7c0   :  { %6689 = vtanh.f32 %v11007_v35 }
 0x7c7   :  { %v3674_v5 = vpop.f32.mrb[24].mxu0  ;;  %v3745_v38 = vpop.f32.mrb[28].mxu1 }
 0x7c8   :  { %v3750_v49 = vadd.f32 %v3674_v5, %v11819_v29  ;;  %v3676_v23 = vpop.f32.mrb[25].mxu0  ;;  %v3747_v1 = vpop.f32.mrb[29].mxu1  ;;  %v6550_v44 = vadd.f32 %v3745_v38, %v7948_v13 }
 0x7c9   :  { %v3751_v58 = vadd.f32 %v3676_v23, %v11820_v50  ;;  %v6551_v10 = vadd.f32 %v3747_v1, %v7952_v3  ;;  %v4067_v1 = vld [vmem:[%s11308_s2] sm:$0xff] }
 0x7ca   :  { %v6690_v11 = vpop.eup %6689  ;;  %v3754_v47 = vmul.f32 0.5, %v3750_v49 }
 0x7cb   :  { %v3758_v41 = vmul.f32 0.5, %v3751_v58  ;;  %v11012_v6 = vmul.f32 %v6690_v11, %v3531_v42  ;;  %v3763_v25 = vmul.f32 0.5, %v6551_v10 }
 0x7cc   :  { %6691 = vtanh.f32 %v3754_v47  ;;  %v4071_v47 = vld [vmem:[%s11308_s2 + $0x20] sm:$0xff] }
 0x7cd   :  { %6693 = vtanh.f32 %v3758_v41  ;;  %3964 = vmatprep.mubr.f32.mxu0 %v11012_v6  ;;  %4035 = vmatprep.mubr.f32.mxu1 %v11012_v6  ;;  %v4076_v41 = vld [vmem:[%s11308_s2 + $0x48] sm:$0xff] }
 0x7ce   :  { %6695 = vtanh.f32 %v6550_v44 }
 0x7cf   :  { %6697 = vtanh.f32 %v3763_v25  ;;  %v6284_v25 = vpack.c.bf16 %v4071_v47, %v4067_v1  ;;  %v4091_v47 = vld [vmem:[%s11308_s2 + $0xc0] sm:$0xff] }
 0x7d6   :  { %v6692_v36 = vpop.eup %6691 }
 0x7d7   :  { %v6694_v53 = vpop.eup %6693  ;;  %v3756_v52 = vmul.f32 0.5, %v6692_v36 }
 0x7d8   :  { %v3760_v5 = vmul.f32 0.5, %v6694_v53  ;;  %v6696_v11 = vpop.eup %6695 }
 0x7d9   :  { %v3757_v29 = vadd.f32 0.5, %v3756_v52  ;;  %v6698_v50 = vpop.eup %6697  ;;  %v4075_v52 = vld [vmem:[%s11308_s2 + $0x40] sm:$0xff] }
 0x7da   :  { %v3761_v49 = vadd.f32 0.5, %v3760_v5  ;;  %v3765_v58 = vmul.f32 0.5, %v6698_v50  ;;  %v4079_v5 = vld [vmem:[%s11308_s2 + $0x60] sm:$0xff] }
 0x7db   :  { %v3768_v23 = vmul.f32 %v6696_v11, %v3757_v29  ;;  %v4084_v29 = vld [vmem:[%s11308_s2 + $0x88] sm:$0xff]  ;;  %v4087_v50 = vld [vmem:[%s11308_s2 + $0xa0] sm:$0xff] }
 0x7dc   :  { %v3767_v38 = vmul.f32 %v3761_v49, %v10258_v46  ;;  %v4080_v46 = vld [vmem:[%s11308_s2 + $0x68] sm:$0xff]  ;;  %v3766_v44 = vadd.f32 0.5, %v3765_v58  ;;  %v6288_v49 = vpack.c.bf16 %v4079_v5, %v4075_v52  ;;  %v4107_v52 = vld [vmem:[%s11308_s2 + $0x140] sm:$0xff] }
 0x7dd   :  { %v6286_v53 = vpack.c.bf16 %v4080_v46, %v4076_v41  ;;  %v4088_v11 = vld [vmem:[%s11308_s2 + $0xa8] sm:$0xff]  ;;  %v4095_v41 = vld [vmem:[%s11308_s2 + $0xe0] sm:$0xff] }
 0x7de   :  { %v11019_v42 = vadd.f32 %v3768_v23, %v3767_v38  ;;  %v6290_v23 = vpack.c.bf16 %v4088_v11, %v4084_v29  ;;  %v4083_v38 = vld [vmem:[%s11308_s2 + $0x80] sm:$0xff]  ;;  %v4092_v58 = vld [vmem:[%s11308_s2 + $0xc8] sm:$0xff] }
 0x7df   :  { %v4111_v5 = vld [vmem:[%s11308_s2 + $0x160] sm:$0xff]  ;;  %v4116_v29 = vld [vmem:[%s11308_s2 + $0x188] sm:$0xff] }
 0x7e0   :  { %6699 = vtanh.f32 %v11019_v42 }
 0x7ea   :  { %v6700_v10 = vpop.eup %6699 }
 0x7eb   :  { %v11034_v36 = vmul.f32 %v6700_v10, %v3766_v44  ;;  %v4099_v44 = vld [vmem:[%s11308_s2 + $0x100] sm:$0xff] }
 0x7ec   :  { %v4103_v10 = vld [vmem:[%s11308_s2 + $0x120] sm:$0xff] }
 0x7ed   :  { %3965 = vmatmul.mubr.f32.vlgmr.msra.gmra.mrb[26].mxu0 %v11034_v36  ;;  %4036 = vmatmul.mubr.f32.vlgmr.msra.gmra.mrb[44].mxu1 %v11034_v36 }
 0x7ee   :  { %6285 = vmatpush1.bf16.msra.mxu0 %v6284_v25  ;;  %6317 = vmatpush1.bf16.msra.mxu1 %v10273_v62  ;;  %v4096_v62 = vld [vmem:[%s11308_s2 + $0xe8] sm:$0xff] }
 0x7ef   :  { %6287 = vmatprep.subr.bf16.mxu0 %v6286_v53  ;;  %6319 = vmatprep.subr.bf16.mxu1 %v10277_v0  ;;  %v6292_v0 = vpack.c.bf16 %v4087_v50, %v4083_v38  ;;  %v6294_v1 = vpack.c.bf16 %v4096_v62, %v4092_v58  ;;  %v4108_v25 = vld [vmem:[%s11308_s2 + $0x148] sm:$0xff]  ;;  %v4123_v58 = vld [vmem:[%s11308_s2 + $0x1c0] sm:$0xff] }
 0x7f0   :  { %4195 = vmatprep.mubr.f32.mxu0 %v11548_v30  ;;  %4266 = vmatprep.mubr.f32.mxu1 %v11548_v30  ;;  %v4100_v30 = vld [vmem:[%s11308_s2 + $0x108] sm:$0xff]  ;;  %v4127_v62 = vld [vmem:[%s11308_s2 + $0x1e0] sm:$0xff] }
 0x7f1   :  { %v4124_v38 = vld [vmem:[%s11308_s2 + $0x1c8] sm:$0xff] }
 0x7f2   :  { %6289 = vmatpush1.bf16.msra.mxu0 %v6288_v49  ;;  %6321 = vmatpush1.bf16.msra.mxu1 %v10295_v45  ;;  %v4104_v45 = vld [vmem:[%s11308_s2 + $0x128] sm:$0xff]  ;;  %v4115_v49 = vld [vmem:[%s11308_s2 + $0x180] sm:$0xff] }
 0x7f3   :  { %6291 = vmatprep.subr.bf16.mxu0 %v6290_v23  ;;  %6323 = vmatprep.subr.bf16.mxu1 %v10299_v55  ;;  %v6296_v55 = vpack.c.bf16 %v4095_v41, %v4091_v47  ;;  %v6298_v46 = vpack.c.bf16 %v4104_v45, %v4100_v30  ;;  %v4119_v23 = vld [vmem:[%s11308_s2 + $0x1a0] sm:$0xff]  ;;  %v11851_v47 = vld [vmem:[#allocation35_spill] sm:$0xff]  ;;  %v11853_v30 = vld [vmem:[#allocation37_spill] sm:$0xff] }
 0x7f4   :  { %v11852_v41 = vld [vmem:[#allocation36_spill] sm:$0xff]  ;;  %v11854_v45 = vld [vmem:[#allocation38_spill] sm:$0xff] }
 0x7f6   :  { %6293 = vmatpush1.bf16.msra.mxu0 %v6292_v0  ;;  %6325 = vmatpush1.bf16.msra.mxu1 %v10317_v33  ;;  %v4112_v33 = vld [vmem:[%s11308_s2 + $0x168] sm:$0xff]  ;;  %v6312_v0 = vpack.c.bf16 %v4127_v62, %v4123_v58 }
 0x7f7   :  { %6295 = vmatprep.subr.bf16.mxu0 %v6294_v1  ;;  %6327 = vmatprep.subr.bf16.mxu1 %v10321_v43  ;;  %v6300_v43 = vpack.c.bf16 %v4103_v10, %v4099_v44  ;;  %v6302_v53 = vpack.c.bf16 %v4112_v33, %v4108_v25  ;;  %v11850_v1 = vld [vmem:[#allocation34_spill] sm:$0xff]  ;;  %v11857_v44 = vld [vmem:[#allocation41_spill] sm:$0xff]  ;;  %v11859_v25 = vld [vmem:[#allocation55_spill] sm:$0xff] }
 0x7f8   :  { %v11858_v10 = vld [vmem:[#allocation54_spill] sm:$0xff]  ;;  %v11860_v33 = vld [vmem:[#allocation56_spill] sm:$0xff]  ;;  %v11863_v58 = vld [vmem:[#allocation5_spill] sm:$0xff] }
 0x7fa   :  { %6297 = vmatpush1.bf16.msra.mxu0 %v6296_v55  ;;  %6329 = vmatpush1.bf16.msra.mxu1 %v10337_v61  ;;  %v4120_v61 = vld [vmem:[%s11308_s2 + $0x1a8] sm:$0xff]  ;;  %v11855_v55 = vld [vmem:[#allocation39_spill] sm:$0xff] }
 0x7fb   :  { %6299 = vmatprep.subr.bf16.mxu0 %v6298_v46  ;;  %6331 = vmatprep.subr.bf16.mxu1 %v10341_v51  ;;  %v6304_v51 = vpack.c.bf16 %v4111_v5, %v4107_v52  ;;  %v6306_v11 = vpack.c.bf16 %v4120_v61, %v4116_v29  ;;  %v11856_v46 = vld [vmem:[#allocation40_spill] sm:$0xff]  ;;  %v4594_v52 = vld [vmem:[%s11313_s6 + $0x8] sm:$0xff] }
 0x7fe   :  { %6301 = vmatpush1.bf16.msra.mxu0 %v6300_v43  ;;  %6333 = vmatpush1.bf16.msra.mxu1 %v10357_v39  ;;  %v4128_v39 = vld [vmem:[%s11308_s2 + $0x1e8] sm:$0xff] }
 0x7ff   :  { %6303 = vmatprep.subr.bf16.mxu0 %v6302_v53  ;;  %6335 = vmatprep.subr.bf16.mxu1 %v10361_v48  ;;  %v6308_v48 = vpack.c.bf16 %v4119_v23, %v4115_v49  ;;  %v6310_v50 = vpack.c.bf16 %v4128_v39, %v4124_v38  ;;  %v11861_v43 = vld [vmem:[#allocation57_spill] sm:$0xff]  ;;  %v4593_v53 = vld [vmem:[%s11313_s6] sm:$0xff] }
 0x800   :  { %v11205_v5 = vpack.c.bf16 %v4594_v52, %v4593_v53 }
 0x802   :  { %6305 = vmatpush1.bf16.msra.mxu0 %v6304_v51  ;;  %6337 = vmatpush1.bf16.msra.mxu1 %v10377_v28  ;;  %v11821_v28 = vld [vmem:[#allocation46_spill] sm:$0xff]  ;;  %v11862_v51 = vld [vmem:[#allocation4_spill] sm:$0xff] }
 0x803   :  { %6307 = vmatprep.subr.bf16.mxu0 %v6306_v11  ;;  %6339 = vmatprep.subr.bf16.mxu1 %v10381_v19  ;;  %v11822_v19 = vld [vmem:[#allocation47_spill] sm:$0xff] }
 0x806   :  { %6309 = vmatpush1.bf16.msra.mxu0 %v6308_v48  ;;  %6341 = vmatpush1.bf16.msra.mxu1 %v10397_v21  ;;  %v11823_v21 = vld [vmem:[#allocation7_spill] sm:$0xff] }
 0x807   :  { %6311 = vmatprep.subr.bf16.mxu0 %v6310_v50  ;;  %6343 = vmatprep.subr.bf16.mxu1 %v10401_v57  ;;  %v11824_v57 = vld [vmem:[#allocation8_spill] sm:$0xff] }
 0x80a   :  { %6313 = vmatpush1.bf16.msra.mxu0 %v6312_v0  ;;  %6345 = vmatpush1.bf16.msra.mxu1 %v10411_v31  ;;  %v11825_v31 = vld [vmem:[#allocation9_spill] sm:$0xff] }
 0x80b   :  { %6347 = vmatprep.subr.bf16.mxu0 %v10428_v59  ;;  %6411 = vmatprep.subr.bf16.mxu1 %v10439_v22  ;;  %v11826_v59 = vld [vmem:[#allocation10_spill] sm:$0xff]  ;;  %v11827_v22 = vld [vmem:[#allocation11_spill] sm:$0xff] }
 0x80d   :  { %4196 = vmatmul.mubr.f32.vlgmr.msra.gmra.mrb[28].mxu0 %v11034_v36  ;;  %4267 = vmatmul.mubr.f32.vlgmr.msra.gmra.mrb[30].mxu1 %v11034_v36  ;;  %v11849_v36 = vld [vmem:[#allocation33_spill] sm:$0xff] }
 0x80e   :  { %6349 = vmatpush1.bf16.msra.mxu0 %v10441_v24  ;;  %6413 = vmatpush1.bf16.msra.mxu1 %v10450_v14  ;;  %v11828_v24 = vld [vmem:[#allocation12_spill] sm:$0xff]  ;;  %v11829_v14 = vld [vmem:[#allocation13_spill] sm:$0xff] }
 0x80f   :  { %6351 = vmatprep.subr.bf16.mxu0 %v10464_v60  ;;  %6415 = vmatprep.subr.bf16.mxu1 %v10475_v54  ;;  %v11830_v60 = vld [vmem:[#allocation14_spill] sm:$0xff]  ;;  %v11831_v54 = vld [vmem:[#allocation15_spill] sm:$0xff] }
 0x812   :  { %6353 = vmatpush1.bf16.msra.mxu0 %v10477_v37  ;;  %6417 = vmatpush1.bf16.msra.mxu1 %v10486_v26  ;;  %v11832_v37 = vld [vmem:[#allocation16_spill] sm:$0xff]  ;;  %v11833_v26 = vld [vmem:[#allocation17_spill] sm:$0xff] }
 0x813   :  { %6355 = vmatprep.subr.bf16.mxu0 %v10500_v34  ;;  %6419 = vmatprep.subr.bf16.mxu1 %v10511_v8  ;;  %v11834_v34 = vld [vmem:[#allocation18_spill] sm:$0xff]  ;;  %v11835_v8 = vld [vmem:[#allocation19_spill] sm:$0xff] }
 0x816   :  { %6357 = vmatpush1.bf16.msra.mxu0 %v10513_v18  ;;  %6421 = vmatpush1.bf16.msra.mxu1 %v10522_v9  ;;  %v11836_v18 = vld [vmem:[#allocation20_spill] sm:$0xff]  ;;  %v11837_v9 = vld [vmem:[#allocation21_spill] sm:$0xff] }
 0x817   :  { %6359 = vmatprep.subr.bf16.mxu0 %v10536_v4  ;;  %6423 = vmatprep.subr.bf16.mxu1 %v10547_v2  ;;  %v11838_v4 = vld [vmem:[#allocation22_spill] sm:$0xff]  ;;  %v11839_v2 = vld [vmem:[#allocation23_spill] sm:$0xff] }
 0x81a   :  { %6361 = vmatpush1.bf16.msra.mxu0 %v10549_v20  ;;  %6425 = vmatpush1.bf16.msra.mxu1 %v10558_v63  ;;  %v11840_v20 = vld [vmem:[#allocation24_spill] sm:$0xff]  ;;  %v11841_v63 = vld [vmem:[#allocation25_spill] sm:$0xff] }
 0x81b   :  { %6363 = vmatprep.subr.bf16.mxu0 %v10572_v16  ;;  %6427 = vmatprep.subr.bf16.mxu1 %v10583_v12  ;;  %v11842_v16 = vld [vmem:[#allocation26_spill] sm:$0xff]  ;;  %v11843_v12 = vld [vmem:[#allocation27_spill] sm:$0xff] }
 0x81e   :  { %6365 = vmatpush1.bf16.msra.mxu0 %v10585_v56  ;;  %6429 = vmatpush1.bf16.msra.mxu1 %v10594_v40  ;;  %v11844_v56 = vld [vmem:[#allocation28_spill] sm:$0xff]  ;;  %v11845_v40 = vld [vmem:[#allocation29_spill] sm:$0xff] }
 0x81f   :  { %6367 = vmatprep.subr.bf16.mxu0 %v10608_v17  ;;  %6431 = vmatprep.subr.bf16.mxu1 %v10619_v27  ;;  %v11846_v17 = vld [vmem:[#allocation30_spill] sm:$0xff]  ;;  %v11847_v27 = vld [vmem:[#allocation31_spill] sm:$0xff] }
 0x822   :  { %6369 = vmatpush1.bf16.msra.mxu0 %v10621_v7  ;;  %6433 = vmatpush1.bf16.msra.mxu1 %v11821_v28  ;;  %v11848_v7 = vld [vmem:[#allocation32_spill] sm:$0xff] }
 0x823   :  { %6371 = vmatprep.subr.bf16.mxu0 %v11822_v19  ;;  %6435 = vmatprep.subr.bf16.mxu1 %v11823_v21 }
 0x826   :  { %6373 = vmatpush1.bf16.msra.mxu0 %v11824_v57  ;;  %6437 = vmatpush1.bf16.msra.mxu1 %v11825_v31 }
 0x827   :  { %6375 = vmatprep.subr.bf16.mxu0 %v11826_v59  ;;  %6439 = vmatprep.subr.bf16.mxu1 %v11827_v22 }
 0x82a   :  { %6377 = vmatpush1.bf16.msra.mxu0 %v11828_v24  ;;  %6441 = vmatpush1.bf16.msra.mxu1 %v11829_v14 }
 0x82b   :  { %6379 = vmatprep.subr.bf16.mxu0 %v11830_v60  ;;  %6443 = vmatprep.subr.bf16.mxu1 %v11831_v54 }
 0x82e   :  { %6381 = vmatpush1.bf16.msra.mxu0 %v11832_v37  ;;  %6445 = vmatpush1.bf16.msra.mxu1 %v11833_v26 }
 0x82f   :  { %6383 = vmatprep.subr.bf16.mxu0 %v11834_v34  ;;  %6447 = vmatprep.subr.bf16.mxu1 %v11835_v8  ;;  %v11864_v8 = vld [vmem:[#allocation52_spill] sm:$0xff] }
 0x832   :  { %6385 = vmatpush1.bf16.msra.mxu0 %v11836_v18  ;;  %6449 = vmatpush1.bf16.msra.mxu1 %v11837_v9 }
 0x833   :  { %6387 = vmatprep.subr.bf16.mxu0 %v11838_v4  ;;  %6451 = vmatprep.subr.bf16.mxu1 %v11839_v2 }
 0x836   :  { %6389 = vmatpush1.bf16.msra.mxu0 %v11840_v20  ;;  %6453 = vmatpush1.bf16.msra.mxu1 %v11841_v63  ;;  %v11865_v20 = vld [vmem:[#allocation53_spill] sm:$0xff] }
 0x837   :  { %6391 = vmatprep.subr.bf16.mxu0 %v11842_v16  ;;  %6455 = vmatprep.subr.bf16.mxu1 %v11843_v12 }
 0x83a   :  { %6393 = vmatpush1.bf16.msra.mxu0 %v11844_v56  ;;  %6457 = vmatpush1.bf16.msra.mxu1 %v11845_v40 }
 0x83b   :  { %6395 = vmatprep.subr.bf16.mxu0 %v11846_v17  ;;  %6459 = vmatprep.subr.bf16.mxu1 %v11847_v27 }
 0x83e   :  { %6397 = vmatpush1.bf16.msra.mxu0 %v11848_v7  ;;  %6461 = vmatpush1.bf16.msra.mxu1 %v11849_v36 }
 0x83f   :  { %6399 = vmatprep.subr.bf16.mxu0 %v11850_v1  ;;  %6463 = vmatprep.subr.bf16.mxu1 %v11851_v47 }
 0x842   :  { %6401 = vmatpush1.bf16.msra.mxu0 %v11852_v41  ;;  %6465 = vmatpush1.bf16.msra.mxu1 %v11853_v30 }
 0x843   :  { %6403 = vmatprep.subr.bf16.mxu0 %v11854_v45  ;;  %6467 = vmatprep.subr.bf16.mxu1 %v11855_v55 }
 0x846   :  { %6405 = vmatpush1.bf16.msra.mxu0 %v11856_v46  ;;  %6469 = vmatpush1.bf16.msra.mxu1 %v11857_v44 }
 0x847   :  { %6407 = vmatprep.subr.bf16.mxu0 %v11858_v10  ;;  %6471 = vmatprep.subr.bf16.mxu1 %v11859_v25  ;;  %v4596_v25 = vld [vmem:[%s11313_s6 + $0x18] sm:$0xff] }
 0x84a   :  { %6409 = vmatpush1.bf16.msra.mxu0 %v11860_v33  ;;  %6473 = vmatpush1.bf16.msra.mxu1 %v11861_v43 }
 0x84b   :  { %6475 = vmatprep.subr.bf16.mxu0 %v11205_v5 }
 0x8c0   :  { %v3966_v29 = vpop.f32.mrb[26].mxu0  ;;  %v4037_v61 = vpop.f32.mrb[44].mxu1 }
 0x8c1   :  { %v3967_v11 = vadd.f32 %v3966_v29, %v11862_v51  ;;  %v3968_v49 = vpop.f32.mrb[27].mxu0  ;;  %v4039_v23 = vpop.f32.mrb[45].mxu1  ;;  %v4038_v50 = vadd.f32 %v4037_v61, %v8205_v32  ;;  %v4598_v29 = vld [vmem:[%s11313_s6 + $0x28] sm:$0xff]  ;;  %v11866_v61 = vld [vmem:[#allocation6_spill] sm:$0xff] }
 0x8c2   :  { %v3969_v38 = vadd.f32 %v3968_v49, %v8200_v15  ;;  %v4040_v62 = vadd.f32 %v4039_v23, %v11863_v58  ;;  %v4599_v49 = vld [vmem:[%s11313_s6 + $0x30] sm:$0xff]  ;;  %v4600_v23 = vld [vmem:[%s11313_s6 + $0x38] sm:$0xff] }
 0x8c3   :  { %v4042_v39 = vmul.f32 0.5, %v3967_v11 }
 0x8c4   :  { %v4046_v48 = vmul.f32 0.5, %v3969_v38  ;;  %v4051_v0 = vmul.f32 0.5, %v4040_v62  ;;  %v6486_v38 = vpack.c.bf16 %v4600_v23, %v4599_v49  ;;  %v4604_v62 = vld [vmem:[%s11313_s6 + $0x58] sm:$0xff] }
 0x8c5   :  { %6701 = vtanh.f32 %v4042_v39  ;;  %v4601_v39 = vld [vmem:[%s11313_s6 + $0x40] sm:$0xff] }
 0x8c6   :  { %6703 = vtanh.f32 %v4046_v48 }
 0x8c7   :  { %6705 = vtanh.f32 %v4038_v50  ;;  %v4603_v50 = vld [vmem:[%s11313_s6 + $0x50] sm:$0xff] }
 0x8c8   :  { %6707 = vtanh.f32 %v4051_v0  ;;  %v6494_v0 = vpack.c.bf16 %v4604_v62, %v4603_v50 }
 0x8cf   :  { %v6702_v28 = vpop.eup %6701 }
 0x8d0   :  { %v6704_v19 = vpop.eup %6703  ;;  %v4044_v21 = vmul.f32 0.5, %v6702_v28  ;;  %v4605_v28 = vld [vmem:[%s11313_s6 + $0x60] sm:$0xff] }
 0x8d1   :  { %v4048_v57 = vmul.f32 0.5, %v6704_v19  ;;  %v6706_v59 = vpop.eup %6705  ;;  %v4606_v19 = vld [vmem:[%s11313_s6 + $0x68] sm:$0xff] }
 0x8d2   :  { %v4045_v31 = vadd.f32 0.5, %v4044_v21  ;;  %v6708_v54 = vpop.eup %6707  ;;  %v6498_v21 = vpack.c.bf16 %v4606_v19, %v4605_v28 }
 0x8d3   :  { %v4049_v22 = vadd.f32 0.5, %v4048_v57  ;;  %v4053_v37 = vmul.f32 0.5, %v6708_v54  ;;  %v4607_v57 = vld [vmem:[%s11313_s6 + $0x70] sm:$0xff]  ;;  %v11870_v54 = vld [vmem:[#allocation45_spill] sm:$0xff] }
 0x8d4   :  { %v4056_v24 = vmul.f32 %v6706_v59, %v4045_v31  ;;  %v4608_v31 = vld [vmem:[%s11313_s6 + $0x78] sm:$0xff] }
 0x8d5   :  { %v4055_v14 = vmul.f32 %v4049_v22, %v11007_v35  ;;  %v4054_v2 = vadd.f32 0.5, %v4053_v37  ;;  %v6502_v59 = vpack.c.bf16 %v4608_v31, %v4607_v57  ;;  %v11867_v22 = vld [vmem:[#allocation42_spill] sm:$0xff] }
 0x8d7   :  { %v11213_v60 = vadd.f32 %v4056_v24, %v4055_v14  ;;  %v11868_v24 = vld [vmem:[#allocation43_spill] sm:$0xff]  ;;  %v11869_v14 = vld [vmem:[#allocation44_spill] sm:$0xff] }
 0x8d9   :  { %6709 = vtanh.f32 %v11213_v60 }
 0x8e0   :  { %v4197_v26 = vpop.f32.mrb[28].mxu0  ;;  %v4268_v34 = vpop.f32.mrb[30].mxu1 }
 0x8e1   :  { %v4273_v18 = vadd.f32 %v4197_v26, %v11864_v8  ;;  %v4199_v9 = vpop.f32.mrb[29].mxu0  ;;  %v4270_v4 = vpop.f32.mrb[31].mxu1  ;;  %v6552_v35 = vadd.f32 %v4268_v34, %v7948_v13 }
 0x8e2   :  { %v4274_v63 = vadd.f32 %v4199_v9, %v11865_v20  ;;  %v6553_v17 = vadd.f32 %v4270_v4, %v7952_v3  ;;  %v4595_v3 = vld [vmem:[%s11313_s6 + $0x10] sm:$0xff] }
 0x8e3   :  { %v6710_v16 = vpop.eup %6709  ;;  %v4277_v12 = vmul.f32 0.5, %v4273_v18  ;;  %v6478_v52 = vpack.c.bf16 %v4596_v25, %v4595_v3 }
 0x8e4   :  { %v4281_v56 = vmul.f32 0.5, %v4274_v63  ;;  %v11218_v40 = vmul.f32 %v6710_v16, %v4054_v2  ;;  %v4286_v27 = vmul.f32 0.5, %v6553_v17 }
 0x8e5   :  { %6711 = vtanh.f32 %v4277_v12 }
 0x8e6   :  { %6713 = vtanh.f32 %v4281_v56  ;;  %4487 = vmatprep.mubr.f32.mxu0 %v11218_v40  ;;  %4558 = vmatprep.mubr.f32.mxu1 %v11218_v40 }
 0x8e7   :  { %6715 = vtanh.f32 %v6552_v35 }
 0x8e8   :  { %6717 = vtanh.f32 %v4286_v27 }
 0x8ef   :  { %v6712_v7 = vpop.eup %6711 }
 0x8f0   :  { %v6714_v36 = vpop.eup %6713  ;;  %v4279_v1 = vmul.f32 0.5, %v6712_v7 }
 0x8f1   :  { %v4283_v47 = vmul.f32 0.5, %v6714_v36  ;;  %v6716_v30 = vpop.eup %6715 }
 0x8f2   :  { %v4280_v41 = vadd.f32 0.5, %v4279_v1  ;;  %v6718_v44 = vpop.eup %6717 }
 0x8f3   :  { %v4284_v45 = vadd.f32 0.5, %v4283_v47  ;;  %v4288_v10 = vmul.f32 0.5, %v6718_v44 }
 0x8f4   :  { %v4291_v55 = vmul.f32 %v6716_v30, %v4280_v41 }
 0x8f5   :  { %v4290_v13 = vmul.f32 %v4284_v45, %v11019_v42  ;;  %v4289_v33 = vadd.f32 0.5, %v4288_v10  ;;  %v4597_v42 = vld [vmem:[%s11313_s6 + $0x20] sm:$0xff] }
 0x8f6   :  { %v6482_v11 = vpack.c.bf16 %v4598_v29, %v4597_v42 }
 0x8f7   :  { %v4292_v46 = vadd.f32 %v4291_v55, %v4290_v13 }
 0x8f9   :  { %6719 = vtanh.f32 %v4292_v46 }
 0x903   :  { %v6720_v43 = vpop.eup %6719 }
 0x904   :  { %v4294_v53 = vmul.f32 %v6720_v43, %v4289_v33 }
 0x906   :  { %4488 = vmatmul.mubr.f32.vlgmr.msra.gmra.mrb[30].mxu0 %v4294_v53  ;;  %4559 = vmatmul.mubr.f32.vlgmr.msra.gmra.mrb[46].mxu1 %v4294_v53 }
 0x907   :  { %6477 = vmatpush3.bf16.msra.mxu0 %v11205_v5  ;;  %4862 = vmatprep.mubr.f32.mxu0 %v11866_v61  ;;  %v4602_v5 = vld [vmem:[%s11313_s6 + $0x48] sm:$0xff] }
 0x908   :  { %6479 = vmatprep.subr.bf16.mxu0 %v6478_v52  ;;  %v6490_v48 = vpack.c.bf16 %v4602_v5, %v4601_v39 }
 0x90b   :  { %6481 = vmatpush3.bf16.msra.mxu0 %v6478_v52 }
 0x90c   :  { %6483 = vmatprep.subr.bf16.mxu0 %v6482_v11 }
 0x90f   :  { %6485 = vmatpush3.bf16.msra.mxu0 %v6482_v11 }
 0x910   :  { %6487 = vmatprep.subr.bf16.mxu0 %v6486_v38 }
 0x913   :  { %6489 = vmatpush3.bf16.msra.mxu0 %v6486_v38 }
 0x914   :  { %6491 = vmatprep.subr.bf16.mxu0 %v6490_v48 }
 0x917   :  { %6493 = vmatpush3.bf16.msra.mxu0 %v6490_v48 }
 0x918   :  { %6495 = vmatprep.subr.bf16.mxu0 %v6494_v0 }
 0x91b   :  { %6497 = vmatpush3.bf16.msra.mxu0 %v6494_v0 }
 0x91c   :  { %6499 = vmatprep.subr.bf16.mxu0 %v6498_v21 }
 0x91f   :  { %6501 = vmatpush3.bf16.msra.mxu0 %v6498_v21 }
 0x920   :  { %6503 = vmatprep.subr.bf16.mxu0 %v6502_v59 }
 0x923   :  { %6505 = vmatpush3.bf16.msra.mxu0 %v6502_v59 }
 0x926   :  { %4863 = vmatmul.mubr.f32.vlgmr.msra.gmra.mrb[32].mxu0 %v11867_v22 }
 0x927   :  { %4865 = vmatprep.mubr.f32.mxu0 %v11868_v24 }
 0x92a   :  { %4866 = vmatmul.mubr.f32.gmra.mrb[34].mxu0 %v11869_v14 }
 0x92b   :  { %4868 = vmatprep.mubr.f32.mxu0 %v11870_v54 }
 0x92e   :  { %4869 = vmatmul.mubr.f32.gmra.mrb[36].mxu0 %v11012_v6 }
 0x92f   :  { %4871 = vmatprep.mubr.f32.mxu0 %v11218_v40 }
 0x9d9   :  { %v4489_v37 = vpop.f32.mrb[30].mxu0  ;;  %v4560_v26 = vpop.f32.mrb[46].mxu1 }
 0x9da   :  { %v4490_v34 = vadd.f32 %v4489_v37, %v11862_v51  ;;  %v4491_v8 = vpop.f32.mrb[31].mxu0  ;;  %v4562_v18 = vpop.f32.mrb[47].mxu1  ;;  %v4561_v20 = vadd.f32 %v4560_v26, %v8205_v32 }
 0x9db   :  { %v4492_v9 = vadd.f32 %v4491_v8, %v8200_v15  ;;  %v4563_v63 = vadd.f32 %v4562_v18, %v11863_v58  ;;  %v4805_v58 = vld [vmem:[%s11314_s7] ss:$0 sm:$0xff] }
 0x9dc   :  { %v4565_v4 = vmul.f32 0.5, %v4490_v34 }
 0x9dd   :  { %v4569_v2 = vmul.f32 0.5, %v4492_v9  ;;  %v4574_v6 = vmul.f32 0.5, %v4563_v63 }
 0x9de   :  { %6721 = vtanh.f32 %v4565_v4 }
 0x9df   :  { %6723 = vtanh.f32 %v4569_v2 }
 0x9e0   :  { %6725 = vtanh.f32 %v4561_v20 }
 0x9e1   :  { %6727 = vtanh.f32 %v4574_v6 }
 0x9e8   :  { %v6722_v16 = vpop.eup %6721 }
 0x9e9   :  { %v6724_v12 = vpop.eup %6723  ;;  %v4567_v56 = vmul.f32 0.5, %v6722_v16 }
 0x9ea   :  { %v4571_v40 = vmul.f32 0.5, %v6724_v12  ;;  %v6726_v35 = vpop.eup %6725 }
 0x9eb   :  { %v4568_v51 = vadd.f32 0.5, %v4567_v56  ;;  %v6728_v36 = vpop.eup %6727 }
 0x9ec   :  { %v4572_v17 = vadd.f32 0.5, %v4571_v40  ;;  %v4576_v32 = vmul.f32 0.5, %v6728_v36 }
 0x9ed   :  { %v4579_v27 = vmul.f32 %v6726_v35, %v4568_v51 }
 0x9ee   :  { %v4578_v15 = vmul.f32 %v4572_v17, %v11213_v60  ;;  %v4577_v30 = vadd.f32 0.5, %v4576_v32 }
 0x9f0   :  { %v4580_v7 = vadd.f32 %v4579_v27, %v4578_v15 }
 0x9f2   :  { %6729 = vtanh.f32 %v4580_v7 }
 0x9f9   :  { %v4864_v1 = vpop.f32.mrb[32].mxu0 }
 0x9fa   :  { %v4688_v47 = vadd.f32 %v4864_v1, %v4805_v58  ;;  %v4682_v41 = vpop.f32.mrb[33].mxu0 }
 0x9fb   :  { %v4683_v46 = vadd.f32 %v4805_v58, %v4682_v41 }
 0x9fc   :  { %v6730_v45 = vpop.eup %6729  ;;  %4723 = vmax.xlane.f32.xlu0 %v4688_v47 }
 0x9fd   :  { %v4867_v55 = vpop.f32.mrb[34].mxu0  ;;  %v4582_v13 = vmul.f32 %v6730_v45, %v4577_v30 }
 0x9fe   :  { %v4698_v44 = vadd.f32 %v4867_v55, %v4805_v58  ;;  %v4692_v10 = vpop.f32.mrb[35].mxu0 }
 0x9ff   :  { %4872 = vmatmul.mubr.f32.gmra.mrb[38].mxu0 %v4582_v13  ;;  %v4693_v3 = vadd.f32 %v4805_v58, %v4692_v10 }
 0xa00   :  { %4727 = vmax.xlane.f32.xlu1 %v4698_v44  ;;  %4721 = vmax.xlane.f32.xlu0 %v4683_v46 }
 0xa01   :  { %v4870_v60 = vpop.f32.mrb[36].mxu0 }
 0xa02   :  { %v4702_v25 = vpop.f32.mrb[37].mxu0  ;;  %v4708_v43 = vadd.f32 %v4870_v60, %v4805_v58 }
 0xa03   :  { %v4703_v33 = vadd.f32 %v4805_v58, %v4702_v25 }
 0xa04   :  { %4725 = vmax.xlane.f32.xlu1 %v4693_v3 }
 0xa05   :  { %4729 = vmax.xlane.f32.xlu0 %v4703_v33 }
 0xa08   :  { %4731 = vmax.xlane.f32.xlu1 %v4708_v43 }
 0xa89   :  { %v4724_v53 = vpop.xlane.xlu0 %4723 }
 0xa8a   :  { %v4738_v61 = vsub.f32 %v4688_v47, %v4724_v53 }
 0xa8c   :  { %v4747_v49 = vmul.f32 1.442695, %v4738_v61 }
 0xa8d   :  { %v4728_v52 = vpop.xlane.xlu1 %4727  ;;  %v4722_v42 = vpop.xlane.xlu0 %4721 }
 0xa8e   :  { %v4737_v11 = vsub.f32 %v4683_v46, %v4722_v42  ;;  %v4740_v23 = vsub.f32 %v4698_v44, %v4728_v52  ;;  %6731 = vpow2.f32 %v4747_v49 }
 0xa90   :  { %v4745_v38 = vmul.f32 1.442695, %v4737_v11  ;;  %v4751_v50 = vmul.f32 1.442695, %v4740_v23 }
 0xa91   :  { %v4726_v29 = vpop.xlane.xlu1 %4725 }
 0xa92   :  { %v4739_v39 = vsub.f32 %v4693_v3, %v4726_v29  ;;  %v4730_v48 = vpop.xlane.xlu0 %4729  ;;  %6733 = vpow2.f32 %v4745_v38 }
 0xa93   :  { %v4741_v28 = vsub.f32 %v4703_v33, %v4730_v48  ;;  %6735 = vpow2.f32 %v4751_v50 }
 0xa94   :  { %v4749_v0 = vmul.f32 1.442695, %v4739_v39 }
 0xa95   :  { %v4732_v5 = vpop.xlane.xlu1 %4731  ;;  %v4753_v57 = vmul.f32 1.442695, %v4741_v28 }
 0xa96   :  { %v4742_v62 = vsub.f32 %v4708_v43, %v4732_v5  ;;  %6737 = vpow2.f32 %v4749_v0 }
 0xa98   :  { %v4755_v19 = vmul.f32 1.442695, %v4742_v62  ;;  %v6732_v24 = vpop.eup %6731 }
 0xa9a   :  { %6739 = vpow2.f32 %v4755_v19 }
 0xa9b   :  { %6741 = vpow2.f32 %v4753_v57 }
 0xa9c   :  { %v6734_v14 = vpop.eup %6733 }
 0xa9d   :  { %v6736_v54 = vpop.eup %6735 }
 0xaa0   :  { %v6738_v37 = vpop.eup %6737 }
 0xaa4   :  { %v6740_v26 = vpop.eup %6739 }
 0xaa5   :  { %v6742_v34 = vpop.eup %6741 }
 0xad2   :  { %v4873_v21 = vpop.f32.mrb[38].mxu0 }
 0xad3   :  { %v4718_v31 = vadd.f32 %v4873_v21, %v4805_v58  ;;  %v4712_v59 = vpop.f32.mrb[39].mxu0 }
 0xad4   :  { %v4713_v22 = vadd.f32 %v4805_v58, %v4712_v59 }
 0xad5   :  { %4735 = vmax.xlane.f32.xlu1 %v4718_v31 }
 0xad6   :  { %4733 = vmax.xlane.f32.xlu0 %v4713_v22 }
 0xad9   :  { %4763 = vadd.xlane.f32.xlu1 %v6732_v24 }
 0xada   :  { %4761 = vadd.xlane.f32.xlu0 %v6734_v14 }
 0xadd   :  { %4767 = vadd.xlane.f32.xlu1 %v6736_v54 }
 0xade   :  { %4765 = vadd.xlane.f32.xlu0 %v6738_v37 }
 0xae1   :  { %4771 = vadd.xlane.f32.xlu1 %v6740_v26 }
 0xae2   :  { %4769 = vadd.xlane.f32.xlu0 %v6742_v34 }
 0xb62   :  { %v4736_v8 = vpop.xlane.xlu1 %4735 }
 0xb63   :  { %v4744_v18 = vsub.f32 %v4718_v31, %v4736_v8  ;;  %v4734_v9 = vpop.xlane.xlu0 %4733 }
 0xb64   :  { %v4743_v4 = vsub.f32 %v4713_v22, %v4734_v9 }
 0xb65   :  { %v4759_v2 = vmul.f32 1.442695, %v4744_v18 }
 0xb66   :  { %v4757_v20 = vmul.f32 1.442695, %v4743_v4  ;;  %v4764_v63 = vpop.xlane.xlu1 %4763 }
 0xb67   :  { %6743 = vpow2.f32 %v4759_v2  ;;  %v4762_v6 = vpop.xlane.xlu0 %4761 }
 0xb68   :  { %6745 = vpow2.f32 %v4757_v20 }
 0xb69   :  { %6747 = vrcp.f32 %v4764_v63 }
 0xb6a   :  { %6749 = vrcp.f32 %v4762_v6  ;;  %v4768_v16 = vpop.xlane.xlu1 %4767 }
 0xb6b   :  { %6751 = vrcp.f32 %v4768_v16  ;;  %v4766_v12 = vpop.xlane.xlu0 %4765 }
 0xb6c   :  { %6753 = vrcp.f32 %v4766_v12 }
 0xb6e   :  { %v4772_v56 = vpop.xlane.xlu1 %4771 }
 0xb6f   :  { %6755 = vrcp.f32 %v4772_v56  ;;  %v4770_v40 = vpop.xlane.xlu0 %4769 }
 0xb70   :  { %6757 = vrcp.f32 %v4770_v40 }
 0xb71   :  { %v6744_v51 = vpop.eup %6743 }
 0xb72   :  { %v6746_v35 = vpop.eup %6745  ;;  %4775 = vadd.xlane.f32.xlu1 %v6744_v51 }
 0xb73   :  { %v6748_v17 = vpop.eup %6747  ;;  %4773 = vadd.xlane.f32.xlu0 %v6746_v35 }
 0xb74   :  { %v6750_v27 = vpop.eup %6749  ;;  %v4780_v15 = vmul.f32 %v6748_v17, %v6732_v24 }
 0xb75   :  { %v6752_v7 = vpop.eup %6751  ;;  %v4778_v36 = vmul.f32 %v6750_v27, %v6734_v14 }
 0xb76   :  { %v6754_v32 = vpop.eup %6753  ;;  %4794 = vst [vmem:[%s11315_s8 + $0x8] sm:$0xff] %v4780_v15  ;;  %v4784_v58 = vmul.f32 %v6752_v7, %v6736_v54 }
 0xb77   :  { %4793 = vst [vmem:[%s11315_s8] sm:$0xff] %v4778_v36  ;;  %v4782_v1 = vmul.f32 %v6754_v32, %v6738_v37 }
 0xb78   :  { %4796 = vst [vmem:[%s11315_s8 + $0x18] sm:$0xff] %v4784_v58 }
 0xb79   :  { %v6756_v47 = vpop.eup %6755  ;;  %4795 = vst [vmem:[%s11315_s8 + $0x10] sm:$0xff] %v4782_v1 }
 0xb7a   :  { %v6758_v41 = vpop.eup %6757  ;;  %v4788_v30 = vmul.f32 %v6756_v47, %v6740_v26 }
 0xb7b   :  { %v4786_v45 = vmul.f32 %v6758_v41, %v6742_v34 }
 0xb7c   :  { %4798 = vst [vmem:[%s11315_s8 + $0x28] sm:$0xff] %v4788_v30 }
 0xb7d   :  { %4797 = vst [vmem:[%s11315_s8 + $0x20] sm:$0xff] %v4786_v45 }
 0xbff   :  { %v4776_v55 = vpop.xlane.xlu1 %4775 }
 0xc00   :  { %6759 = vrcp.f32 %v4776_v55  ;;  %v4774_v13 = vpop.xlane.xlu0 %4773 }
 0xc01   :  { %6761 = vrcp.f32 %v4774_v13 }
 0xc0a   :  { %v6760_v46 = vpop.eup %6759 }
 0xc0b   :  { %v6762_v44 = vpop.eup %6761  ;;  %v4792_v10 = vmul.f32 %v6760_v46, %v6744_v51 }
 0xc0c   :  { %v4790_v60 = vmul.f32 %v6762_v44, %v6746_v35 }
 0xc0d   :  { %4800 = vst [vmem:[%s11315_s8 + $0x38] sm:$0xff] %v4792_v10 }
 0xc0e   :  { %4799 = vst [vmem:[%s11315_s8 + $0x30] sm:$0xff] %v4790_v60 }

</bundles_post_ra>
